<compile_context>
chip_gen: v6e
topology: v6e:2x2x1
jax: 0.10.0
libtpu: 0.0.40
codegen_flags: <defaults>
</compile_context>

<pallas_src>
import functools

import numpy as np
import jax
import jax.numpy as jnp
from jax import lax
from jax.experimental import pallas as pl
from jax.experimental.pallas import tpu as pltpu


def _round_up(x, m):
    return ((x + m - 1) // m) * m


# ---------------------------------------------------------------------------
# Fused LeNet kernel (processes ONE image per grid step).
# ---------------------------------------------------------------------------

def _lenet_kernel(x_ref, w1_ref, b1_ref, w2_ref, b2_ref, g_ref, m_ref,
                  w3_ref, b3_ref, w4_ref, b4_ref, o_ref,
                  im1_ref, a1_ref, p1_ref, im2_ref, a2_ref, *,
                  Cin, W, K, C1, C2, W_A1, W_P1, W_A2, W_P2, NO_PAD):
    f32 = jnp.float32
    bf16 = jnp.bfloat16
    KK = K * K
    TW = 2 * W

    # ---- conv1 im2col: each shifted tap slice is written ONCE to scratch --
    for t in range(KK):
        i, j = t // K, t % K
        s = i * W + j
        im1_ref[t * Cin:(t + 1) * Cin, :] = x_ref[:, s:s + W_A1]

    # ---- conv1 + bias + ReLU: single MXU matmul over all taps*channels ----
    acc1 = jnp.dot(w1_ref[...], im1_ref[...], preferred_element_type=f32)
    a1_ref[...] = jnp.maximum(acc1 + b1_ref[...], 0.0)

    # ---- pool1: 2x2 avg stride 2 on the flat grid, stored bf16 once -------
    p1 = (a1_ref[:, 0:W_P1] + a1_ref[:, 1:W_P1 + 1] +
          a1_ref[:, W:W + W_P1] + a1_ref[:, W + 1:W + 1 + W_P1]) * 0.25
    p1_ref[...] = p1.astype(bf16)

    # ---- conv2 im2col on the stride-2 subgrid (bf16, no per-tap casts) ----
    for t in range(KK):
        i, j = t // K, t % K
        s = i * TW + j * 2
        im2_ref[t * C1:(t + 1) * C1, :] = p1_ref[:, s:s + W_A2]

    # ---- conv2 + bias + ReLU: single MXU matmul, contraction K*K*C1 -------
    acc2 = jnp.dot(w2_ref[...], im2_ref[...], preferred_element_type=f32)
    a2_ref[...] = jnp.maximum(acc2 + b2_ref[...], 0.0)

    # ---- pool2: 2x2 avg stride 2 -------------------------------------------
    p2 = (a2_ref[:, 0:W_P2] + a2_ref[:, 2:W_P2 + 2] +
          a2_ref[:, TW:TW + W_P2] + a2_ref[:, TW + 2:TW + 2 + W_P2]) * 0.25

    # ---- flatten: host-precomputed one-hot gather/spread matmul + channel
    #      block mask + sublane sum -> (1, C2*SBP) feature row ---------------
    z = jnp.dot(p2.astype(bf16), g_ref[...], preferred_element_type=f32)
    xflat = jnp.sum(z * m_ref[...], axis=0, keepdims=True)

    # ---- linear1 + ReLU ----------------------------------------------------
    # TODO(synk): nn.Dropout(0.3) is the identity in eval mode; training-mode
    # stochastic masking is intentionally not implemented here.
    h = jnp.maximum(
        jnp.dot(xflat.astype(bf16), w3_ref[...], preferred_element_type=f32)
        + b3_ref[...], 0.0)

    # ---- linear2 + softmax (padded lanes carry a -1e30 bias -> prob 0) -----
    logits = (jnp.dot(h.astype(bf16), w4_ref[...], preferred_element_type=f32)
              + b4_ref[...])
    zl = logits - jnp.max(logits, axis=-1, keepdims=True)
    e = jnp.exp(zl)
    probs = e / jnp.sum(e, axis=-1, keepdims=True)

    # Lane-dense (8, 128) store; row 0 / first NO lanes are sliced outside.
    o_ref[...] = jnp.broadcast_to(probs, (8, NO_PAD))


# ---------------------------------------------------------------------------
# Forward wrapper: one pallas_call, grid over batch ("parallel" for v7x).
# ---------------------------------------------------------------------------

def lenet_forward(kparams, x_nchw):
    B, Cin, H, W = x_nchw.shape
    K = 5
    C1, KKCin = kparams["w1"].shape
    C2, KKC1 = kparams["w2"].shape
    F, NH = kparams["w3"].shape
    NO = kparams["w4"].shape[1]
    assert KKCin == K * K * Cin and KKC1 == K * K * C1
    SBP = F // C2
    NO_PAD = _round_up(NO, 128)

    # ---- spatial bookkeeping (conv1 -> pool1 -> conv2 -> pool2) ------------
    H1, W1 = H - K + 1, W - K + 1
    H1p, W1p = H1 // 2, W1 // 2
    H2, W2 = H1p - K + 1, W1p - K + 1
    HP2, WP2 = H2 // 2, W2 // 2
    SB = HP2 * WP2
    assert 0 < SB <= SBP

    # ---- wide-grid widths: each stage covers every flat position that the
    #      next stage's shifted slices touch (rounded up to 128 lanes). ------
    max_off = 4 * W * (HP2 - 1) + 4 * (WP2 - 1)      # last valid pool2 column
    W_P2 = _round_up(max_off + 1, 128)
    W_A2 = _round_up(W_P2 + 2 * W + 2, 128)
    W_P1 = _round_up(W_A2 + (K - 1) * (2 * W + 2), 128)
    W_A1 = _round_up(W_P1 + W + 1, 128)
    W_X1 = _round_up(max(H * W, W_A1 + (K - 1) * (W + 1)), 128)
    # Tie the gather constants to the padding derivation (correctness guard).
    assert W_P2 > max_off
    assert W_A2 >= W_P2 + 2 * W + 2
    assert W_P1 >= W_A2 + (K - 1) * (2 * W + 2)
    assert W_A1 >= W_P1 + W + 1
    assert W_X1 >= W_A1 + (K - 1) * (W + 1) and W_X1 >= H * W

    # ---- trace-time constants: gather/spread matrix + channel-block mask ---
    g_np = np.zeros((W_P2, F), np.float32)
    m_np = np.zeros((C2, F), np.float32)
    for c in range(C2):
        m_np[c, c * SBP:c * SBP + SB] = 1.0
        for s in range(SB):
            ph, pw = s // WP2, s % WP2
            g_np[4 * W * ph + 4 * pw, c * SBP + s] = 1.0
    g = jnp.asarray(g_np, jnp.bfloat16)
    m = jnp.asarray(m_np, jnp.float32)

    # ---- input glue: NCHW -> per-image flat (Cin, W_X1), bf16 once ---------
    x_flat = x_nchw.reshape(B, Cin, H * W).astype(jnp.bfloat16)
    x_pad = jnp.pad(x_flat, ((0, 0), (0, 0), (0, W_X1 - H * W)))

    # ---- pad linear2 to a lane-dense 128-wide output ------------------------
    w4p = jnp.pad(kparams["w4"], ((0, 0), (0, NO_PAD - NO)))
    b4p = jnp.pad(kparams["b4"], ((0, 0), (0, NO_PAD - NO)),
                  constant_values=-1e30)

    kernel = functools.partial(
        _lenet_kernel, Cin=Cin, W=W, K=K, C1=C1, C2=C2,
        W_A1=W_A1, W_P1=W_P1, W_A2=W_A2, W_P2=W_P2, NO_PAD=NO_PAD)

    out = pl.pallas_call(
        kernel,
        out_shape=jax.ShapeDtypeStruct((B, 8, NO_PAD), jnp.float32),
        grid=(B,),
        in_specs=[
            pl.BlockSpec((None, Cin, W_X1), lambda b: (b, 0, 0)),   # x
            pl.BlockSpec((C1, KKCin), lambda b: (0, 0)),            # w1
            pl.BlockSpec((C1, 1), lambda b: (0, 0)),                # b1
            pl.BlockSpec((C2, KKC1), lambda b: (0, 0)),             # w2
            pl.BlockSpec((C2, 1), lambda b: (0, 0)),                # b2
            pl.BlockSpec((W_P2, F), lambda b: (0, 0)),              # gather G
            pl.BlockSpec((C2, F), lambda b: (0, 0)),                # mask M
            pl.BlockSpec((F, NH), lambda b: (0, 0)),                # w3
            pl.BlockSpec((1, NH), lambda b: (0, 0)),                # b3
            pl.BlockSpec((NH, NO_PAD), lambda b: (0, 0)),           # w4 (pad)
            pl.BlockSpec((1, NO_PAD), lambda b: (0, 0)),            # b4 (pad)
        ],
        out_specs=pl.BlockSpec((None, 8, NO_PAD), lambda b: (b, 0, 0)),
        scratch_shapes=[
            pltpu.VMEM((K * K * Cin, W_A1), jnp.bfloat16),   # conv1 im2col
            pltpu.VMEM((C1, W_A1), jnp.float32),             # conv1+relu
            pltpu.VMEM((C1, W_P1), jnp.bfloat16),            # pool1 (bf16)
            pltpu.VMEM((K * K * C1, W_A2), jnp.bfloat16),    # conv2 im2col
            pltpu.VMEM((C2, W_A2), jnp.float32),             # conv2+relu
        ],
        compiler_params=pltpu.CompilerParams(
            dimension_semantics=("parallel",)),
    )(x_pad, kparams["w1"], kparams["b1"], kparams["w2"], kparams["b2"],
      g, m, kparams["w3"], kparams["b3"], w4p, b4p)

    return out[:, 0, :NO]


# ---------------------------------------------------------------------------
# Parameters (torch layout), one-time kernel-ready preparation, reference.
# ---------------------------------------------------------------------------

def init_params(key, in_channels, out_channels):
    def uniform(k, shape, fan_in):
        bound = 1.0 / jnp.sqrt(jnp.float32(fan_in))
        return jax.random.uniform(k, shape, jnp.float32, -bound, bound)

    ks = jax.random.split(key, 8)
    return {
        "conv1_w": uniform(ks[0], (6, in_channels, 5, 5), in_channels * 25),
        "conv1_b": uniform(ks[1], (6,), in_channels * 25),
        "conv2_w": uniform(ks[2], (16, 6, 5, 5), 6 * 25),
        "conv2_b": uniform(ks[3], (16,), 6 * 25),
        "lin1_w": uniform(ks[4], (120, 16 * 5 * 5), 16 * 5 * 5),
        "lin1_b": uniform(ks[5], (120,), 16 * 5 * 5),
        "lin2_w": uniform(ks[6], (out_channels, 120), 120),
        "lin2_b": uniform(ks[7], (out_channels,), 120),
    }


def prepare_params(params):
    """One-time (outside jit) conversion of torch-layout params to the layouts
    the fused kernel consumes: flattened per-tap conv weight matrices and
    pre-transposed linear weights as bf16 MXU operands, f32 biases."""
    c1w = params["conv1_w"]                      # (C1, Cin, K, K)
    C1, Cin, K, _ = c1w.shape
    c2w = params["conv2_w"]                      # (C2, C1, K, K)
    C2 = c2w.shape[0]
    l1w = params["lin1_w"]                       # (NH, C2*SB)
    NH, n_feat = l1w.shape
    SB = n_feat // C2                            # 25
    SBP = _round_up(SB, 8)                       # 32
    l2w = params["lin2_w"]                       # (NO, NH)
    NO = l2w.shape[0]

    # conv weights: (Cout, K*K*Cin) with column index (i*K + j)*Cin + ci,
    # matching the im2col row layout built in-kernel.
    w1 = jnp.transpose(c1w, (0, 2, 3, 1)).reshape(C1, K * K * Cin)
    w2 = jnp.transpose(c2w, (0, 2, 3, 1)).reshape(C2, K * K * C1)
    # linear1: features reordered to (c, s) blocks padded SB -> SBP.
    w3 = jnp.transpose(l1w, (1, 0)).reshape(C2, SB, NH)
    w3 = jnp.pad(w3, ((0, 0), (0, SBP - SB), (0, 0))).reshape(C2 * SBP, NH)
    w4 = jnp.transpose(l2w, (1, 0))              # (NH, NO), padded in wrapper

    return {
        "w1": w1.astype(jnp.bfloat16),
        "b1": params["conv1_b"].reshape(C1, 1).astype(jnp.float32),
        "w2": w2.astype(jnp.bfloat16),
        "b2": params["conv2_b"].reshape(C2, 1).astype(jnp.float32),
        "w3": w3.astype(jnp.bfloat16),
        "b3": params["lin1_b"].reshape(1, NH).astype(jnp.float32),
        "w4": w4.astype(jnp.bfloat16),
        "b4": params["lin2_b"].reshape(1, NO).astype(jnp.float32),
    }


def lenet_reference(params, x):
    """Pure-JAX f32 reference matching the PyTorch module in eval mode."""
    dn = ("NCHW", "OIHW", "NCHW")
    y = lax.conv_general_dilated(x, params["conv1_w"], (1, 1), "VALID",
                                 dimension_numbers=dn)
    y = jnp.maximum(y + params["conv1_b"][None, :, None, None], 0.0)
    y = lax.reduce_window(y, 0.0, lax.add, (1, 1, 2, 2), (1, 1, 2, 2),
                          "VALID") * 0.25
    y = lax.conv_general_dilated(y, params["conv2_w"], (1, 1), "VALID",
                                 dimension_numbers=dn)
    y = jnp.maximum(y + params["conv2_b"][None, :, None, None], 0.0)
    y = lax.reduce_window(y, 0.0, lax.add, (1, 1, 2, 2), (1, 1, 2, 2),
                          "VALID") * 0.25
    y = y.reshape(y.shape[0], -1)
    h = jnp.maximum(y @ params["lin1_w"].T + params["lin1_b"], 0.0)
    logits = h @ params["lin2_w"].T + params["lin2_b"]
    return jax.nn.softmax(logits, axis=1)


if __name__ == "__main__":
    in_channels, out_channels, batch = 1, 10, 2
    key = jax.random.PRNGKey(0)
    k_params, k_x = jax.random.split(key)
    params = init_params(k_params, in_channels, out_channels)
    kparams = prepare_params(params)     # one-time weight layout prep
    # 32x32 spatial is implied by the hardcoded 16*5*5 flatten in the module.
    x = jax.random.normal(k_x, (batch, in_channels, 32, 32), jnp.float32)

    out = jax.jit(lenet_forward)(kparams, x)
    out = jax.block_until_ready(out)
    assert out.shape == (batch, out_channels)

    # Correctness guard vs. pure-JAX reference (loose tol for bf16 operands).
    ref = lenet_reference(params, x)
    assert float(jnp.max(jnp.abs(out - ref))) < 5e-2

    print("KERNEL_OK")
</pallas_src>

<mosaic_0001>
module attributes {stable_mosaic.version = 11 : i64} {
  func.func @_lenet_kernel(%arg0: i32, %arg1: memref<1x1x1536xbf16, #tpu.memory_space<vmem>>, %arg2: memref<6x25xbf16, #tpu.memory_space<vmem>>, %arg3: memref<6x1xf32, #tpu.memory_space<vmem>>, %arg4: memref<16x150xbf16, #tpu.memory_space<vmem>>, %arg5: memref<16x1xf32, #tpu.memory_space<vmem>>, %arg6: memref<640x512xbf16, #tpu.memory_space<vmem>>, %arg7: memref<16x512xf32, #tpu.memory_space<vmem>>, %arg8: memref<512x120xbf16, #tpu.memory_space<vmem>>, %arg9: memref<1x120xf32, #tpu.memory_space<vmem>>, %arg10: memref<120x128xbf16, #tpu.memory_space<vmem>>, %arg11: memref<1x128xf32, #tpu.memory_space<vmem>>, %arg12: memref<1x8x128xf32, #tpu.memory_space<vmem>>, %arg13: memref<25x1280xbf16, #tpu.memory_space<vmem>>, %arg14: memref<6x1280xf32, #tpu.memory_space<vmem>>, %arg15: memref<6x1152xbf16, #tpu.memory_space<vmem>>, %arg16: memref<150x768xbf16, #tpu.memory_space<vmem>>, %arg17: memref<16x768xf32, #tpu.memory_space<vmem>>) attributes {dimension_semantics = [#tpu.dimension_semantics<parallel>], iteration_bounds = array<i64: 2>, scalar_prefetch = 0 : i64, scratch_operands = 5 : i64, tpu.core_type = #tpu.core_type<tc>, window_params = [{transform_indices = @transform_0, window_bounds = array<i64: 1, 1, 1536>}, {pipeline_mode = #tpu.pipeline_mode<synchronous>, transform_indices = @transform_1, window_bounds = array<i64: 6, 25>}, {pipeline_mode = #tpu.pipeline_mode<synchronous>, transform_indices = @transform_2, window_bounds = array<i64: 6, 1>}, {pipeline_mode = #tpu.pipeline_mode<synchronous>, transform_indices = @transform_3, window_bounds = array<i64: 16, 150>}, {pipeline_mode = #tpu.pipeline_mode<synchronous>, transform_indices = @transform_4, window_bounds = array<i64: 16, 1>}, {pipeline_mode = #tpu.pipeline_mode<synchronous>, transform_indices = @transform_5, window_bounds = array<i64: 640, 512>}, {pipeline_mode = #tpu.pipeline_mode<synchronous>, transform_indices = @transform_6, window_bounds = array<i64: 16, 512>}, {pipeline_mode = #tpu.pipeline_mode<synchronous>, transform_indices = @transform_7, window_bounds = array<i64: 512, 120>}, {pipeline_mode = #tpu.pipeline_mode<synchronous>, transform_indices = @transform_8, window_bounds = array<i64: 1, 120>}, {pipeline_mode = #tpu.pipeline_mode<synchronous>, transform_indices = @transform_9, window_bounds = array<i64: 120, 128>}, {pipeline_mode = #tpu.pipeline_mode<synchronous>, transform_indices = @transform_10, window_bounds = array<i64: 1, 128>}, {transform_indices = @transform_11, window_bounds = array<i64: 1, 8, 128>}]} {
    %c0 = arith.constant 0 : index
    %c0_0 = arith.constant 0 : index
    %c0_1 = arith.constant 0 : index
    %0 = vector.load %arg1[%c0, %c0_0, %c0_1] : memref<1x1x1536xbf16, #tpu.memory_space<vmem>>, vector<1x1x1280xbf16>
    %1 = vector.shape_cast %0 : vector<1x1x1280xbf16> to vector<1x1280xbf16>
    %c0_2 = arith.constant 0 : index
    %c0_3 = arith.constant 0 : index
    %2 = vector.load %arg13[%c0_2, %c0_3] : memref<25x1280xbf16, #tpu.memory_space<vmem>>, vector<1x1280xbf16>
    tpu.vector_store %arg13[%c0_2, %c0_3], %1 {strides = array<i32>} : memref<25x1280xbf16, #tpu.memory_space<vmem>>, vector<1x1280xbf16>,
    %c0_4 = arith.constant 0 : index
    %c0_5 = arith.constant 0 : index
    %c1 = arith.constant 1 : index
    %3 = vector.load %arg1[%c0_4, %c0_5, %c1] : memref<1x1x1536xbf16, #tpu.memory_space<vmem>>, vector<1x1x1280xbf16>
    %4 = vector.shape_cast %3 : vector<1x1x1280xbf16> to vector<1x1280xbf16>
    %c1_6 = arith.constant 1 : index
    %c0_7 = arith.constant 0 : index
    %5 = vector.load %arg13[%c1_6, %c0_7] : memref<25x1280xbf16, #tpu.memory_space<vmem>>, vector<1x1280xbf16>
    tpu.vector_store %arg13[%c1_6, %c0_7], %4 {strides = array<i32>} : memref<25x1280xbf16, #tpu.memory_space<vmem>>, vector<1x1280xbf16>,
    %c0_8 = arith.constant 0 : index
    %c0_9 = arith.constant 0 : index
    %c2 = arith.constant 2 : index
    %6 = vector.load %arg1[%c0_8, %c0_9, %c2] : memref<1x1x1536xbf16, #tpu.memory_space<vmem>>, vector<1x1x1280xbf16>
    %7 = vector.shape_cast %6 : vector<1x1x1280xbf16> to vector<1x1280xbf16>
    %c2_10 = arith.constant 2 : index
    %c0_11 = arith.constant 0 : index
    %8 = vector.load %arg13[%c2_10, %c0_11] : memref<25x1280xbf16, #tpu.memory_space<vmem>>, vector<1x1280xbf16>
    tpu.vector_store %arg13[%c2_10, %c0_11], %7 {strides = array<i32>} : memref<25x1280xbf16, #tpu.memory_space<vmem>>, vector<1x1280xbf16>,
    %c0_12 = arith.constant 0 : index
    %c0_13 = arith.constant 0 : index
    %c3 = arith.constant 3 : index
    %9 = vector.load %arg1[%c0_12, %c0_13, %c3] : memref<1x1x1536xbf16, #tpu.memory_space<vmem>>, vector<1x1x1280xbf16>
    %10 = vector.shape_cast %9 : vector<1x1x1280xbf16> to vector<1x1280xbf16>
    %c3_14 = arith.constant 3 : index
    %c0_15 = arith.constant 0 : index
    %11 = vector.load %arg13[%c3_14, %c0_15] : memref<25x1280xbf16, #tpu.memory_space<vmem>>, vector<1x1280xbf16>
    tpu.vector_store %arg13[%c3_14, %c0_15], %10 {strides = array<i32>} : memref<25x1280xbf16, #tpu.memory_space<vmem>>, vector<1x1280xbf16>,
    %c0_16 = arith.constant 0 : index
    %c0_17 = arith.constant 0 : index
    %c4 = arith.constant 4 : index
    %12 = vector.load %arg1[%c0_16, %c0_17, %c4] : memref<1x1x1536xbf16, #tpu.memory_space<vmem>>, vector<1x1x1280xbf16>
    %13 = vector.shape_cast %12 : vector<1x1x1280xbf16> to vector<1x1280xbf16>
    %c4_18 = arith.constant 4 : index
    %c0_19 = arith.constant 0 : index
    %14 = vector.load %arg13[%c4_18, %c0_19] : memref<25x1280xbf16, #tpu.memory_space<vmem>>, vector<1x1280xbf16>
    tpu.vector_store %arg13[%c4_18, %c0_19], %13 {strides = array<i32>} : memref<25x1280xbf16, #tpu.memory_space<vmem>>, vector<1x1280xbf16>,
    %c0_20 = arith.constant 0 : index
    %c0_21 = arith.constant 0 : index
    %c32 = arith.constant 32 : index
    %15 = vector.load %arg1[%c0_20, %c0_21, %c32] : memref<1x1x1536xbf16, #tpu.memory_space<vmem>>, vector<1x1x1280xbf16>
    %16 = vector.shape_cast %15 : vector<1x1x1280xbf16> to vector<1x1280xbf16>
    %c5 = arith.constant 5 : index
    %c0_22 = arith.constant 0 : index
    %17 = vector.load %arg13[%c5, %c0_22] : memref<25x1280xbf16, #tpu.memory_space<vmem>>, vector<1x1280xbf16>
    tpu.vector_store %arg13[%c5, %c0_22], %16 {strides = array<i32>} : memref<25x1280xbf16, #tpu.memory_space<vmem>>, vector<1x1280xbf16>,
    %c0_23 = arith.constant 0 : index
    %c0_24 = arith.constant 0 : index
    %c33 = arith.constant 33 : index
    %18 = vector.load %arg1[%c0_23, %c0_24, %c33] : memref<1x1x1536xbf16, #tpu.memory_space<vmem>>, vector<1x1x1280xbf16>
    %19 = vector.shape_cast %18 : vector<1x1x1280xbf16> to vector<1x1280xbf16>
    %c6 = arith.constant 6 : index
    %c0_25 = arith.constant 0 : index
    %20 = vector.load %arg13[%c6, %c0_25] : memref<25x1280xbf16, #tpu.memory_space<vmem>>, vector<1x1280xbf16>
    tpu.vector_store %arg13[%c6, %c0_25], %19 {strides = array<i32>} : memref<25x1280xbf16, #tpu.memory_space<vmem>>, vector<1x1280xbf16>,
    %c0_26 = arith.constant 0 : index
    %c0_27 = arith.constant 0 : index
    %c34 = arith.constant 34 : index
    %21 = vector.load %arg1[%c0_26, %c0_27, %c34] : memref<1x1x1536xbf16, #tpu.memory_space<vmem>>, vector<1x1x1280xbf16>
    %22 = vector.shape_cast %21 : vector<1x1x1280xbf16> to vector<1x1280xbf16>
    %c7 = arith.constant 7 : index
    %c0_28 = arith.constant 0 : index
    %23 = vector.load %arg13[%c7, %c0_28] : memref<25x1280xbf16, #tpu.memory_space<vmem>>, vector<1x1280xbf16>
    tpu.vector_store %arg13[%c7, %c0_28], %22 {strides = array<i32>} : memref<25x1280xbf16, #tpu.memory_space<vmem>>, vector<1x1280xbf16>,
    %c0_29 = arith.constant 0 : index
    %c0_30 = arith.constant 0 : index
    %c35 = arith.constant 35 : index
    %24 = vector.load %arg1[%c0_29, %c0_30, %c35] : memref<1x1x1536xbf16, #tpu.memory_space<vmem>>, vector<1x1x1280xbf16>
    %25 = vector.shape_cast %24 : vector<1x1x1280xbf16> to vector<1x1280xbf16>
    %c8 = arith.constant 8 : index
    %c0_31 = arith.constant 0 : index
    %26 = vector.load %arg13[%c8, %c0_31] : memref<25x1280xbf16, #tpu.memory_space<vmem>>, vector<1x1280xbf16>
    tpu.vector_store %arg13[%c8, %c0_31], %25 {strides = array<i32>} : memref<25x1280xbf16, #tpu.memory_space<vmem>>, vector<1x1280xbf16>,
    %c0_32 = arith.constant 0 : index
    %c0_33 = arith.constant 0 : index
    %c36 = arith.constant 36 : index
    %27 = vector.load %arg1[%c0_32, %c0_33, %c36] : memref<1x1x1536xbf16, #tpu.memory_space<vmem>>, vector<1x1x1280xbf16>
    %28 = vector.shape_cast %27 : vector<1x1x1280xbf16> to vector<1x1280xbf16>
    %c9 = arith.constant 9 : index
    %c0_34 = arith.constant 0 : index
    %29 = vector.load %arg13[%c9, %c0_34] : memref<25x1280xbf16, #tpu.memory_space<vmem>>, vector<1x1280xbf16>
    tpu.vector_store %arg13[%c9, %c0_34], %28 {strides = array<i32>} : memref<25x1280xbf16, #tpu.memory_space<vmem>>, vector<1x1280xbf16>,
    %c0_35 = arith.constant 0 : index
    %c0_36 = arith.constant 0 : index
    %c64 = arith.constant 64 : index
    %30 = vector.load %arg1[%c0_35, %c0_36, %c64] : memref<1x1x1536xbf16, #tpu.memory_space<vmem>>, vector<1x1x1280xbf16>
    %31 = vector.shape_cast %30 : vector<1x1x1280xbf16> to vector<1x1280xbf16>
    %c10 = arith.constant 10 : index
    %c0_37 = arith.constant 0 : index
    %32 = vector.load %arg13[%c10, %c0_37] : memref<25x1280xbf16, #tpu.memory_space<vmem>>, vector<1x1280xbf16>
    tpu.vector_store %arg13[%c10, %c0_37], %31 {strides = array<i32>} : memref<25x1280xbf16, #tpu.memory_space<vmem>>, vector<1x1280xbf16>,
    %c0_38 = arith.constant 0 : index
    %c0_39 = arith.constant 0 : index
    %c65 = arith.constant 65 : index
    %33 = vector.load %arg1[%c0_38, %c0_39, %c65] : memref<1x1x1536xbf16, #tpu.memory_space<vmem>>, vector<1x1x1280xbf16>
    %34 = vector.shape_cast %33 : vector<1x1x1280xbf16> to vector<1x1280xbf16>
    %c11 = arith.constant 11 : index
    %c0_40 = arith.constant 0 : index
    %35 = vector.load %arg13[%c11, %c0_40] : memref<25x1280xbf16, #tpu.memory_space<vmem>>, vector<1x1280xbf16>
    tpu.vector_store %arg13[%c11, %c0_40], %34 {strides = array<i32>} : memref<25x1280xbf16, #tpu.memory_space<vmem>>, vector<1x1280xbf16>,
    %c0_41 = arith.constant 0 : index
    %c0_42 = arith.constant 0 : index
    %c66 = arith.constant 66 : index
    %36 = vector.load %arg1[%c0_41, %c0_42, %c66] : memref<1x1x1536xbf16, #tpu.memory_space<vmem>>, vector<1x1x1280xbf16>
    %37 = vector.shape_cast %36 : vector<1x1x1280xbf16> to vector<1x1280xbf16>
    %c12 = arith.constant 12 : index
    %c0_43 = arith.constant 0 : index
    %38 = vector.load %arg13[%c12, %c0_43] : memref<25x1280xbf16, #tpu.memory_space<vmem>>, vector<1x1280xbf16>
    tpu.vector_store %arg13[%c12, %c0_43], %37 {strides = array<i32>} : memref<25x1280xbf16, #tpu.memory_space<vmem>>, vector<1x1280xbf16>,
    %c0_44 = arith.constant 0 : index
    %c0_45 = arith.constant 0 : index
    %c67 = arith.constant 67 : index
    %39 = vector.load %arg1[%c0_44, %c0_45, %c67] : memref<1x1x1536xbf16, #tpu.memory_space<vmem>>, vector<1x1x1280xbf16>
    %40 = vector.shape_cast %39 : vector<1x1x1280xbf16> to vector<1x1280xbf16>
    %c13 = arith.constant 13 : index
    %c0_46 = arith.constant 0 : index
    %41 = vector.load %arg13[%c13, %c0_46] : memref<25x1280xbf16, #tpu.memory_space<vmem>>, vector<1x1280xbf16>
    tpu.vector_store %arg13[%c13, %c0_46], %40 {strides = array<i32>} : memref<25x1280xbf16, #tpu.memory_space<vmem>>, vector<1x1280xbf16>,
    %c0_47 = arith.constant 0 : index
    %c0_48 = arith.constant 0 : index
    %c68 = arith.constant 68 : index
    %42 = vector.load %arg1[%c0_47, %c0_48, %c68] : memref<1x1x1536xbf16, #tpu.memory_space<vmem>>, vector<1x1x1280xbf16>
    %43 = vector.shape_cast %42 : vector<1x1x1280xbf16> to vector<1x1280xbf16>
    %c14 = arith.constant 14 : index
    %c0_49 = arith.constant 0 : index
    %44 = vector.load %arg13[%c14, %c0_49] : memref<25x1280xbf16, #tpu.memory_space<vmem>>, vector<1x1280xbf16>
    tpu.vector_store %arg13[%c14, %c0_49], %43 {strides = array<i32>} : memref<25x1280xbf16, #tpu.memory_space<vmem>>, vector<1x1280xbf16>,
    %c0_50 = arith.constant 0 : index
    %c0_51 = arith.constant 0 : index
    %c96 = arith.constant 96 : index
    %45 = vector.load %arg1[%c0_50, %c0_51, %c96] : memref<1x1x1536xbf16, #tpu.memory_space<vmem>>, vector<1x1x1280xbf16>
    %46 = vector.shape_cast %45 : vector<1x1x1280xbf16> to vector<1x1280xbf16>
    %c15 = arith.constant 15 : index
    %c0_52 = arith.constant 0 : index
    %47 = vector.load %arg13[%c15, %c0_52] : memref<25x1280xbf16, #tpu.memory_space<vmem>>, vector<1x1280xbf16>
    tpu.vector_store %arg13[%c15, %c0_52], %46 {strides = array<i32>} : memref<25x1280xbf16, #tpu.memory_space<vmem>>, vector<1x1280xbf16>,
    %c0_53 = arith.constant 0 : index
    %c0_54 = arith.constant 0 : index
    %c97 = arith.constant 97 : index
    %48 = vector.load %arg1[%c0_53, %c0_54, %c97] : memref<1x1x1536xbf16, #tpu.memory_space<vmem>>, vector<1x1x1280xbf16>
    %49 = vector.shape_cast %48 : vector<1x1x1280xbf16> to vector<1x1280xbf16>
    %c16 = arith.constant 16 : index
    %c0_55 = arith.constant 0 : index
    %50 = vector.load %arg13[%c16, %c0_55] : memref<25x1280xbf16, #tpu.memory_space<vmem>>, vector<1x1280xbf16>
    tpu.vector_store %arg13[%c16, %c0_55], %49 {strides = array<i32>} : memref<25x1280xbf16, #tpu.memory_space<vmem>>, vector<1x1280xbf16>,
    %c0_56 = arith.constant 0 : index
    %c0_57 = arith.constant 0 : index
    %c98 = arith.constant 98 : index
    %51 = vector.load %arg1[%c0_56, %c0_57, %c98] : memref<1x1x1536xbf16, #tpu.memory_space<vmem>>, vector<1x1x1280xbf16>
    %52 = vector.shape_cast %51 : vector<1x1x1280xbf16> to vector<1x1280xbf16>
    %c17 = arith.constant 17 : index
    %c0_58 = arith.constant 0 : index
    %53 = vector.load %arg13[%c17, %c0_58] : memref<25x1280xbf16, #tpu.memory_space<vmem>>, vector<1x1280xbf16>
    tpu.vector_store %arg13[%c17, %c0_58], %52 {strides = array<i32>} : memref<25x1280xbf16, #tpu.memory_space<vmem>>, vector<1x1280xbf16>,
    %c0_59 = arith.constant 0 : index
    %c0_60 = arith.constant 0 : index
    %c99 = arith.constant 99 : index
    %54 = vector.load %arg1[%c0_59, %c0_60, %c99] : memref<1x1x1536xbf16, #tpu.memory_space<vmem>>, vector<1x1x1280xbf16>
    %55 = vector.shape_cast %54 : vector<1x1x1280xbf16> to vector<1x1280xbf16>
    %c18 = arith.constant 18 : index
    %c0_61 = arith.constant 0 : index
    %56 = vector.load %arg13[%c18, %c0_61] : memref<25x1280xbf16, #tpu.memory_space<vmem>>, vector<1x1280xbf16>
    tpu.vector_store %arg13[%c18, %c0_61], %55 {strides = array<i32>} : memref<25x1280xbf16, #tpu.memory_space<vmem>>, vector<1x1280xbf16>,
    %c0_62 = arith.constant 0 : index
    %c0_63 = arith.constant 0 : index
    %c100 = arith.constant 100 : index
    %57 = vector.load %arg1[%c0_62, %c0_63, %c100] : memref<1x1x1536xbf16, #tpu.memory_space<vmem>>, vector<1x1x1280xbf16>
    %58 = vector.shape_cast %57 : vector<1x1x1280xbf16> to vector<1x1280xbf16>
    %c19 = arith.constant 19 : index
    %c0_64 = arith.constant 0 : index
    %59 = vector.load %arg13[%c19, %c0_64] : memref<25x1280xbf16, #tpu.memory_space<vmem>>, vector<1x1280xbf16>
    tpu.vector_store %arg13[%c19, %c0_64], %58 {strides = array<i32>} : memref<25x1280xbf16, #tpu.memory_space<vmem>>, vector<1x1280xbf16>,
    %c0_65 = arith.constant 0 : index
    %c0_66 = arith.constant 0 : index
    %c128 = arith.constant 128 : index
    %60 = vector.load %arg1[%c0_65, %c0_66, %c128] : memref<1x1x1536xbf16, #tpu.memory_space<vmem>>, vector<1x1x1280xbf16>
    %61 = vector.shape_cast %60 : vector<1x1x1280xbf16> to vector<1x1280xbf16>
    %c20 = arith.constant 20 : index
    %c0_67 = arith.constant 0 : index
    %62 = vector.load %arg13[%c20, %c0_67] : memref<25x1280xbf16, #tpu.memory_space<vmem>>, vector<1x1280xbf16>
    tpu.vector_store %arg13[%c20, %c0_67], %61 {strides = array<i32>} : memref<25x1280xbf16, #tpu.memory_space<vmem>>, vector<1x1280xbf16>,
    %c0_68 = arith.constant 0 : index
    %c0_69 = arith.constant 0 : index
    %c129 = arith.constant 129 : index
    %63 = vector.load %arg1[%c0_68, %c0_69, %c129] : memref<1x1x1536xbf16, #tpu.memory_space<vmem>>, vector<1x1x1280xbf16>
    %64 = vector.shape_cast %63 : vector<1x1x1280xbf16> to vector<1x1280xbf16>
    %c21 = arith.constant 21 : index
    %c0_70 = arith.constant 0 : index
    %65 = vector.load %arg13[%c21, %c0_70] : memref<25x1280xbf16, #tpu.memory_space<vmem>>, vector<1x1280xbf16>
    tpu.vector_store %arg13[%c21, %c0_70], %64 {strides = array<i32>} : memref<25x1280xbf16, #tpu.memory_space<vmem>>, vector<1x1280xbf16>,
    %c0_71 = arith.constant 0 : index
    %c0_72 = arith.constant 0 : index
    %c130 = arith.constant 130 : index
    %66 = vector.load %arg1[%c0_71, %c0_72, %c130] : memref<1x1x1536xbf16, #tpu.memory_space<vmem>>, vector<1x1x1280xbf16>
    %67 = vector.shape_cast %66 : vector<1x1x1280xbf16> to vector<1x1280xbf16>
    %c22 = arith.constant 22 : index
    %c0_73 = arith.constant 0 : index
    %68 = vector.load %arg13[%c22, %c0_73] : memref<25x1280xbf16, #tpu.memory_space<vmem>>, vector<1x1280xbf16>
    tpu.vector_store %arg13[%c22, %c0_73], %67 {strides = array<i32>} : memref<25x1280xbf16, #tpu.memory_space<vmem>>, vector<1x1280xbf16>,
    %c0_74 = arith.constant 0 : index
    %c0_75 = arith.constant 0 : index
    %c131 = arith.constant 131 : index
    %69 = vector.load %arg1[%c0_74, %c0_75, %c131] : memref<1x1x1536xbf16, #tpu.memory_space<vmem>>, vector<1x1x1280xbf16>
    %70 = vector.shape_cast %69 : vector<1x1x1280xbf16> to vector<1x1280xbf16>
    %c23 = arith.constant 23 : index
    %c0_76 = arith.constant 0 : index
    %71 = vector.load %arg13[%c23, %c0_76] : memref<25x1280xbf16, #tpu.memory_space<vmem>>, vector<1x1280xbf16>
    tpu.vector_store %arg13[%c23, %c0_76], %70 {strides = array<i32>} : memref<25x1280xbf16, #tpu.memory_space<vmem>>, vector<1x1280xbf16>,
    %c0_77 = arith.constant 0 : index
    %c0_78 = arith.constant 0 : index
    %c132 = arith.constant 132 : index
    %72 = vector.load %arg1[%c0_77, %c0_78, %c132] : memref<1x1x1536xbf16, #tpu.memory_space<vmem>>, vector<1x1x1280xbf16>
    %73 = vector.shape_cast %72 : vector<1x1x1280xbf16> to vector<1x1280xbf16>
    %c24 = arith.constant 24 : index
    %c0_79 = arith.constant 0 : index
    %74 = vector.load %arg13[%c24, %c0_79] : memref<25x1280xbf16, #tpu.memory_space<vmem>>, vector<1x1280xbf16>
    tpu.vector_store %arg13[%c24, %c0_79], %73 {strides = array<i32>} : memref<25x1280xbf16, #tpu.memory_space<vmem>>, vector<1x1280xbf16>,
    %c0_80 = arith.constant 0 : index
    %c0_81 = arith.constant 0 : index
    %75 = vector.load %arg2[%c0_80, %c0_81] : memref<6x25xbf16, #tpu.memory_space<vmem>>, vector<6x25xbf16>
    %c0_82 = arith.constant 0 : index
    %c0_83 = arith.constant 0 : index
    %76 = vector.load %arg13[%c0_82, %c0_83] : memref<25x1280xbf16, #tpu.memory_space<vmem>>, vector<25x1280xbf16>
    %cst = arith.constant dense<0.000000e+00> : vector<6x1280xf32>
    %77 = tpu.matmul %75, %76, %cst {dimension_numbers = #tpu.dot_dimension_numbers<[1], [0], [0], [1], [0, 0, 1, 1], [], []>} : vector<6x25xbf16>, vector<25x1280xbf16>, vector<6x1280xf32> -> vector<6x1280xf32>
    %c0_84 = arith.constant 0 : index
    %c0_85 = arith.constant 0 : index
    %78 = vector.load %arg3[%c0_84, %c0_85] : memref<6x1xf32, #tpu.memory_space<vmem>>, vector<6x1xf32>
    %79 = vector.broadcast %78 : vector<6x1xf32> to vector<6x1280xf32>
    %80 = arith.addf %77, %79 : vector<6x1280xf32>
    %cst_86 = arith.constant 0.000000e+00 : f32
    %81 = vector.broadcast %cst_86 : f32 to vector<6x1280xf32>
    %82 = arith.maximumf %80, %81 : vector<6x1280xf32>
    %c0_87 = arith.constant 0 : index
    %c0_88 = arith.constant 0 : index
    %83 = vector.load %arg14[%c0_87, %c0_88] : memref<6x1280xf32, #tpu.memory_space<vmem>>, vector<6x1280xf32>
    tpu.vector_store %arg14[%c0_87, %c0_88], %82 {strides = array<i32>} : memref<6x1280xf32, #tpu.memory_space<vmem>>, vector<6x1280xf32>,
    %c0_89 = arith.constant 0 : index
    %c0_90 = arith.constant 0 : index
    %84 = vector.load %arg14[%c0_89, %c0_90] : memref<6x1280xf32, #tpu.memory_space<vmem>>, vector<6x1152xf32>
    %c0_91 = arith.constant 0 : index
    %c1_92 = arith.constant 1 : index
    %85 = vector.load %arg14[%c0_91, %c1_92] : memref<6x1280xf32, #tpu.memory_space<vmem>>, vector<6x1152xf32>
    %86 = arith.addf %84, %85 : vector<6x1152xf32>
    %c0_93 = arith.constant 0 : index
    %c32_94 = arith.constant 32 : index
    %87 = vector.load %arg14[%c0_93, %c32_94] : memref<6x1280xf32, #tpu.memory_space<vmem>>, vector<6x1152xf32>
    %88 = arith.addf %86, %87 : vector<6x1152xf32>
    %c0_95 = arith.constant 0 : index
    %c33_96 = arith.constant 33 : index
    %89 = vector.load %arg14[%c0_95, %c33_96] : memref<6x1280xf32, #tpu.memory_space<vmem>>, vector<6x1152xf32>
    %90 = arith.addf %88, %89 : vector<6x1152xf32>
    %cst_97 = arith.constant 2.500000e-01 : f32
    %91 = vector.broadcast %cst_97 : f32 to vector<6x1152xf32>
    %92 = arith.mulf %90, %91 : vector<6x1152xf32>
    %93 = arith.truncf %92 : vector<6x1152xf32> to vector<6x1152xbf16>
    %c0_98 = arith.constant 0 : index
    %c0_99 = arith.constant 0 : index
    %94 = vector.load %arg15[%c0_98, %c0_99] : memref<6x1152xbf16, #tpu.memory_space<vmem>>, vector<6x1152xbf16>
    tpu.vector_store %arg15[%c0_98, %c0_99], %93 {strides = array<i32>} : memref<6x1152xbf16, #tpu.memory_space<vmem>>, vector<6x1152xbf16>,
    %c0_100 = arith.constant 0 : index
    %c0_101 = arith.constant 0 : index
    %95 = vector.load %arg15[%c0_100, %c0_101] : memref<6x1152xbf16, #tpu.memory_space<vmem>>, vector<6x768xbf16>
    %c0_102 = arith.constant 0 : index
    %c0_103 = arith.constant 0 : index
    %96 = vector.load %arg16[%c0_102, %c0_103] : memref<150x768xbf16, #tpu.memory_space<vmem>>, vector<6x768xbf16>
    tpu.vector_store %arg16[%c0_102, %c0_103], %95 {strides = array<i32>} : memref<150x768xbf16, #tpu.memory_space<vmem>>, vector<6x768xbf16>,
    %c0_104 = arith.constant 0 : index
    %c2_105 = arith.constant 2 : index
    %97 = vector.load %arg15[%c0_104, %c2_105] : memref<6x1152xbf16, #tpu.memory_space<vmem>>, vector<6x768xbf16>
    %c6_106 = arith.constant 6 : index
    %c0_107 = arith.constant 0 : index
    %98 = vector.load %arg16[%c6_106, %c0_107] : memref<150x768xbf16, #tpu.memory_space<vmem>>, vector<6x768xbf16>
    tpu.vector_store %arg16[%c6_106, %c0_107], %97 {strides = array<i32>} : memref<150x768xbf16, #tpu.memory_space<vmem>>, vector<6x768xbf16>,
    %c0_108 = arith.constant 0 : index
    %c4_109 = arith.constant 4 : index
    %99 = vector.load %arg15[%c0_108, %c4_109] : memref<6x1152xbf16, #tpu.memory_space<vmem>>, vector<6x768xbf16>
    %c12_110 = arith.constant 12 : index
    %c0_111 = arith.constant 0 : index
    %100 = vector.load %arg16[%c12_110, %c0_111] : memref<150x768xbf16, #tpu.memory_space<vmem>>, vector<6x768xbf16>
    tpu.vector_store %arg16[%c12_110, %c0_111], %99 {strides = array<i32>} : memref<150x768xbf16, #tpu.memory_space<vmem>>, vector<6x768xbf16>,
    %c0_112 = arith.constant 0 : index
    %c6_113 = arith.constant 6 : index
    %101 = vector.load %arg15[%c0_112, %c6_113] : memref<6x1152xbf16, #tpu.memory_space<vmem>>, vector<6x768xbf16>
    %c18_114 = arith.constant 18 : index
    %c0_115 = arith.constant 0 : index
    %102 = vector.load %arg16[%c18_114, %c0_115] : memref<150x768xbf16, #tpu.memory_space<vmem>>, vector<6x768xbf16>
    tpu.vector_store %arg16[%c18_114, %c0_115], %101 {strides = array<i32>} : memref<150x768xbf16, #tpu.memory_space<vmem>>, vector<6x768xbf16>,
    %c0_116 = arith.constant 0 : index
    %c8_117 = arith.constant 8 : index
    %103 = vector.load %arg15[%c0_116, %c8_117] : memref<6x1152xbf16, #tpu.memory_space<vmem>>, vector<6x768xbf16>
    %c24_118 = arith.constant 24 : index
    %c0_119 = arith.constant 0 : index
    %104 = vector.load %arg16[%c24_118, %c0_119] : memref<150x768xbf16, #tpu.memory_space<vmem>>, vector<6x768xbf16>
    tpu.vector_store %arg16[%c24_118, %c0_119], %103 {strides = array<i32>} : memref<150x768xbf16, #tpu.memory_space<vmem>>, vector<6x768xbf16>,
    %c0_120 = arith.constant 0 : index
    %c64_121 = arith.constant 64 : index
    %105 = vector.load %arg15[%c0_120, %c64_121] : memref<6x1152xbf16, #tpu.memory_space<vmem>>, vector<6x768xbf16>
    %c30 = arith.constant 30 : index
    %c0_122 = arith.constant 0 : index
    %106 = vector.load %arg16[%c30, %c0_122] : memref<150x768xbf16, #tpu.memory_space<vmem>>, vector<6x768xbf16>
    tpu.vector_store %arg16[%c30, %c0_122], %105 {strides = array<i32>} : memref<150x768xbf16, #tpu.memory_space<vmem>>, vector<6x768xbf16>,
    %c0_123 = arith.constant 0 : index
    %c66_124 = arith.constant 66 : index
    %107 = vector.load %arg15[%c0_123, %c66_124] : memref<6x1152xbf16, #tpu.memory_space<vmem>>, vector<6x768xbf16>
    %c36_125 = arith.constant 36 : index
    %c0_126 = arith.constant 0 : index
    %108 = vector.load %arg16[%c36_125, %c0_126] : memref<150x768xbf16, #tpu.memory_space<vmem>>, vector<6x768xbf16>
    tpu.vector_store %arg16[%c36_125, %c0_126], %107 {strides = array<i32>} : memref<150x768xbf16, #tpu.memory_space<vmem>>, vector<6x768xbf16>,
    %c0_127 = arith.constant 0 : index
    %c68_128 = arith.constant 68 : index
    %109 = vector.load %arg15[%c0_127, %c68_128] : memref<6x1152xbf16, #tpu.memory_space<vmem>>, vector<6x768xbf16>
    %c42 = arith.constant 42 : index
    %c0_129 = arith.constant 0 : index
    %110 = vector.load %arg16[%c42, %c0_129] : memref<150x768xbf16, #tpu.memory_space<vmem>>, vector<6x768xbf16>
    tpu.vector_store %arg16[%c42, %c0_129], %109 {strides = array<i32>} : memref<150x768xbf16, #tpu.memory_space<vmem>>, vector<6x768xbf16>,
    %c0_130 = arith.constant 0 : index
    %c70 = arith.constant 70 : index
    %111 = vector.load %arg15[%c0_130, %c70] : memref<6x1152xbf16, #tpu.memory_space<vmem>>, vector<6x768xbf16>
    %c48 = arith.constant 48 : index
    %c0_131 = arith.constant 0 : index
    %112 = vector.load %arg16[%c48, %c0_131] : memref<150x768xbf16, #tpu.memory_space<vmem>>, vector<6x768xbf16>
    tpu.vector_store %arg16[%c48, %c0_131], %111 {strides = array<i32>} : memref<150x768xbf16, #tpu.memory_space<vmem>>, vector<6x768xbf16>,
    %c0_132 = arith.constant 0 : index
    %c72 = arith.constant 72 : index
    %113 = vector.load %arg15[%c0_132, %c72] : memref<6x1152xbf16, #tpu.memory_space<vmem>>, vector<6x768xbf16>
    %c54 = arith.constant 54 : index
    %c0_133 = arith.constant 0 : index
    %114 = vector.load %arg16[%c54, %c0_133] : memref<150x768xbf16, #tpu.memory_space<vmem>>, vector<6x768xbf16>
    tpu.vector_store %arg16[%c54, %c0_133], %113 {strides = array<i32>} : memref<150x768xbf16, #tpu.memory_space<vmem>>, vector<6x768xbf16>,
    %c0_134 = arith.constant 0 : index
    %c128_135 = arith.constant 128 : index
    %115 = vector.load %arg15[%c0_134, %c128_135] : memref<6x1152xbf16, #tpu.memory_space<vmem>>, vector<6x768xbf16>
    %c60 = arith.constant 60 : index
    %c0_136 = arith.constant 0 : index
    %116 = vector.load %arg16[%c60, %c0_136] : memref<150x768xbf16, #tpu.memory_space<vmem>>, vector<6x768xbf16>
    tpu.vector_store %arg16[%c60, %c0_136], %115 {strides = array<i32>} : memref<150x768xbf16, #tpu.memory_space<vmem>>, vector<6x768xbf16>,
    %c0_137 = arith.constant 0 : index
    %c130_138 = arith.constant 130 : index
    %117 = vector.load %arg15[%c0_137, %c130_138] : memref<6x1152xbf16, #tpu.memory_space<vmem>>, vector<6x768xbf16>
    %c66_139 = arith.constant 66 : index
    %c0_140 = arith.constant 0 : index
    %118 = vector.load %arg16[%c66_139, %c0_140] : memref<150x768xbf16, #tpu.memory_space<vmem>>, vector<6x768xbf16>
    tpu.vector_store %arg16[%c66_139, %c0_140], %117 {strides = array<i32>} : memref<150x768xbf16, #tpu.memory_space<vmem>>, vector<6x768xbf16>,
    %c0_141 = arith.constant 0 : index
    %c132_142 = arith.constant 132 : index
    %119 = vector.load %arg15[%c0_141, %c132_142] : memref<6x1152xbf16, #tpu.memory_space<vmem>>, vector<6x768xbf16>
    %c72_143 = arith.constant 72 : index
    %c0_144 = arith.constant 0 : index
    %120 = vector.load %arg16[%c72_143, %c0_144] : memref<150x768xbf16, #tpu.memory_space<vmem>>, vector<6x768xbf16>
    tpu.vector_store %arg16[%c72_143, %c0_144], %119 {strides = array<i32>} : memref<150x768xbf16, #tpu.memory_space<vmem>>, vector<6x768xbf16>,
    %c0_145 = arith.constant 0 : index
    %c134 = arith.constant 134 : index
    %121 = vector.load %arg15[%c0_145, %c134] : memref<6x1152xbf16, #tpu.memory_space<vmem>>, vector<6x768xbf16>
    %c78 = arith.constant 78 : index
    %c0_146 = arith.constant 0 : index
    %122 = vector.load %arg16[%c78, %c0_146] : memref<150x768xbf16, #tpu.memory_space<vmem>>, vector<6x768xbf16>
    tpu.vector_store %arg16[%c78, %c0_146], %121 {strides = array<i32>} : memref<150x768xbf16, #tpu.memory_space<vmem>>, vector<6x768xbf16>,
    %c0_147 = arith.constant 0 : index
    %c136 = arith.constant 136 : index
    %123 = vector.load %arg15[%c0_147, %c136] : memref<6x1152xbf16, #tpu.memory_space<vmem>>, vector<6x768xbf16>
    %c84 = arith.constant 84 : index
    %c0_148 = arith.constant 0 : index
    %124 = vector.load %arg16[%c84, %c0_148] : memref<150x768xbf16, #tpu.memory_space<vmem>>, vector<6x768xbf16>
    tpu.vector_store %arg16[%c84, %c0_148], %123 {strides = array<i32>} : memref<150x768xbf16, #tpu.memory_space<vmem>>, vector<6x768xbf16>,
    %c0_149 = arith.constant 0 : index
    %c192 = arith.constant 192 : index
    %125 = vector.load %arg15[%c0_149, %c192] : memref<6x1152xbf16, #tpu.memory_space<vmem>>, vector<6x768xbf16>
    %c90 = arith.constant 90 : index
    %c0_150 = arith.constant 0 : index
    %126 = vector.load %arg16[%c90, %c0_150] : memref<150x768xbf16, #tpu.memory_space<vmem>>, vector<6x768xbf16>
    tpu.vector_store %arg16[%c90, %c0_150], %125 {strides = array<i32>} : memref<150x768xbf16, #tpu.memory_space<vmem>>, vector<6x768xbf16>,
    %c0_151 = arith.constant 0 : index
    %c194 = arith.constant 194 : index
    %127 = vector.load %arg15[%c0_151, %c194] : memref<6x1152xbf16, #tpu.memory_space<vmem>>, vector<6x768xbf16>
    %c96_152 = arith.constant 96 : index
    %c0_153 = arith.constant 0 : index
    %128 = vector.load %arg16[%c96_152, %c0_153] : memref<150x768xbf16, #tpu.memory_space<vmem>>, vector<6x768xbf16>
    tpu.vector_store %arg16[%c96_152, %c0_153], %127 {strides = array<i32>} : memref<150x768xbf16, #tpu.memory_space<vmem>>, vector<6x768xbf16>,
    %c0_154 = arith.constant 0 : index
    %c196 = arith.constant 196 : index
    %129 = vector.load %arg15[%c0_154, %c196] : memref<6x1152xbf16, #tpu.memory_space<vmem>>, vector<6x768xbf16>
    %c102 = arith.constant 102 : index
    %c0_155 = arith.constant 0 : index
    %130 = vector.load %arg16[%c102, %c0_155] : memref<150x768xbf16, #tpu.memory_space<vmem>>, vector<6x768xbf16>
    tpu.vector_store %arg16[%c102, %c0_155], %129 {strides = array<i32>} : memref<150x768xbf16, #tpu.memory_space<vmem>>, vector<6x768xbf16>,
    %c0_156 = arith.constant 0 : index
    %c198 = arith.constant 198 : index
    %131 = vector.load %arg15[%c0_156, %c198] : memref<6x1152xbf16, #tpu.memory_space<vmem>>, vector<6x768xbf16>
    %c108 = arith.constant 108 : index
    %c0_157 = arith.constant 0 : index
    %132 = vector.load %arg16[%c108, %c0_157] : memref<150x768xbf16, #tpu.memory_space<vmem>>, vector<6x768xbf16>
    tpu.vector_store %arg16[%c108, %c0_157], %131 {strides = array<i32>} : memref<150x768xbf16, #tpu.memory_space<vmem>>, vector<6x768xbf16>,
    %c0_158 = arith.constant 0 : index
    %c200 = arith.constant 200 : index
    %133 = vector.load %arg15[%c0_158, %c200] : memref<6x1152xbf16, #tpu.memory_space<vmem>>, vector<6x768xbf16>
    %c114 = arith.constant 114 : index
    %c0_159 = arith.constant 0 : index
    %134 = vector.load %arg16[%c114, %c0_159] : memref<150x768xbf16, #tpu.memory_space<vmem>>, vector<6x768xbf16>
    tpu.vector_store %arg16[%c114, %c0_159], %133 {strides = array<i32>} : memref<150x768xbf16, #tpu.memory_space<vmem>>, vector<6x768xbf16>,
    %c0_160 = arith.constant 0 : index
    %c256 = arith.constant 256 : index
    %135 = vector.load %arg15[%c0_160, %c256] : memref<6x1152xbf16, #tpu.memory_space<vmem>>, vector<6x768xbf16>
    %c120 = arith.constant 120 : index
    %c0_161 = arith.constant 0 : index
    %136 = vector.load %arg16[%c120, %c0_161] : memref<150x768xbf16, #tpu.memory_space<vmem>>, vector<6x768xbf16>
    tpu.vector_store %arg16[%c120, %c0_161], %135 {strides = array<i32>} : memref<150x768xbf16, #tpu.memory_space<vmem>>, vector<6x768xbf16>,
    %c0_162 = arith.constant 0 : index
    %c258 = arith.constant 258 : index
    %137 = vector.load %arg15[%c0_162, %c258] : memref<6x1152xbf16, #tpu.memory_space<vmem>>, vector<6x768xbf16>
    %c126 = arith.constant 126 : index
    %c0_163 = arith.constant 0 : index
    %138 = vector.load %arg16[%c126, %c0_163] : memref<150x768xbf16, #tpu.memory_space<vmem>>, vector<6x768xbf16>
    tpu.vector_store %arg16[%c126, %c0_163], %137 {strides = array<i32>} : memref<150x768xbf16, #tpu.memory_space<vmem>>, vector<6x768xbf16>,
    %c0_164 = arith.constant 0 : index
    %c260 = arith.constant 260 : index
    %139 = vector.load %arg15[%c0_164, %c260] : memref<6x1152xbf16, #tpu.memory_space<vmem>>, vector<6x768xbf16>
    %c132_165 = arith.constant 132 : index
    %c0_166 = arith.constant 0 : index
    %140 = vector.load %arg16[%c132_165, %c0_166] : memref<150x768xbf16, #tpu.memory_space<vmem>>, vector<6x768xbf16>
    tpu.vector_store %arg16[%c132_165, %c0_166], %139 {strides = array<i32>} : memref<150x768xbf16, #tpu.memory_space<vmem>>, vector<6x768xbf16>,
    %c0_167 = arith.constant 0 : index
    %c262 = arith.constant 262 : index
    %141 = vector.load %arg15[%c0_167, %c262] : memref<6x1152xbf16, #tpu.memory_space<vmem>>, vector<6x768xbf16>
    %c138 = arith.constant 138 : index
    %c0_168 = arith.constant 0 : index
    %142 = vector.load %arg16[%c138, %c0_168] : memref<150x768xbf16, #tpu.memory_space<vmem>>, vector<6x768xbf16>
    tpu.vector_store %arg16[%c138, %c0_168], %141 {strides = array<i32>} : memref<150x768xbf16, #tpu.memory_space<vmem>>, vector<6x768xbf16>,
    %c0_169 = arith.constant 0 : index
    %c264 = arith.constant 264 : index
    %143 = vector.load %arg15[%c0_169, %c264] : memref<6x1152xbf16, #tpu.memory_space<vmem>>, vector<6x768xbf16>
    %c144 = arith.constant 144 : index
    %c0_170 = arith.constant 0 : index
    %144 = vector.load %arg16[%c144, %c0_170] : memref<150x768xbf16, #tpu.memory_space<vmem>>, vector<6x768xbf16>
    tpu.vector_store %arg16[%c144, %c0_170], %143 {strides = array<i32>} : memref<150x768xbf16, #tpu.memory_space<vmem>>, vector<6x768xbf16>,
    %c0_171 = arith.constant 0 : index
    %c0_172 = arith.constant 0 : index
    %145 = vector.load %arg4[%c0_171, %c0_172] : memref<16x150xbf16, #tpu.memory_space<vmem>>, vector<16x150xbf16>
    %c0_173 = arith.constant 0 : index
    %c0_174 = arith.constant 0 : index
    %146 = vector.load %arg16[%c0_173, %c0_174] : memref<150x768xbf16, #tpu.memory_space<vmem>>, vector<150x768xbf16>
    %cst_175 = arith.constant dense<0.000000e+00> : vector<16x768xf32>
    %147 = tpu.matmul %145, %146, %cst_175 {dimension_numbers = #tpu.dot_dimension_numbers<[1], [0], [0], [1], [0, 0, 1, 1], [], []>} : vector<16x150xbf16>, vector<150x768xbf16>, vector<16x768xf32> -> vector<16x768xf32>
    %c0_176 = arith.constant 0 : index
    %c0_177 = arith.constant 0 : index
    %148 = vector.load %arg5[%c0_176, %c0_177] : memref<16x1xf32, #tpu.memory_space<vmem>>, vector<16x1xf32>
    %149 = vector.broadcast %148 : vector<16x1xf32> to vector<16x768xf32>
    %150 = arith.addf %147, %149 : vector<16x768xf32>
    %cst_178 = arith.constant 0.000000e+00 : f32
    %151 = vector.broadcast %cst_178 : f32 to vector<16x768xf32>
    %152 = arith.maximumf %150, %151 : vector<16x768xf32>
    %c0_179 = arith.constant 0 : index
    %c0_180 = arith.constant 0 : index
    %153 = vector.load %arg17[%c0_179, %c0_180] : memref<16x768xf32, #tpu.memory_space<vmem>>, vector<16x768xf32>
    tpu.vector_store %arg17[%c0_179, %c0_180], %152 {strides = array<i32>} : memref<16x768xf32, #tpu.memory_space<vmem>>, vector<16x768xf32>,
    %c0_181 = arith.constant 0 : index
    %c0_182 = arith.constant 0 : index
    %154 = vector.load %arg17[%c0_181, %c0_182] : memref<16x768xf32, #tpu.memory_space<vmem>>, vector<16x640xf32>
    %c0_183 = arith.constant 0 : index
    %c2_184 = arith.constant 2 : index
    %155 = vector.load %arg17[%c0_183, %c2_184] : memref<16x768xf32, #tpu.memory_space<vmem>>, vector<16x640xf32>
    %156 = arith.addf %154, %155 : vector<16x640xf32>
    %c0_185 = arith.constant 0 : index
    %c64_186 = arith.constant 64 : index
    %157 = vector.load %arg17[%c0_185, %c64_186] : memref<16x768xf32, #tpu.memory_space<vmem>>, vector<16x640xf32>
    %158 = arith.addf %156, %157 : vector<16x640xf32>
    %c0_187 = arith.constant 0 : index
    %c66_188 = arith.constant 66 : index
    %159 = vector.load %arg17[%c0_187, %c66_188] : memref<16x768xf32, #tpu.memory_space<vmem>>, vector<16x640xf32>
    %160 = arith.addf %158, %159 : vector<16x640xf32>
    %cst_189 = arith.constant 2.500000e-01 : f32
    %161 = vector.broadcast %cst_189 : f32 to vector<16x640xf32>
    %162 = arith.mulf %160, %161 : vector<16x640xf32>
    %163 = arith.truncf %162 : vector<16x640xf32> to vector<16x640xbf16>
    %c0_190 = arith.constant 0 : index
    %c0_191 = arith.constant 0 : index
    %164 = vector.load %arg6[%c0_190, %c0_191] : memref<640x512xbf16, #tpu.memory_space<vmem>>, vector<640x512xbf16>
    %cst_192 = arith.constant dense<0.000000e+00> : vector<16x512xf32>
    %165 = tpu.matmul %163, %164, %cst_192 {dimension_numbers = #tpu.dot_dimension_numbers<[1], [0], [0], [1], [0, 0, 1, 1], [], []>} : vector<16x640xbf16>, vector<640x512xbf16>, vector<16x512xf32> -> vector<16x512xf32>
    %c0_193 = arith.constant 0 : index
    %c0_194 = arith.constant 0 : index
    %166 = vector.load %arg7[%c0_193, %c0_194] : memref<16x512xf32, #tpu.memory_space<vmem>>, vector<16x512xf32>
    %167 = arith.mulf %165, %166 : vector<16x512xf32>
    %cst_195 = arith.constant dense<0.000000e+00> : vector<512xf32>
    %168 = vector.multi_reduction <add>, %167, %cst_195 [0] : vector<16x512xf32> to vector<512xf32>
    %169 = vector.shape_cast %168 : vector<512xf32> to vector<1x512xf32>
    %170 = arith.truncf %169 : vector<1x512xf32> to vector<1x512xbf16>
    %c0_196 = arith.constant 0 : index
    %c0_197 = arith.constant 0 : index
    %171 = vector.load %arg8[%c0_196, %c0_197] : memref<512x120xbf16, #tpu.memory_space<vmem>>, vector<512x120xbf16>
    %cst_198 = arith.constant dense<0.000000e+00> : vector<1x120xf32>
    %172 = tpu.matmul %170, %171, %cst_198 {dimension_numbers = #tpu.dot_dimension_numbers<[1], [0], [0], [1], [0, 0, 1, 1], [], []>} : vector<1x512xbf16>, vector<512x120xbf16>, vector<1x120xf32> -> vector<1x120xf32>
    %c0_199 = arith.constant 0 : index
    %c0_200 = arith.constant 0 : index
    %173 = vector.load %arg9[%c0_199, %c0_200] : memref<1x120xf32, #tpu.memory_space<vmem>>, vector<1x120xf32>
    %174 = arith.addf %172, %173 : vector<1x120xf32>
    %cst_201 = arith.constant 0.000000e+00 : f32
    %175 = vector.broadcast %cst_201 : f32 to vector<1x120xf32>
    %176 = arith.maximumf %174, %175 : vector<1x120xf32>
    %177 = arith.truncf %176 : vector<1x120xf32> to vector<1x120xbf16>
    %c0_202 = arith.constant 0 : index
    %c0_203 = arith.constant 0 : index
    %178 = vector.load %arg10[%c0_202, %c0_203] : memref<120x128xbf16, #tpu.memory_space<vmem>>, vector<120x128xbf16>
    %cst_204 = arith.constant dense<0.000000e+00> : vector<1x128xf32>
    %179 = tpu.matmul %177, %178, %cst_204 {dimension_numbers = #tpu.dot_dimension_numbers<[1], [0], [0], [1], [0, 0, 1, 1], [], []>} : vector<1x120xbf16>, vector<120x128xbf16>, vector<1x128xf32> -> vector<1x128xf32>
    %c0_205 = arith.constant 0 : index
    %c0_206 = arith.constant 0 : index
    %180 = vector.load %arg11[%c0_205, %c0_206] : memref<1x128xf32, #tpu.memory_space<vmem>>, vector<1x128xf32>
    %181 = arith.addf %179, %180 : vector<1x128xf32>
    %cst_207 = arith.constant dense<0xFF800000> : vector<1xf32>
    %182 = vector.multi_reduction <maximumf>, %181, %cst_207 [1] : vector<1x128xf32> to vector<1xf32>
    %183 = vector.shape_cast %182 : vector<1xf32> to vector<1x1xf32>
    %184 = vector.broadcast %183 : vector<1x1xf32> to vector<1x128xf32>
    %185 = arith.subf %181, %184 : vector<1x128xf32>
    %186 = math.exp %185 : vector<1x128xf32>
    %cst_208 = arith.constant dense<0.000000e+00> : vector<1xf32>
    %187 = vector.multi_reduction <add>, %186, %cst_208 [1] : vector<1x128xf32> to vector<1xf32>
    %188 = vector.shape_cast %187 : vector<1xf32> to vector<1x1xf32>
    %189 = vector.broadcast %188 : vector<1x1xf32> to vector<1x128xf32>
    %190 = arith.divf %186, %189 : vector<1x128xf32>
    %191 = vector.shape_cast %190 : vector<1x128xf32> to vector<1x128xf32>
    %192 = vector.broadcast %191 : vector<1x128xf32> to vector<8x128xf32>
    %c0_209 = arith.constant 0 : index
    %c0_210 = arith.constant 0 : index
    %c0_211 = arith.constant 0 : index
    %193 = vector.load %arg12[%c0_209, %c0_210, %c0_211] : memref<1x8x128xf32, #tpu.memory_space<vmem>>, vector<1x8x128xf32>
    %194 = vector.shape_cast %193 : vector<1x8x128xf32> to vector<8x128xf32>
    %195 = vector.shape_cast %192 : vector<8x128xf32> to vector<1x8x128xf32>
    tpu.vector_store %arg12[%c0_209, %c0_210, %c0_211], %195 {strides = array<i32>} : memref<1x8x128xf32, #tpu.memory_space<vmem>>, vector<1x8x128xf32>,
    return
  }
  func.func @transform_0(%arg0: i32) -> (i32, i32, i32) {
    %c0_i32 = arith.constant 0 : i32
    %c0_i32_0 = arith.constant 0 : i32
    %c0_i32_1 = arith.constant 0 : i32
    return %arg0, %c0_i32, %c0_i32_0 : i32, i32, i32
  }
  func.func @transform_1(%arg0: i32) -> (i32, i32) {
    %c0_i32 = arith.constant 0 : i32
    %c0_i32_0 = arith.constant 0 : i32
    %c0_i32_1 = arith.constant 0 : i32
    return %c0_i32, %c0_i32_0 : i32, i32
  }
  func.func @transform_2(%arg0: i32) -> (i32, i32) {
    %c0_i32 = arith.constant 0 : i32
    %c0_i32_0 = arith.constant 0 : i32
    %c0_i32_1 = arith.constant 0 : i32
    return %c0_i32, %c0_i32_0 : i32, i32
  }
  func.func @transform_3(%arg0: i32) -> (i32, i32) {
    %c0_i32 = arith.constant 0 : i32
    %c0_i32_0 = arith.constant 0 : i32
    %c0_i32_1 = arith.constant 0 : i32
    return %c0_i32, %c0_i32_0 : i32, i32
  }
  func.func @transform_4(%arg0: i32) -> (i32, i32) {
    %c0_i32 = arith.constant 0 : i32
    %c0_i32_0 = arith.constant 0 : i32
    %c0_i32_1 = arith.constant 0 : i32
    return %c0_i32, %c0_i32_0 : i32, i32
  }
  func.func @transform_5(%arg0: i32) -> (i32, i32) {
    %c0_i32 = arith.constant 0 : i32
    %c0_i32_0 = arith.constant 0 : i32
    %c0_i32_1 = arith.constant 0 : i32
    return %c0_i32, %c0_i32_0 : i32, i32
  }
  func.func @transform_6(%arg0: i32) -> (i32, i32) {
    %c0_i32 = arith.constant 0 : i32
    %c0_i32_0 = arith.constant 0 : i32
    %c0_i32_1 = arith.constant 0 : i32
    return %c0_i32, %c0_i32_0 : i32, i32
  }
  func.func @transform_7(%arg0: i32) -> (i32, i32) {
    %c0_i32 = arith.constant 0 : i32
    %c0_i32_0 = arith.constant 0 : i32
    %c0_i32_1 = arith.constant 0 : i32
    return %c0_i32, %c0_i32_0 : i32, i32
  }
  func.func @transform_8(%arg0: i32) -> (i32, i32) {
    %c0_i32 = arith.constant 0 : i32
    %c0_i32_0 = arith.constant 0 : i32
    %c0_i32_1 = arith.constant 0 : i32
    return %c0_i32, %c0_i32_0 : i32, i32
  }
  func.func @transform_9(%arg0: i32) -> (i32, i32) {
    %c0_i32 = arith.constant 0 : i32
    %c0_i32_0 = arith.constant 0 : i32
    %c0_i32_1 = arith.constant 0 : i32
    return %c0_i32, %c0_i32_0 : i32, i32
  }
  func.func @transform_10(%arg0: i32) -> (i32, i32) {
    %c0_i32 = arith.constant 0 : i32
    %c0_i32_0 = arith.constant 0 : i32
    %c0_i32_1 = arith.constant 0 : i32
    return %c0_i32, %c0_i32_0 : i32, i32
  }
  func.func @transform_11(%arg0: i32) -> (i32, i32, i32) {
    %c0_i32 = arith.constant 0 : i32
    %c0_i32_0 = arith.constant 0 : i32
    %c0_i32_1 = arith.constant 0 : i32
    return %arg0, %c0_i32, %c0_i32_0 : i32, i32, i32
  }
}

</mosaic_0001>

<bundles_post_ra>
// kernel: lenet_forward.1
= control target key start
LH: loop header
LB: loop body
LE: loop exit
PB: predicated region body
PF: predicated region fallthrough
CT: control target
= control target key end

     0   :  { %16 = vsyncpa [#allocation8], 0  ;;  %s9053_s17 = smov 0   ;;  %s12489_s0 = inlined_call_operand.vmem [shape: bf16[2,1,1536], index: 0, kind: input, shape index: {}]   ;;  %s12490_s1 = inlined_call_operand.vmem [shape: bf16[6,25], index: 1, kind: input, shape index: {}]   ;;  %s12491_s2 = inlined_call_operand.vmem [shape: f32[6,1], index: 2, kind: input, shape index: {}]   ;;  %s12492_s3 = inlined_call_operand.vmem [shape: bf16[16,150], index: 3, kind: input, shape index: {}]   ;;  %s12493_s4 = inlined_call_operand.vmem [shape: f32[16,1], index: 4, kind: input, shape index: {}]   ;;  %s12494_s5 = inlined_call_operand.hbm [shape: bf16[640,512], index: 5, kind: input, shape index: {}]   ;;  %s12495_s6 = inlined_call_operand.vmem [shape: f32[16,512], index: 6, kind: input, shape index: {}]   ;;  %s12496_s7 = inlined_call_operand.vmem [shape: bf16[512,120], index: 7, kind: input, shape index: {}]   ;;  %s12497_s8 = inlined_call_operand.vmem [shape: f32[1,120], index: 8, kind: input, shape index: {}]   ;;  %s12498_s9 = inlined_call_operand.vmem [shape: bf16[120,128], index: 9, kind: input, shape index: {}]   ;;  %s12499_s10 = inlined_call_operand.vmem [shape: f32[1,128], index: 10, kind: input, shape index: {}]   ;;  %s12500_s11 = inlined_call_operand.vmem [shape: f32[2,8,128], index: 11, kind: output, shape index: {}]  }
   0x1 LB: > { %s9059_s18 = sadd.s32 4294967295, %s8960_s17   ;;  %p7912_p0 = scmp.ge.s32.totalorder %s8960_s17, 1  ;;  %s8960_s17 = sphi %s9053_s17, %s22_s17  }
   0x2   : > { %p289_p1 = scmp.lt.s32.totalorder %s8960_s17, 3  ;;  %s8962_s19 = smov [#allocation7]  }
   0x3   : > { %s313_s20 = sshll.u32 %s8962_s19, 4  ;;  %p8325_p3 = scmp.eq.s32.totalorder %s9059_s18, 0  ;;  %s314_s20 = int_to_ptr.vmem [resolvable:$true] %s313_s20 }
   0x4   : > { %p9063_p2 = pnand %p7912_p0, %p289_p1  ;;  %s8935_s22 = scalar_lea.vmem %s314_s20, 20480 }
   0x5   : > { %p8936_p7 = scmp.ne.s32.totalorder %s314_s20, %s8935_s22  ;;  %p8943_p10 = scmp.lt.s32.totalorder %s314_s20, %s314_s20 }
   0x6   : > { %p8321_p4 = pneg %p9063_p2  ;;  %p8944_p11 = scmp.lt.s32.totalorder %s8935_s22, %s8935_s22 }
   0x8   : > { %p8322_p5 = pnand %p8325_p3, %p8321_p4  ;;  %p8945_p12 = por %p8944_p11, %p8943_p10 }
   0xa   : > { %p8926_p6 = pneg %p8322_p5 }
   0xc   : > { %p8938_p8 = pnand %p8936_p7, %p8926_p6 }
   0xe   : > { %p8939_p9 = pneg %p8938_p8 }
  0x10   : > { %p8946_p13 = pnand %p8945_p12, %p8939_p9 }
  0x12   : > { %8949 = shalt.err (!%p8946_p13)
}
  0x13   : > { %s8963_s23 = smov 256   ;;  %s8964_s24 = smov 16  }
  0x14   : > { %8324 = dma.hbm_to_vmem [thread:$0]  (!%p8322_p5), %s12494_s5, 20480, %s314_s20, [#allocation8], %s8963_s23, %s8963_s23, %s8964_s24  }
  0x15   : > { %351 = sbr.rel (%p9063_p2) target bundleno = 2460 (0x99c), region = 64 }
  0x1a   : > { %8955 = dma.done.wait (%p8325_p3), [#allocation8], 20480  }
  0x1b   : > { %8957 = vsyncadd (%p8325_p3), [#allocation8], 4294946816  ;;  %p389_p0 = scmp.lt.s32.totalorder %s9059_s18, 1  ;;  %v406_v0 = vlaneseq  ;;  %v8965_v1 = vmov 1935823168   ;;  %vm737_vm2 = vcmask 1041409  }
  0x1c   : > { %v404_v2 = vunpack.c.l.s4 %v8965_v1  ;;  %vm888_vm0 = vsmask.f32 7942  ;;  %vm890_vm1 = vsmask.f32 7958  ;;  %vm740_vm3 = vcmask 1045509   ;;  %s12501_s12 = smov 29  }
  0x1d   : > { %s12923_s18 = smov (!%p389_p0, %s9059_s18), 1  ;;  %v9085_v3 = vshrl.u32 %v406_v0, 7  ;;  %vm889_vm4 = vmand %vm737_vm2, %vm888_vm0  ;;  %s12505_s13 = smov 31   ;;  %vm1014_vm7 = vcmask 1042434   ;;  %vm1015_vm8 = vsmask.f32 2304 }
  0x1e   : > { %v405_v4 = vunpack.c.0.s8 %v404_v2  ;;  %s8316_s27 = smul.u32 12, %s12923_s18  ;;  %vm891_vm5 = vmand %vm740_vm3, %vm890_vm1  ;;  %s8968_s14 = smov 126   ;;  %vm1017_vm9 = vcmask 1046534   ;;  %vm1018_vm10 = vsmask.f32 6400 }
  0x1f   : > { %12614 = vst [vmem:[#allocation10_spill] sm:$0xff] %v9085_v3  ;;  %vm9105_vm6 = vmor %vm891_vm5, %vm889_vm4  ;;  %s8969_s15 = smov 124   ;;  %s8970_s16 = smov 95   ;;  %vm1165_vm13 = vsmask.f32 7946 }
  0x20   : > { %v9089_v5 = vsub.s32 %v405_v4, %v9085_v3  ;;  %s9095_s30 = scalar_lea.vmem %s12489_s0, %s8316_s27  ;;  %s8971_s19 = smov 93   ;;  %vm9207_vm11 = vmand %vm1014_vm7, %vm1015_vm8  ;;  %vm1167_vm15 = vsmask.f32 7962  ;;  %v3105_v61 = vld [vmem:[#allocation2 + $0x28] sm:$0x44]  ;;  %vm12502_vm8 = vcmask 1044484  }
  0x21   : > { %v2772_v6 = vld [vmem:[%s9095_s30] sm:$0xff]  ;;  %s8972_s20 = smov 64   ;;  %s8973_s21 = smov 62   ;;  %v8531_v51 = vld [vmem:[%s9095_s30 + $0x9] ss:$0 sps:$4 sm:$0x77]   ;;  %vm9213_vm12 = vmand %vm1017_vm9, %vm1018_vm10 }
  0x22   : > { %v9100_v7 = vld [vmem:[%s9095_s30 + $0x1] sm:$0xff]  ;;  %v2783_v8 = vrot.slane %v2772_v6, %v9089_v5  ;;  %v2776_v9 = vcombine.high %v2772_v6, %v2772_v6  ;;  %v912_v23 = vcombine.low %v2772_v6, %v2772_v6  ;;  %s8974_s22 = smov 60   ;;  %vm1166_vm14 = vmand %vm1014_vm7, %vm1165_vm13  ;;  %s8975_s23 = smov 30   ;;  %v9238_v62 = vrot.slane %v8531_v51, %v9089_v5 }
  0x23   : > { %v3267_v10 = vcombine.low %v9100_v7, %v9100_v7  ;;  %v3281_v16 = vrot.slane %v9100_v7, %v9089_v5  ;;  %v9204_v49 = vld [vmem:[%s9095_s30 + $0x1] sm:$0xff]  ;;  %v3387_v54 = vcombine.high %v9100_v7, %v9100_v7  ;;  %vm1168_vm0 = vmand %vm1017_vm9, %vm1167_vm15  ;;  %s12504_s24 = smov 28   ;;  %s8977_s25 = smov 127   ;;  %vm467_vm5 = vsmask.f32 256 }
  0x24   : > { %v9110_v12 = vrot.slane %v2783_v8, %v9089_v5  ;;  %v2791_v13 = vcombine.low %v2783_v8, %v2783_v8  ;;  %v2533_v14 = vcombine.high %v2783_v8, %v2783_v8  ;;  %v9113_v15 = vrot.slane %v2776_v9, %v9089_v5  ;;  %vm9232_vm1 = vmor %vm1168_vm0, %vm1166_vm14  ;;  %v9245_v2 = vld.sshfl [vmem:[%s9095_s30 + $0x8] sm:$0x15 pattern:$0x73625140]  ;;  %s8978_s26 = smov 125   ;;  %s8979_s27 = smov 94  }
  0x25   : > { %v3274_v19 = vrot.slane %v3267_v10, %v9089_v5  ;;  %v3283_v22 = vcombine.low %v3281_v16, %v3281_v16  ;;  %v919_v29 = vrot.slane %v912_v23, %v9089_v5  ;;  %v3139_v35 = vcombine.high %v3281_v16, %v3281_v16  ;;  %vm9254_vm4 = vmor %vm9213_vm12, %vm9207_vm11  ;;  %s8980_s28 = smov 96   ;;  %s8981_s29 = smov 63  }
  0x26   : > { %2845 = vrot.lane.b32.xlu1 %v9110_v12, %s12501_s12  ;;  %2585 = vrot.lane.b32.xlu0 %v9110_v12, %s12505_s13  ;;  %v2799_v17 = vrot.slane %v2791_v13, %v9089_v5  ;;  %v9123_v18 = vrot.slane %v2533_v14, %v9089_v5  ;;  %v9132_v21 = vrot.slane %v9113_v15, %v9089_v5  ;;  %v9181_v39 = vshll.u32 %v9110_v12, 16 }
  0x27   : > { %v3297_v20 = vrot.slane %v3274_v19, %v9089_v5  ;;  %v3304_v24 = vrot.slane %v3283_v22, %v9089_v5  ;;  %v3282_v25 = vcombine.low %v3274_v19, %v3274_v19  ;;  %v2792_v26 = vcombine.low %v9113_v15, %v9113_v15 }
  0x28   : > { %v935_v30 = vrot.slane %v919_v29, %v9089_v5  ;;  %v927_v31 = vcombine.high %v919_v29, %v919_v29  ;;  %v1204_v32 = vcombine.low %v919_v29, %v919_v29  ;;  %v2534_v36 = vcombine.high %v9113_v15, %v9113_v15 }
  0x29   : > { %v3290_v27 = vrot.slane %v3282_v25, %v9089_v5  ;;  %v2813_v28 = vrot.slane %v2792_v26, %v9089_v5  ;;  %v3311_v37 = vrot.slane %v3281_v16, %v9089_v5  ;;  %v9178_v38 = vrot.slane %v3139_v35, %v9089_v5 }
  0x2a   : > { %2843 = vrot.lane.b32.xlu1 %v2799_v17, %s12501_s12  ;;  %2587 = vrot.lane.b32.xlu0 %v9123_v18, %s12505_s13  ;;  %v942_v33 = vrot.slane %v927_v31, %v9089_v5  ;;  %v1212_v34 = vrot.slane %v1204_v32, %v9089_v5  ;;  %v9184_v40 = vrot.slane %v2534_v36, %v9089_v5  ;;  %v9190_v42 = vshll.u32 %v9123_v18, 16 }
  0x2b   : > { %v3192_v41 = vshll.u32 %v3311_v37, 16  ;;  %v3196_v43 = vshll.u32 %v9178_v38, 16  ;;  %v2966_v44 = vrot.slane %v9181_v39, 7  ;;  %v3040_v55 = vcombine.low %v9204_v49, %v9204_v49 }
  0x2c   : > { %v9200_v46 = vpack.i.bf16 %v9190_v42, %v9181_v39  ;;  %v2970_v47 = vrot.slane %v9190_v42, 7  ;;  %v9248_v4 = vrot.slane %v3387_v54, %v9089_v5  ;;  %v9261_v8 = vshll.u32 %v9132_v21, 16  ;;  %v8534_v54 = vld [vmem:[%s9095_s30 + $0x8] ss:$0 sps:$4 sm:$0x77]  }
  0x2d   : > { %v3194_v45 = vrot.slane %v3192_v41, 6  ;;  %v3198_v48 = vrot.slane %v3196_v43, 6  ;;  %v3457_v53 = vrot.slane %v3192_v41, 5  ;;  %v3461_v58 = vrot.slane %v3196_v43, 5  ;;  %v473_v41 = vld [vmem:[#allocation2] sm:$0x11] }
  0x2e   : > { %3337 = vrot.lane.b32.xlu1 %v3297_v20, %s8968_s14  ;;  %2589 = vrot.lane.b32.xlu0 %v9132_v21, %s12505_s13  ;;  %v9229_v56 = vpack.i.bf16 %v2970_v47, %v2966_v44  ;;  %v3047_v60 = vrot.slane %v3040_v55, %v9089_v5  ;;  %v9265_v9 = vrot.slane %v9245_v2, %v9089_v5  ;;  %v9275_v15 = vshll.u32 %v9184_v40, 16  ;;  %v476_v43 = vld [vmem:[#allocation2 + $0x38] sm:$0x11]  ;;  %v8536_v55 = vld [vmem:[%s9095_s30 + $0x8] ss:$0 sps:$4 sm:$0x77]  }
  0x2f   : > { %v8376_v57 = vpack.i.bf16 %v3198_v48, %v3194_v45  ;;  %v8381_v1 = vpack.i.bf16 %v3461_v58, %v3457_v53  ;;  %v2828_v10 = vcombine.low %v9245_v2, %v9245_v2  ;;  %v3320_v14 = vcombine.low %v9238_v62, %v9238_v62  ;;  %v8533_v53 = vld [vmem:[%s9095_s30 + $0x8] ss:$0 sps:$4 sm:$0x77]  }
  0x30   : > { %v3055_v63 = vcombine.high %v3047_v60, %v3047_v60  ;;  %v3063_v0 = vrot.slane %v3047_v60, %v9089_v5  ;;  %v3424_v16 = vrot.slane %v9248_v4, %v9089_v5  ;;  %v2974_v20 = vrot.slane %v9261_v8, 7 }
  0x31   : > { %v9287_v22 = vrot.slane %v2828_v10, %v9089_v5  ;;  %v3327_v23 = vrot.slane %v3320_v14, %v9089_v5  ;;  %v9296_v26 = vpack.i.bf16 %v9275_v15, %v9261_v8  ;;  %vm12503_vm7 = vcmask 1040384  }
  0x32   : > { %3339 = vrot.lane.b32.xlu0 %v3304_v24, %s8968_s14  ;;  %703 = vrot.lane.b32.xlu1 %v2799_v17, %s8968_s14  ;;  %v3106_v7 = vsel %vm9254_vm4, %v3063_v0, %v3105_v61  ;;  %v3070_v13 = vrot.slane %v3055_v63, %v9089_v5  ;;  %v2978_v24 = vrot.slane %v9275_v15, 7  ;;  %v3463_v25 = vshll.u32 %v3424_v16, 16  ;;  %vm468_vm10 = vmand %vm12503_vm7, %vm467_vm5  ;;  %v8535_v61 = vld [vmem:[%s9095_s30 + $0x8] ss:$0 sps:$4 sm:$0x77]  }
  0x33   : > { %3107 = vst [vmem:[#allocation2 + $0x28] sm:$0x44] %v3106_v7  ;;  %vm470_vm9 = vsmask.f32 4352  ;;  %v1387_v32 = vrot.slane %v9181_v39, 5  ;;  %v8411_v50 = vpack.i.bf16 %v2974_v20, %v2970_v47  ;;  %v8406_v51 = vpack.i.bf16 %v9261_v8, %v9190_v42 }
  0x34   : > { %v3202_v29 = vrot.slane %v3463_v25, 6  ;;  %vm471_vm11 = vmand %vm12502_vm8, %vm470_vm9  ;;  %v1114_v52 = vrot.slane %v9190_v42, 6  ;;  %v9361_v47 = vrot.slane %v8534_v54, %v9089_v5  ;;  %vm595_vm13 = vcmask 1043456  }
  0x35   : > { %vm9321_vm12 = vmor %vm471_vm11, %vm468_vm10  ;;  %vm738_vm14 = vsmask.f32 1280  ;;  %vm741_vm15 = vsmask.f32 5376  ;;  %vm12517_vm0 = vcmask 236544   ;;  %vm12515_vm5 = vcmask 252928  }
  0x36   : > { %3335 = vrot.lane.b32.xlu0 %v3290_v27, %s8968_s14  ;;  %2847 = vrot.lane.b32.xlu1 %v2813_v28, %s12501_s12  ;;  %v8391_v27 = vpack.i.bf16 %v2978_v24, %v2974_v20  ;;  %v8396_v31 = vpack.i.bf16 %v9181_v39, %v3202_v29  ;;  %vm12509_vm9 = vcmask 1043459   ;;  %vm1292_vm10 = vsmask.f32 3328  ;;  %vm9374_vm11 = vmand %vm737_vm2, %vm738_vm14 }
  0x37   : > { %vm12506_vm8 = vcmask 1047559   ;;  %vm9383_vm7 = vmand %vm740_vm3, %vm741_vm15  ;;  %vm12522_vm2 = vcmask 1031168   ;;  %vm1295_vm14 = vsmask.f32 7424  ;;  %v1122_v54 = vrot.slane %v9275_v15, 6 }
  0x38   : > { %vm9404_vm3 = vmor %vm9383_vm7, %vm9374_vm11  ;;  %v1399_v10 = vrot.slane %v9275_v15, 5  ;;  %vm12516_vm11 = vcmask 1014784  }
  0x39   : > { %vm9423_vm7 = vmand %vm12509_vm9, %vm1292_vm10  ;;  %vm12511_vm9 = vcmask 490496  }
  0x3a   : > { %705 = vrot.lane.b32.xlu0 %v9110_v12, %s8968_s14  ;;  %980 = vrot.lane.b32.xlu1 %v935_v30, %s8969_s15  ;;  %vm1296_vm15 = vmand %vm12506_vm8, %vm1295_vm14  ;;  %vm12514_vm14 = vcmask 777216   ;;  %vm12510_vm8 = vcmask 506880  }
  0x3b   : > { %vm9452_vm10 = vmor %vm1296_vm15, %vm9423_vm7  ;;  %vm12512_vm7 = vcmask 760832   ;;  %vm12513_vm15 = vcmask 523264  }
  0x3e   : > { %982 = vrot.lane.b32.xlu0 %v942_v33, %s8969_s15  ;;  %1257 = vrot.lane.b32.xlu1 %v1212_v34, %s8970_s16 }
  0x42   : > { %1259 = vrot.lane.b32.xlu0 %v935_v30, %s8970_s16  ;;  %1533 = vrot.lane.b32.xlu1 %v9110_v12, %s8971_s19 }
  0x46   : > { %1535 = vrot.lane.b32.xlu0 %v9123_v18, %s8971_s19  ;;  %1791 = vrot.lane.b32.xlu1 %v2799_v17, %s8972_s20 }
  0x4a   : > { %1793 = vrot.lane.b32.xlu0 %v9110_v12, %s8972_s20  ;;  %2056 = vrot.lane.b32.xlu1 %v935_v30, %s8973_s21 }
  0x4e   : > { %2058 = vrot.lane.b32.xlu0 %v942_v33, %s8973_s21  ;;  %2321 = vrot.lane.b32.xlu1 %v1212_v34, %s8974_s22  ;;  %v1110_v33 = vrot.slane %v9181_v39, 6  ;;  %v9314_v34 = vld [vmem:[%s9095_s30] sm:$0xff] }
  0x4f   : > { %v409_v35 = vrot.slane %v9314_v34, %v9089_v5 }
  0x52   : > { %2323 = vrot.lane.b32.xlu0 %v935_v30, %s8974_s22  ;;  %707 = vrot.lane.b32.xlu1 %v2813_v28, %s8968_s14 }
  0x56   : > { %984 = vrot.lane.b32.xlu0 %v9110_v12, %s8969_s15  ;;  %1261 = vrot.lane.b32.xlu1 %v2799_v17, %s8970_s16 }
  0x5a   : > { %1537 = vrot.lane.b32.xlu0 %v9132_v21, %s8971_s19  ;;  %1795 = vrot.lane.b32.xlu1 %v2813_v28, %s8972_s20  ;;  %v3465_v28 = vrot.slane %v3463_v25, 5 }
  0x5c   : > { %v8401_v30 = vpack.i.bf16 %v2966_v44, %v3465_v28  ;;  %v1391_v44 = vrot.slane %v9190_v42, 5 }
  0x5e   : > { %2060 = vrot.lane.b32.xlu0 %v9110_v12, %s8973_s21  ;;  %2325 = vrot.lane.b32.xlu1 %v2799_v17, %s8974_s22  ;;  %v3108_v17 = vld [vmem:[#allocation2 + $0x40] sm:$0x44] }
  0x5f   : > { %v3109_v19 = vsel %vm9254_vm4, %v3070_v13, %v3108_v17  ;;  %v2877_v13 = vld [vmem:[#allocation2 + $0x28] sm:$0x22]  ;;  %v2619_v17 = vld [vmem:[#allocation2 + $0x28] sm:$0x11] }
  0x60   : > { %3110 = vst [vmem:[#allocation2 + $0x40] sm:$0x44] %v3109_v19  ;;  %v9390_v19 = vrot.slane %v8536_v55, %v9089_v5 }
  0x62   : > { %2591 = vrot.lane.b32.xlu0 %v9184_v40, %s12505_s13  ;;  %2849 = vrot.lane.b32.xlu1 %v9132_v21, %s12501_s12 }
  0x66   : > { %3341 = vrot.lane.b32.xlu0 %v3311_v37, %s8968_s14  ;;  %8367 = vrot.lane.b32.xlu1 %v9200_v46, %s8975_s23 }
  0x6a   : > { %8372 = vrot.lane.b32.xlu0 %v9229_v56, %s12504_s24  ;;  %8377 = vrot.lane.b32.xlu1 %v8376_v57, %s8977_s25  ;;  %v8921_v57 = vld [vmem:[%s9095_s30] sm:$0xff] }
  0x6b   : > { %v2109_v58 = vcombine.high %v8921_v57, %v8921_v57 }
  0x6d   : > { %v2123_v20 = vrot.slane %v2109_v58, %v9089_v5 }
  0x6e   : > { %8382 = vrot.lane.b32.xlu0 %v8381_v1, %s8978_s26  ;;  %3597 = vrot.lane.b32.xlu1 %v3311_v37, %s8969_s15  ;;  %v417_v37 = vcombine.high %v409_v35, %v409_v35 }
  0x6f   : > { %v2146_v57 = vrot.slane %v2123_v20, %v9089_v5 }
  0x70   : > { %v432_v39 = vrot.slane %v417_v37, %v9089_v5  ;;  %v2622_v37 = vld [vmem:[#allocation2 + $0x40] sm:$0x11] }
  0x72   : > { %3599 = vrot.lane.b32.xlu0 %v9178_v38, %s8969_s15  ;;  %2593 = vrot.lane.b32.xlu1 %v9265_v9, %s12505_s13  ;;  %v425_v38 = vrot.slane %v409_v35, %v9089_v5  ;;  %v477_v48 = vsel %vm9321_vm12, %v432_v39, %v476_v43  ;;  %s8984_s13 = smov 61   ;;  %v1118_v43 = vrot.slane %v9261_v8, 6 }
  0x73   : > { %478 = vst [vmem:[#allocation2 + $0x38] sm:$0x11] %v477_v48  ;;  %v9431_v48 = vld.sshfl [vmem:[%s9095_s30 + $0x9] sm:$0x15 pattern:$0x73625140] }
  0x74   : > { %v474_v45 = vsel %vm9321_vm12, %v425_v38, %v473_v41 }
  0x75   : > { %475 = vst [vmem:[#allocation2] sm:$0x11] %v474_v45  ;;  %v2125_v45 = vcombine.high %v2123_v20, %v2123_v20 }
  0x76   : > { %2851 = vrot.lane.b32.xlu0 %v9287_v22, %s12501_s12  ;;  %3343 = vrot.lane.b32.xlu1 %v3327_v23, %s8968_s14  ;;  %s8982_s12 = smov 92  }
  0x7a   : > { %8387 = vrot.lane.b32.xlu0 %v9296_v26, %s8975_s23  ;;  %8392 = vrot.lane.b32.xlu1 %v8391_v27, %s12504_s24  ;;  %s12507_s24 = smov 32   ;;  %v9398_v27 = vrot.slane %v8535_v61, %v9089_v5  ;;  %v2153_v61 = vrot.slane %v2125_v45, %v9089_v5 }
  0x7c   : > { %v2048_v55 = vrot.slane %v9398_v27, %v9089_v5 }
  0x7e   : > { %8402 = vrot.lane.b32.xlu1 %v8401_v30, %s8978_s26  ;;  %8397 = vrot.lane.b32.xlu0 %v8396_v31, %s8977_s25 }
  0x82   : > { %709 = vrot.lane.b32.xlu1 %v9132_v21, %s8968_s14  ;;  %3601 = vrot.lane.b32.xlu0 %v3424_v16, %s8969_s15 }
  0x86   : > { %1263 = vrot.lane.b32.xlu1 %v9110_v12, %s8970_s16  ;;  %986 = vrot.lane.b32.xlu0 %v9123_v18, %s8969_s15 }
  0x8a   : > { %1797 = vrot.lane.b32.xlu1 %v9132_v21, %s8972_s20  ;;  %1539 = vrot.lane.b32.xlu0 %v9184_v40, %s8971_s19  ;;  %v8421_v21 = vpack.i.bf16 %v1391_v44, %v1387_v32  ;;  %v8416_v40 = vpack.i.bf16 %v1114_v52, %v1110_v33  ;;  %v2306_v44 = vcombine.low %v9390_v19, %v9390_v19 }
  0x8e   : > { %2327 = vrot.lane.b32.xlu1 %v9110_v12, %s8974_s22  ;;  %2062 = vrot.lane.b32.xlu0 %v9123_v18, %s8973_s21  ;;  %v9356_v12 = vrot.slane %v8533_v53, %v9089_v5 }
  0x90   : > { %v972_v60 = vrot.slane %v9356_v12, %v9089_v5 }
  0x92   : > { %8412 = vrot.lane.b32.xlu1 %v8411_v50, %s8978_s26  ;;  %8407 = vrot.lane.b32.xlu0 %v8406_v51, %s8977_s25  ;;  %v3140_v50 = vcombine.high %v9248_v4, %v9248_v4 }
  0x94   : > { %v9461_v63 = vrot.slane %v3140_v50, %v9089_v5 }
  0x96   : > { %8422 = vrot.lane.b32.xlu1 %v8421_v21, %s8979_s27  ;;  %8417 = vrot.lane.b32.xlu0 %v8416_v40, %s8980_s28 }
  0x98   : > { %v9358_v18 = vpop.permute.xlu1 %2845  ;;  %v2586_v42 = vpop.permute.xlu0 %2585 }
  0x99   : > { %v2856_v1 = vrot.slane %v9358_v18, 4  ;;  %v2597_v7 = vrot.slane %v2586_v42, 4 }
  0x9a   : > { %8432 = vrot.lane.b32.xlu1 %v9229_v56, %s8981_s29  ;;  %8427 = vrot.lane.b32.xlu0 %v9200_v46, %s8982_s12  ;;  %v1242_v46 = vcombine.low %v9361_v47, %v9361_v47 }
  0x9c   : > { %v2844_v56 = vpop.permute.xlu1 %2843  ;;  %v2588_v0 = vpop.permute.xlu0 %2587  ;;  %v1249_v39 = vrot.slane %v1242_v46, %v9089_v5  ;;  %v2313_v46 = vrot.slane %v2306_v44, %v9089_v5 }
  0x9d   : > { %v2855_v14 = vrot.slane %v2844_v56, 4  ;;  %v2598_v16 = vrot.slane %v2588_v0, 4 }
  0x9e   : > { %8442 = vrot.lane.b32.xlu1 %v8421_v21, %s12507_s24  ;;  %8437 = vrot.lane.b32.xlu0 %v8416_v40, %s8984_s13 }
  0x9f   : > { %v2861_v23 = vsel %vm595_vm13, %v2855_v14, %v2856_v1  ;;  %v2603_v25 = vsel %vm595_vm13, %v2597_v7, %v2598_v16  ;;  %v1395_v7 = vrot.slane %v9261_v8, 5  ;;  %v9484_v8 = vshll.u32 %v2153_v61, 16 }
  0xa0   : > { %v2863_v29 = vsel %vm12517_vm0, %v2844_v56, %v2861_v23  ;;  %v2605_v30 = vsel %vm12515_vm5, %v2586_v42, %v2603_v25  ;;  %v3338_v31 = vpop.permute.xlu1 %3337  ;;  %v9410_v32 = vpop.permute.xlu0 %2589  ;;  %v9465_v56 = vrot.slane %v9431_v48, %v9089_v5  ;;  %v3368_v23 = vld [vmem:[#allocation2 + $0x28] sm:$0x88] }
  0xa1   : > { %v2878_v33 = vsel %vm9404_vm3, %v2863_v29, %v2877_v13  ;;  %v2620_v35 = vsel %vm9321_vm12, %v2605_v30, %v2619_v17  ;;  %v2599_v38 = vrot.slane %v9410_v32, 4  ;;  %v3348_v51 = vrot.slane %v3338_v31, 4 }
  0xa2   : > { %2879 = vst [vmem:[#allocation2 + $0x28] sm:$0x22] %v2878_v33  ;;  %2621 = vst [vmem:[#allocation2 + $0x28] sm:$0x11] %v2620_v35  ;;  %988 = vrot.lane.b32.xlu1 %v972_v60, %s8969_s15  ;;  %711 = vrot.lane.b32.xlu0 %v9287_v22, %s8968_s14  ;;  %v3371_v60 = vld [vmem:[#allocation2 + $0x40] sm:$0x88]  ;;  %v8446_v17 = vpack.i.bf16 %v1122_v54, %v1118_v43 }
  0xa3   : > { %v2606_v52 = vsel %vm595_vm13, %v2598_v16, %v2599_v38  ;;  %v9479_v30 = vshll.u32 %v2146_v57, 16  ;;  %v2880_v33 = vld [vmem:[#allocation2 + $0x40] sm:$0x22]  ;;  %v3208_v35 = vshll.u32 %v9465_v56, 16 }
  0xa4   : > { %v2607_v53 = vsel %vm12515_vm5, %v2588_v0, %v2606_v52  ;;  %v9441_v21 = vpop.permute.xlu0 %3339  ;;  %v704_v40 = vpop.permute.xlu1 %703 }
  0xa5   : > { %v2623_v42 = vsel %vm9321_vm12, %v2607_v53, %v2622_v37  ;;  %v3349_v4 = vrot.slane %v9441_v21, 4  ;;  %v9490_v37 = vrot.slane %v9204_v49, %v9089_v5  ;;  %v2187_v54 = vrot.slane %v9479_v30, 6 }
  0xa6   : > { %2624 = vst [vmem:[#allocation2 + $0x40] sm:$0x11] %v2623_v42  ;;  %1541 = vrot.lane.b32.xlu1 %v9265_v9, %s8971_s19  ;;  %1265 = vrot.lane.b32.xlu0 %v1249_v39, %s8970_s16  ;;  %v715_v39 = vrot.slane %v704_v40, 4  ;;  %v3111_v42 = vld [vmem:[#allocation2 + $0x58] sm:$0x44]  ;;  %v1922_v57 = vrot.slane %v9479_v30, 7 }
  0xa7   : > { %v3355_v0 = vsel %vm595_vm13, %v3348_v51, %v3349_v4  ;;  %v3077_v49 = vrot.slane %v9490_v37, %v9089_v5 }
  0xa8   : > { %v3356_v13 = vsel %vm12522_vm2, %v3338_v31, %v3355_v0  ;;  %v3336_v14 = vpop.permute.xlu0 %3335  ;;  %v9474_v16 = vpop.permute.xlu1 %2847  ;;  %v3204_v31 = vshll.u32 %v9461_v63, 16 }
  0xa9   : > { %v3372_v20 = vsel %vm9452_vm10, %v3356_v13, %v3371_v60  ;;  %v3347_v25 = vrot.slane %v3336_v14, 4  ;;  %v2857_v29 = vrot.slane %v9474_v16, 4  ;;  %v1926_v60 = vrot.slane %v9484_v8, 7 }
  0xaa   : > { %3373 = vst [vmem:[#allocation2 + $0x40] sm:$0x88] %v3372_v20  ;;  %2064 = vrot.lane.b32.xlu1 %v2048_v55, %s8973_s21  ;;  %1799 = vrot.lane.b32.xlu0 %v9287_v22, %s8972_s20  ;;  %v8451_v22 = vpack.i.bf16 %v1399_v10, %v1395_v7  ;;  %v2191_v55 = vrot.slane %v9484_v8, 6  ;;  %v3112_v61 = vsel %vm9254_vm4, %v3077_v49, %v3111_v42  ;;  %v1298_v42 = vld [vmem:[#allocation2] sm:$0x88] }
  0xab   : > { %v3353_v41 = vsel %vm595_vm13, %v3347_v25, %v3348_v51  ;;  %v2864_v43 = vsel %vm595_vm13, %v2856_v1, %v2857_v29  ;;  %3113 = vst [vmem:[#allocation2 + $0x58] sm:$0x44] %v3112_v61  ;;  %v2452_v25 = vrot.slane %v9479_v30, 5 }
  0xac   : > { %v3354_v44 = vsel %vm12522_vm2, %v3336_v14, %v3353_v41  ;;  %v2865_v45 = vsel %vm12517_vm0, %v9358_v18, %v2864_v43  ;;  %v9501_v50 = vpop.permute.xlu0 %705  ;;  %v981_v52 = vpop.permute.xlu1 %980  ;;  %v744_v18 = vld [vmem:[#allocation2] sm:$0x22]  ;;  %v3206_v14 = vrot.slane %v3204_v31, 6  ;;  %v2456_v41 = vrot.slane %v9484_v8, 5 }
  0xad   : > { %v3369_v51 = vsel %vm9452_vm10, %v3354_v44, %v3368_v23  ;;  %v2881_v53 = vsel %vm9404_vm3, %v2865_v45, %v2880_v33  ;;  %v716_v1 = vrot.slane %v9501_v50, 4  ;;  %v992_v7 = vrot.slane %v981_v52, 4  ;;  %v1021_v33 = vld [vmem:[#allocation2] sm:$0x44] }
  0xae   : > { %3370 = vst [vmem:[#allocation2 + $0x28] sm:$0x88] %v3369_v51  ;;  %2882 = vst [vmem:[#allocation2 + $0x40] sm:$0x22] %v2881_v53  ;;  %8447 = vrot.lane.b32.xlu1 %v8446_v17, %s8980_s28  ;;  %2329 = vrot.lane.b32.xlu0 %v2313_v46, %s8974_s22  ;;  %v3210_v17 = vrot.slane %v3208_v35, 6  ;;  %v2690_v43 = vcombine.high %v9245_v2, %v9245_v2  ;;  %v3473_v53 = vrot.slane %v3208_v35, 5 }
  0xaf   : > { %v721_v0 = vsel %vm595_vm13, %v715_v39, %v716_v1  ;;  %v8461_v39 = vpack.i.bf16 %v1926_v60, %v1922_v57 }
  0xb0   : > { %v723_v10 = vsel %vm12522_vm2, %v704_v40, %v721_v0  ;;  %v9522_v13 = vpop.permute.xlu0 %982  ;;  %v1258_v46 = vpop.permute.xlu1 %1257  ;;  %v8466_v40 = vpack.i.bf16 %v2191_v55, %v2187_v54  ;;  %v8476_v2 = vpack.i.bf16 %v3210_v17, %v3206_v14  ;;  %v3114_v54 = vld [vmem:[#allocation2 + $0x10] sm:$0x44]  ;;  %v1567_v17 = vld [vmem:[#allocation2 + $0x68] sm:$0x11] }
  0xb1   : > { %v745_v20 = vsel %vm9404_vm3, %v723_v10, %v744_v18  ;;  %v993_v23 = vrot.slane %v9522_v13, 4  ;;  %v1269_v45 = vrot.slane %v1258_v46, 4  ;;  %v3469_v18 = vrot.slane %v3204_v31, 5 }
  0xb2   : > { %746 = vst [vmem:[#allocation2] sm:$0x22] %v745_v20  ;;  %8457 = vrot.lane.b32.xlu1 %v9296_v26, %s8982_s12  ;;  %8452 = vrot.lane.b32.xlu0 %v8451_v22, %s8979_s27  ;;  %v3056_v22 = vcombine.high %v9490_v37, %v9490_v37  ;;  %v9552_v37 = vrot.slane %v2690_v43, %v9089_v5 }
  0xb3   : > { %v998_v44 = vsel %vm595_vm13, %v992_v7, %v993_v23  ;;  %v2980_v7 = vshll.u32 %v9265_v9, 16 }
  0xb4   : > { %v1000_v30 = vsel %vm12516_vm11, %v981_v52, %v998_v44  ;;  %v9540_v49 = vpop.permute.xlu0 %1259  ;;  %v1534_v26 = vpop.permute.xlu1 %1533  ;;  %v8471_v52 = vpack.i.bf16 %v2456_v41, %v2452_v25  ;;  %v3084_v55 = vrot.slane %v3056_v22, %v9089_v5  ;;  %v2721_v20 = vshll.u32 %v9552_v37, 16 }
  0xb5   : > { %v1022_v8 = vsel %vm9254_vm4, %v1000_v30, %v1021_v33  ;;  %v1270_v51 = vrot.slane %v9540_v49, 4  ;;  %v1545_v57 = vrot.slane %v1534_v26, 4  ;;  %v9576_v43 = vrot.slane %v2980_v7, 7  ;;  %v1825_v30 = vld [vmem:[#allocation2 + $0x68] sm:$0x22] }
  0xb6   : > { %1023 = vst [vmem:[#allocation2] sm:$0x44] %v1022_v8  ;;  %8467 = vrot.lane.b32.xlu1 %v8466_v40, %s8984_s13  ;;  %8462 = vrot.lane.b32.xlu0 %v8461_v39, %s8981_s29  ;;  %v3115_v31 = vsel %vm9254_vm4, %v3084_v55, %v3114_v54  ;;  %v402_v44 = vcombine.high %v9314_v34, %v9314_v34  ;;  %v9586_v8 = vrot.slane %v2721_v20, 7 }
  0xb7   : > { %v1275_v35 = vsel %vm595_vm13, %v1269_v45, %v1270_v51  ;;  %3116 = vst [vmem:[#allocation2 + $0x10] sm:$0x44] %v3115_v31  ;;  %v2090_v31 = vld [vmem:[#allocation2 + $0x68] sm:$0x44] }
  0xb8   : > { %v1277_v60 = vsel %vm12514_vm14, %v1258_v46, %v1275_v35  ;;  %v9559_v61 = vpop.permute.xlu0 %1535  ;;  %v1792_v0 = vpop.permute.xlu1 %1791  ;;  %v8481_v46 = vpack.i.bf16 %v3473_v53, %v3469_v18  ;;  %v416_v53 = vrot.slane %v402_v44, %v9089_v5 }
  0xb9   : > { %v1299_v10 = vsel %vm9452_vm10, %v1277_v60, %v1298_v42  ;;  %v1546_v14 = vrot.slane %v9559_v61, 4  ;;  %v1803_v33 = vrot.slane %v1792_v0, 4  ;;  %v12518_v42 = vmov 0  }
  0xba   : > { %1300 = vst [vmem:[#allocation2] sm:$0x88] %v1299_v10  ;;  %8477 = vrot.lane.b32.xlu1 %v8476_v2, %s8977_s25  ;;  %8472 = vrot.lane.b32.xlu0 %v8471_v52, %s12507_s24  ;;  %v7919_v2 = vld.sshfl [vmem:[%s9095_s30 + $0x8] sm:$0x15 pattern:$0x73625140]  ;;  %v418_v35 = vcombine.high %v416_v53, %v416_v53  ;;  %v439_v10 = vrot.slane %v416_v53, %v9089_v5 }
  0xbb   : > { %v1551_v25 = vsel %vm595_vm13, %v1545_v57, %v1546_v14  ;;  %3832 = vmatprep.mubr.bf16.mxu0 %v12518_v42  ;;  %3873 = vmatprep.mubr.bf16.mxu1 %v12518_v42  ;;  %v544_v55 = vcombine.high %v7919_v2, %v7919_v2  ;;  %s12637_s24 = smov 31  }
  0xbc   : > { %v1553_v40 = vsel %vm12512_vm7, %v1534_v26, %v1551_v25  ;;  %v9574_v39 = vpop.permute.xlu0 %1793  ;;  %v2057_v41 = vpop.permute.xlu1 %2056  ;;  %v8486_v26 = vpack.i.bf16 %v2721_v20, %v2980_v7  ;;  %8526 = vset.pattern.permute.xlu0 %v12518_v42  ;;  %8527 = vset.pattern.permute.xlu1 %v12518_v42  ;;  %v551_v7 = vrot.slane %v7919_v2, %v9089_v5  ;;  %v479_v25 = vld [vmem:[#allocation2 + $0x50] sm:$0x11] }
  0xbd   : > { %v1568_v45 = vsel %vm9321_vm12, %v1553_v40, %v1567_v17  ;;  %v1804_v22 = vrot.slane %v9574_v39, 4  ;;  %v2068_v54 = vrot.slane %v2057_v41, 4  ;;  %v446_v17 = vrot.slane %v418_v35, %v9089_v5 }
  0xbe   : > { %1569 = vst [vmem:[#allocation2 + $0x68] sm:$0x11] %v1568_v45  ;;  %3603 = vrot.lane.b32.xlu1 %v9461_v63, %s8969_s15  ;;  %8482 = vrot.lane.b32.xlu0 %v8481_v46, %s8978_s26  ;;  %v1106_v35 = vrot.slane %v544_v55, %v9089_v5  ;;  %v965_v55 = vcombine.high %v9356_v12, %v9356_v12 }
  0xbf   : > { %v1809_v34 = vsel %vm595_vm13, %v1803_v33, %v1804_v22  ;;  %v482_v33 = vld [vmem:[#allocation2 + $0x18] sm:$0x11]  ;;  %v8501_v12 = vpack.i.bf16 %v9576_v43, %v2978_v24 }
  0xc0   : > { %v1811_v63 = vsel %vm12513_vm15, %v1792_v0, %v1809_v34  ;;  %v9596_v52 = vpop.permute.xlu0 %2058  ;;  %v2322_v18 = vpop.permute.xlu1 %2321  ;;  %v8491_v0 = vpack.i.bf16 %v9586_v8, %v9576_v43  ;;  %v483_v2 = vsel %vm9321_vm12, %v446_v17, %v482_v33  ;;  %v2355_v34 = vld [vmem:[#allocation2 + $0x68] sm:$0x88]  ;;  %v9666_v33 = vshll.u32 %v1106_v35, 16 }
  0xc1   : > { %v1826_v57 = vsel %vm9404_vm3, %v1811_v63, %v1825_v30  ;;  %v2069_v60 = vrot.slane %v9596_v52, 4  ;;  %v2333_v20 = vrot.slane %v2322_v18, 4  ;;  %v3334_v30 = vrot.slane %v9238_v62, %v9089_v5  ;;  %484 = vst [vmem:[#allocation2 + $0x18] sm:$0x11] %v483_v2  ;;  %v747_v63 = vld [vmem:[#allocation2 + $0x38] sm:$0x22] }
  0xc2   : > { %1827 = vst [vmem:[#allocation2 + $0x68] sm:$0x22] %v1826_v57  ;;  %8487 = vrot.lane.b32.xlu1 %v8486_v26, %s8975_s23  ;;  %2595 = vrot.lane.b32.xlu0 %v9552_v37, %s12637_s24  ;;  %v480_v26 = vsel %vm9321_vm12, %v439_v10, %v479_v25  ;;  %s12638_s23 = smov 28   ;;  %s12639_s24 = smov 29   ;;  %v9632_v62 = vshll.u32 %v551_v7, 16 }
  0xc3   : > { %v2074_v46 = vsel %vm595_vm13, %v2068_v54, %v2069_v60  ;;  %481 = vst [vmem:[#allocation2 + $0x50] sm:$0x11] %v480_v26  ;;  %v8922_v26 = vld.sshfl [vmem:[%s9095_s30 + $0x8] sm:$0x15 pattern:$0x73625140] }
  0xc4   : > { %v2076_v40 = vsel %vm12510_vm8, %v2057_v41, %v2074_v46  ;;  %v9615_v44 = vpop.permute.xlu0 %2323  ;;  %v9617_v45 = vpop.permute.xlu1 %707  ;;  %v8496_v25 = vpack.i.bf16 %v9632_v62, %v9275_v15  ;;  %v9688_v2 = vrot.slane %v8922_v26, %v9089_v5  ;;  %v1126_v35 = vrot.slane %v9632_v62, 6 }
  0xc5   : > { %v2091_v53 = vsel %vm9254_vm4, %v2076_v40, %v2090_v31  ;;  %v2334_v54 = vrot.slane %v9615_v44, 4  ;;  %v12530_v41 = vrot.slane %v9617_v45, 4 }
  0xc6   : > { %2092 = vst [vmem:[#allocation2 + $0x68] sm:$0x44] %v2091_v53  ;;  %8492 = vrot.lane.b32.xlu1 %v8491_v0, %s12638_s23  ;;  %2853 = vrot.lane.b32.xlu0 %v9265_v9, %s12639_s24  ;;  %v1570_v53 = vld [vmem:[#allocation2 + $0x78] sm:$0x11] }
  0xc7   : > { %v2339_v57 = vsel %vm595_vm13, %v2333_v20, %v2334_v54  ;;  %v724_v31 = vsel %vm595_vm13, %v716_v1, %v12530_v41  ;;  %v1301_v20 = vld [vmem:[#allocation2 + $0x38] sm:$0x88] }
  0xc8   : > { %v2341_v10 = vsel %vm12511_vm9, %v2322_v18, %v2339_v57  ;;  %v725_v0 = vsel %vm12522_vm2, %v9501_v50, %v724_v31  ;;  %v9646_v9 = vpop.permute.xlu0 %984  ;;  %v9648_v7 = vpop.permute.xlu1 %1261  ;;  %v1024_v50 = vld [vmem:[#allocation2 + $0x38] sm:$0x44]  ;;  %v12529_v57 = vrot.slane %v9666_v33, 6 }
  0xc9   : > { %v2356_v17 = vsel %vm9452_vm10, %v2341_v10, %v2355_v34  ;;  %v748_v46 = vsel %vm9404_vm3, %v725_v0, %v747_v63  ;;  %v12526_v1 = vrot.slane %v9646_v9, 4  ;;  %v12527_v18 = vrot.slane %v9648_v7, 4 }
  0xca   : > { %2357 = vst [vmem:[#allocation2 + $0x68] sm:$0x88] %v2356_v17  ;;  %749 = vst [vmem:[#allocation2 + $0x38] sm:$0x22] %v748_v46  ;;  %3605 = vrot.lane.b32.xlu1 %v9465_v56, %s8969_s15  ;;  %3345 = vrot.lane.b32.xlu0 %v3334_v30, %s8968_s14  ;;  %v979_v63 = vrot.slane %v965_v55, %v9089_v5 }
  0xcb   : > { %v1001_v40 = vsel %vm595_vm13, %v993_v23, %v12526_v1  ;;  %v1278_v56 = vsel %vm595_vm13, %v1270_v51, %v12527_v18  ;;  %v7918_v18 = vld.sshfl [vmem:[%s9095_s30 + $0x8] sm:$0x5 pattern:$0x73625140] }
  0xcc   : > { %v1002_v24 = vsel %vm12516_vm11, %v9522_v13, %v1001_v40  ;;  %v1279_v15 = vsel %vm12514_vm14, %v9540_v49, %v1278_v56  ;;  %v9682_v43 = vpop.permute.xlu0 %1537  ;;  %v9684_v30 = vpop.permute.xlu1 %1795  ;;  %v1828_v49 = vld [vmem:[#allocation2 + $0x78] sm:$0x22]  ;;  %v1403_v40 = vrot.slane %v9632_v62, 5  ;;  %v12532_v56 = vrot.slane %v9666_v33, 5 }
  0xcd   : > { %v1025_v23 = vsel %vm9254_vm4, %v1002_v24, %v1024_v50  ;;  %v1302_v51 = vsel %vm9452_vm10, %v1279_v15, %v1301_v20  ;;  %v12524_v13 = vrot.slane %v9682_v43, 4  ;;  %v12525_v34 = vrot.slane %v9684_v30, 4 }
  0xce   : > { %1026 = vst [vmem:[#allocation2 + $0x38] sm:$0x44] %v1025_v23  ;;  %1303 = vst [vmem:[#allocation2 + $0x38] sm:$0x88] %v1302_v51  ;;  %8502 = vrot.lane.b32.xlu1 %v8501_v12, %s8978_s26  ;;  %8497 = vrot.lane.b32.xlu0 %v8496_v25, %s8977_s25  ;;  %v2358_v12 = vld [vmem:[#allocation2 + $0x78] sm:$0x88]  ;;  %v8506_v25 = vpack.i.bf16 %v12529_v57, %v1126_v35  ;;  %v3176_v15 = vcombine.high %v9431_v48, %v9431_v48 }
  0xcf   : > { %v1554_v31 = vsel %vm595_vm13, %v1546_v14, %v12524_v13  ;;  %v1812_v10 = vsel %vm595_vm13, %v1804_v22, %v12525_v34 }
  0xd0   : > { %v1555_v0 = vsel %vm12512_vm7, %v9559_v61, %v1554_v31  ;;  %v1813_v55 = vsel %vm12513_vm15, %v9574_v39, %v1812_v10  ;;  %v9715_v17 = vpop.permute.xlu0 %2060  ;;  %v9717_v46 = vpop.permute.xlu1 %2325  ;;  %v2093_v61 = vld [vmem:[#allocation2 + $0x78] sm:$0x44]  ;;  %v1256_v39 = vrot.slane %v9361_v47, %v9089_v5  ;;  %vm12521_vm7 = vcmask 244736  }
  0xd1   : > { %v1571_v50 = vsel %vm9321_vm12, %v1555_v0, %v1570_v53  ;;  %v1829_v14 = vsel %vm9404_vm3, %v1813_v55, %v1828_v49  ;;  %v12520_v20 = vrot.slane %v9715_v17, 4  ;;  %v12523_v22 = vrot.slane %v9717_v46, 4 }
  0xd2   : > { %1572 = vst [vmem:[#allocation2 + $0x78] sm:$0x11] %v1571_v50  ;;  %1830 = vst [vmem:[#allocation2 + $0x78] sm:$0x22] %v1829_v14  ;;  %990 = vrot.lane.b32.xlu1 %v979_v63, %s8969_s15  ;;  %713 = vrot.lane.b32.xlu0 %v9688_v2, %s8968_s14  ;;  %vm12542_vm15 = vcmask 228352  }
  0xd3   : > { %v2077_v24 = vsel %vm595_vm13, %v2069_v60, %v12520_v20  ;;  %v2342_v47 = vsel %vm595_vm13, %v2334_v54, %v12523_v22  ;;  %v2625_v54 = vld [vmem:[#allocation2 + $0x58] sm:$0x11]  ;;  %v3248_v20 = vld [vmem:[#allocation2 + $0x28] sm:$0x44] }
  0xd4   : > { %v2078_v26 = vsel %vm12510_vm8, %v9596_v52, %v2077_v24  ;;  %v2343_v23 = vsel %vm12511_vm9, %v9615_v44, %v2342_v47  ;;  %v9752_v51 = vpop.permute.xlu0 %2591  ;;  %v9754_v53 = vpop.permute.xlu1 %2849  ;;  %v2883_v52 = vld [vmem:[#allocation2 + $0x58] sm:$0x22]  ;;  %vm612_vm8 = vsmask.f32 7938  ;;  %vm614_vm9 = vsmask.f32 7954 }
  0xd5   : > { %v2094_v60 = vsel %vm9254_vm4, %v2078_v26, %v2093_v61  ;;  %v2359_v49 = vsel %vm9452_vm10, %v2343_v23, %v2358_v12  ;;  %v2600_v63 = vrot.slane %v9752_v51, 4  ;;  %v2858_v48 = vrot.slane %v9754_v53, 4 }
  0xd6   : > { %2095 = vst [vmem:[#allocation2 + $0x78] sm:$0x44] %v2094_v60  ;;  %2360 = vst [vmem:[#allocation2 + $0x78] sm:$0x88] %v2359_v49  ;;  %1267 = vrot.lane.b32.xlu1 %v1256_v39, %s8970_s16  ;;  %8507 = vrot.lane.b32.xlu0 %v8506_v25, %s8980_s28  ;;  %v8511_v44 = vpack.i.bf16 %v12532_v56, %v1403_v40  ;;  %v3374_v39 = vld [vmem:[#allocation2 + $0x58] sm:$0x88]  ;;  %v2041_v47 = vcombine.high %v9398_v27, %v9398_v27 }
  0xd7   : > { %v2608_v31 = vsel %vm595_vm13, %v2599_v38, %v2600_v63  ;;  %v2866_v10 = vsel %vm595_vm13, %v2857_v29, %v2858_v48  ;;  %v9787_v38 = vrot.slane %v3176_v15, %v9089_v5  ;;  %v2320_v23 = vrot.slane %v9390_v19, %v9089_v5  ;;  %v2628_v56 = vld [vmem:[#allocation2 + $0x10] sm:$0x11] }
  0xd8   : > { %v2609_v0 = vsel %vm12515_vm5, %v9410_v32, %v2608_v31  ;;  %v2867_v55 = vsel %vm12517_vm0, %v9474_v16, %v2866_v10  ;;  %v9782_v50 = vpop.permute.xlu0 %3341  ;;  %v9784_v14 = vpop.permute.xlu1 %8367  ;;  %vm12640_vm5 = vcmask 1040384   ;;  %vm12643_vm0 = vcmask 1044484  }
  0xd9   : > { %v2626_v61 = vsel %vm9321_vm12, %v2609_v0, %v2625_v54  ;;  %v2884_v29 = vsel %vm9404_vm3, %v2867_v55, %v2883_v52  ;;  %v3350_v12 = vrot.slane %v9782_v50, 4  ;;  %vm9796_vm11 = vmand %vm12640_vm5, %vm612_vm8  ;;  %v8370_v16 = vunpack.i.h.bf16 %v9784_v14  ;;  %v2757_v0 = vld [vmem:[#allocation2 + $0x28] sm:$0x11] }
  0xda   : > { %2627 = vst [vmem:[#allocation2 + $0x58] sm:$0x11] %v2626_v61  ;;  %2885 = vst [vmem:[#allocation2 + $0x58] sm:$0x22] %v2884_v29  ;;  %v8369_v24 = vunpack.i.l.bf16 %v9784_v14  ;;  %1543 = vrot.lane.b32.xlu1 %v9552_v37, %s8971_s19  ;;  %8512 = vrot.lane.b32.xlu0 %v8511_v44, %s8979_s27  ;;  %vm1442_vm8 = vsmask.f32 7950  ;;  %v2055_v29 = vrot.slane %v2041_v47, %v9089_v5 }
  0xdb   : > { %vm9803_vm14 = vmand %vm12643_vm0, %vm614_vm9  ;;  %vm1444_vm5 = vsmask.f32 7966  ;;  %v3357_v15 = vsel %vm595_vm13, %v3349_v4, %v3350_v12  ;;  %v9820_v26 = vrot.slane %v8370_v16, 4  ;;  %vm12555_vm0 = vcmask 1022976   ;;  %s8989_s27 = smov 56   ;;  %s7917_s19 = sshll.u32 %s12923_s18, 3 }
  0xdc   : > { %v1930_v37 = vrot.slane %v9632_v62, 7  ;;  %v3358_v60 = vsel %vm12522_vm2, %v9441_v21, %v3357_v15  ;;  %v2735_v27 = vrot.slane %v8369_v24, 4  ;;  %v9827_v49 = vpop.permute.xlu0 %8372  ;;  %v9829_v54 = vpop.permute.xlu1 %8377  ;;  %v3212_v4 = vshll.u32 %v9787_v38, 16  ;;  %vm9838_vm9 = vmor %vm9803_vm14, %vm9796_vm11 }
  0xdd   : > { %v3375_v52 = vsel %vm9452_vm10, %v3358_v60, %v3374_v39  ;;  %v8375_v21 = vunpack.i.h.bf16 %v9827_v49  ;;  %v8374_v31 = vunpack.i.l.bf16 %v9827_v49  ;;  %v12528_v10 = vunpack.i.h.bf16 %v9829_v54  ;;  %v8552_v60 = vld [vmem:[%s9095_s30 + $0x9] ss:$0 sps:$4 sm:$0x33]   ;;  %s12659_s30 = smov 32  }
  0xde   : > { %3376 = vst [vmem:[#allocation2 + $0x58] sm:$0x88] %v3375_v52  ;;  %v2741_v55 = vsel %vm595_vm13, %v2735_v27, %v9820_v26  ;;  %v8379_v61 = vunpack.i.l.bf16 %v9829_v54  ;;  %1801 = vrot.lane.b32.xlu1 %v9688_v2, %s8972_s20  ;;  %1679 = vrot.lane.b32.xlu0 %v9632_v62, %s8982_s12  ;;  %vm12648_vm11 = vcmask 1043459   ;;  %v3214_v13 = vrot.slane %v3212_v4, 6 }
  0xdf   : > { %v2743_v32 = vsel %vm12521_vm7, %v8369_v24, %v2741_v55  ;;  %v9856_v39 = vrot.slane %v8375_v21, 4  ;;  %v2999_v25 = vrot.slane %v8374_v31, 4  ;;  %v9860_v15 = vrot.slane %v12528_v10, 4  ;;  %vm9867_vm14 = vmand %vm12648_vm11, %vm1442_vm8  ;;  %v3021_v55 = vld [vmem:[#allocation2 + $0x28] sm:$0x22] }
  0xe0   : > { %v2758_v2 = vsel %vm9838_vm9, %v2743_v32, %v2757_v0  ;;  %v3227_v27 = vrot.slane %v8379_v61, 4  ;;  %v9871_v24 = vpop.permute.xlu0 %8382  ;;  %v3598_v52 = vpop.permute.xlu1 %3597  ;;  %vm12651_vm7 = vcmask 1047559   ;;  %v8516_v0 = vpack.i.bf16 %v9666_v33, %v3214_v13 }
  0xe1   : > { %2759 = vst [vmem:[#allocation2 + $0x28] sm:$0x11] %v2758_v2  ;;  %v3005_v42 = vsel %vm595_vm13, %v2999_v25, %v9856_v39  ;;  %vm9877_vm2 = vmand %vm12651_vm7, %vm1444_vm5  ;;  %v12531_v32 = vunpack.i.h.bf16 %v9871_v24  ;;  %v8384_v22 = vunpack.i.l.bf16 %v9871_v24  ;;  %v3609_v1 = vrot.slane %v3598_v52, 4 }
  0xe2   : > { %v3007_v34 = vsel %vm12542_vm15, %v8374_v31, %v3005_v42  ;;  %v3233_v2 = vsel %vm595_vm13, %v3227_v27, %v9860_v15  ;;  %2066 = vrot.lane.b32.xlu1 %v2055_v29, %s8973_s21  ;;  %1943 = vrot.lane.b32.xlu0 %v1930_v37, %s8981_s29  ;;  %v3092_v25 = vrot.slane %v8552_v60, %v9089_v5  ;;  %vm12654_vm7 = vcmask 1039360   ;;  %v3117_v31 = vld [vmem:[#allocation2 + $0x98] sm:$0x44]  ;;  %v485_v27 = vld [vmem:[#allocation2 + $0x30] sm:$0x11]  ;;  %vm9903_vm8 = vmor %vm9877_vm2, %vm9867_vm14 }
  0xe3   : > { %v3022_v10 = vsel %vm9105_vm6, %v3007_v34, %v3021_v55  ;;  %v3234_v57 = vsel %vm12654_vm7, %v8379_v61, %v3233_v2  ;;  %v9895_v41 = vrot.slane %v12531_v32, 4  ;;  %v3490_v42 = vrot.slane %v8384_v22, 4  ;;  %v3511_v2 = vld [vmem:[#allocation2 + $0x28] sm:$0x88] }
  0xe4   : > { %3023 = vst [vmem:[#allocation2 + $0x28] sm:$0x22] %v3022_v10  ;;  %v3249_v29 = vsel %vm9232_vm1, %v3234_v57, %v3248_v20  ;;  %v9907_v34 = vpop.permute.xlu0 %3599  ;;  %v9909_v61 = vpop.permute.xlu1 %2593  ;;  %v3099_v60 = vrot.slane %v3092_v25, %v9089_v5  ;;  %v460_v55 = vrot.slane %v7918_v18, %v9089_v5  ;;  %v3630_v20 = vld [vmem:[#allocation2 + $0x60] sm:$0x11]  ;;  %v3477_v18 = vrot.slane %v3212_v4, 5 }
  0xe5   : > { %3250 = vst [vmem:[#allocation2 + $0x28] sm:$0x44] %v3249_v29  ;;  %v3496_v57 = vsel %vm595_vm13, %v3490_v42, %v9895_v41  ;;  %v3610_v10 = vrot.slane %v9907_v34, 4  ;;  %v12540_v47 = vrot.slane %v9909_v61, 4  ;;  %vm12657_vm2 = vcmask 1014784  }
  0xe6   : > { %v3497_v32 = vsel %vm12555_vm0, %v8384_v22, %v3496_v57  ;;  %2331 = vrot.lane.b32.xlu1 %v2320_v23, %s8974_s22  ;;  %2208 = vrot.lane.b32.xlu0 %v1126_v35, %s8984_s13  ;;  %v3118_v25 = vsel %vm9254_vm4, %v3099_v60, %v3117_v31  ;;  %v486_v13 = vsel %vm9321_vm12, %v460_v55, %v485_v27  ;;  %vm12658_vm5 = vcmask 252928   ;;  %v3377_v27 = vld [vmem:[#allocation2 + $0x10] sm:$0x88] }
  0xe7   : > { %v3512_v22 = vsel %vm9903_vm8, %v3497_v32, %v3511_v2  ;;  %v3615_v42 = vsel %vm595_vm13, %v3609_v1, %v3610_v10  ;;  %v2610_v5 = vsel %vm595_vm13, %v2600_v63, %v12540_v47  ;;  %3119 = vst [vmem:[#allocation2 + $0x98] sm:$0x44] %v3118_v25  ;;  %487 = vst [vmem:[#allocation2 + $0x30] sm:$0x11] %v486_v13  ;;  %vm12660_vm11 = vcmask 236544  }
  0xe8   : > { %3513 = vst [vmem:[#allocation2 + $0x28] sm:$0x88] %v3512_v22  ;;  %v3616_v19 = vsel %vm12657_vm2, %v3598_v52, %v3615_v42  ;;  %v2611_v35 = vsel %vm12658_vm5, %v9752_v51, %v2610_v5  ;;  %v9943_v23 = vpop.permute.xlu0 %2851  ;;  %v9945_v4 = vpop.permute.xlu1 %3343  ;;  %v2886_v52 = vld [vmem:[#allocation2 + $0x10] sm:$0x22]  ;;  %v8521_v51 = vpack.i.bf16 %v9586_v8, %v3477_v18  ;;  %vm12661_vm14 = vcmask 1031168  }
  0xe9   : > { %v3631_v1 = vsel %vm9321_vm12, %v3616_v19, %v3630_v20  ;;  %v2629_v32 = vsel %vm9321_vm12, %v2611_v35, %v2628_v56  ;;  %v12537_v63 = vrot.slane %v9943_v23, 4  ;;  %v12533_v31 = vrot.slane %v9945_v4, 4  ;;  %v2760_v19 = vld [vmem:[#allocation2 + $0x40] sm:$0x11]  ;;  %v2763_v35 = vld [vmem:[#allocation2 + $0x58] sm:$0x11] }
  0xea   : > { %3632 = vst [vmem:[#allocation2 + $0x60] sm:$0x11] %v3631_v1  ;;  %2630 = vst [vmem:[#allocation2 + $0x10] sm:$0x11] %v2629_v32  ;;  %8517 = vrot.lane.b32.xlu1 %v8516_v0, %s8977_s25  ;;  %2473 = vrot.lane.b32.xlu0 %v1403_v40, %s12659_s30  ;;  %vm3767_vm7 = vcmask 1044480   ;;  %v8986_v55 = vmov 65535  }
  0xeb   : > { %v2868_v56 = vsel %vm595_vm13, %v2858_v48, %v12537_v63  ;;  %v3359_v29 = vsel %vm595_vm13, %v3350_v12, %v12533_v31  ;;  %v3768_v48 = vsel %vm595_vm13, 4294967295, %v8986_v55  ;;  %v1934_v2 = vrot.slane %v9666_v33, 7  ;;  %v3024_v55 = vld [vmem:[#allocation2 + $0x40] sm:$0x22] }
  0xec   : > { %v2869_v60 = vsel %vm12660_vm11, %v9754_v53, %v2868_v56  ;;  %v3360_v62 = vsel %vm12661_vm14, %v9782_v50, %v3359_v29  ;;  %v9972_v40 = vpop.permute.xlu0 %8387  ;;  %v9974_v8 = vpop.permute.xlu1 %8392  ;;  %v9994_v13 = vsel %vm3767_vm7, %v3768_v48, 0  ;;  %vm12662_vm2 = vcmask 244736   ;;  %vm12668_vm11 = vmmov %vm12661_vm14  ;;  %v893_v63 = vld [vmem:[#allocation2] sm:$0x22] }
  0xed   : > { %v2887_v57 = vsel %vm9404_vm3, %v2869_v60, %v2886_v52  ;;  %v3378_v12 = vsel %vm9452_vm10, %v3360_v62, %v3377_v27  ;;  %v12538_v20 = vunpack.i.h.bf16 %v9972_v40  ;;  %v8389_v53 = vunpack.i.l.bf16 %v9972_v40  ;;  %vm12663_vm5 = vmmov %vm12662_vm2 }
  0xee   : > { %2888 = vst [vmem:[#allocation2 + $0x10] sm:$0x22] %v2887_v57  ;;  %3379 = vst [vmem:[#allocation2 + $0x10] sm:$0x88] %v3378_v12  ;;  %v12535_v50 = vunpack.i.h.bf16 %v9974_v8  ;;  %v8394_v0 = vunpack.i.l.bf16 %v9974_v8  ;;  %3607 = vrot.lane.b32.xlu1 %v9787_v38, %s8969_s15  ;;  %8522 = vrot.lane.b32.xlu0 %v8521_v51, %s8978_s26  ;;  %vm12669_vm14 = vcmask 1014784   ;;  %vm12671_vm7 = vcmask 1039360  }
  0xef   : > { %v9991_v18 = vrot.slane %v12538_v20, 4  ;;  %v2737_v25 = vrot.slane %v8389_v53, 4 }
  0xf0   : > { %v9998_v22 = vrot.slane %v12535_v50, 4  ;;  %v3001_v42 = vrot.slane %v8394_v0, 4  ;;  %v10000_v5 = vpop.permute.xlu1 %8402  ;;  %v10002_v38 = vpop.permute.xlu0 %8397 }
  0xf1   : > { %v2744_v1 = vsel %vm595_vm13, %v9820_v26, %v2737_v25  ;;  %v2746_v32 = vsel %vm595_vm13, %v2737_v25, %v9991_v18  ;;  %v12539_v52 = vunpack.i.l.bf16 %v10000_v5  ;;  %v8539_v26 = vld [vmem:[#allocation2 + $0x2c] ss:$56 sps:$4 sm:$0x1f]   ;;  %v8541_v60 = vld [vmem:[#allocation2 + $0x28] ss:$56 sps:$4 sm:$0x1f]  }
  0xf2   : > { %v2745_v27 = vsel %vm12662_vm2, %v8370_v16, %v2744_v1  ;;  %v2747_v51 = vsel %vm12663_vm5, %v8389_v53, %v2746_v32  ;;  %v3008_v56 = vsel %vm595_vm13, %v9856_v39, %v3001_v42  ;;  %v3010_v29 = vsel %vm595_vm13, %v3001_v42, %v9998_v22  ;;  %1945 = vrot.lane.b32.xlu1 %v1934_v2, %s8981_s29  ;;  %v3027_v16 = vld [vmem:[#allocation2 + $0x58] sm:$0x22]  ;;  %vm12675_vm5 = vmmov %vm12669_vm14 }
  0xf3   : > { %v2761_v62 = vsel %vm9838_vm9, %v2745_v27, %v2760_v19  ;;  %v2764_v14 = vsel %vm9838_vm9, %v2747_v51, %v2763_v35  ;;  %v3009_v48 = vsel %vm12542_vm15, %v8375_v21, %v3008_v56  ;;  %v3011_v39 = vsel %vm12542_vm15, %v8394_v0, %v3010_v29  ;;  %1681 = vrot.lane.b32.xlu0 %v9666_v33, %s8982_s12  ;;  %v750_v19 = vld [vmem:[#allocation2 + $0x50] sm:$0x22]  ;;  %v3514_v27 = vld [vmem:[#allocation2 + $0x40] sm:$0x88] }
  0xf4   : > { %2762 = vst [vmem:[#allocation2 + $0x40] sm:$0x11] %v2761_v62  ;;  %2765 = vst [vmem:[#allocation2 + $0x58] sm:$0x11] %v2764_v14  ;;  %v3025_v57 = vsel %vm9105_vm6, %v3009_v48, %v3024_v55  ;;  %v3028_v12 = vsel %vm9105_vm6, %v3011_v39, %v3027_v16  ;;  %v10034_v53 = vrot.slane %v12539_v52, 4  ;;  %v10036_v49 = vpop.permute.xlu1 %709  ;;  %v10038_v21 = vpop.permute.xlu0 %3601  ;;  %v12541_v0 = vunpack.i.l.bf16 %v10002_v38 }
  0xf5   : > { %3026 = vst [vmem:[#allocation2 + $0x40] sm:$0x22] %v3025_v57  ;;  %3029 = vst [vmem:[#allocation2 + $0x58] sm:$0x22] %v3028_v12  ;;  %v718_v2 = vrot.slane %v10036_v49, 4  ;;  %v12543_v25 = vrot.slane %v10038_v21, 4  ;;  %v3774_v35 = vand.u32 %v8539_v26, %v9994_v13  ;;  %v3771_v32 = vand.u32 %v8541_v60, %v9994_v13 }
  0xf6   : > { %v3498_v42 = vsel %vm595_vm13, %v9895_v41, %v10034_v53  ;;  %v12664_v1 = vrot.slane %v9666_v33, 5  ;;  %v12665_v51 = vunpack.i.h.bf16 %v9871_v24  ;;  %v10056_v29 = vrot.slane %v12541_v0, 4  ;;  %v3633_v62 = vld [vmem:[#allocation2 + $0x20] sm:$0x11]  ;;  %v3251_v60 = vld [vmem:[#allocation2 + $0x40] sm:$0x44] }
  0xf7   : > { %v12666_v41 = vrot.slane %v9617_v45, 4  ;;  %v12667_v14 = vrot.slane %v9666_v33, 6  ;;  %v3617_v16 = vsel %vm595_vm13, %v3610_v10, %v12543_v25  ;;  %3812 = vmatprep.subr.bf16.mxu0 %v3774_v35  ;;  %v12670_v10 = vunpack.i.h.bf16 %v9829_v54  ;;  %v1027_v54 = vld [vmem:[#allocation2 + $0x50] sm:$0x44] }
  0xf8   : > { %2475 = vrot.lane.b32.xlu1 %v12664_v1, %s12659_s30  ;;  %v3499_v56 = vsel %vm12555_vm0, %v12665_v51, %v3498_v42  ;;  %v10075_v48 = vpop.permute.xlu1 %1263  ;;  %v10077_v39 = vpop.permute.xlu0 %986  ;;  %v3235_v33 = vsel %vm595_vm13, %v9860_v15, %v10056_v29  ;;  %3813 = vmatpush1.bf16.msra.mxu0 %v3771_v32  ;;  %v1304_v1 = vld [vmem:[#allocation2 + $0x50] sm:$0x88]  ;;  %vm12673_vm2 = vcmask 777216   ;;  %v12674_v51 = vrot.slane %v9646_v9, 4 }
  0xf9   : > { %v726_v26 = vsel %vm595_vm13, %v12666_v41, %v718_v2  ;;  %2210 = vrot.lane.b32.xlu0 %v12667_v14, %s8984_s13  ;;  %v3515_v24 = vsel %vm9903_vm8, %v3499_v56, %v3514_v27  ;;  %v12551_v12 = vrot.slane %v10075_v48, 4  ;;  %v3236_v42 = vsel %vm12671_vm7, %v12670_v10, %v3235_v33  ;;  %v3666_v33 = vld [vmem:[%s12491_s2] sm:$0x3f] }
  0xfa   : > { %v727_v55 = vsel %vm12668_vm11, %v9617_v45, %v726_v26  ;;  %3516 = vst [vmem:[#allocation2 + $0x40] sm:$0x88] %v3515_v24  ;;  %v3618_v45 = vsel %vm12669_vm14, %v9907_v34, %v3617_v16  ;;  %v995_v15 = vrot.slane %v10077_v39, 4  ;;  %v12672_v34 = vrot.slane %v9648_v7, 4  ;;  %v1573_v16 = vld [vmem:[#allocation2 + $0x80] sm:$0x11] }
  0xfb   : > { %v751_v57 = vsel %vm9404_vm3, %v727_v55, %v750_v19  ;;  %v3634_v35 = vsel %vm9321_vm12, %v3618_v45, %v3633_v62  ;;  %v3252_v19 = vsel %vm9232_vm1, %v3236_v42, %v3251_v60  ;;  %v1831_v55 = vld [vmem:[#allocation2 + $0x80] sm:$0x22]  ;;  %v12677_v10 = vrot.slane %v9682_v43, 4 }
  0xfc   : > { %752 = vst [vmem:[#allocation2 + $0x50] sm:$0x22] %v751_v57  ;;  %3635 = vst [vmem:[#allocation2 + $0x20] sm:$0x11] %v3634_v35  ;;  %v1280_v32 = vsel %vm595_vm13, %v12672_v34, %v12551_v12  ;;  %v1003_v56 = vsel %vm595_vm13, %v12674_v51, %v995_v15  ;;  %v10107_v41 = vpop.permute.xlu1 %1797  ;;  %v10109_v26 = vpop.permute.xlu0 %1539  ;;  %v8405_v57 = vunpack.i.h.bf16 %v10000_v5  ;;  %vm12678_vm11 = vcmask 523264  }
  0xfd   : > { %3253 = vst [vmem:[#allocation2 + $0x40] sm:$0x44] %v3252_v19  ;;  %v1281_v27 = vsel %vm12673_vm2, %v9648_v7, %v1280_v32  ;;  %v1004_v14 = vsel %vm12675_vm5, %v9646_v9, %v1003_v56  ;;  %v12549_v24 = vrot.slane %v10107_v41, 4  ;;  %v12552_v7 = vrot.slane %v10109_v26, 4  ;;  %3669 = vperm.xlu0 %8526, %v3666_v33   ;;  %v2096_v56 = vld [vmem:[#allocation2 + $0x80] sm:$0x44] }
  0xfe   : > { %v1305_v62 = vsel %vm9452_vm10, %v1281_v27, %v1304_v1  ;;  %v1028_v60 = vsel %vm9254_vm4, %v1004_v14, %v1027_v54  ;;  %v12676_v9 = vrot.slane %v9684_v30, 4  ;;  %vm12679_vm14 = vcmask 760832   ;;  %v1705_v12 = vld [vmem:[#allocation2 + $0x68] sm:$0x11] }
  0xff   : > { %1306 = vst [vmem:[#allocation2 + $0x50] sm:$0x88] %v1305_v62  ;;  %1029 = vst [vmem:[#allocation2 + $0x50] sm:$0x44] %v1028_v60  ;;  %v1556_v42 = vsel %vm595_vm13, %v12677_v10, %v12552_v7  ;;  %v8400_v14 = vunpack.i.h.bf16 %v10002_v38  ;;  %v12680_v60 = vrot.slane %v9717_v46, 4  ;;  %vm12682_vm7 = vcmask 490496  }
 0x100   : > { %v1814_v45 = vsel %vm595_vm13, %v12676_v9, %v12549_v24  ;;  %v1557_v1 = vsel %vm12679_vm14, %v9682_v43, %v1556_v42  ;;  %v10137_v19 = vpop.permute.xlu1 %2327  ;;  %v10139_v34 = vpop.permute.xlu0 %2062  ;;  %v866_v43 = vrot.slane %v8405_v57, 4  ;;  %vm12683_vm2 = vcmask 506880   ;;  %v1969_v24 = vld [vmem:[#allocation2 + $0x68] sm:$0x22] }
 0x101   : > { %v1815_v35 = vsel %vm12678_vm11, %v9684_v30, %v1814_v45  ;;  %v1574_v54 = vsel %vm9321_vm12, %v1557_v1, %v1573_v16  ;;  %v12548_v27 = vrot.slane %v10137_v19, 4  ;;  %v12550_v51 = vrot.slane %v10139_v34, 4  ;;  %v2361_v30 = vld [vmem:[#allocation2 + $0x80] sm:$0x88] }
 0x102   : > { %v1832_v32 = vsel %vm9404_vm3, %v1815_v35, %v1831_v55  ;;  %1575 = vst [vmem:[#allocation2 + $0x80] sm:$0x11] %v1574_v54  ;;  %v12681_v16 = vrot.slane %v9715_v17, 4  ;;  %vm1427_vm5 = vcmask 769024   ;;  %vm1150_vm11 = vcmask 785408  }
 0x103   : > { %1833 = vst [vmem:[#allocation2 + $0x80] sm:$0x22] %v1832_v32  ;;  %v3662_v62 = vld [vmem:[#allocation2 + $0x20] sm:$0x11]  ;;  %v2344_v55 = vsel %vm595_vm13, %v12680_v60, %v12548_v27  ;;  %vm12582_vm14 = vcmask 515072  }
 0x104   : > { %v2079_v33 = vsel %vm595_vm13, %v12681_v16, %v12550_v51  ;;  %v3657_v9 = vld [vmem:[#allocation2 + $0x40] sm:$0xff]  ;;  %v2345_v45 = vsel %vm12682_vm7, %v9717_v46, %v2344_v55  ;;  %v10162_v42 = vpop.permute.xlu1 %8412  ;;  %v10164_v35 = vpop.permute.xlu0 %8407  ;;  %vm1690_vm7 = vcmask 752640  }
 0x105   : > { %v2080_v10 = vsel %vm12683_vm2, %v9715_v17, %v2079_v33  ;;  %v7950_v1 = vcombine.high %v3657_v9, %v3662_v62  ;;  %v7949_v32 = vcombine.low %v3657_v9, %v3662_v62  ;;  %v2362_v54 = vsel %vm9452_vm10, %v2345_v45, %v2361_v30 }
 0x106   : > { %v2097_v60 = vsel %vm9254_vm4, %v2080_v10, %v2096_v56  ;;  %v12534_v16 = vunpack.i.h.bf16 %v10162_v42  ;;  %v8414_v31 = vunpack.i.l.bf16 %v10162_v42  ;;  %2363 = vst [vmem:[#allocation2 + $0x80] sm:$0x88] %v2362_v54  ;;  %v12536_v17 = vunpack.i.h.bf16 %v10164_v35 }
 0x107   : > { %2098 = vst [vmem:[#allocation2 + $0x80] sm:$0x44] %v2097_v60  ;;  %v8409_v46 = vunpack.i.l.bf16 %v10164_v35  ;;  %v3780_v55 = vand.u32 %v7950_v1, %v9994_v13  ;;  %v3777_v62 = vand.u32 %v7949_v32, %v9994_v13  ;;  %v589_v56 = vrot.slane %v8400_v14, 4  ;;  %v617_v60 = vld [vmem:[#allocation2] sm:$0x11] }
 0x108   : > { %v10178_v30 = vrot.slane %v12534_v16, 4  ;;  %v867_v33 = vrot.slane %v8414_v31, 4  ;;  %v10182_v9 = vrot.slane %v12536_v17, 4  ;;  %v10184_v10 = vpop.permute.xlu1 %8422  ;;  %v10186_v54 = vpop.permute.xlu0 %8417  ;;  %v620_v16 = vld [vmem:[#allocation2 + $0x38] sm:$0x11]  ;;  %vm12684_vm2 = vcmask 1039360  }
 0x109   : > { %v590_v45 = vrot.slane %v8409_v46, 4  ;;  %3853 = vmatprep.subr.bf16.mxu1 %v3780_v55  ;;  %v12545_v50 = vunpack.i.h.bf16 %v10184_v10  ;;  %v8424_v17 = vunpack.i.l.bf16 %v10184_v10  ;;  %v896_v55 = vld [vmem:[#allocation2 + $0x38] sm:$0x22]  ;;  %vm12685_vm15 = vmmov %vm12684_vm2 }
 0x10a   : > { %v872_v1 = vsel %vm595_vm13, %v866_v43, %v867_v33  ;;  %v875_v32 = vsel %vm595_vm13, %v867_v33, %v10178_v30  ;;  %3854 = vmatpush1.bf16.msra.mxu1 %v3777_v62 }
 0x10b   : > { %v874_v20 = vsel %vm12555_vm0, %v8405_v57, %v872_v1  ;;  %v876_v52 = vsel %vm12555_vm0, %v8414_v31, %v875_v32  ;;  %v596_v47 = vsel %vm595_vm13, %v589_v56, %v590_v45  ;;  %v599_v43 = vsel %vm595_vm13, %v590_v45, %v10182_v9  ;;  %v1447_v1 = vld [vmem:[#allocation2] sm:$0x88] }
 0x10c   : > { %v894_v33 = vsel %vm9105_vm6, %v874_v20, %v893_v63  ;;  %v897_v62 = vsel %vm9105_vm6, %v876_v52, %v896_v55  ;;  %v598_v0 = vsel %vm12684_vm2, %v8400_v14, %v596_v47  ;;  %v600_v25 = vsel %vm12685_vm15, %v8409_v46, %v599_v43  ;;  %v10212_v20 = vpop.permute.xlu1 %8432  ;;  %v10214_v52 = vpop.permute.xlu0 %8427 }
 0x10d   : > { %895 = vst [vmem:[#allocation2] sm:$0x22] %v894_v33  ;;  %898 = vst [vmem:[#allocation2 + $0x38] sm:$0x22] %v897_v62  ;;  %v618_v31 = vsel %vm9838_vm9, %v598_v0, %v617_v60  ;;  %v621_v57 = vsel %vm9838_vm9, %v600_v25, %v620_v16  ;;  %v10210_v56 = vrot.slane %v12545_v50, 4  ;;  %v1420_v63 = vrot.slane %v8424_v17, 4 }
 0x10e   : > { %619 = vst [vmem:[#allocation2] sm:$0x11] %v618_v31  ;;  %622 = vst [vmem:[#allocation2 + $0x38] sm:$0x11] %v621_v57  ;;  %v12546_v47 = vunpack.i.h.bf16 %v10186_v54  ;;  %v8419_v14 = vunpack.i.l.bf16 %v10186_v54  ;;  %v12544_v0 = vunpack.i.h.bf16 %v10212_v20  ;;  %v8434_v46 = vunpack.i.l.bf16 %v10212_v20 }
 0x10f   : > { %v1426_v25 = vsel %vm595_vm13, %v1420_v63, %v10210_v56  ;;  %v12547_v16 = vunpack.i.h.bf16 %v10214_v52  ;;  %v8429_v45 = vunpack.i.l.bf16 %v10214_v52  ;;  %vm12556_vm15 = vcmask 261120  }
 0x110   : > { %v1428_v32 = vsel %vm1427_vm5, %v8424_v17, %v1426_v25  ;;  %v10227_v60 = vrot.slane %v12546_v47, 4  ;;  %v1143_v55 = vrot.slane %v8419_v14, 4  ;;  %v10231_v43 = vrot.slane %v12544_v0, 4  ;;  %v10239_v63 = vpop.permute.xlu1 %8442  ;;  %v10241_v17 = vpop.permute.xlu0 %8437 }
 0x111   : > { %v1448_v33 = vsel %vm9903_vm8, %v1428_v32, %v1447_v1  ;;  %v1947_v62 = vrot.slane %v8434_v46, 4  ;;  %v10237_v31 = vrot.slane %v12547_v16, 4  ;;  %v1683_v57 = vrot.slane %v8429_v45, 4  ;;  %v1170_v32 = vld [vmem:[#allocation2] sm:$0x44] }
 0x112   : > { %1449 = vst [vmem:[#allocation2] sm:$0x88] %v1448_v33  ;;  %v1149_v25 = vsel %vm595_vm13, %v1143_v55, %v10227_v60  ;;  %v12553_v0 = vunpack.i.h.bf16 %v10239_v63  ;;  %v8444_v50 = vunpack.i.l.bf16 %v10239_v63  ;;  %v12554_v1 = vunpack.i.h.bf16 %v10241_v17 }
 0x113   : > { %v1151_v47 = vsel %vm1150_vm11, %v8419_v14, %v1149_v25  ;;  %v1953_v16 = vsel %vm595_vm13, %v1947_v62, %v10231_v43  ;;  %v1689_v27 = vsel %vm595_vm13, %v1683_v57, %v10237_v31  ;;  %v8439_v33 = vunpack.i.l.bf16 %v10241_v17 }
 0x114   : > { %v1171_v55 = vsel %vm9232_vm1, %v1151_v47, %v1170_v32  ;;  %v1955_v51 = vsel %vm12582_vm14, %v8434_v46, %v1953_v16  ;;  %v1691_v7 = vsel %vm1690_vm7, %v8429_v45, %v1689_v27  ;;  %v10260_v14 = vrot.slane %v12553_v0, 4  ;;  %v10270_v46 = vpop.permute.xlu1 %988  ;;  %v10272_v16 = vpop.permute.xlu0 %711  ;;  %v2499_v32 = vld [vmem:[#allocation2 + $0x68] sm:$0x88] }
 0x115   : > { %1172 = vst [vmem:[#allocation2] sm:$0x44] %v1171_v55  ;;  %v1970_v62 = vsel %vm9105_vm6, %v1955_v51, %v1969_v24  ;;  %v1706_v57 = vsel %vm9838_vm9, %v1691_v7, %v1705_v12  ;;  %v2477_v25 = vrot.slane %v8444_v50, 4  ;;  %v10268_v47 = vrot.slane %v12554_v1, 4  ;;  %v1030_v7 = vld [vmem:[#allocation2 + $0x18] sm:$0x44] }
 0x116   : > { %1971 = vst [vmem:[#allocation2 + $0x68] sm:$0x22] %v1970_v62  ;;  %1707 = vst [vmem:[#allocation2 + $0x68] sm:$0x11] %v1706_v57  ;;  %vm12577_vm2 = vcmask 498688   ;;  %v2212_v27 = vrot.slane %v8439_v33, 4 }
 0x117   : > { %v12565_v45 = vrot.slane %v10270_v46, 4  ;;  %v12564_v24 = vrot.slane %v10272_v16, 4  ;;  %v2483_v12 = vsel %vm595_vm13, %v2477_v25, %v10260_v14  ;;  %v753_v51 = vld [vmem:[#allocation2 + $0x18] sm:$0x22]  ;;  %v2234_v1 = vld [vmem:[#allocation2 + $0x68] sm:$0x44] }
 0x118   : > { %v2485_v55 = vsel %vm12556_vm15, %v8444_v50, %v2483_v12  ;;  %v2218_v0 = vsel %vm595_vm13, %v2212_v27, %v10268_v47  ;;  %vm12686_vm0 = vcmask 1014784   ;;  %vm12687_vm15 = vcmask 1031168   ;;  %v10298_v3 = vpop.permute.xlu1 %1541 }
 0x119   : > { %v1005_v62 = vsel %vm595_vm13, %v995_v15, %v12565_v45  ;;  %v728_v57 = vsel %vm595_vm13, %v718_v2, %v12564_v24  ;;  %v2500_v25 = vsel %vm9903_vm8, %v2485_v55, %v2499_v32  ;;  %v2220_v50 = vsel %vm12577_vm2, %v8439_v33, %v2218_v0  ;;  %v10300_v15 = vpop.permute.xlu0 %1265  ;;  %v1176_v24 = vld [vmem:[#allocation2 + $0x50] sm:$0x44] }
 0x11a   : > { %v1006_v27 = vsel %vm12686_vm0, %v10077_v39, %v1005_v62  ;;  %v729_v12 = vsel %vm12687_vm15, %v10036_v49, %v728_v57  ;;  %2501 = vst [vmem:[#allocation2 + $0x68] sm:$0x88] %v2500_v25  ;;  %v2235_v2 = vsel %vm9232_vm1, %v2220_v50, %v2234_v1  ;;  %v12562_v33 = vrot.slane %v10298_v3, 4  ;;  %v1576_v49 = vld [vmem:[#allocation2 + $0x8] sm:$0x11] }
 0x11b   : > { %v1031_v32 = vsel %vm9254_vm4, %v1006_v27, %v1030_v7  ;;  %v754_v0 = vsel %vm9404_vm3, %v729_v12, %v753_v51  ;;  %2236 = vst [vmem:[#allocation2 + $0x68] sm:$0x44] %v2235_v2  ;;  %v12563_v39 = vrot.slane %v10300_v15, 4  ;;  %v12688_v55 = vrot.slane %v10109_v26, 4  ;;  %v1307_v62 = vld [vmem:[#allocation2 + $0x18] sm:$0x88] }
 0x11c   : > { %1032 = vst [vmem:[#allocation2 + $0x18] sm:$0x44] %v1031_v32  ;;  %755 = vst [vmem:[#allocation2 + $0x18] sm:$0x22] %v754_v0  ;;  %vm12689_vm0 = vcmask 760832   ;;  %v12690_v51 = vrot.slane %v10075_v48, 4  ;;  %v10322_v25 = vpop.permute.xlu1 %2064 }
 0x11d   : > { %v1558_v1 = vsel %vm595_vm13, %v12688_v55, %v12562_v33  ;;  %12691 = vst [vmem:[#allocation11_spill] sm:$0xff] %v10322_v25  ;;  %v10324_v50 = vpop.permute.xlu0 %1799  ;;  %vm12693_vm15 = vcmask 777216   ;;  %v12558_v2 = vrot.slane %v10322_v25, 4  ;;  %v2099_v0 = vld [vmem:[#allocation2 + $0x8] sm:$0x44] }
 0x11e   : > { %v1559_v7 = vsel %vm12689_vm0, %v10109_v26, %v1558_v1  ;;  %v1282_v57 = vsel %vm595_vm13, %v12690_v51, %v12563_v39  ;;  %12692 = vst [vmem:[#allocation12_spill] sm:$0xff] %v10324_v50  ;;  %v12559_v26 = vrot.slane %v10324_v50, 4  ;;  %v1834_v55 = vld [vmem:[#allocation2 + $0x8] sm:$0x22]  ;;  %v12694_v1 = vrot.slane %v10139_v34, 4 }
 0x11f   : > { %v1577_v27 = vsel %vm9321_vm12, %v1559_v7, %v1576_v49  ;;  %v1283_v12 = vsel %vm12693_vm15, %v10075_v48, %v1282_v57  ;;  %v12695_v48 = vrot.slane %v10107_v41, 4  ;;  %vm12696_vm0 = vcmask 506880   ;;  %v1711_v25 = vld [vmem:[#allocation2 + $0x80] sm:$0x11] }
 0x120   : > { %1578 = vst [vmem:[#allocation2 + $0x8] sm:$0x11] %v1577_v27  ;;  %v1308_v32 = vsel %vm9452_vm10, %v1283_v12, %v1307_v62  ;;  %v2081_v49 = vsel %vm595_vm13, %v12694_v1, %v12558_v2  ;;  %vm12697_vm15 = vcmask 523264   ;;  %v10348_v57 = vpop.permute.xlu1 %8447 }
 0x121   : > { %1309 = vst [vmem:[#allocation2 + $0x18] sm:$0x88] %v1308_v32  ;;  %v1816_v7 = vsel %vm595_vm13, %v12695_v48, %v12559_v26  ;;  %v2082_v51 = vsel %vm12696_vm0, %v10139_v34, %v2081_v49  ;;  %v10350_v27 = vpop.permute.xlu0 %2329  ;;  %v12561_v1 = vunpack.i.h.bf16 %v10348_v57  ;;  %v8449_v48 = vunpack.i.l.bf16 %v10348_v57 }
 0x122   : > { %v1817_v62 = vsel %vm12697_vm15, %v10107_v41, %v1816_v7  ;;  %12698 = vst [vmem:[#allocation13_spill] sm:$0xff] %v10350_v27  ;;  %v2100_v12 = vsel %vm9254_vm4, %v2082_v51, %v2099_v0  ;;  %v8542_v2 = vld [vmem:[#allocation2 + $0x4] ss:$104 sps:$4 sm:$0xff]   ;;  %v8544_v26 = vld [vmem:[#allocation2] ss:$104 sps:$4 sm:$0xff]   ;;  %v12560_v41 = vrot.slane %v10350_v27, 4  ;;  %v12705_v27 = vunpack.i.h.bf16 %v10214_v52 }
 0x123   : > { %v1835_v32 = vsel %vm9404_vm3, %v1817_v62, %v1834_v55  ;;  %2101 = vst [vmem:[#allocation2 + $0x8] sm:$0x44] %v2100_v12  ;;  %v10361_v34 = vrot.slane %v12561_v1, 4  ;;  %v1145_v49 = vrot.slane %v8449_v48, 4  ;;  %v2364_v7 = vld [vmem:[#allocation2 + $0x8] sm:$0x88]  ;;  %3814 = vmatprep.subr.bf16.mxu0 %v8542_v2  ;;  %v12702_v1 = vunpack.i.h.bf16 %v10186_v54 }
 0x124   : > { %1836 = vst [vmem:[#allocation2 + $0x8] sm:$0x22] %v1835_v32  ;;  %v12699_v0 = vrot.slane %v10137_v19, 4  ;;  %3815 = vmatpush1.bf16.msra.mxu0 %v8544_v26  ;;  %v10368_v51 = vpop.permute.xlu1 %8457  ;;  %v10375_v12 = vld [vmem:[%s12490_s1] sm:$0x7]  ;;  %vm3762_vm0 = vcmask 203776  }
 0x125   : > { %12700 = vst [vmem:[#allocation14_spill] sm:$0xff] %v10368_v51  ;;  %v10370_v62 = vpop.permute.xlu0 %8452  ;;  %v1152_v2 = vsel %vm595_vm13, %v10227_v60, %v1145_v49  ;;  %v1154_v32 = vsel %vm595_vm13, %v1145_v49, %v10361_v34  ;;  %vm12701_vm15 = vcmask 490496   ;;  %v12566_v26 = vunpack.i.h.bf16 %v10368_v51 }
 0x126   : > { %v2346_v55 = vsel %vm595_vm13, %v12699_v0, %v12560_v41  ;;  %v1173_v41 = vld [vmem:[#allocation2 + $0x38] sm:$0x44]  ;;  %v1153_v33 = vsel %vm1150_vm11, %v12702_v1, %v1152_v2  ;;  %v1155_v39 = vsel %vm1150_vm11, %v8449_v48, %v1154_v32  ;;  %v8459_v60 = vunpack.i.l.bf16 %v10368_v51 }
 0x127   : > { %v2347_v0 = vsel %vm12701_vm15, %v10137_v19, %v2346_v55  ;;  %v1174_v49 = vsel %vm9232_vm1, %v1153_v33, %v1173_v41  ;;  %v1177_v19 = vsel %vm9232_vm1, %v1155_v39, %v1176_v24  ;;  %v10397_v54 = vrot.slane %v12566_v26, 4  ;;  %7957 = vmatmul.mubr.msk.bf16.vlgmr.msra.gmra.mxu0 %vm3762_vm0, %v10375_v12  ;;  %v1708_v26 = vld [vmem:[#allocation2 + $0x78] sm:$0x11] }
 0x128   : > { %v2365_v45 = vsel %vm9452_vm10, %v2347_v0, %v2364_v7  ;;  %v12569_v1 = vunpack.i.h.bf16 %v10370_v62  ;;  %1175 = vst [vmem:[#allocation2 + $0x38] sm:$0x44] %v1174_v49  ;;  %1178 = vst [vmem:[#allocation2 + $0x50] sm:$0x44] %v1177_v19  ;;  %v1685_v48 = vrot.slane %v8459_v60, 4  ;;  %v8454_v7 = vunpack.i.l.bf16 %v10370_v62  ;;  %v10403_v55 = vpop.permute.xlu1 %8467 }
 0x129   : > { %2366 = vst [vmem:[#allocation2 + $0x8] sm:$0x88] %v2365_v45  ;;  %12703 = vst [vmem:[#allocation15_spill] sm:$0xff] %v10397_v54  ;;  %v10405_v33 = vpop.permute.xlu0 %8462  ;;  %v12704_v24 = vmov 0   ;;  %v8469_v41 = vunpack.i.l.bf16 %v10403_v55  ;;  %v12706_v51 = vunpack.i.h.bf16 %v10403_v55  ;;  %vm12718_vm15 = vcmask 1039360  }
 0x12a   : > { %3914 = vmatprep.mubr.bf16.mxu0 %v12704_v24  ;;  %v10410_v45 = vrot.slane %v12569_v1, 4  ;;  %v1692_v32 = vsel %vm595_vm13, %v10237_v31, %v1685_v48  ;;  %v1694_v0 = vsel %vm595_vm13, %v1685_v48, %v10397_v54  ;;  %v1422_v49 = vrot.slane %v8454_v7, 4 }
 0x12b   : > { %v8464_v19 = vunpack.i.l.bf16 %v10405_v33  ;;  %v1693_v1 = vsel %vm1690_vm7, %v12705_v27, %v1692_v32  ;;  %v1695_v39 = vsel %vm1690_vm7, %v8459_v60, %v1694_v0  ;;  %v10426_v2 = vrot.slane %v12706_v51, 4  ;;  %v1450_v51 = vld [vmem:[#allocation2 + $0x38] sm:$0x88]  ;;  %v1453_v32 = vld [vmem:[#allocation2 + $0x50] sm:$0x88] }
 0x12c   : > { %v2214_v50 = vrot.slane %v8469_v41, 4  ;;  %v1709_v31 = vsel %vm9838_vm9, %v1693_v1, %v1708_v26  ;;  %v1712_v48 = vsel %vm9838_vm9, %v1695_v39, %v1711_v25  ;;  %v1429_v54 = vsel %vm595_vm13, %v10210_v56, %v1422_v49  ;;  %v10436_v27 = vpop.permute.xlu1 %8477 }
 0x12d   : > { %v1431_v52 = vsel %vm595_vm13, %v1422_v49, %v10410_v45  ;;  %12707 = vst [vmem:[#allocation16_spill] sm:$0xff] %v10436_v27  ;;  %v10438_v60 = vpop.permute.xlu0 %8472  ;;  %1710 = vst [vmem:[#allocation2 + $0x78] sm:$0x11] %v1709_v31  ;;  %v12709_v0 = vunpack.i.h.bf16 %v10184_v10  ;;  %v2237_v31 = vld [vmem:[#allocation2 + $0x78] sm:$0x44] }
 0x12e   : > { %12708 = vst [vmem:[#allocation17_spill] sm:$0xff] %v10438_v60  ;;  %1713 = vst [vmem:[#allocation2 + $0x80] sm:$0x11] %v1712_v48  ;;  %v1432_v25 = vsel %vm1427_vm5, %v8454_v7, %v1431_v52  ;;  %v2221_v56 = vsel %vm595_vm13, %v10268_v47, %v2214_v50  ;;  %v2223_v1 = vsel %vm595_vm13, %v2214_v50, %v10426_v2  ;;  %v12710_v48 = vunpack.i.h.bf16 %v10241_v17  ;;  %v2240_v7 = vld [vmem:[#allocation2 + $0x80] sm:$0x44] }
 0x12f   : > { %v1430_v26 = vsel %vm1427_vm5, %v12709_v0, %v1429_v54  ;;  %v1454_v49 = vsel %vm9903_vm8, %v1432_v25, %v1453_v32  ;;  %v2224_v54 = vsel %vm12577_vm2, %v8469_v41, %v2223_v1  ;;  %v12711_v52 = vunpack.i.h.bf16 %v10405_v33 }
 0x130   : > { %v1451_v39 = vsel %vm9903_vm8, %v1430_v26, %v1450_v51  ;;  %v2222_v10 = vsel %vm12577_vm2, %v12710_v48, %v2221_v56  ;;  %1455 = vst [vmem:[#allocation2 + $0x50] sm:$0x88] %v1454_v49  ;;  %v2241_v50 = vsel %vm9232_vm1, %v2224_v54, %v2240_v7  ;;  %v1949_v32 = vrot.slane %v8464_v19, 4  ;;  %v10468_v25 = vpop.permute.xlu1 %3603  ;;  %v1972_v48 = vld [vmem:[#allocation2 + $0x78] sm:$0x22]  ;;  %vm12719_vm2 = vmmov %vm12718_vm15 }
 0x131   : > { %1452 = vst [vmem:[#allocation2 + $0x38] sm:$0x88] %v1451_v39  ;;  %v2238_v47 = vsel %vm9232_vm1, %v2222_v10, %v2237_v31  ;;  %v10462_v51 = vrot.slane %v12711_v52, 4  ;;  %2242 = vst [vmem:[#allocation2 + $0x80] sm:$0x44] %v2241_v50  ;;  %v12576_v17 = vunpack.i.h.bf16 %v10436_v27  ;;  %v8479_v41 = vunpack.i.l.bf16 %v10436_v27  ;;  %v10470_v56 = vpop.permute.xlu0 %8482 }
 0x132   : > { %2239 = vst [vmem:[#allocation2 + $0x78] sm:$0x44] %v2238_v47  ;;  %v12578_v0 = vunpack.i.h.bf16 %v10438_v60  ;;  %v8474_v26 = vunpack.i.l.bf16 %v10438_v60  ;;  %v1956_v1 = vsel %vm595_vm13, %v10231_v43, %v1949_v32  ;;  %v1975_v10 = vld [vmem:[#allocation2 + $0x80] sm:$0x22]  ;;  %v12712_v54 = vunpack.i.h.bf16 %v10212_v20  ;;  %v3254_v31 = vld [vmem:[#allocation2 + $0x58] sm:$0x44] }
 0x133   : > { %v1958_v39 = vsel %vm595_vm13, %v1949_v32, %v10462_v51  ;;  %v10484_v50 = vrot.slane %v12576_v17, 4  ;;  %v3230_v43 = vrot.slane %v8479_v41, 4  ;;  %v3257_v49 = vld [vmem:[#allocation2 + $0x10] sm:$0x44]  ;;  %v2502_v60 = vld [vmem:[#allocation2 + $0x78] sm:$0x88] }
 0x134   : > { %v1957_v7 = vsel %vm12582_vm14, %v12712_v54, %v1956_v1  ;;  %v1959_v47 = vsel %vm12582_vm14, %v8464_v19, %v1958_v39  ;;  %v10492_v20 = vrot.slane %v12578_v0, 4  ;;  %v2479_v1 = vrot.slane %v8474_v26, 4  ;;  %v10507_v17 = vpop.permute.xlu1 %8487 }
 0x135   : > { %12713 = vst [vmem:[#allocation18_spill] sm:$0xff] %v10484_v50  ;;  %v1973_v52 = vsel %vm9105_vm6, %v1957_v7, %v1972_v48  ;;  %v1976_v32 = vsel %vm9105_vm6, %v1959_v47, %v1975_v10  ;;  %v3237_v19 = vsel %vm595_vm13, %v10056_v29, %v3230_v43  ;;  %v3239_v39 = vsel %vm595_vm13, %v3230_v43, %v10484_v50  ;;  %v2505_v50 = vld [vmem:[#allocation2 + $0x80] sm:$0x88] }
 0x136   : > { %1974 = vst [vmem:[#allocation2 + $0x78] sm:$0x22] %v1973_v52  ;;  %1977 = vst [vmem:[#allocation2 + $0x80] sm:$0x22] %v1976_v32  ;;  %v12714_v48 = vrot.slane %v10468_v25, 4  ;;  %v12715_v54 = vrot.slane %v10038_v21, 4  ;;  %v12716_v7 = vunpack.i.h.bf16 %v10470_v56  ;;  %v2596_v52 = vpop.permute.xlu0 %2595  ;;  %v12717_v32 = vunpack.i.l.bf16 %v10002_v38 }
 0x137   : > { %v3240_v0 = vsel %vm12719_vm2, %v8479_v41, %v3239_v39  ;;  %v2486_v43 = vsel %vm595_vm13, %v10260_v14, %v2479_v1  ;;  %v2488_v27 = vsel %vm595_vm13, %v2479_v1, %v10492_v20  ;;  %v12720_v38 = vunpack.i.h.bf16 %v10239_v63 }
 0x138   : > { %v3619_v10 = vsel %vm595_vm13, %v12715_v54, %v12714_v48  ;;  %v10505_v47 = vrot.slane %v12716_v7, 4  ;;  %v3238_v29 = vsel %vm12718_vm15, %v12717_v32, %v3237_v19  ;;  %v3636_v48 = vld [vmem:[#allocation2 + $0x48] sm:$0x11]  ;;  %v3258_v7 = vsel %vm9232_vm1, %v3240_v0, %v3257_v49  ;;  %v10536_v39 = vpop.permute.xlu1 %8492 }
 0x139   : > { %v3255_v54 = vsel %vm9232_vm1, %v3238_v29, %v3254_v31  ;;  %vm12721_vm15 = vcmask 261120   ;;  %3259 = vst [vmem:[#allocation2 + $0x10] sm:$0x44] %v3258_v7  ;;  %vm12723_vm14 = vcmask 1014784   ;;  %v8484_v0 = vunpack.i.l.bf16 %v10470_v56  ;;  %v2631_v7 = vld [vmem:[#allocation2 + $0x98] sm:$0x11] }
 0x13a   : > { %v2487_v19 = vsel %vm12721_vm15, %v12720_v38, %v2486_v43  ;;  %vm12722_vm2 = vmmov %vm12721_vm15  ;;  %3256 = vst [vmem:[#allocation2 + $0x58] sm:$0x44] %v3255_v54  ;;  %v3620_v31 = vsel %vm12723_vm14, %v10038_v21, %v3619_v10  ;;  %v2602_v49 = vrot.slane %v2596_v52, 4  ;;  %v8495_v32 = vunpack.i.h.bf16 %v10536_v39 }
 0x13b   : > { %v2489_v41 = vsel %vm12722_vm2, %v8474_v26, %v2488_v27  ;;  %v2503_v14 = vsel %vm9903_vm8, %v2487_v19, %v2502_v60  ;;  %v3637_v63 = vsel %vm9321_vm12, %v3620_v31, %v3636_v48  ;;  %v8490_v27 = vunpack.i.h.bf16 %v10507_v17  ;;  %v2854_v60 = vpop.permute.xlu0 %2853  ;;  %v3517_v19 = vld [vmem:[#allocation2 + $0x58] sm:$0x88] }
 0x13c   : > { %v2506_v1 = vsel %vm9903_vm8, %v2489_v41, %v2505_v50  ;;  %2504 = vst [vmem:[#allocation2 + $0x78] sm:$0x88] %v2503_v14  ;;  %v8489_v26 = vunpack.i.l.bf16 %v10507_v17  ;;  %3638 = vst [vmem:[#allocation2 + $0x48] sm:$0x11] %v3637_v63  ;;  %v3493_v50 = vrot.slane %v8484_v0, 4  ;;  %v12724_v10 = vrot.slane %v9909_v61, 4 }
 0x13d   : > { %2507 = vst [vmem:[#allocation2 + $0x80] sm:$0x88] %v2506_v1  ;;  %v8494_v43 = vunpack.i.l.bf16 %v10536_v39  ;;  %v2860_v48 = vrot.slane %v2854_v60, 4  ;;  %vm12725_vm14 = vcmask 252928   ;;  %v3520_v41 = vld [vmem:[#allocation2 + $0x10] sm:$0x88]  ;;  %v12726_v14 = vunpack.i.l.bf16 %v10000_v5 }
 0x13e   : > { %v2739_v21 = vrot.slane %v8489_v26, 4  ;;  %v2612_v29 = vsel %vm595_vm13, %v12724_v10, %v2602_v49  ;;  %v3500_v52 = vsel %vm595_vm13, %v10034_v53, %v3493_v50  ;;  %v3502_v54 = vsel %vm595_vm13, %v3493_v50, %v10505_v47  ;;  %v10557_v53 = vpop.permute.xlu1 %3605  ;;  %v2766_v10 = vld [vmem:[#allocation2 + $0x10] sm:$0x11] }
 0x13f   : > { %v2613_v38 = vsel %vm12725_vm14, %v9909_v61, %v2612_v29  ;;  %vm12727_vm15 = vcmask 1022976   ;;  %v2740_v63 = vrot.slane %v8490_v27, 4  ;;  %v3346_v60 = vpop.permute.xlu0 %3345  ;;  %v12729_v5 = vunpack.i.h.bf16 %v9972_v40 }
 0x140   : > { %v3501_v1 = vsel %vm12727_vm15, %v12726_v14, %v3500_v52  ;;  %vm12728_vm2 = vmmov %vm12727_vm15  ;;  %v2748_v49 = vsel %vm595_vm13, %v9991_v18, %v2739_v21  ;;  %vm12730_vm14 = vcmask 244736   ;;  %v3004_v52 = vrot.slane %v8495_v32, 4 }
 0x141   : > { %v3503_v31 = vsel %vm12728_vm2, %v8484_v0, %v3502_v54  ;;  %v3518_v50 = vsel %vm9903_vm8, %v3501_v1, %v3517_v19  ;;  %v2749_v29 = vsel %vm12730_vm14, %v12729_v5, %v2748_v49  ;;  %v2889_v0 = vld [vmem:[#allocation2 + $0x98] sm:$0x22]  ;;  %v2632_v27 = vsel %vm9321_vm12, %v2613_v38, %v2631_v7 }
 0x142   : > { %v3521_v61 = vsel %vm9903_vm8, %v3503_v31, %v3520_v41  ;;  %3519 = vst [vmem:[#allocation2 + $0x58] sm:$0x88] %v3518_v50  ;;  %v2767_v18 = vsel %vm9838_vm9, %v2749_v29, %v2766_v10  ;;  %v3003_v54 = vrot.slane %v8494_v43, 4  ;;  %v12731_v19 = vrot.slane %v9943_v23, 4  ;;  %2633 = vst [vmem:[#allocation2 + $0x98] sm:$0x11] %v2632_v27  ;;  %v10583_v10 = vpop.permute.xlu1 %8502 }
 0x143   : > { %3522 = vst [vmem:[#allocation2 + $0x10] sm:$0x88] %v3521_v61  ;;  %2768 = vst [vmem:[#allocation2 + $0x10] sm:$0x11] %v2767_v18  ;;  %vm12732_vm15 = vcmask 236544   ;;  %v3613_v32 = vrot.slane %v10557_v53, 4  ;;  %v2750_v49 = vsel %vm595_vm13, %v2739_v21, %v2740_v63  ;;  %v10585_v5 = vpop.permute.xlu0 %8497 }
 0x144   : > { %v2870_v41 = vsel %vm595_vm13, %v12731_v19, %v2860_v48  ;;  %v3352_v14 = vrot.slane %v3346_v60, 4  ;;  %v3647_v1 = vld [vmem:[#allocation2 + $0x38] sm:$0xff]  ;;  %v3012_v7 = vsel %vm595_vm13, %v9998_v22, %v3003_v54  ;;  %v3639_v50 = vld [vmem:[#allocation2 + $0x70] sm:$0x11]  ;;  %v12733_v60 = vunpack.i.h.bf16 %v9974_v8 }
 0x145   : > { %v2871_v40 = vsel %vm12732_vm15, %v9943_v23, %v2870_v41  ;;  %v3652_v31 = vld [vmem:[#allocation2 + $0x78] sm:$0xff]  ;;  %v3030_v23 = vld [vmem:[#allocation2 + $0x10] sm:$0x22]  ;;  %vm12734_vm2 = vcmask 228352   ;;  %v3014_v21 = vsel %vm595_vm13, %v3003_v54, %v3004_v52  ;;  %v12735_v22 = vrot.slane %v10468_v25, 4 }
 0x146   : > { %v2890_v38 = vsel %vm9404_vm3, %v2871_v40, %v2889_v0  ;;  %v3380_v48 = vld [vmem:[#allocation2 + $0x98] sm:$0x88]  ;;  %v7940_v61 = vcombine.high %v3647_v1, %v3652_v31  ;;  %v3013_v29 = vsel %vm12734_vm2, %v12733_v60, %v3012_v7  ;;  %v12736_v0 = vrot.slane %v9945_v4, 4 }
 0x147   : > { %2891 = vst [vmem:[#allocation2 + $0x98] sm:$0x22] %v2890_v38  ;;  %v3621_v63 = vsel %vm595_vm13, %v12735_v22, %v3613_v32  ;;  %v3031_v27 = vsel %vm9105_vm6, %v3013_v29, %v3030_v23  ;;  %vm12737_vm14 = vcmask 1014784   ;;  %vm12738_vm15 = vcmask 1031168   ;;  %v714_v7 = vpop.permute.xlu0 %713  ;;  %v626_v29 = vld [vmem:[#allocation2 + $0x18] sm:$0x11] }
 0x148   : > { %v3361_v18 = vsel %vm595_vm13, %v12736_v0, %v3352_v14  ;;  %v3622_v8 = vsel %vm12737_vm14, %v10468_v25, %v3621_v63  ;;  %3855 = vmatprep.subr.bf16.mxu1 %v7940_v61  ;;  %v7939_v54 = vcombine.low %v3647_v1, %v3652_v31  ;;  %3032 = vst [vmem:[#allocation2 + $0x10] sm:$0x22] %v3031_v27  ;;  %v8505_v40 = vunpack.i.h.bf16 %v10583_v10  ;;  %v991_v31 = vpop.permute.xlu1 %990  ;;  %v1033_v22 = vld [vmem:[#allocation2 + $0x30] sm:$0x44]  ;;  %v902_v27 = vld [vmem:[#allocation2 + $0x18] sm:$0x22] }
 0x149   : > { %v3362_v52 = vsel %vm12738_vm15, %v9945_v4, %v3361_v18  ;;  %v3640_v19 = vsel %vm9321_vm12, %v3622_v8, %v3639_v50  ;;  %v8504_v14 = vunpack.i.l.bf16 %v10583_v10  ;;  %vm12739_vm2 = vcmask 244736   ;;  %v2769_v23 = vld [vmem:[#allocation2 + $0x98] sm:$0x11] }
 0x14a   : > { %v3381_v41 = vsel %vm9452_vm10, %v3362_v52, %v3380_v48  ;;  %v2751_v25 = vsel %vm12739_vm2, %v8489_v26, %v2750_v49  ;;  %3641 = vst [vmem:[#allocation2 + $0x70] sm:$0x11] %v3640_v19  ;;  %3856 = vmatpush1.bf16.msra.mxu1 %v7939_v54  ;;  %v8500_v4 = vunpack.i.h.bf16 %v10585_v5  ;;  %v8499_v1 = vunpack.i.l.bf16 %v10585_v5  ;;  %v623_v48 = vld [vmem:[#allocation2 + $0x50] sm:$0x11]  ;;  %v899_v26 = vld [vmem:[#allocation2 + $0x50] sm:$0x22] }
 0x14b   : > { %3382 = vst [vmem:[#allocation2 + $0x98] sm:$0x88] %v3381_v41  ;;  %v10618_v38 = vrot.slane %v8505_v40, 4  ;;  %v869_v50 = vrot.slane %v8504_v14, 4  ;;  %v997_v61 = vrot.slane %v991_v31, 4  ;;  %vm12740_vm14 = vcmask 228352  }
 0x14c   : > { %v3015_v17 = vsel %vm12740_vm14, %v8494_v43, %v3014_v21  ;;  %v10625_v49 = vrot.slane %v8500_v4, 4  ;;  %v592_v60 = vrot.slane %v8499_v1, 4  ;;  %v720_v63 = vrot.slane %v714_v7, 4  ;;  %v8548_v8 = vld [vmem:[#allocation2 + $0x5c] ss:$-16 sps:$4 sm:$0x1f]   ;;  %v1268_v7 = vpop.permute.xlu1 %1267 }
 0x14d   : > { %v2770_v0 = vsel %vm9838_vm9, %v2751_v25, %v2769_v23  ;;  %v877_v18 = vsel %vm595_vm13, %v10178_v30, %v869_v50  ;;  %v879_v39 = vsel %vm595_vm13, %v869_v50, %v10618_v38  ;;  %7958 = vmatmul.mubr.msk.bf16.vlgmr.msra.gmra.mxu1 %vm3762_vm0, %v10375_v12  ;;  %v12741_v43 = vrot.slane %v10270_v46, 4  ;;  %v8546_v31 = vld [vmem:[#allocation2 + $0x58] ss:$-16 sps:$4 sm:$0x1f]   ;;  %v10646_v50 = vpop.permute.xlu0 %8507 }
 0x14e   : > { %2771 = vst [vmem:[#allocation2 + $0x98] sm:$0x11] %v2770_v0  ;;  %v3033_v52 = vld [vmem:[#allocation2 + $0x98] sm:$0x22]  ;;  %v12742_v54 = vunpack.i.h.bf16 %v10162_v42  ;;  %vm12743_vm15 = vcmask 1022976   ;;  %v601_v41 = vsel %vm595_vm13, %v10182_v9, %v592_v60  ;;  %v603_v25 = vsel %vm595_vm13, %v592_v60, %v10625_v49  ;;  %3955 = vmatprep.mubr.bf16.mxu1 %v12704_v24 }
 0x14f   : > { %v1007_v21 = vsel %vm595_vm13, %v12741_v43, %v997_v61  ;;  %vm12744_vm2 = vmmov %vm12743_vm15  ;;  %v3034_v61 = vsel %vm9105_vm6, %v3015_v17, %v3033_v52  ;;  %v12745_v9 = vunpack.i.h.bf16 %v10164_v35  ;;  %vm12746_vm14 = vcmask 1039360   ;;  %v756_v60 = vld [vmem:[#allocation2 + $0x30] sm:$0x22] }
 0x150   : > { %v878_v19 = vsel %vm12743_vm15, %v12742_v54, %v877_v18  ;;  %v880_v30 = vsel %vm12744_vm2, %v8504_v14, %v879_v39  ;;  %3035 = vst [vmem:[#allocation2 + $0x98] sm:$0x22] %v3034_v61  ;;  %vm12747_vm15 = vmmov %vm12746_vm14  ;;  %vm12748_vm2 = vcmask 1014784   ;;  %v3786_v43 = vand.u32 %v8548_v8, %v9994_v13  ;;  %v1579_v61 = vld [vmem:[#allocation2 + $0x88] sm:$0x11] }
 0x151   : > { %v900_v42 = vsel %vm9105_vm6, %v878_v19, %v899_v26  ;;  %v903_v14 = vsel %vm9105_vm6, %v880_v30, %v902_v27  ;;  %v602_v23 = vsel %vm12746_vm14, %v12745_v9, %v601_v41  ;;  %v604_v0 = vsel %vm12747_vm15, %v8499_v1, %v603_v25  ;;  %v10677_v54 = vpop.permute.xlu0 %8512  ;;  %v3659_v41 = vld [vmem:[#allocation2 + $0x10] sm:$0xff] }
 0x152   : > { %901 = vst [vmem:[#allocation2 + $0x50] sm:$0x22] %v900_v42  ;;  %904 = vst [vmem:[#allocation2 + $0x18] sm:$0x22] %v903_v14  ;;  %v624_v18 = vsel %vm9838_vm9, %v602_v23, %v623_v48  ;;  %v1008_v17 = vsel %vm12748_vm2, %v10270_v46, %v1007_v21  ;;  %v12749_v26 = vrot.slane %v10272_v16, 4  ;;  %v627_v35 = vsel %vm9838_vm9, %v604_v0, %v626_v29  ;;  %v1544_v29 = vpop.permute.xlu1 %1543 }
 0x153   : > { %625 = vst [vmem:[#allocation2 + $0x50] sm:$0x11] %v624_v18  ;;  %v1034_v27 = vsel %vm9254_vm4, %v1008_v17, %v1033_v22  ;;  %vm12750_vm14 = vcmask 1031168   ;;  %v3664_v48 = vld [vmem:[#allocation2 + $0x70] sm:$0x11]  ;;  %v1274_v21 = vrot.slane %v1268_v7, 4  ;;  %v8510_v52 = vunpack.i.h.bf16 %v10646_v50  ;;  %3894 = vmatprep.subr.bf16.mxu0 %v3786_v43 }
 0x154   : > { %v730_v39 = vsel %vm595_vm13, %v12749_v26, %v720_v63  ;;  %628 = vst [vmem:[#allocation2 + $0x18] sm:$0x11] %v627_v35  ;;  %1035 = vst [vmem:[#allocation2 + $0x30] sm:$0x44] %v1034_v27  ;;  %v3783_v63 = vand.u32 %v8546_v31, %v9994_v13  ;;  %v1310_v22 = vld [vmem:[#allocation2 + $0x30] sm:$0x88]  ;;  %v8515_v19 = vunpack.i.h.bf16 %v10677_v54  ;;  %v8514_v30 = vunpack.i.l.bf16 %v10677_v54 }
 0x155   : > { %v731_v1 = vsel %vm12750_vm14, %v10272_v16, %v730_v39  ;;  %v8509_v16 = vunpack.i.l.bf16 %v10646_v50  ;;  %v1550_v8 = vrot.slane %v1544_v29, 4  ;;  %v12751_v25 = vrot.slane %v10300_v15, 4  ;;  %v10695_v27 = vpop.permute.xlu0 %1679 }
 0x156   : > { %v757_v46 = vsel %vm9404_vm3, %v731_v1, %v756_v60  ;;  %3895 = vmatpush1.bf16.msra.mxu0 %v3783_v63  ;;  %v1148_v7 = vrot.slane %v8510_v52, 4  ;;  %v7953_v42 = vcombine.low %v3659_v41, %v3664_v48  ;;  %v7954_v14 = vcombine.high %v3659_v41, %v3664_v48  ;;  %v1802_v35 = vpop.permute.xlu1 %1801 }
 0x157   : > { %758 = vst [vmem:[#allocation2 + $0x30] sm:$0x22] %v757_v46  ;;  %v1284_v31 = vsel %vm595_vm13, %v12751_v25, %v1274_v21  ;;  %vm12752_vm15 = vcmask 777216   ;;  %v1147_v23 = vrot.slane %v8509_v16, 4  ;;  %v12753_v50 = vrot.slane %v10298_v3, 4 }
 0x158   : > { %v1285_v9 = vsel %vm12752_vm15, %v10300_v15, %v1284_v31  ;;  %v1425_v0 = vrot.slane %v8515_v19, 4  ;;  %vm12754_vm2 = vcmask 760832   ;;  %v1424_v26 = vrot.slane %v8514_v30, 4  ;;  %v1179_v15 = vld [vmem:[#allocation2 + $0x18] sm:$0x44] }
 0x159   : > { %v1560_v60 = vsel %vm595_vm13, %v12753_v50, %v1550_v8  ;;  %v1311_v18 = vsel %vm9452_vm10, %v1285_v9, %v1310_v22  ;;  %v3792_v39 = vand.u32 %v7954_v14, %v9994_v13  ;;  %v1156_v1 = vsel %vm595_vm13, %v10361_v34, %v1147_v23  ;;  %v1456_v8 = vld [vmem:[#allocation2 + $0x18] sm:$0x88]  ;;  %v1837_v31 = vld [vmem:[#allocation2 + $0x88] sm:$0x22] }
 0x15a   : > { %v1561_v17 = vsel %vm12754_vm2, %v10298_v3, %v1560_v60  ;;  %1312 = vst [vmem:[#allocation2 + $0x30] sm:$0x88] %v1311_v18  ;;  %v1158_v43 = vsel %vm595_vm13, %v1147_v23, %v1148_v7  ;;  %v3789_v46 = vand.u32 %v7953_v42, %v9994_v13  ;;  %v12755_v3 = vunpack.i.h.bf16 %v10348_v57  ;;  %v8549_v52 = vld [vmem:[#allocation2 + $0x50] ss:$48 sps:$4 sm:$0xff]   ;;  %v8551_v29 = vld [vmem:[#allocation2 + $0x54] ss:$48 sps:$4 sm:$0xff]   ;;  %v2067_v7 = vpop.permute.xlu1 %2066 }
 0x15b   : > { %v1580_v48 = vsel %vm9321_vm12, %v1561_v17, %v1579_v61  ;;  %v1433_v21 = vsel %vm595_vm13, %v10410_v45, %v1424_v26  ;;  %3935 = vmatprep.subr.bf16.mxu1 %v3792_v39  ;;  %v1182_v54 = vld [vmem:[#allocation2 + $0x30] sm:$0x44]  ;;  %v1159_v34 = vsel %vm1150_vm11, %v8509_v16, %v1158_v43  ;;  %v12756_v19 = vunpack.i.h.bf16 %v10370_v62  ;;  %3896 = vmatprep.subr.bf16.mxu0 %v8551_v29  ;;  %v10719_v61 = vpop.permute.xlu0 %1943  ;;  %v12760_v18 = vld [vmem:[#allocation15_spill] sm:$0xff] }
 0x15c   : > { %v1157_v63 = vsel %vm1150_vm11, %v12755_v3, %v1156_v1  ;;  %1581 = vst [vmem:[#allocation2 + $0x88] sm:$0x11] %v1580_v48  ;;  %3936 = vmatpush1.bf16.msra.mxu1 %v3789_v46  ;;  %v1808_v41 = vrot.slane %v1802_v35, 4  ;;  %v1183_v45 = vsel %vm9232_vm1, %v1159_v34, %v1182_v54  ;;  %v1687_v16 = vrot.slane %v10695_v27, 4  ;;  %v12757_v42 = vld [vmem:[#allocation12_spill] sm:$0xff]  ;;  %3897 = vmatpush1.bf16.msra.mxu0 %v8549_v52  ;;  %v12761_v35 = vld [vmem:[#allocation14_spill] sm:$0xff] }
 0x15d   : > { %v1180_v22 = vsel %vm9232_vm1, %v1157_v63, %v1179_v15  ;;  %v1434_v57 = vsel %vm1427_vm5, %v12756_v19, %v1433_v21  ;;  %1184 = vst [vmem:[#allocation2 + $0x30] sm:$0x44] %v1183_v45  ;;  %v1435_v62 = vsel %vm595_vm13, %v1424_v26, %v1425_v0  ;;  %v12758_v14 = vrot.slane %v12757_v42, 4  ;;  %v2102_v39 = vld [vmem:[#allocation2 + $0x88] sm:$0x44]  ;;  %v12768_v45 = vld [vmem:[#allocation13_spill] sm:$0xff] }
 0x15e   : > { %1181 = vst [vmem:[#allocation2 + $0x18] sm:$0x44] %v1180_v22  ;;  %v1457_v25 = vsel %vm9903_vm8, %v1434_v57, %v1456_v8  ;;  %v2073_v23 = vrot.slane %v2067_v7, 4  ;;  %v1951_v50 = vrot.slane %v10719_v61, 4  ;;  %vm12759_vm14 = vcmask 523264   ;;  %v12763_v43 = vld [vmem:[#allocation11_spill] sm:$0xff]  ;;  %v2332_v22 = vpop.permute.xlu1 %2331 }
 0x15f   : > { %1458 = vst [vmem:[#allocation2 + $0x18] sm:$0x88] %v1457_v25  ;;  %v1818_v9 = vsel %vm595_vm13, %v12758_v14, %v1808_v41  ;;  %v1696_v17 = vsel %vm595_vm13, %v12760_v18, %v1687_v16  ;;  %v1714_v26 = vld [vmem:[#allocation2 + $0x8] sm:$0x11]  ;;  %v12762_v15 = vunpack.i.h.bf16 %v12761_v35  ;;  %v12764_v48 = vrot.slane %v12763_v43, 4  ;;  %7959 = vmatmul.mubr.msk.bf16.vlgmr.msra.gmra.mxu0 %vm3762_vm0, %v10375_v12 }
 0x160   : > { %v1819_v60 = vsel %vm12759_vm14, %v12757_v42, %v1818_v9  ;;  %v1960_v3 = vsel %vm595_vm13, %v10462_v51, %v1951_v50  ;;  %v1436_v21 = vsel %vm1427_vm5, %v8514_v30, %v1435_v62  ;;  %v1978_v29 = vld [vmem:[#allocation2 + $0x8] sm:$0x22]  ;;  %v12766_v54 = vunpack.i.h.bf16 %v10405_v33  ;;  %v10754_v51 = vpop.permute.xlu0 %2208  ;;  %3996 = vmatprep.mubr.bf16.mxu0 %v12704_v24  ;;  %v2367_v33 = vld [vmem:[#allocation2 + $0x88] sm:$0x88]  ;;  %v2243_v9 = vld [vmem:[#allocation2 + $0x8] sm:$0x44] }
 0x161   : > { %v1838_v0 = vsel %vm9404_vm3, %v1819_v60, %v1837_v31  ;;  %v1697_v1 = vsel %vm1690_vm7, %v12762_v15, %v1696_v17  ;;  %v2083_v46 = vsel %vm595_vm13, %v12764_v48, %v2073_v23  ;;  %v1459_v63 = vld [vmem:[#allocation2 + $0x30] sm:$0x88]  ;;  %vm12765_vm3 = vcmask 506880   ;;  %v3260_v35 = vld [vmem:[#allocation2 + $0x98] sm:$0x44] }
 0x162   : > { %1839 = vst [vmem:[#allocation2 + $0x88] sm:$0x22] %v1838_v0  ;;  %v1715_v28 = vsel %vm9838_vm9, %v1697_v1, %v1714_v26  ;;  %v2084_v52 = vsel %vm12765_vm3, %v12763_v43, %v2083_v46  ;;  %vm12767_vm15 = vcmask 515072   ;;  %v1460_v30 = vsel %vm9903_vm8, %v1436_v21, %v1459_v63  ;;  %v8518_v62 = vpop.permute.xlu1 %8517  ;;  %v629_v15 = vld [vmem:[#allocation2 + $0x30] sm:$0x11]  ;;  %v12773_v48 = vld [vmem:[#allocation18_spill] sm:$0xff] }
 0x163   : > { %v1961_v34 = vsel %vm12767_vm15, %v12766_v54, %v1960_v3  ;;  %1716 = vst [vmem:[#allocation2 + $0x8] sm:$0x11] %v1715_v28  ;;  %v2103_v8 = vsel %vm9254_vm4, %v2084_v52, %v2102_v39  ;;  %v2338_v57 = vrot.slane %v2332_v22, 4  ;;  %1461 = vst [vmem:[#allocation2 + $0x30] sm:$0x88] %v1460_v30  ;;  %v2216_v41 = vrot.slane %v10754_v51, 4 }
 0x164   : > { %v1979_v19 = vsel %vm9105_vm6, %v1961_v34, %v1978_v29  ;;  %2104 = vst [vmem:[#allocation2 + $0x88] sm:$0x44] %v2103_v8  ;;  %v12769_v25 = vrot.slane %v12768_v45, 4  ;;  %vm12770_vm5 = vcmask 490496   ;;  %v10773_v42 = vpop.permute.xlu0 %2473  ;;  %v12771_v23 = vunpack.i.h.bf16 %v10403_v55  ;;  %v2508_v3 = vld [vmem:[#allocation2 + $0x8] sm:$0x88] }
 0x165   : > { %1980 = vst [vmem:[#allocation2 + $0x8] sm:$0x22] %v1979_v19  ;;  %v2225_v7 = vsel %vm595_vm13, %v10426_v2, %v2216_v41  ;;  %vm12772_vm4 = vcmask 498688   ;;  %v8520_v18 = vunpack.i.h.bf16 %v8518_v62  ;;  %v8519_v17 = vunpack.i.l.bf16 %v8518_v62  ;;  %v12774_v63 = vld [vmem:[#allocation17_spill] sm:$0xff]  ;;  %v12778_v54 = vld [vmem:[#allocation16_spill] sm:$0xff] }
 0x166   : > { %v2348_v31 = vsel %vm595_vm13, %v12769_v25, %v2338_v57  ;;  %v2226_v60 = vsel %vm12772_vm4, %v12771_v23, %v2225_v7  ;;  %v2481_v0 = vrot.slane %v10773_v42, 4  ;;  %v3608_v1 = vpop.permute.xlu1 %3607  ;;  %v12775_v21 = vunpack.i.h.bf16 %v12774_v63  ;;  %v3642_v22 = vld [vmem:[#allocation2 + $0x90] sm:$0x11]  ;;  %v3523_v23 = vld [vmem:[#allocation2 + $0x98] sm:$0x88] }
 0x167   : > { %v2349_v6 = vsel %vm12770_vm5, %v12768_v45, %v2348_v31  ;;  %v2244_v39 = vsel %vm9232_vm1, %v2226_v60, %v2243_v9  ;;  %v594_v2 = vrot.slane %v8520_v18, 4  ;;  %v3232_v26 = vrot.slane %v8519_v17, 4 }
 0x168   : > { %v2368_v14 = vsel %vm9452_vm10, %v2349_v6, %v2367_v33  ;;  %2245 = vst [vmem:[#allocation2 + $0x8] sm:$0x44] %v2244_v39  ;;  %v2490_v58 = vsel %vm595_vm13, %v10492_v20, %v2481_v0  ;;  %v8523_v55 = vpop.permute.xlu0 %8522  ;;  %vm12776_vm10 = vcmask 261120   ;;  %v3614_v52 = vrot.slane %v3608_v1, 4 }
 0x169   : > { %2369 = vst [vmem:[#allocation2 + $0x88] sm:$0x88] %v2368_v14  ;;  %v605_v43 = vsel %vm595_vm13, %v10625_v49, %v594_v2  ;;  %v3241_v46 = vsel %vm595_vm13, %v12773_v48, %v3232_v26  ;;  %v2491_v28 = vsel %vm12776_vm10, %v12775_v21, %v2490_v58  ;;  %vm12777_vm2 = vcmask 1039360   ;;  %v1981_v17 = vld [vmem:[#allocation2 + $0x88] sm:$0x22]  ;;  %vm12786_vm4 = vmmov %vm12776_vm10 }
 0x16a   : > { %v606_v29 = vsel %vm12777_vm2, %v8500_v4, %v605_v43  ;;  %v12779_v20 = vunpack.i.h.bf16 %v12778_v54  ;;  %vm12780_vm14 = vmmov %vm12777_vm2  ;;  %v2509_v49 = vsel %vm9903_vm8, %v2491_v28, %v2508_v3  ;;  %v8525_v30 = vunpack.i.h.bf16 %v8523_v55  ;;  %v1946_v45 = vpop.permute.xlu1 %1945  ;;  %v1717_v2 = vld [vmem:[#allocation2 + $0x88] sm:$0x11] }
 0x16b   : > { %v630_v8 = vsel %vm9838_vm9, %v606_v29, %v629_v15  ;;  %2510 = vst [vmem:[#allocation2 + $0x8] sm:$0x88] %v2509_v49  ;;  %v3623_v5 = vsel %vm595_vm13, %v3613_v32, %v3614_v52  ;;  %v8524_v4 = vunpack.i.l.bf16 %v8523_v55  ;;  %vm12781_vm3 = vcmask 1014784   ;;  %v905_v32 = vld [vmem:[#allocation2 + $0x30] sm:$0x22] }
 0x16c   : > { %v3242_v34 = vsel %vm12780_vm14, %v12779_v20, %v3241_v46  ;;  %631 = vst [vmem:[#allocation2 + $0x30] sm:$0x11] %v630_v8  ;;  %v3624_v57 = vsel %vm12781_vm3, %v10557_v53, %v3623_v5  ;;  %v871_v33 = vrot.slane %v8525_v30, 4  ;;  %v1952_v6 = vrot.slane %v1946_v45, 4  ;;  %v1682_v7 = vpop.permute.xlu0 %1681  ;;  %v2246_v44 = vld [vmem:[#allocation2 + $0x88] sm:$0x44] }
 0x16d   : > { %v3261_v19 = vsel %vm9232_vm1, %v3242_v34, %v3260_v35  ;;  %v3643_v25 = vsel %vm9321_vm12, %v3624_v57, %v3642_v22  ;;  %v3495_v31 = vrot.slane %v8524_v4, 4  ;;  %v1688_v14 = vrot.slane %v1682_v7, 4 }
 0x16e   : > { %3262 = vst [vmem:[#allocation2 + $0x98] sm:$0x44] %v3261_v19  ;;  %3644 = vst [vmem:[#allocation2 + $0x90] sm:$0x11] %v3643_v25  ;;  %v881_v62 = vsel %vm595_vm13, %v10618_v38, %v871_v33  ;;  %vm12782_vm15 = vcmask 1022976   ;;  %v1962_v36 = vsel %vm595_vm13, %v1951_v50, %v1952_v6  ;;  %v12783_v18 = vunpack.i.h.bf16 %v10470_v56 }
 0x16f   : > { %v882_v9 = vsel %vm12782_vm15, %v8505_v40, %v881_v62  ;;  %v3504_v53 = vsel %vm595_vm13, %v10505_v47, %v3495_v31  ;;  %vm12784_vm12 = vmmov %vm12782_vm15  ;;  %vm12785_vm5 = vcmask 515072   ;;  %v1698_v47 = vsel %vm595_vm13, %v1687_v16, %v1688_v14  ;;  %v2476_v40 = vpop.permute.xlu1 %2475 }
 0x170   : > { %v906_v60 = vsel %vm9105_vm6, %v882_v9, %v905_v32  ;;  %v3505_v38 = vsel %vm12784_vm12, %v12783_v18, %v3504_v53  ;;  %v1963_v10 = vsel %vm12785_vm5, %v10719_v61, %v1962_v36  ;;  %v1699_v56 = vsel %vm1690_vm7, %v10695_v27, %v1698_v47  ;;  %v2211_v35 = vpop.permute.xlu0 %2210  ;;  %v2511_v55 = vld [vmem:[#allocation2 + $0x88] sm:$0x88] }
 0x171   : > { %907 = vst [vmem:[#allocation2 + $0x30] sm:$0x22] %v906_v60  ;;  %v3524_v50 = vsel %vm9903_vm8, %v3505_v38, %v3523_v23  ;;  %v1982_v39 = vsel %vm9105_vm6, %v1963_v10, %v1981_v17  ;;  %v2482_v26 = vrot.slane %v2476_v40, 4  ;;  %v1718_v61 = vsel %vm9838_vm9, %v1699_v56, %v1717_v2 }
 0x172   : > { %3525 = vst [vmem:[#allocation2 + $0x98] sm:$0x88] %v3524_v50  ;;  %1983 = vst [vmem:[#allocation2 + $0x88] sm:$0x22] %v1982_v39  ;;  %v2217_v16 = vrot.slane %v2211_v35, 4  ;;  %vm12787_vm6 = vcmask 498688  }
 0x173   : > { %v8553_v15 = vld [vmem:[#allocation2 + $0x18] ss:$-16 sps:$4 sm:$0xff]   ;;  %v8555_v58 = vld [vmem:[#allocation2 + $0x1c] ss:$-16 sps:$4 sm:$0xff]   ;;  %1719 = vst [vmem:[#allocation2 + $0x88] sm:$0x11] %v1718_v61  ;;  %v2492_v1 = vsel %vm595_vm13, %v2481_v0, %v2482_v26 }
 0x174   : > { %v2493_v11 = vsel %vm12786_vm4, %v10773_v42, %v2492_v1  ;;  %v2227_v27 = vsel %vm595_vm13, %v2216_v41, %v2217_v16  ;;  %3937 = vmatprep.subr.bf16.mxu1 %v8555_v58 }
 0x175   : > { %v2512_v43 = vsel %vm9903_vm8, %v2493_v11, %v2511_v55  ;;  %v2228_v48 = vsel %vm12787_vm6, %v10754_v51, %v2227_v27  ;;  %3938 = vmatpush1.bf16.msra.mxu1 %v8553_v15  ;;  %vm12790_vm8 = vcmask 777216  }
 0x176   : > { %2513 = vst [vmem:[#allocation2 + $0x88] sm:$0x88] %v2512_v43  ;;  %v2247_v0 = vsel %vm9232_vm1, %v2228_v48, %v2246_v44  ;;  %vm12788_vm1 = vmmov %vm12777_vm2 }
 0x177   : > { %2248 = vst [vmem:[#allocation2 + $0x88] sm:$0x44] %v2247_v0  ;;  %vm12789_vm9 = vmmov %vm12788_vm1 }
 0x178   : > { %7960 = vmatmul.mubr.msk.bf16.vlgmr.msra.gmra.mxu1 %vm3762_vm0, %v10375_v12  ;;  %v10857_v59 = vpop.permute.xlu0 %3669  ;;  %vm12791_vm7 = vmmov %vm12790_vm8 }
 0x179   : > { %v8556_v42 = vld [vmem:[#allocation2 + $0x98] ss:$-8 sps:$4 sm:$0x1f]   ;;  %v8558_v46 = vld [vmem:[#allocation2 + $0x9c] ss:$-8 sps:$4 sm:$0x1f]   ;;  %vm12794_vm2 = vmmov %vm12791_vm7 }
 0x17a   : > { %v3795_v41 = vand.u32 %v8556_v42, %v9994_v13  ;;  %v3798_v37 = vand.u32 %v8558_v46, %v9994_v13  ;;  %vm12795_vm14 = vmmov %vm12794_vm2 }
 0x17b   : > { %vm12798_vm12 = vmmov %vm12794_vm2 }
 0x17c   : > { %3976 = vmatprep.subr.bf16.mxu0 %v3798_v37  ;;  %vm12799_vm5 = vmmov %vm12794_vm2 }
 0x17d   : > { %3977 = vmatpush1.bf16.msra.mxu0 %v3795_v41 }
 0x17e   : > { %v8561_v3 = vld [vmem:[#allocation2 + $0x34] ss:$88 sps:$4 sm:$0xff]   ;;  %v8559_v63 = vld [vmem:[#allocation2 + $0x30] ss:$88 sps:$4 sm:$0xff]  }
 0x17f   : > { %3978 = vmatprep.subr.bf16.mxu0 %v8561_v3 }
 0x181   : > { %3979 = vmatpush1.bf16.msra.mxu0 %v8559_v63 }
 0x184   : > { %7961 = vmatmul.mubr.msk.bf16.vlgmr.msra.gmra.mxu0 %vm3762_vm0, %v10375_v12  ;;  %vm12792_vm0 = vmmov %vm12788_vm1 }
 0x185   : > { %vm12793_vm10 = vmmov %vm12792_vm0 }
 0x186   : > { %vm12796_vm3 = vmmov %vm12792_vm0 }
 0x187   : > { %vm12797_vm15 = vmmov %vm12792_vm0 }
 0x188   : > { %vm12800_vm4 = vmmov %vm12792_vm0 }
 0x189   : > { %vm12801_vm6 = vmmov %vm12792_vm0 }
 0x1e7   : > { %v3834_v51 = vpop.f32.mrf.mxu0 }
 0x1e8   : > { %v3835_v21 = vadd.f32 %v3834_v51, %v10857_v59 }
 0x1e9   : > { %v3836_v28 = vpop.f32.mrf.mxu0 }
 0x1ea   : > { %v4005_v52 = vmax.f32 %v3835_v21, 0.0  ;;  %v3837_v29 = vadd.f32 %v3836_v28, %v10857_v59 }
 0x1eb   : > { %v3838_v54 = vpop.f32.mrf.mxu0 }
 0x1ec   : > { %4015 = vst [vmem:[#allocation3 + $0x30] sm:$0x3f] %v4005_v52  ;;  %v4006_v13 = vmax.f32 %v3837_v29, 0.0 }
 0x1ed   : > { %v3839_v20 = vpop.f32.mrf.mxu0 }
 0x1ee   : > { %4016 = vst [vmem:[#allocation3] sm:$0x3f] %v4006_v13 }
 0x1f3   : > { %v10861_v34 = vld [vmem:[#allocation3 + $0x30] sm:$0x3f] }
 0x1f4   : > { %4045 = vrot.lane.b32.xlu1 %v10861_v34, %s8977_s25 }
 0x1f5   : > { %v10875_v33 = vld [vmem:[#allocation3] sm:$0x3f] }
 0x1f8   : > { %4093 = vrot.lane.b32.xlu1 %v10861_v34, %s8980_s28 }
 0x20d   : > { %v3875_v12 = vpop.f32.mrf.mxu1 }
 0x20e   : > { %v3876_v49 = vadd.f32 %v3875_v12, %v10857_v59 }
 0x20f   : > { %v3877_v22 = vpop.f32.mrf.mxu1 }
 0x210   : > { %v4007_v30 = vmax.f32 %v3876_v49, 0.0  ;;  %v3878_v8 = vadd.f32 %v3877_v22, %v10857_v59 }
 0x211   : > { %v3879_v19 = vpop.f32.mrf.mxu1 }
 0x212   : > { %4017 = vst [vmem:[#allocation3 + $0x40] sm:$0x3f] %v4007_v30  ;;  %v4008_v5 = vmax.f32 %v3878_v8, 0.0 }
 0x213   : > { %v3880_v4 = vpop.f32.mrf.mxu1 }
 0x214   : > { %4018 = vst [vmem:[#allocation3 + $0x18] sm:$0x3f] %v4008_v5 }
 0x219   : > { %v10869_v57 = vld [vmem:[#allocation3 + $0x40] sm:$0x3f] }
 0x21a   : > { %4097 = vrot.lane.b32.xlu1 %v10869_v57, %s8980_s28  ;;  %4049 = vrot.lane.b32.xlu0 %v10869_v57, %s8977_s25 }
 0x21b   : > { %v10882_v31 = vld [vmem:[#allocation3 + $0x18] sm:$0x3f] }
 0x21e   : > { %4047 = vrot.lane.b32.xlu1 %v10875_v33, %s8977_s25  ;;  %4141 = vrot.lane.b32.xlu0 %v10861_v34, %s8970_s16 }
 0x21f   : > { %v3916_v45 = vpop.f32.mrf.mxu0 }
 0x220   : > { %v3917_v25 = vadd.f32 %v3916_v45, %v10857_v59 }
 0x221   : > { %v3918_v6 = vpop.f32.mrf.mxu0 }
 0x222   : > { %v4009_v7 = vmax.f32 %v3917_v25, 0.0  ;;  %v3919_v62 = vadd.f32 %v3918_v6, %v10857_v59  ;;  %4051 = vrot.lane.b32.xlu1 %v10882_v31, %s8977_s25  ;;  %4145 = vrot.lane.b32.xlu0 %v10869_v57, %s8970_s16 }
 0x223   : > { %v3920_v14 = vpop.f32.mrf.mxu0 }
 0x224   : > { %4019 = vst [vmem:[#allocation3 + $0x8] sm:$0x3f] %v4009_v7  ;;  %v4010_v32 = vmax.f32 %v3919_v62, 0.0 }
 0x225   : > { %v3921_v9 = vpop.f32.mrf.mxu0 }
 0x226   : > { %4020 = vst [vmem:[#allocation3 + $0x10] sm:$0x3f] %v4010_v32  ;;  %4143 = vrot.lane.b32.xlu1 %v10875_v33, %s8970_s16  ;;  %4095 = vrot.lane.b32.xlu0 %v10875_v33, %s8980_s28 }
 0x22a   : > { %4147 = vrot.lane.b32.xlu1 %v10882_v31, %s8970_s16  ;;  %4099 = vrot.lane.b32.xlu0 %v10882_v31, %s8980_s28 }
 0x22b   : > { %v10897_v53 = vld [vmem:[#allocation3 + $0x8] sm:$0x3f] }
 0x22d   : > { %v10912_v56 = vld [vmem:[#allocation3 + $0x10] sm:$0x3f] }
 0x22e   : > { %4101 = vrot.lane.b32.xlu1 %v10897_v53, %s8980_s28  ;;  %4053 = vrot.lane.b32.xlu0 %v10897_v53, %s8977_s25 }
 0x238   : > { %v3957_v36 = vpop.f32.mrf.mxu1 }
 0x239   : > { %v3958_v23 = vadd.f32 %v3957_v36, %v10857_v59 }
 0x23a   : > { %v3959_v60 = vpop.f32.mrf.mxu1 }
 0x23b   : > { %v4011_v18 = vmax.f32 %v3958_v23, 0.0  ;;  %v3960_v38 = vadd.f32 %v3959_v60, %v10857_v59 }
 0x23c   : > { %v3961_v10 = vpop.f32.mrf.mxu1 }
 0x23d   : > { %4021 = vst [vmem:[#allocation3 + $0x20] sm:$0x3f] %v4011_v18  ;;  %v4012_v17 = vmax.f32 %v3960_v38, 0.0 }
 0x23e   : > { %v3962_v47 = vpop.f32.mrf.mxu1 }
 0x23f   : > { %4022 = vst [vmem:[#allocation3 + $0x48] sm:$0x3f] %v4012_v17 }
 0x244   : > { %v10905_v40 = vld [vmem:[#allocation3 + $0x20] sm:$0x3f]  ;;  %v3998_v50 = vpop.f32.mrf.mxu0 }
 0x245   : > { %4105 = vrot.lane.b32.xlu1 %v10905_v40, %s8980_s28  ;;  %4057 = vrot.lane.b32.xlu0 %v10905_v40, %s8977_s25  ;;  %v3999_v39 = vadd.f32 %v3998_v50, %v10857_v59 }
 0x246   : > { %v4000_v2 = vpop.f32.mrf.mxu0  ;;  %v10923_v58 = vld [vmem:[#allocation3 + $0x48] sm:$0x3f] }
 0x247   : > { %v4013_v26 = vmax.f32 %v3999_v39, 0.0  ;;  %v4001_v35 = vadd.f32 %v4000_v2, %v10857_v59 }
 0x248   : > { %v4002_v61 = vpop.f32.mrf.mxu0 }
 0x249   : > { %4055 = vrot.lane.b32.xlu1 %v10912_v56, %s8977_s25  ;;  %4149 = vrot.lane.b32.xlu0 %v10897_v53, %s8970_s16  ;;  %4023 = vst [vmem:[#allocation3 + $0x38] sm:$0x3f] %v4013_v26  ;;  %v4014_v16 = vmax.f32 %v4001_v35, 0.0 }
 0x24a   : > { %v4003_v15 = vpop.f32.mrf.mxu0 }
 0x24b   : > { %4024 = vst [vmem:[#allocation3 + $0x28] sm:$0x3f] %v4014_v16 }
 0x24d   : > { %4151 = vrot.lane.b32.xlu1 %v10912_v56, %s8970_s16  ;;  %4153 = vrot.lane.b32.xlu0 %v10905_v40, %s8970_s16 }
 0x250   : > { %v10929_v1 = vld [vmem:[#allocation3 + $0x38] sm:$0x3f] }
 0x251   : > { %4059 = vrot.lane.b32.xlu1 %v10923_v58, %s8977_s25  ;;  %4103 = vrot.lane.b32.xlu0 %v10912_v56, %s8980_s28 }
 0x252   : > { %v4034_v11 = vld [vmem:[#allocation3 + $0x28] sm:$0x3f] }
 0x255   : > { %4107 = vrot.lane.b32.xlu1 %v10923_v58, %s8980_s28  ;;  %4061 = vrot.lane.b32.xlu0 %v10929_v1, %s8977_s25 }
 0x259   : > { %4155 = vrot.lane.b32.xlu1 %v10923_v58, %s8970_s16  ;;  %4109 = vrot.lane.b32.xlu0 %v10929_v1, %s8980_s28 }
 0x25d   : > { %4063 = vrot.lane.b32.xlu1 %v4034_v11, %s8977_s25  ;;  %4157 = vrot.lane.b32.xlu0 %v10929_v1, %s8970_s16  ;;  %s8988_s25 = smov 120  }
 0x261   : > { %4159 = vrot.lane.b32.xlu1 %v4034_v11, %s8970_s16  ;;  %4111 = vrot.lane.b32.xlu0 %v4034_v11, %s8980_s28  ;;  %s8987_s16 = smov 58   ;;  %s8990_s28 = smov 122  }
 0x266   : > { %v4046_v55 = vpop.permute.xlu1 %4045 }
 0x26a   : > { %v4094_v27 = vpop.permute.xlu1 %4093 }
 0x28c   : > { %v4098_v43 = vpop.permute.xlu1 %4097  ;;  %v4050_v44 = vpop.permute.xlu0 %4049 }
 0x290   : > { %v4048_v48 = vpop.permute.xlu1 %4047  ;;  %v4142_v0 = vpop.permute.xlu0 %4141 }
 0x291   : > { %v4066_v41 = vsel %vm12788_vm1, %v4046_v55, %v4048_v48  ;;  %v4067_v37 = vsel %vm12789_vm9, %v4048_v48, %v4050_v44  ;;  %vm12802_vm1 = vmmov %vm12794_vm2 }
 0x292   : > { %v4084_v3 = vadd.f32 %v4066_v41, %v10861_v34  ;;  %v4085_v63 = vadd.f32 %v4067_v37, %v10875_v33  ;;  %vm12803_vm9 = vmmov %vm12792_vm0 }
 0x294   : > { %v4052_v42 = vpop.permute.xlu1 %4051  ;;  %v4146_v46 = vpop.permute.xlu0 %4145 }
 0x295   : > { %v4068_v9 = vsel %vm12792_vm0, %v4050_v44, %v4052_v42  ;;  %vm4432_vm0 = vcmask 982016  }
 0x296   : > { %v4086_v47 = vadd.f32 %v4068_v9, %v10869_v57 }
 0x298   : > { %v4144_v59 = vpop.permute.xlu1 %4143  ;;  %v4096_v51 = vpop.permute.xlu0 %4095 }
 0x299   : > { %v4114_v21 = vsel %vm1150_vm11, %v4094_v27, %v4096_v51  ;;  %v4115_v28 = vsel %vm1150_vm11, %v4096_v51, %v4098_v43  ;;  %v4162_v54 = vsel %vm12790_vm8, %v4142_v0, %v4144_v59  ;;  %v4163_v13 = vsel %vm12791_vm7, %v4144_v59, %v4146_v46  ;;  %vm12804_vm8 = vmmov %vm12802_vm1 }
 0x29a   : > { %v4132_v52 = vadd.f32 %v4114_v21, %v4084_v3  ;;  %v4133_v29 = vadd.f32 %v4115_v28, %v4085_v63  ;;  %vm12805_vm7 = vmmov %vm12802_vm1 }
 0x29c   : > { %v4180_v20 = vadd.f32 %v4162_v54, %v4132_v52  ;;  %v4181_v12 = vadd.f32 %v4163_v13, %v4133_v29  ;;  %v4100_v34 = vpop.permute.xlu0 %4099  ;;  %v4148_v33 = vpop.permute.xlu1 %4147 }
 0x29d   : > { %v4116_v10 = vsel %vm1150_vm11, %v4098_v43, %v4100_v34  ;;  %v4164_v15 = vsel %vm12794_vm2, %v4146_v46, %v4148_v33  ;;  %vm5725_vm2 = vcmask 179200  }
 0x29e   : > { %v4189_v49 = vmul.f32 0.25, %v4180_v20  ;;  %v4190_v22 = vmul.f32 0.25, %v4181_v12  ;;  %v4134_v2 = vadd.f32 %v4116_v10, %v4086_v47 }
 0x2a0   : > { %v8238_v30 = vpack.c.bf16 %v4190_v22, %v4189_v49  ;;  %v4054_v32 = vpop.permute.xlu0 %4053  ;;  %v4102_v18 = vpop.permute.xlu1 %4101  ;;  %v4182_v27 = vadd.f32 %v4164_v15, %v4134_v2 }
 0x2a1   : > { %v4069_v17 = vsel %vm12793_vm10, %v4052_v42, %v4054_v32  ;;  %v4117_v11 = vsel %vm1150_vm11, %v4100_v34, %v4102_v18  ;;  %vm12806_vm10 = vcmask 506880  }
 0x2a2   : > { %4235 = vst [vmem:[#allocation4] sm:$0x77] %v8238_v30  ;;  %v4087_v26 = vadd.f32 %v4069_v17, %v10882_v31  ;;  %v4191_v0 = vmul.f32 0.25, %v4182_v27 }
 0x2a4   : > { %v4135_v57 = vadd.f32 %v4117_v11, %v4087_v26 }
 0x2a9   : > { %v4608_v8 = vld [vmem:[#allocation4] sm:$0x77] }
 0x2aa   : > { %v4411_v19 = vld [vmem:[#allocation4] sm:$0x77]  ;;  %4616 = vrot.lane.b32.xlu1 %v4608_v8, %s8987_s16 }
 0x2ab   : > { %v4641_v5 = vld [vmem:[#allocation4] sm:$0x77]  ;;  %4419 = vrot.lane.b32.xlu0 %v4411_v19, %s8988_s25 }
 0x2ac   : > { %v4374_v4 = vld [vmem:[#allocation4] sm:$0x77]  ;;  %v4649_v45 = vrot.slane %v4641_v5, 5 }
 0x2ad   : > { %v4382_v25 = vrot.slane %v4374_v4, 7  ;;  %v10954_v6 = vld [vmem:[#allocation4] sm:$0x77] }
 0x2ae   : > { %v4444_v7 = vld [vmem:[#allocation4] sm:$0x77]  ;;  %4657 = vrot.lane.b32.xlu1 %v4649_v45, %s8989_s27  ;;  %v4516_v36 = vrot.slane %v10954_v6, 6  ;;  %v4653_v59 = vrot.slane %v4649_v45, 4 }
 0x2af   : > { %v4310_v62 = vld [vmem:[#allocation4] sm:$0x77]  ;;  %4386 = vrot.lane.b32.xlu0 %v4382_v25, %s8990_s28  ;;  %v4452_v23 = vrot.slane %v4444_v7, 5 }
 0x2b0   : > { %v4240_v14 = vld [vmem:[#allocation4] sm:$0x77]  ;;  %v4318_v60 = vrot.slane %v4310_v62, 6  ;;  %v4520_v4 = vrot.slane %v4516_v36, 4 }
 0x2b1   : > { %4243 = vst [vmem:[#allocation5] sm:$0x77] %v4240_v14  ;;  %v4572_v38 = vld [vmem:[#allocation4] sm:$0x77]  ;;  %v4456_v22 = vrot.slane %v4452_v23, 4 }
 0x2b2   : > { %4524 = vrot.lane.b32.xlu1 %v4516_v36, %s8973_s21  ;;  %v4580_v50 = vrot.slane %v4572_v38, 7  ;;  %v4322_v39 = vrot.slane %v4318_v60, 4  ;;  %v4246_v35 = vld [vmem:[#allocation4] sm:$0x77] }
 0x2b3   : > { %4460 = vrot.lane.b32.xlu0 %v4452_v23, %s8972_s20  ;;  %v4254_v55 = vrot.slane %v4246_v35, 5 }
 0x2b6   : > { %4584 = vrot.lane.b32.xlu1 %v4580_v50, %s8974_s22 }
 0x2b7   : > { %v4106_v61 = vpop.permute.xlu1 %4105  ;;  %v4058_v16 = vpop.permute.xlu0 %4057  ;;  %4334 = vrot.lane.b32.xlu0 %v4322_v39, %s8969_s15 }
 0x2ba   : > { %4262 = vrot.lane.b32.xlu1 %v4254_v55, %s8968_s14 }
 0x2bb   : > { %v4056_v43 = vpop.permute.xlu1 %4055  ;;  %v4150_v44 = vpop.permute.xlu0 %4149 }
 0x2bc   : > { %v4165_v31 = vsel %vm12795_vm14, %v4148_v33, %v4150_v44  ;;  %v4070_v46 = vsel %vm12796_vm3, %v4054_v32, %v4056_v43  ;;  %v4071_v3 = vsel %vm12797_vm15, %v4056_v43, %v4058_v16  ;;  %vm4399_vm14 = vcmask 998400  }
 0x2bd   : > { %v4183_v48 = vadd.f32 %v4165_v31, %v4135_v57  ;;  %v4088_v51 = vadd.f32 %v4070_v46, %v10897_v53  ;;  %v4089_v21 = vadd.f32 %v4071_v3, %v10912_v56  ;;  %vm12807_vm3 = vcmask 1014784  }
 0x2be   : > { %4326 = vrot.lane.b32.xlu1 %v4318_v60, %s8969_s15  ;;  %v4258_v60 = vrot.slane %v4254_v55, 4  ;;  %vm4682_vm15 = vcmask 457728  }
 0x2bf   : > { %v4192_v42 = vmul.f32 0.25, %v4183_v48  ;;  %v4152_v41 = vpop.permute.xlu1 %4151  ;;  %v4154_v37 = vpop.permute.xlu0 %4153 }
 0x2c0   : > { %v4166_v12 = vsel %vm12798_vm12, %v4150_v44, %v4152_v41  ;;  %v4167_v49 = vsel %vm12799_vm5, %v4152_v41, %v4154_v37  ;;  %vm12808_vm12 = vcmask 523264   ;;  %vm12809_vm5 = vmmov %vm12806_vm10 }
 0x2c1   : > { %v8239_v63 = vpack.c.bf16 %v4192_v42, %v4191_v0 }
 0x2c2   : > { %4665 = vrot.lane.b32.xlu1 %v4653_v59, %s8989_s27 }
 0x2c3   : > { %4236 = vst [vmem:[#allocation4 + $0x8] sm:$0x77] %v8239_v63  ;;  %v4060_v28 = vpop.permute.xlu1 %4059  ;;  %v4104_v52 = vpop.permute.xlu0 %4103 }
 0x2c4   : > { %v4118_v29 = vsel %vm1150_vm11, %v4102_v18, %v4104_v52  ;;  %v4119_v54 = vsel %vm1150_vm11, %v4104_v52, %v4106_v61  ;;  %v4072_v8 = vsel %vm12800_vm4, %v4058_v16, %v4060_v28  ;;  %vm12810_vm4 = vcmask 490496  }
 0x2c5   : > { %v4136_v13 = vadd.f32 %v4118_v29, %v4088_v51  ;;  %v4137_v20 = vadd.f32 %v4119_v54, %v4089_v21  ;;  %v4090_v6 = vadd.f32 %v4072_v8, %v10905_v40 }
 0x2c6   : > { %4468 = vrot.lane.b32.xlu1 %v4456_v22, %s8972_s20 }
 0x2c7   : > { %v4184_v30 = vadd.f32 %v4166_v12, %v4136_v13  ;;  %v4185_v53 = vadd.f32 %v4167_v49, %v4137_v20  ;;  %v4108_v34 = vpop.permute.xlu1 %4107  ;;  %v4062_v56 = vpop.permute.xlu0 %4061 }
 0x2c8   : > { %v4120_v33 = vsel %vm1150_vm11, %v4106_v61, %v4108_v34  ;;  %v4073_v45 = vsel %vm12801_vm6, %v4060_v28, %v4062_v56  ;;  %vm12811_vm6 = vcmask 1031168  }
 0x2c9   : > { %v4193_v19 = vmul.f32 0.25, %v4184_v30  ;;  %v4194_v5 = vmul.f32 0.25, %v4185_v53  ;;  %v4138_v36 = vadd.f32 %v4120_v33, %v4090_v6  ;;  %v4091_v23 = vadd.f32 %v4073_v45, %v10923_v58 }
 0x2ca   : > { %v4962_v25 = vld [vmem:[#allocation4 + $0x4] sm:$0x77]  ;;  %4532 = vrot.lane.b32.xlu1 %v4520_v4, %s8973_s21 }
 0x2cb   : > { %v8240_v7 = vpack.c.bf16 %v4194_v5, %v4193_v19  ;;  %v4156_v62 = vpop.permute.xlu1 %4155  ;;  %4970 = vrot.lane.b32.xlu0 %v4962_v25, %s8973_s21  ;;  %v4110_v14 = vpop.permute.xlu0 %4109  ;;  %v4609_v18 = vld [vmem:[#allocation4 + $0x8] sm:$0x77] }
 0x2cc   : > { %v4168_v32 = vsel %vm12802_vm1, %v4154_v37, %v4156_v62  ;;  %v4121_v9 = vsel %vm1150_vm11, %v4108_v34, %v4110_v14  ;;  %v5122_v38 = vld [vmem:[#allocation4 + $0x4] sm:$0x77]  ;;  %vm12812_vm1 = vmmov %vm12807_vm3 }
 0x2cd   : > { %4237 = vst [vmem:[#allocation4 + $0x10] sm:$0x77] %v8240_v7  ;;  %v4186_v10 = vadd.f32 %v4168_v32, %v4138_v36  ;;  %v4139_v40 = vadd.f32 %v4121_v9, %v4091_v23  ;;  %v5130_v26 = vrot.slane %v5122_v38, 7  ;;  %v10996_v35 = vld [vmem:[#allocation4 + $0x8] sm:$0x77] }
 0x2ce   : > { %4270 = vrot.lane.b32.xlu1 %v4258_v60, %s8968_s14  ;;  %v4766_v16 = vld [vmem:[#allocation4 + $0x4] sm:$0x77]  ;;  %v5172_v44 = vrot.slane %v10996_v35, 5 }
 0x2cf   : > { %v4064_v17 = vpop.permute.xlu1 %4063  ;;  %4618 = vrot.lane.b32.xlu0 %v4609_v18, %s8987_s16  ;;  %v4158_v47 = vpop.permute.xlu0 %4157  ;;  %v4195_v58 = vmul.f32 0.25, %v4186_v10  ;;  %v11004_v48 = vld [vmem:[#allocation4 + $0x4] sm:$0x77] }
 0x2d0   : > { %v4074_v50 = vsel %vm12803_vm9, %v4062_v56, %v4064_v17  ;;  %v4169_v39 = vsel %vm12804_vm8, %v4156_v62, %v4158_v47  ;;  %v5002_v41 = vrot.slane %v11004_v48, 5  ;;  %v11011_v37 = vld [vmem:[#allocation4 + $0x4] sm:$0x77]  ;;  %vm12813_vm9 = vmmov %vm12811_vm6 }
 0x2d1   : > { %v4187_v2 = vadd.f32 %v4169_v39, %v4139_v40  ;;  %v4092_v61 = vadd.f32 %v4074_v50, %v10929_v1  ;;  %v4412_v1 = vld [vmem:[#allocation4 + $0x8] sm:$0x77]  ;;  %v5066_v63 = vrot.slane %v11011_v37, 6  ;;  %vm12814_vm8 = vmmov %vm12810_vm4 }
 0x2d2   : > { %4774 = vrot.lane.b32.xlu1 %v4766_v16, %s8969_s15  ;;  %v5328_v3 = vld [vmem:[#allocation4 + $0x8] sm:$0x77] }
 0x2d3   : > { %v4196_v15 = vmul.f32 0.25, %v4187_v2  ;;  %v4160_v11 = vpop.permute.xlu1 %4159  ;;  %5134 = vrot.lane.b32.xlu0 %v5130_v26, %s8989_s27  ;;  %v4112_v55 = vpop.permute.xlu0 %4111  ;;  %v11018_v59 = vld [vmem:[#allocation4 + $0x4] sm:$0x77] }
 0x2d4   : > { %v4122_v27 = vsel %vm1150_vm11, %v4110_v14, %v4112_v55  ;;  %v4170_v31 = vsel %vm12805_vm7, %v4158_v47, %v4160_v11  ;;  %v4963_v51 = vld [vmem:[#allocation4 + $0xc] sm:$0x77]  ;;  %v4730_v21 = vld [vmem:[#allocation4 + $0x4] sm:$0x77]  ;;  %v4870_v28 = vrot.slane %v11018_v59, 6  ;;  %vm4629_vm11 = vcmask 474112   ;;  %vm12815_vm7 = vmmov %vm12808_vm12 }
 0x2d5   : > { %v8241_v43 = vpack.c.bf16 %v4196_v15, %v4195_v58  ;;  %v4140_v57 = vadd.f32 %v4122_v27, %v4092_v61  ;;  %v4738_v52 = vrot.slane %v4730_v21, 7  ;;  %v4926_v29 = vld [vmem:[#allocation4 + $0x4] sm:$0x77]  ;;  %v4767_v22 = vld [vmem:[#allocation4 + $0xc] sm:$0x77] }
 0x2d6   : > { %4421 = vrot.lane.b32.xlu1 %v4412_v1, %s8988_s25  ;;  %v11028_v54 = vld [vmem:[#allocation4 + $0x4] sm:$0x77]  ;;  %v4934_v13 = vrot.slane %v4926_v29, 7  ;;  %v4413_v4 = vld [vmem:[#allocation4 + $0x10] sm:$0x77]  ;;  %v5070_v1 = vrot.slane %v5066_v63, 4 }
 0x2d7   : > { %4238 = vst [vmem:[#allocation4 + $0x18] sm:$0x77] %v8241_v43  ;;  %v4188_v0 = vadd.f32 %v4170_v31, %v4140_v57  ;;  %5180 = vrot.lane.b32.xlu0 %v5172_v44, %s8968_s14  ;;  %v4806_v20 = vrot.slane %v11028_v54, 5  ;;  %v4375_v12 = vld [vmem:[#allocation4 + $0x8] sm:$0x77]  ;;  %v4874_v48 = vrot.slane %v4870_v28, 4 }
 0x2d8   : > { %v4383_v49 = vrot.slane %v4375_v12, 7  ;;  %v11036_v30 = vld [vmem:[#allocation4 + $0x8] sm:$0x77]  ;;  %v5159_v32 = vld [vmem:[#allocation4 + $0x10] sm:$0x77] }
 0x2d9   : > { %v4197_v42 = vmul.f32 0.25, %v4188_v0  ;;  %v11038_v53 = vld [vmem:[#allocation4 + $0x8] sm:$0x77]  ;;  %v4650_v34 = vrot.slane %v11036_v30, 5  ;;  %5162 = vst [vmem:[#allocation5 + $0x30] sm:$0x77] %v5159_v32 }
 0x2da   : > { %5336 = vrot.lane.b32.xlu1 %v5328_v3, %s8988_s25  ;;  %v4453_v56 = vrot.slane %v11038_v53, 5  ;;  %v11044_v8 = vld [vmem:[#allocation4 + $0x8] sm:$0x77]  ;;  %v4242_v40 = vld [vmem:[#allocation4 + $0x10] sm:$0x77]  ;;  %v4810_v37 = vrot.slane %v4806_v20, 4 }
 0x2db   : > { %v8242_v46 = vpack.c.bf16 %v4197_v42, %v4197_v42  ;;  %5010 = vrot.lane.b32.xlu0 %v5002_v41, %s8974_s22  ;;  %v4517_v19 = vrot.slane %v11044_v8, 6  ;;  %v4573_v5 = vld [vmem:[#allocation4 + $0x8] sm:$0x77]  ;;  %v4610_v17 = vld [vmem:[#allocation4 + $0x10] sm:$0x77]  ;;  %v4654_v12 = vrot.slane %v4650_v34, 4 }
 0x2dc   : > { %v11056_v33 = vld [vmem:[#allocation4 + $0x8] sm:$0x77]  ;;  %v4581_v25 = vrot.slane %v4573_v5, 7  ;;  %4245 = vst [vmem:[#allocation5 + $0x58] sm:$0x77] %v4242_v40  ;;  %v4457_v35 = vrot.slane %v4453_v56, 4 }
 0x2dd   : > { %4239 = vst [vmem:[#allocation4 + $0x20] sm:$0x7] %v8242_v46  ;;  %v5158_v45 = vld [vmem:[#allocation4 + $0x8] sm:$0x77]  ;;  %v5236_v6 = vrot.slane %v11056_v33, 6  ;;  %v5006_v46 = vrot.slane %v5002_v41, 4 }
 0x2de   : > { %4972 = vrot.lane.b32.xlu1 %v4963_v51, %s8973_s21  ;;  %5161 = vst [vmem:[#allocation5 + $0xa0] sm:$0x77] %v5158_v45  ;;  %v5292_v7 = vld [vmem:[#allocation4 + $0x8] sm:$0x77]  ;;  %v5160_v23 = vld [vmem:[#allocation4 + $0x18] sm:$0x77] }
 0x2df   : > { %5074 = vrot.lane.b32.xlu0 %v5066_v63, %s8987_s16  ;;  %v4706_v62 = vld [vmem:[#allocation4 + $0x4] sm:$0x77]  ;;  %v4707_v9 = vld [vmem:[#allocation4 + $0xc] sm:$0x77]  ;;  %v5300_v18 = vrot.slane %v5292_v7, 7  ;;  %v4521_v33 = vrot.slane %v4517_v19, 4 }
 0x2e0   : > { %v4712_v14 = vrot.slane %v4706_v62, 6  ;;  %v4713_v36 = vrot.slane %v4707_v9, 6  ;;  %v4241_v60 = vld [vmem:[#allocation4 + $0x8] sm:$0x77]  ;;  %5163 = vst [vmem:[#allocation5 + $0x50] sm:$0x77] %v5160_v23 }
 0x2e1   : > { %4244 = vst [vmem:[#allocation5 + $0xc0] sm:$0x77] %v4241_v60  ;;  %v4708_v10 = vld [vmem:[#allocation4 + $0x14] sm:$0x77]  ;;  %v11064_v47 = vld [vmem:[#allocation4 + $0x8] sm:$0x77] }
 0x2e2   : > { %4742 = vrot.lane.b32.xlu1 %v4738_v52, %s8968_s14  ;;  %v4715_v38 = vrot.slane %v4712_v14, 4  ;;  %4724 = vst [vmem:[#allocation5 + $0x110] sm:$0xcc] %v4712_v14  ;;  %v4716_v50 = vrot.slane %v4713_v36, 4  ;;  %4725 = vst [vmem:[#allocation5 + $0x198] sm:$0xcc] %v4713_v36 }
 0x2e3   : > { %4878 = vrot.lane.b32.xlu0 %v4870_v28, %s8988_s25  ;;  %v4714_v39 = vrot.slane %v4708_v10, 6  ;;  %v5123_v2 = vld [vmem:[#allocation4 + $0xc] sm:$0x77]  ;;  %v4255_v58 = vrot.slane %v11064_v47, 5 }
 0x2e4   : > { %4727 = vst [vmem:[#allocation5 + $0x128] sm:$0x11] %v4715_v38  ;;  %4728 = vst [vmem:[#allocation5 + $0x28] sm:$0x11] %v4716_v50  ;;  %v5131_v61 = vrot.slane %v5123_v2, 7 }
 0x2e5   : > { %v4717_v26 = vrot.slane %v4714_v39, 4  ;;  %4726 = vst [vmem:[#allocation5 + $0x88] sm:$0xcc] %v4714_v39  ;;  %v4311_v16 = vld [vmem:[#allocation4 + $0x8] sm:$0x77] }
 0x2e6   : > { %4814 = vrot.lane.b32.xlu1 %v4806_v20, %s8990_s28  ;;  %v11072_v15 = vld [vmem:[#allocation4 + $0x10] sm:$0x77]  ;;  %v4319_v11 = vrot.slane %v4311_v16, 6  ;;  %v5176_v20 = vrot.slane %v5172_v44, 4 }
 0x2e7   : > { %4938 = vrot.lane.b32.xlu0 %v4934_v13, %s8972_s20  ;;  %4729 = vst [vmem:[#allocation5 + $0x78] sm:$0x11] %v4717_v26  ;;  %v5173_v55 = vrot.slane %v11072_v15, 5  ;;  %v11077_v27 = vld [vmem:[#allocation4 + $0xc] sm:$0x77] }
 0x2e8   : > { %v5003_v43 = vrot.slane %v11077_v27, 5  ;;  %v5329_v57 = vld [vmem:[#allocation4 + $0x10] sm:$0x77]  ;;  %v4323_v41 = vrot.slane %v4319_v11, 4 }
 0x2e9   : > { %v5059_v31 = vld [vmem:[#allocation4 + $0xc] sm:$0x77] }
 0x2ea   : > { %4388 = vrot.lane.b32.xlu1 %v4383_v49, %s8990_s28  ;;  %v5067_v0 = vrot.slane %v5059_v31, 6  ;;  %v11088_v42 = vld [vmem:[#allocation4 + $0xc] sm:$0x77]  ;;  %v5007_v14 = vrot.slane %v5003_v43, 4 }
 0x2eb   : > { %4776 = vrot.lane.b32.xlu0 %v4767_v22, %s8969_s15  ;;  %v4871_v3 = vrot.slane %v11088_v42, 6  ;;  %v4927_v51 = vld [vmem:[#allocation4 + $0xc] sm:$0x77]  ;;  %v5240_v22 = vrot.slane %v5236_v6, 4 }
 0x2ec   : > { %v4935_v63 = vrot.slane %v4927_v51, 7  ;;  %v4731_v21 = vld [vmem:[#allocation4 + $0xc] sm:$0x77]  ;;  %v5071_v7 = vrot.slane %v5067_v0, 4 }
 0x2ed   : > { %v11105_v52 = vld [vmem:[#allocation4 + $0x10] sm:$0x77]  ;;  %v4739_v29 = vrot.slane %v4731_v21, 7  ;;  %v4875_v47 = vrot.slane %v4871_v3, 4 }
 0x2ee   : > { %4462 = vrot.lane.b32.xlu1 %v4453_v56, %s8972_s20  ;;  %v4651_v54 = vrot.slane %v11105_v52, 5  ;;  %v4799_v13 = vld [vmem:[#allocation4 + $0xc] sm:$0x77]  ;;  %v5177_v52 = vrot.slane %v5173_v55, 4 }
 0x2ef   : > { %4659 = vrot.lane.b32.xlu0 %v4650_v34, %s8989_s27  ;;  %v4807_v59 = vrot.slane %v4799_v13, 5  ;;  %v11126_v5 = vld [vmem:[#allocation4 + $0x10] sm:$0x77] }
 0x2f0   : > { %v4312_v34 = vld [vmem:[#allocation4 + $0x10] sm:$0x77] }
 0x2f1   : > { %v4320_v53 = vrot.slane %v4312_v34, 6  ;;  %v4510_v62 = vld [vmem:[#allocation4 + $0x10] sm:$0x77]  ;;  %v4811_v60 = vrot.slane %v4807_v59, 4 }
 0x2f2   : > { %4423 = vrot.lane.b32.xlu1 %v4413_v4, %s8988_s25  ;;  %v4256_v4 = vrot.slane %v11126_v5, 5  ;;  %v4518_v8 = vrot.slane %v4510_v62, 6  ;;  %v4574_v32 = vld [vmem:[#allocation4 + $0x10] sm:$0x77] }
 0x2f3   : > { %4526 = vrot.lane.b32.xlu0 %v4517_v19, %s8973_s21  ;;  %v4582_v36 = vrot.slane %v4574_v32, 7  ;;  %v4446_v38 = vld [vmem:[#allocation4 + $0x10] sm:$0x77]  ;;  %v4324_v51 = vrot.slane %v4320_v53, 4 }
 0x2f4   : > { %v4454_v50 = vrot.slane %v4446_v38, 5  ;;  %v5293_v31 = vld [vmem:[#allocation4 + $0x10] sm:$0x77] }
 0x2f5   : > { %v11236_v32 = vld [vmem:[#allocation4 + $0x14] sm:$0x77] }
 0x2f6   : > { %5244 = vrot.lane.b32.xlu1 %v5236_v6, %s8969_s15  ;;  %v4458_v26 = vrot.slane %v4454_v50, 4  ;;  %v4768_v5 = vld [vmem:[#allocation4 + $0x14] sm:$0x77] }
 0x2f7   : > { %4586 = vrot.lane.b32.xlu0 %v4581_v25, %s8974_s22  ;;  %v4259_v25 = vrot.slane %v4255_v58, 4  ;;  %v8588_v38 = vld [vmem:[%s12492_s3 + $0x4] ss:$8 sps:$4 sm:$0xff]  }
 0x2f8   : > { %8030 = vmatprep.mubr.msk.bf16.mxu1 %vm5725_vm2, %v8588_v38  ;;  %8032 = vmatprep.mubr.msk.bf16.mxu0 %vm5725_vm2, %v8588_v38  ;;  %v5060_v38 = vld [vmem:[#allocation4 + $0x14] sm:$0x77] }
 0x2fa   : > { %5304 = vrot.lane.b32.xlu1 %v5300_v18, %s8990_s28  ;;  %v4376_v18 = vld [vmem:[#allocation4 + $0x10] sm:$0x77] }
 0x2fb   : > { %4620 = vrot.lane.b32.xlu0 %v4610_v17, %s8987_s16  ;;  %v4384_v40 = vrot.slane %v4376_v18, 7  ;;  %v4808_v18 = vrot.slane %v11236_v32, 5 }
 0x2fe   : > { %5136 = vrot.lane.b32.xlu1 %v5131_v61, %s8989_s27 }
 0x2ff   : > { %4264 = vrot.lane.b32.xlu0 %v4255_v58, %s8968_s14  ;;  %v5229_v58 = vld [vmem:[#allocation4 + $0x10] sm:$0x77] }
 0x300   : > { %v5237_v16 = vrot.slane %v5229_v58, 6 }
 0x302   : > { %5182 = vrot.lane.b32.xlu1 %v5173_v55, %s8968_s14 }
 0x303   : > { %4328 = vrot.lane.b32.xlu0 %v4319_v11, %s8969_s15 }
 0x306   : > { %5012 = vrot.lane.b32.xlu1 %v5003_v43, %s8974_s22  ;;  %v4522_v43 = vrot.slane %v4518_v8, 4 }
 0x307   : > { %5338 = vrot.lane.b32.xlu0 %v5329_v57, %s8988_s25 }
 0x30a   : > { %5076 = vrot.lane.b32.xlu1 %v5067_v0, %s8987_s16 }
 0x30b   : > { %5082 = vrot.lane.b32.xlu0 %v5070_v1, %s8987_s16 }
 0x30e   : > { %4880 = vrot.lane.b32.xlu1 %v4871_v3, %s8988_s25 }
 0x30f   : > { %5018 = vrot.lane.b32.xlu0 %v5006_v46, %s8974_s22  ;;  %v5301_v46 = vrot.slane %v5293_v31, 7 }
 0x312   : > { %4940 = vrot.lane.b32.xlu1 %v4935_v63, %s8972_s20  ;;  %v4655_v63 = vrot.slane %v4651_v54, 4 }
 0x313   : > { %4822 = vrot.lane.b32.xlu0 %v4810_v37, %s8990_s28 }
 0x316   : > { %4336 = vrot.lane.b32.xlu1 %v4323_v41, %s8969_s15 }
 0x317   : > { %4886 = vrot.lane.b32.xlu0 %v4874_v48, %s8988_s25 }
 0x31a   : > { %4661 = vrot.lane.b32.xlu1 %v4651_v54, %s8989_s27 }
 0x31b   : > { %4744 = vrot.lane.b32.xlu0 %v4739_v29, %s8968_s14  ;;  %v4964_v29 = vld [vmem:[#allocation4 + $0x14] sm:$0x77] }
 0x31c   : > { %v11113_v28 = vpop.permute.xlu1 %4616 }
 0x31d   : > { %v11134_v30 = vpop.permute.xlu0 %4419  ;;  %v4624_v11 = vrot.slane %v11113_v28, 4 }
 0x31e   : > { %5188 = vrot.lane.b32.xlu1 %v5176_v20, %s8968_s14  ;;  %v4427_v41 = vrot.slane %v11134_v30, 4  ;;  %v5330_v20 = vld [vmem:[#allocation4 + $0x18] sm:$0x77] }
 0x31f   : > { %4816 = vrot.lane.b32.xlu0 %v4807_v59, %s8990_s28 }
 0x320   : > { %v11121_v49 = vpop.permute.xlu1 %4657 }
 0x321   : > { %v11146_v56 = vpop.permute.xlu0 %4386 }
 0x322   : > { %5252 = vrot.lane.b32.xlu1 %v5240_v22, %s8969_s15 }
 0x323   : > { %4667 = vrot.lane.b32.xlu0 %v4654_v12, %s8989_s27  ;;  %v5124_v12 = vld [vmem:[#allocation4 + $0x14] sm:$0x77] }
 0x324   : > { %v11131_v44 = vpop.permute.xlu1 %4524 }
 0x325   : > { %v11156_v9 = vpop.permute.xlu0 %4460 }
 0x326   : > { %4266 = vrot.lane.b32.xlu1 %v4256_v4, %s8968_s14 }
 0x327   : > { %4470 = vrot.lane.b32.xlu0 %v4457_v35, %s8972_s20  ;;  %v5241_v35 = vrot.slane %v5237_v16, 4 }
 0x328   : > { %v11142_v45 = vpop.permute.xlu1 %4584 }
 0x329   : > { %v11164_v10 = vpop.permute.xlu0 %4334 }
 0x32a   : > { %4330 = vrot.lane.b32.xlu1 %v4320_v53, %s8969_s15 }
 0x32b   : > { %4534 = vrot.lane.b32.xlu0 %v4521_v33, %s8973_s21  ;;  %v5132_v33 = vrot.slane %v5124_v12, 7 }
 0x32c   : > { %v11150_v6 = vpop.permute.xlu1 %4262 }
 0x32e   : > { %5084 = vrot.lane.b32.xlu1 %v5071_v7, %s8987_s16  ;;  %v4260_v7 = vrot.slane %v4256_v4, 4  ;;  %v5125_v4 = vld [vmem:[#allocation4 + $0x1c] sm:$0x7] }
 0x32f   : > { %4272 = vrot.lane.b32.xlu0 %v4259_v25, %s8968_s14 }
 0x330   : > { %v11154_v19 = vpop.permute.xlu1 %4326 }
 0x332   : > { %5020 = vrot.lane.b32.xlu1 %v5007_v14, %s8974_s22 }
 0x333   : > { %4528 = vrot.lane.b32.xlu0 %v4518_v8, %s8973_s21 }
 0x334   : > { %v11160_v23 = vpop.permute.xlu1 %4665 }
 0x336   : > { %4824 = vrot.lane.b32.xlu1 %v4811_v60, %s8990_s28 }
 0x337   : > { %4588 = vrot.lane.b32.xlu0 %v4582_v36, %s8974_s22 }
 0x338   : > { %v11166_v17 = vpop.permute.xlu1 %4468 }
 0x33a   : > { %4888 = vrot.lane.b32.xlu1 %v4875_v47, %s8988_s25 }
 0x33b   : > { %4390 = vrot.lane.b32.xlu0 %v4384_v40, %s8990_s28  ;;  %v5133_v40 = vrot.slane %v5125_v4, 7 }
 0x33c   : > { %v11172_v2 = vpop.permute.xlu1 %4532 }
 0x33d   : > { %v4971_v39 = vpop.permute.xlu0 %4970 }
 0x33e   : > { %4472 = vrot.lane.b32.xlu1 %v4458_v26, %s8972_s20  ;;  %v4978_v15 = vrot.slane %v4971_v39, 4 }
 0x33f   : > { %4464 = vrot.lane.b32.xlu0 %v4454_v50, %s8972_s20  ;;  %v4965_v50 = vld [vmem:[#allocation4 + $0x1c] sm:$0x7] }
 0x340   : > { %v11179_v27 = vpop.permute.xlu1 %4270 }
 0x341   : > { %v11176_v61 = vpop.permute.xlu0 %4618 }
 0x342   : > { %v4625_v57 = vrot.slane %v11176_v61, 4  ;;  %4536 = vrot.lane.b32.xlu1 %v4522_v43, %s8973_s21  ;;  %v4394_v43 = vrot.slane %v11146_v56, 4 }
 0x343   : > { %5246 = vrot.lane.b32.xlu0 %v5237_v16, %s8969_s15  ;;  %v11259_v16 = vld [vmem:[#allocation4 + $0x1c] sm:$0x7] }
 0x344   : > { %v4628_v1 = vsel %vm595_vm13, %v4624_v11, %v4625_v57  ;;  %v11191_v3 = vpop.permute.xlu1 %4774  ;;  %v11261_v11 = vld [vmem:[#allocation4 + $0x18] sm:$0x77] }
 0x345   : > { %v4630_v0 = vsel %vm4629_vm11, %v11113_v28, %v4628_v1  ;;  %v11189_v42 = vpop.permute.xlu0 %5134 }
 0x346   : > { %4638 = vst [vmem:[#allocation5 + $0x48] sm:$0x77] %v4630_v0  ;;  %4338 = vrot.lane.b32.xlu1 %v4324_v51, %s8969_s15  ;;  %v5005_v51 = vrot.slane %v11259_v16, 5 }
 0x347   : > { %5306 = vrot.lane.b32.xlu0 %v5301_v46, %s8990_s28 }
 0x348   : > { %v11199_v48 = vpop.permute.xlu1 %4421 }
 0x349   : > { %v11195_v37 = vpop.permute.xlu0 %5180  ;;  %v4428_v21 = vrot.slane %v11199_v48, 4 }
 0x34a   : > { %4974 = vrot.lane.b32.xlu1 %v4964_v29, %s8973_s21  ;;  %v4673_v29 = vrot.slane %v11121_v49, 4 }
 0x34b   : > { %4669 = vrot.lane.b32.xlu0 %v4655_v63, %s8989_s27  ;;  %v4431_v13 = vsel %vm595_vm13, %v4427_v41, %v4428_v21  ;;  %v5174_v41 = vrot.slane %v11261_v11, 5 }
 0x34c   : > { %v4433_v54 = vsel %vm4432_vm0, %v11134_v30, %v4431_v13  ;;  %v11214_v28 = vpop.permute.xlu1 %5336  ;;  %v4732_v30 = vld [vmem:[#allocation4 + $0x14] sm:$0x77] }
 0x34d   : > { %v11208_v59 = vpop.permute.xlu0 %5010  ;;  %4441 = vst [vmem:[#allocation5 + $0x38] sm:$0x77] %v4433_v54  ;;  %v4740_v14 = vrot.slane %v4732_v30, 7 }
 0x34e   : > { %5340 = vrot.lane.b32.xlu1 %v5330_v20, %s8988_s25  ;;  %v4996_v20 = vld [vmem:[#allocation4 + $0x14] sm:$0x77] }
 0x34f   : > { %5190 = vrot.lane.b32.xlu0 %v5177_v52, %s8968_s14 }
 0x350   : > { %v11220_v34 = vpop.permute.xlu1 %4972 }
 0x351   : > { %v11218_v22 = vpop.permute.xlu0 %5074  ;;  %v12592_v55 = vrot.slane %v11220_v34, 4 }
 0x352   : > { %5138 = vrot.lane.b32.xlu1 %v5132_v33, %s8989_s27 }
 0x353   : > { %5254 = vrot.lane.b32.xlu0 %v5241_v35, %s8969_s15  ;;  %v4982_v53 = vsel %vm595_vm13, %v4978_v15, %v12592_v55  ;;  %v11290_v35 = vld [vmem:[#allocation4 + $0x1c] sm:$0x7]  ;;  %v4611_v55 = vld [vmem:[#allocation4 + $0x18] sm:$0x7] }
 0x354   : > { %v4983_v62 = vsel %vm12806_vm10, %v4971_v39, %v4982_v53  ;;  %v11233_v8 = vpop.permute.xlu1 %4742  ;;  %v4782_v39 = vrot.slane %v11191_v3, 4  ;;  %v5004_v53 = vrot.slane %v4996_v20, 5  ;;  %v4864_v20 = vld [vmem:[#allocation4 + $0x14] sm:$0x77]  ;;  %vm12816_vm10 = vmmov %vm12812_vm1 }
 0x355   : > { %v11228_v25 = vpop.permute.xlu0 %4878  ;;  %4991 = vst [vmem:[#allocation5 + $0x68] sm:$0x77] %v4983_v62 }
 0x356   : > { %4746 = vrot.lane.b32.xlu1 %v4740_v14, %s8968_s14 }
 0x357   : > { %4274 = vrot.lane.b32.xlu0 %v4260_v7, %s8968_s14  ;;  %v4540_v7 = vrot.slane %v11131_v44, 4 }
 0x358   : > { %v11241_v60 = vpop.permute.xlu1 %4814 }
 0x359   : > { %v11239_v36 = vpop.permute.xlu0 %4938 }
 0x35a   : > { %4818 = vrot.lane.b32.xlu1 %v4808_v18, %s8990_s28 }
 0x35b   : > { %4778 = vrot.lane.b32.xlu0 %v4768_v5, %s8969_s15  ;;  %v5069_v5 = vrot.slane %v11290_v35, 6 }
 0x35c   : > { %v11256_v26 = vpop.permute.xlu1 %4388 }
 0x35d   : > { %v11251_v47 = vpop.permute.xlu0 %4776  ;;  %v12595_v31 = vrot.slane %v11256_v26, 4 }
 0x35e   : > { %v12587_v58 = vrot.slane %v11251_v47, 4  ;;  %5140 = vrot.lane.b32.xlu1 %v5133_v40, %s8989_s27 }
 0x35f   : > { %4976 = vrot.lane.b32.xlu0 %v4965_v50, %s8973_s21  ;;  %v4398_v0 = vsel %vm595_vm13, %v4394_v43, %v12595_v31  ;;  %v5068_v43 = vrot.slane %v5060_v38, 6  ;;  %v4575_v31 = vld [vmem:[#allocation4 + $0x18] sm:$0x7] }
 0x360   : > { %v4786_v1 = vsel %vm595_vm13, %v4782_v39, %v12587_v58  ;;  %v4400_v13 = vsel %vm4399_vm14, %v11146_v56, %v4398_v0  ;;  %v11282_v52 = vpop.permute.xlu1 %4462 }
 0x361   : > { %v4787_v46 = vsel %vm12807_vm3, %v11191_v3, %v4786_v1  ;;  %v11276_v63 = vpop.permute.xlu0 %4659  ;;  %v4476_v3 = vrot.slane %v11156_v9, 4  ;;  %4408 = vst [vmem:[#allocation5 + $0x190] sm:$0xee] %v4400_v13  ;;  %v12593_v12 = vrot.slane %v11282_v52, 4  ;;  %v4592_v1 = vrot.slane %v11142_v45, 4  ;;  %vm12817_vm3 = vmmov %vm12811_vm6 }
 0x362   : > { %4795 = vst [vmem:[#allocation5 + $0x170] sm:$0x77] %v4787_v46  ;;  %v4674_v54 = vrot.slane %v11276_v63, 4  ;;  %5016 = vrot.lane.b32.xlu1 %v5005_v51, %s8974_s22 }
 0x363   : > { %5184 = vrot.lane.b32.xlu0 %v5174_v41, %s8968_s14  ;;  %v4484_v33 = vsel %vm595_vm13, %v4476_v3, %v12593_v12  ;;  %v4872_v3 = vrot.slane %v4864_v20, 6  ;;  %v11487_v12 = vld [vmem:[#allocation4 + $0x18] sm:$0x7] }
 0x364   : > { %v4681_v56 = vsel %vm595_vm13, %v4673_v29, %v4674_v54  ;;  %v4485_v62 = vsel %vm12808_vm12, %v11156_v9, %v4484_v33  ;;  %v11308_v14 = vpop.permute.xlu1 %4423  ;;  %v5008_v29 = vrot.slane %v5004_v53, 4  ;;  %v4812_v33 = vrot.slane %v4808_v18, 4  ;;  %vm12818_vm12 = vmmov %vm12815_vm7 }
 0x365   : > { %v4683_v15 = vsel %vm4682_vm15, %v11121_v49, %v4681_v56  ;;  %v11303_v30 = vpop.permute.xlu0 %4526  ;;  %4502 = vst [vmem:[#allocation5 + $0x38] sm:$0x88] %v4485_v62  ;;  %v12584_v40 = vrot.slane %v11308_v14, 4  ;;  %v4278_v18 = vrot.slane %v11150_v6, 4 }
 0x366   : > { %4700 = vst [vmem:[#allocation5 + $0x48] sm:$0x88] %v4683_v15  ;;  %v4541_v4 = vrot.slane %v11303_v30, 4  ;;  %5080 = vrot.lane.b32.xlu1 %v5069_v5, %s8987_s16 }
 0x367   : > { %5014 = vrot.lane.b32.xlu0 %v5004_v53, %s8974_s22  ;;  %v4434_v9 = vsel %vm595_vm13, %v4428_v21, %v12584_v40  ;;  %v4928_v53 = vld [vmem:[#allocation4 + $0x14] sm:$0x77]  ;;  %v5090_v40 = vrot.slane %v11218_v22, 4 }
 0x368   : > { %v4548_v49 = vsel %vm595_vm13, %v4540_v7, %v4541_v4  ;;  %v4435_v0 = vsel %vm4432_vm0, %v11199_v48, %v4434_v9  ;;  %v11332_v46 = vpop.permute.xlu1 %5244  ;;  %v4936_v32 = vrot.slane %v4928_v53, 7 }
 0x369   : > { %v4549_v50 = vsel %vm12809_vm5, %v11131_v44, %v4548_v49  ;;  %v11327_v39 = vpop.permute.xlu0 %4586  ;;  %4442 = vst [vmem:[#allocation5 + $0x1b0] sm:$0x77] %v4435_v0  ;;  %v4876_v49 = vrot.slane %v4872_v3, 4  ;;  %vm12819_vm5 = vmmov %vm12817_vm3 }
 0x36a   : > { %4566 = vst [vmem:[#allocation5 + $0x188] sm:$0xcc] %v4549_v50  ;;  %v12600_v13 = vrot.slane %v11327_v39, 4  ;;  %5022 = vrot.lane.b32.xlu1 %v5008_v29, %s8974_s22  ;;  %v5142_v50 = vrot.slane %v11189_v42, 4 }
 0x36b   : > { %5078 = vrot.lane.b32.xlu0 %v5068_v43, %s8987_s16 }
 0x36c   : > { %v4596_v44 = vsel %vm595_vm13, %v4592_v1, %v12600_v13  ;;  %v11344_v56 = vpop.permute.xlu1 %5304 }
 0x36d   : > { %v4597_v21 = vsel %vm12810_vm4, %v11142_v45, %v4596_v44  ;;  %v11342_v48 = vpop.permute.xlu0 %4620  ;;  %v5072_v44 = vrot.slane %v5068_v43, 4  ;;  %v5294_v43 = vld [vmem:[#allocation4 + $0x18] sm:$0x77]  ;;  %vm12820_vm4 = vcmask 506880  }
 0x36e   : > { %4605 = vst [vmem:[#allocation5 + $0xf8] sm:$0xee] %v4597_v21  ;;  %v12583_v15 = vrot.slane %v11342_v48, 4  ;;  %4826 = vrot.lane.b32.xlu1 %v4812_v33, %s8990_s28  ;;  %v4342_v21 = vrot.slane %v11154_v19, 4 }
 0x36f   : > { %4882 = vrot.lane.b32.xlu0 %v4872_v3, %s8988_s25 }
 0x370   : > { %v4631_v45 = vsel %vm595_vm13, %v4625_v57, %v12583_v15  ;;  %v11361_v38 = vpop.permute.xlu1 %5136  ;;  %v11367_v57 = vld [vmem:[#allocation4 + $0x18] sm:$0x77] }
 0x371   : > { %v4632_v7 = vsel %vm4629_vm11, %v11176_v61, %v4631_v45  ;;  %v11358_v62 = vpop.permute.xlu0 %4264  ;;  %v12589_v1 = vrot.slane %v11361_v38, 4  ;;  %v5238_v53 = vrot.slane %v11367_v57, 6  ;;  %v11409_v15 = vld [vmem:[#allocation4 + $0x1c] sm:$0x7] }
 0x372   : > { %4639 = vst [vmem:[#allocation5 + $0x60] sm:$0x77] %v4632_v7  ;;  %v4279_v9 = vrot.slane %v11358_v62, 4  ;;  %4890 = vrot.lane.b32.xlu1 %v4876_v49, %s8988_s25  ;;  %v4733_v7 = vld [vmem:[#allocation4 + $0x1c] sm:$0x7] }
 0x373   : > { %4942 = vrot.lane.b32.xlu0 %v4936_v32, %s8972_s20  ;;  %v5146_v0 = vsel %vm595_vm13, %v5142_v50, %v12589_v1  ;;  %v5196_v32 = vrot.slane %v11195_v37, 4 }
 0x374   : > { %v4286_v61 = vsel %vm595_vm13, %v4278_v18, %v4279_v9  ;;  %v5147_v3 = vsel %vm4682_vm15, %v11189_v42, %v5146_v0  ;;  %v11383_v33 = vpop.permute.xlu1 %5182  ;;  %v5344_v0 = vrot.slane %v11214_v28, 4 }
 0x375   : > { %v4287_v29 = vsel %vm12811_vm6, %v11150_v6, %v4286_v61  ;;  %v11378_v20 = vpop.permute.xlu0 %4328  ;;  %5155 = vst [vmem:[#allocation5 + $0x138] sm:$0xee] %v5147_v3  ;;  %v12586_v6 = vrot.slane %v11383_v33, 4  ;;  %v4741_v61 = vrot.slane %v4733_v7, 7  ;;  %v5302_v3 = vrot.slane %v5294_v43, 7  ;;  %vm12821_vm6 = vmmov %vm12812_vm1 }
 0x376   : > { %4304 = vst [vmem:[#allocation5] sm:$0x88] %v4287_v29  ;;  %v4343_v45 = vrot.slane %v11378_v20, 4  ;;  %5248 = vrot.lane.b32.xlu1 %v5238_v53, %s8969_s15 }
 0x377   : > { %5086 = vrot.lane.b32.xlu0 %v5072_v44, %s8987_s16  ;;  %v5204_v18 = vsel %vm595_vm13, %v5196_v32, %v12586_v6  ;;  %v5026_v32 = vrot.slane %v11208_v59, 4  ;;  %v4894_v6 = vrot.slane %v11228_v25, 4 }
 0x378   : > { %v4350_v42 = vsel %vm595_vm13, %v4342_v21, %v4343_v45  ;;  %v5205_v29 = vsel %vm12813_vm9, %v11195_v37, %v5204_v18  ;;  %v11406_v44 = vpop.permute.xlu1 %5012  ;;  %vm12823_vm9 = vmmov %vm12820_vm4 }
 0x379   : > { %v4351_v49 = vsel %vm12812_vm1, %v11154_v19, %v4350_v42  ;;  %v11401_v50 = vpop.permute.xlu0 %5338  ;;  %5222 = vst [vmem:[#allocation5 + $0xa0] sm:$0x88] %v5205_v29  ;;  %v12585_v19 = vrot.slane %v11406_v44, 4  ;;  %v11413_v42 = vld [vmem:[#allocation4 + $0x1c] sm:$0x7]  ;;  %vm12822_vm1 = vmmov %vm12817_vm3 }
 0x37a   : > { %4368 = vst [vmem:[#allocation5 + $0xe0] sm:$0xcc] %v4351_v49  ;;  %v12590_v21 = vrot.slane %v11401_v50, 4  ;;  %5308 = vrot.lane.b32.xlu1 %v5302_v3, %s8990_s28  ;;  %v4809_v49 = vrot.slane %v11409_v15, 5  ;;  %v4873_v3 = vrot.slane %v11413_v42, 6 }
 0x37b   : > { %4748 = vrot.lane.b32.xlu0 %v4741_v61, %s8968_s14  ;;  %v5034_v7 = vsel %vm595_vm13, %v5026_v32, %v12585_v19 }
 0x37c   : > { %v5348_v37 = vsel %vm595_vm13, %v5344_v0, %v12590_v21  ;;  %v5035_v61 = vsel %vm12814_vm8, %v11208_v59, %v5034_v7  ;;  %v11430_v29 = vpop.permute.xlu1 %5076  ;;  %v11433_v0 = vld [vmem:[#allocation4 + $0x18] sm:$0x7]  ;;  %v4769_v21 = vld [vmem:[#allocation4 + $0x1c] sm:$0x7] }
 0x37d   : > { %v5349_v43 = vsel %vm4432_vm0, %v11214_v28, %v5348_v37  ;;  %v11425_v18 = vpop.permute.xlu0 %5082  ;;  %5052 = vst [vmem:[#allocation5 + $0x68] sm:$0x88] %v5035_v61  ;;  %v12588_v32 = vrot.slane %v11430_v29, 4  ;;  %v4929_v28 = vld [vmem:[#allocation4 + $0x1c] sm:$0x7]  ;;  %v4652_v7 = vrot.slane %v11433_v0, 5 }
 0x37e   : > { %5357 = vst [vmem:[#allocation5 + $0x90] sm:$0x77] %v5349_v43  ;;  %4884 = vrot.lane.b32.xlu1 %v4873_v3, %s8988_s25  ;;  %v4937_v19 = vrot.slane %v4929_v28, 7 }
 0x37f   : > { %4820 = vrot.lane.b32.xlu0 %v4809_v49, %s8990_s28  ;;  %v5098_v59 = vsel %vm595_vm13, %v5090_v40, %v12588_v32 }
 0x380   : > { %v5099_v43 = vsel %vm4629_vm11, %v11218_v22, %v5098_v59  ;;  %v11451_v61 = vpop.permute.xlu1 %4880  ;;  %v4414_v59 = vld [vmem:[#allocation4 + $0x18] sm:$0x7] }
 0x381   : > { %v11446_v37 = vpop.permute.xlu0 %5018  ;;  %5116 = vst [vmem:[#allocation5 + $0x150] sm:$0xcc] %v5099_v43  ;;  %v12591_v58 = vrot.slane %v11451_v61, 4  ;;  %v4946_v43 = vrot.slane %v11239_v36, 4 }
 0x382   : > { %4944 = vrot.lane.b32.xlu1 %v4937_v19, %s8972_s20 }
 0x383   : > { %4663 = vrot.lane.b32.xlu0 %v4652_v7, %s8989_s27  ;;  %v4902_v40 = vsel %vm595_vm13, %v4894_v6, %v12591_v58  ;;  %v11483_v58 = vld [vmem:[#allocation4 + $0x20] sm:$0x7] }
 0x384   : > { %v4903_v22 = vsel %vm4432_vm0, %v11228_v25, %v4902_v40  ;;  %v11466_v28 = vpop.permute.xlu1 %4940  ;;  %v5073_v25 = vrot.slane %v5069_v5, 4  ;;  %v12597_v5 = vrot.slane %v11483_v58, 5 }
 0x385   : > { %v11462_v32 = vpop.permute.xlu0 %4822  ;;  %4920 = vst [vmem:[#allocation5 + $0xd8] sm:$0xcc] %v4903_v22  ;;  %v12594_v1 = vrot.slane %v11466_v28, 4 }
 0x386   : > { %4780 = vrot.lane.b32.xlu1 %v4769_v21, %s8969_s15 }
 0x387   : > { %4425 = vrot.lane.b32.xlu0 %v4414_v59, %s8988_s25  ;;  %v4950_v6 = vsel %vm595_vm13, %v4946_v43, %v12594_v1  ;;  %v4346_v59 = vrot.slane %v11164_v10, 4  ;;  %v4750_v43 = vrot.slane %v11233_v8, 4  ;;  %v12598_v1 = vrot.slane %v11487_v12, 6 }
 0x388   : > { %v4951_v40 = vsel %vm12815_vm7, %v11239_v36, %v4950_v6  ;;  %v11481_v22 = vpop.permute.xlu1 %4336  ;;  %vm12825_vm7 = vmmov %vm12814_vm8 }
 0x389   : > { %v11475_v19 = vpop.permute.xlu0 %4886  ;;  %4959 = vst [vmem:[#allocation5 + $0x168] sm:$0xee] %v4951_v40  ;;  %v12596_v21 = vrot.slane %v11481_v22, 4 }
 0x38a   : > { %4622 = vrot.lane.b32.xlu1 %v4611_v55, %s8987_s16 }
 0x38b   : > { %5088 = vrot.lane.b32.xlu0 %v5073_v25, %s8987_s16  ;;  %v4356_v36 = vsel %vm595_vm13, %v4346_v59, %v12596_v21  ;;  %v5009_v21 = vrot.slane %v5005_v51, 4 }
 0x38c   : > { %v4357_v6 = vsel %vm12816_vm10, %v11164_v10, %v4356_v36  ;;  %v11500_v40 = vpop.permute.xlu1 %4661  ;;  %vm12829_vm10 = vmmov %vm12818_vm12 }
 0x38d   : > { %v11494_v35 = vpop.permute.xlu0 %4744  ;;  %4371 = vst [vmem:[#allocation5 + $0x190] sm:$0x11] %v4357_v6  ;;  %v4675_v55 = vrot.slane %v11500_v40, 4 }
 0x38e   : > { %v12599_v25 = vrot.slane %v11494_v35, 4  ;;  %4530 = vrot.lane.b32.xlu1 %v12598_v1, %s8973_s21 }
 0x38f   : > { %5186 = vrot.lane.b32.xlu0 %v12597_v5, %s8968_s14  ;;  %v4684_v59 = vsel %vm595_vm13, %v4674_v54, %v4675_v55  ;;  %v4830_v5 = vrot.slane %v11241_v60, 4  ;;  %v4377_v54 = vld [vmem:[#allocation4 + $0x18] sm:$0x7] }
 0x390   : > { %v4754_v10 = vsel %vm595_vm13, %v4750_v43, %v12599_v25  ;;  %v4685_v1 = vsel %vm4682_vm15, %v11276_v63, %v4684_v59  ;;  %v11528_v43 = vpop.permute.xlu1 %5188  ;;  %v4583_v25 = vrot.slane %v4575_v31, 7  ;;  %v5178_v31 = vrot.slane %v5174_v41, 4 }
 0x391   : > { %v4755_v36 = vsel %vm12817_vm3, %v11233_v8, %v4754_v10  ;;  %v11521_v6 = vpop.permute.xlu0 %4816  ;;  %4701 = vst [vmem:[#allocation5 + $0x60] sm:$0x88] %v4685_v1  ;;  %v4677_v63 = vrot.slane %v11160_v23, 4  ;;  %v4480_v10 = vrot.slane %v11166_v17, 4  ;;  %vm12830_vm3 = vmmov %vm12829_vm10 }
 0x392   : > { %4763 = vst [vmem:[#allocation5 + $0x128] sm:$0xee] %v4755_v36  ;;  %v4831_v13 = vrot.slane %v11521_v6, 4  ;;  %4590 = vrot.lane.b32.xlu1 %v4583_v25, %s8974_s22  ;;  %v4656_v36 = vrot.slane %v4652_v7, 4 }
 0x393   : > { %5024 = vrot.lane.b32.xlu0 %v5009_v21, %s8974_s22  ;;  %v4385_v21 = vrot.slane %v4377_v54, 7 }
 0x394   : > { %v4838_v8 = vsel %vm595_vm13, %v4830_v5, %v4831_v13  ;;  %v11543_v1 = vpop.permute.xlu1 %5252  ;;  %v5242_v5 = vrot.slane %v5238_v53, 4 }
 0x395   : > { %v4839_v16 = vsel %vm4399_vm14, %v11241_v60, %v4838_v8  ;;  %v11538_v51 = vpop.permute.xlu0 %4667  ;;  %v4447_v8 = vld [vmem:[#allocation4 + $0x18] sm:$0x7] }
 0x396   : > { %4856 = vst [vmem:[#allocation5 + $0x170] sm:$0x88] %v4839_v16  ;;  %v4678_v25 = vrot.slane %v11538_v51, 4  ;;  %4392 = vrot.lane.b32.xlu1 %v4385_v21, %s8990_s28  ;;  %v4455_v7 = vrot.slane %v4447_v8, 5  ;;  %v4544_v21 = vrot.slane %v11172_v2, 4  ;;  %v4282_v8 = vrot.slane %v11179_v27, 4 }
 0x397   : > { %5192 = vrot.lane.b32.xlu0 %v5178_v31, %s8968_s14 }
 0x398   : > { %v4688_v60 = vsel %vm595_vm13, %v4677_v63, %v4678_v25  ;;  %v11558_v59 = vpop.permute.xlu1 %4266  ;;  %v4813_v63 = vrot.slane %v4809_v49, 4 }
 0x399   : > { %v4689_v11 = vsel %vm4682_vm15, %v11160_v23, %v4688_v60  ;;  %v11553_v41 = vpop.permute.xlu0 %4470  ;;  %v12602_v16 = vrot.slane %v11558_v59, 4  ;;  %v4249_v23 = vld [vmem:[#allocation4 + $0x18] sm:$0x7] }
 0x39a   : > { %4703 = vst [vmem:[#allocation5 + $0x110] sm:$0x33] %v4689_v11  ;;  %v4481_v54 = vrot.slane %v11553_v41, 4  ;;  %4671 = vrot.lane.b32.xlu1 %v4656_v36, %s8989_s27  ;;  %v4877_v36 = vrot.slane %v4873_v3, 4 }
 0x39b   : > { %5256 = vrot.lane.b32.xlu0 %v5242_v5, %s8969_s15  ;;  %v4288_v53 = vsel %vm595_vm13, %v4279_v9, %v12602_v16  ;;  %v4257_v9 = vrot.slane %v4249_v23, 5 }
 0x39c   : > { %v4490_v57 = vsel %vm595_vm13, %v4480_v10, %v4481_v54  ;;  %v4289_v60 = vsel %vm12819_vm5, %v11358_v62, %v4288_v53  ;;  %v11583_v11 = vpop.permute.xlu1 %4330  ;;  %vm12833_vm5 = vmmov %vm12820_vm4 }
 0x39d   : > { %v4491_v0 = vsel %vm12818_vm12, %v11166_v17, %v4490_v57  ;;  %v11576_v31 = vpop.permute.xlu0 %4534  ;;  %4305 = vst [vmem:[#allocation5 + $0xc0] sm:$0x88] %v4289_v60  ;;  %v12601_v17 = vrot.slane %v11583_v11, 4  ;;  %v4261_v53 = vrot.slane %v4257_v9, 4  ;;  %vm12831_vm12 = vmmov %vm12821_vm6 }
 0x39e   : > { %4505 = vst [vmem:[#allocation5 + $0x188] sm:$0x33] %v4491_v0  ;;  %v4545_v5 = vrot.slane %v11576_v31, 4  ;;  %4466 = vrot.lane.b32.xlu1 %v4455_v7, %s8972_s20 }
 0x39f   : > { %4828 = vrot.lane.b32.xlu0 %v4813_v63, %s8990_s28  ;;  %v4352_v62 = vsel %vm595_vm13, %v4343_v45, %v12601_v17  ;;  %v5094_v45 = vrot.slane %v11425_v18, 4 }
 0x3a0   : > { %v4554_v15 = vsel %vm595_vm13, %v4544_v21, %v4545_v5  ;;  %v4353_v23 = vsel %vm12821_vm6, %v11378_v20, %v4352_v62  ;;  %v11606_v57 = vpop.permute.xlu1 %5084  ;;  %v5030_v62 = vrot.slane %v11446_v37, 4 }
 0x3a1   : > { %v4555_v49 = vsel %vm12820_vm4, %v11172_v2, %v4554_v15  ;;  %v11599_v10 = vpop.permute.xlu0 %4272  ;;  %4369 = vst [vmem:[#allocation5 + $0x158] sm:$0xcc] %v4353_v23  ;;  %v5095_v2 = vrot.slane %v11606_v57, 4  ;;  %vm12835_vm4 = vmmov %vm12821_vm6 }
 0x3a2   : > { %4569 = vst [vmem:[#allocation5 + $0xf8] sm:$0x11] %v4555_v49  ;;  %v4283_v0 = vrot.slane %v11599_v10, 4  ;;  %4276 = vrot.lane.b32.xlu1 %v4261_v53, %s8968_s14  ;;  %vm12837_vm6 = vmmov %vm12833_vm5 }
 0x3a3   : > { %4892 = vrot.lane.b32.xlu0 %v4877_v36, %s8988_s25  ;;  %v5104_v20 = vsel %vm595_vm13, %v5094_v45, %v5095_v2  ;;  %v5331_v36 = vld [vmem:[#allocation4 + $0x20] sm:$0x7] }
 0x3a4   : > { %v4292_v42 = vsel %vm595_vm13, %v4282_v8, %v4283_v0  ;;  %v5105_v21 = vsel %vm4629_vm11, %v11425_v18, %v5104_v20  ;;  %v11625_v60 = vpop.permute.xlu1 %5020  ;;  %v11630_v8 = vld [vmem:[#allocation4 + $0x20] sm:$0x7] }
 0x3a5   : > { %v4293_v3 = vsel %vm12822_vm1, %v11179_v27, %v4292_v42  ;;  %v11621_v63 = vpop.permute.xlu0 %4528  ;;  %5119 = vst [vmem:[#allocation5 + $0x138] sm:$0x11] %v5105_v21  ;;  %v5031_v49 = vrot.slane %v11625_v60, 4  ;;  %v5295_v45 = vld [vmem:[#allocation4 + $0x20] sm:$0x7]  ;;  %v4459_v42 = vrot.slane %v4455_v7, 4 }
 0x3a6   : > { %4307 = vst [vmem:[#allocation5 + $0xe0] sm:$0x33] %v4293_v3  ;;  %v12603_v15 = vrot.slane %v11621_v63, 4  ;;  %5342 = vrot.lane.b32.xlu1 %v5331_v36, %s8988_s25  ;;  %v5239_v3 = vrot.slane %v11630_v8, 6  ;;  %v4313_v21 = vld [vmem:[#allocation4 + $0x18] sm:$0x7] }
 0x3a7   : > { %4268 = vrot.lane.b32.xlu0 %v4257_v9, %s8968_s14  ;;  %v5040_v18 = vsel %vm595_vm13, %v5030_v62, %v5031_v49  ;;  %v4834_v62 = vrot.slane %v11462_v32, 4  ;;  %v5303_v36 = vrot.slane %v5295_v45, 7  ;;  %v4321_v17 = vrot.slane %v4313_v21, 6  ;;  %v8576_v8 = vld [vmem:[#allocation5 + $0x4c] ss:$200 sps:$4 sm:$0xff]  }
 0x3a8   : > { %v4550_v27 = vsel %vm595_vm13, %v4541_v4, %v12603_v15  ;;  %v5041_v9 = vsel %vm12814_vm8, %v11446_v37, %v5040_v18  ;;  %v11648_v20 = vpop.permute.xlu1 %4824  ;;  %v12824_v37 = vrot.slane %v11327_v39, 4  ;;  %vm12842_vm8 = vmmov %vm12822_vm1 }
 0x3a9   : > { %v4551_v23 = vsel %vm12823_vm9, %v11303_v30, %v4550_v27  ;;  %v11644_v53 = vpop.permute.xlu0 %4588  ;;  %5055 = vst [vmem:[#allocation5 + $0x150] sm:$0x33] %v5041_v9  ;;  %v4835_v30 = vrot.slane %v11648_v20, 4  ;;  %vm12840_vm9 = vmmov %vm12835_vm4 }
 0x3aa   : > { %4567 = vst [vmem:[#allocation5 + $0x40] sm:$0xcc] %v4551_v23  ;;  %v12604_v4 = vrot.slane %v11644_v53, 4  ;;  %5250 = vrot.lane.b32.xlu1 %v5239_v3, %s8969_s15 }
 0x3ab   : > { %4474 = vrot.lane.b32.xlu0 %v4459_v42, %s8972_s20  ;;  %v4844_v27 = vsel %vm595_vm13, %v4834_v62, %v4835_v30  ;;  %v12826_v42 = vrot.slane %v11487_v12, 6  ;;  %v4898_v62 = vrot.slane %v11475_v19, 4  ;;  %v12827_v12 = vrot.slane %v11256_v26, 4 }
 0x3ac   : > { %v4598_v7 = vsel %vm595_vm13, %v12824_v37, %v12604_v4  ;;  %v4845_v16 = vsel %vm4399_vm14, %v11462_v32, %v4844_v27  ;;  %v11674_v15 = vpop.permute.xlu1 %4888  ;;  %v8562_v45 = vld [vmem:[#allocation5 + $0x138] ss:$-152 sps:$4 sm:$0xff]   ;;  %v8564_v37 = vld [vmem:[#allocation5 + $0x13c] ss:$-152 sps:$4 sm:$0xff]   ;;  %v4325_v27 = vrot.slane %v4321_v17, 4 }
 0x3ad   : > { %v4599_v18 = vsel %vm12825_vm7, %v11327_v39, %v4598_v7  ;;  %v11668_v23 = vpop.permute.xlu0 %4390  ;;  %v4523_v9 = vrot.slane %v12826_v42, 4  ;;  %4859 = vst [vmem:[#allocation5 + $0xd8] sm:$0x33] %v4845_v16  ;;  %v4899_v39 = vrot.slane %v11674_v15, 4  ;;  %5748 = vmatprep.subr.bf16.mxu1 %v8564_v37  ;;  %vm12843_vm7 = vmmov %vm12822_vm1 }
 0x3ae   : > { %4606 = vst [vmem:[#allocation5 + $0x130] sm:$0xee] %v4599_v18  ;;  %v4396_v4 = vrot.slane %v11668_v23, 4  ;;  %5310 = vrot.lane.b32.xlu1 %v5303_v36, %s8990_s28  ;;  %5749 = vmatpush1.bf16.msra.mxu1 %v8562_v45 }
 0x3af   : > { %4538 = vrot.lane.b32.xlu0 %v4523_v9, %s8973_s21  ;;  %v4908_v21 = vsel %vm595_vm13, %v4898_v62, %v4899_v39 }
 0x3b0   : > { %v4401_v32 = vsel %vm595_vm13, %v12827_v12, %v4396_v4  ;;  %v4909_v36 = vsel %vm4432_vm0, %v11475_v19, %v4908_v21  ;;  %v11695_v18 = vpop.permute.xlu1 %4472  ;;  %v8565_v42 = vld [vmem:[#allocation5 + $0x68] ss:$232 sps:$4 sm:$0xff]   ;;  %v8567_v9 = vld [vmem:[#allocation5 + $0x6c] ss:$232 sps:$4 sm:$0xff]   ;;  %v12828_v19 = vrot.slane %v11282_v52, 4 }
 0x3b1   : > { %v4402_v16 = vsel %vm4399_vm14, %v11256_v26, %v4401_v32  ;;  %v11691_v7 = vpop.permute.xlu0 %4464  ;;  %4923 = vst [vmem:[#allocation5 + $0x168] sm:$0x11] %v4909_v36  ;;  %v12605_v62 = vrot.slane %v11695_v18, 4  ;;  %v5420_v26 = vld [vmem:[%s12493_s4 + $0x8] sm:$0xff]  ;;  %5750 = vmatprep.subr.bf16.mxu1 %v8567_v9 }
 0x3b2   : > { %4409 = vst [vmem:[#allocation5 + $0x108] sm:$0xee] %v4402_v16  ;;  %v12609_v37 = vrot.slane %v11691_v7, 4  ;;  %5428 = vperm.xlu1 %8527, %v5420_v26   ;;  %5751 = vmatpush1.bf16.msra.mxu1 %v8565_v42  ;;  %v5260_v16 = vrot.slane %v11332_v46, 4 }
 0x3b3   : > { %4340 = vrot.lane.b32.xlu0 %v4325_v27, %s8969_s15  ;;  %v4492_v12 = vsel %vm595_vm13, %v4481_v54, %v12605_v62  ;;  %v5312_v54 = vrot.slane %v11344_v56, 4 }
 0x3b4   : > { %v4486_v45 = vsel %vm595_vm13, %v12828_v19, %v12609_v37  ;;  %v4493_v27 = vsel %vm12830_vm3, %v11553_v41, %v4492_v12  ;;  %v11720_v36 = vpop.permute.xlu1 %4536  ;;  %vm5729_vm3 = vcmask 1042432  }
 0x3b5   : > { %v4487_v32 = vsel %vm12829_vm10, %v11282_v52, %v4486_v45  ;;  %v11715_v21 = vpop.permute.xlu0 %5246  ;;  %4506 = vst [vmem:[#allocation5 + $0x40] sm:$0x33] %v4493_v27  ;;  %v12607_v26 = vrot.slane %v11720_v36, 4  ;;  %v12832_v45 = vrot.slane %v11483_v58, 5  ;;  %vm12845_vm10 = vmmov %vm12835_vm4 }
 0x3b6   : > { %4503 = vst [vmem:[#allocation5 + $0x1b0] sm:$0x88] %v4487_v32  ;;  %v5261_v9 = vrot.slane %v11715_v21, 4 }
 0x3b7   : > { %4332 = vrot.lane.b32.xlu0 %v4321_v17, %s8969_s15  ;;  %v4556_v41 = vsel %vm595_vm13, %v4545_v5, %v12607_v26  ;;  %v5179_v17 = vrot.slane %v12832_v45, 4  ;;  %v5243_v45 = vrot.slane %v5239_v3, 4  ;;  %v12836_v3 = vrot.slane %v11220_v34, 4  ;;  %v8577_v26 = vld [vmem:[#allocation5 + $0x188] ss:$-144 sps:$4 sm:$0xff]  }
 0x3b8   : > { %v5268_v52 = vsel %vm595_vm13, %v5260_v16, %v5261_v9  ;;  %v4557_v12 = vsel %vm12833_vm5, %v11576_v31, %v4556_v41  ;;  %v11742_v32 = vpop.permute.xlu1 %4338  ;;  %v8568_v16 = vld [vmem:[#allocation5 + $0xd8] ss:$144 sps:$4 sm:$0xff]   ;;  %v8570_v27 = vld [vmem:[#allocation5 + $0xdc] ss:$144 sps:$4 sm:$0xff]   ;;  %v12834_v31 = vrot.slane %v11481_v22, 4 }
 0x3b9   : > { %v5269_v42 = vsel %vm12831_vm12, %v11332_v46, %v5268_v52  ;;  %v11736_v19 = vpop.permute.xlu0 %5306  ;;  %4570 = vst [vmem:[#allocation5 + $0x130] sm:$0x11] %v4557_v12  ;;  %v12606_v5 = vrot.slane %v11742_v32, 4  ;;  %5752 = vmatprep.subr.bf16.mxu1 %v8570_v27  ;;  %v8573_v46 = vld [vmem:[#allocation5 + $0x12c] ss:$72 sps:$4 sm:$0xff]   ;;  %vm12846_vm12 = vmmov %vm12833_vm5 }
 0x3ba   : > { %5286 = vst [vmem:[#allocation5 + $0x10] sm:$0xcc] %v5269_v42  ;;  %v5313_v62 = vrot.slane %v11736_v19, 4  ;;  %5753 = vmatpush1.bf16.msra.mxu1 %v8568_v16  ;;  %v8571_v27 = vld [vmem:[#allocation5 + $0x128] ss:$72 sps:$4 sm:$0xff]   ;;  %vm12848_vm5 = vmmov %vm12822_vm1 }
 0x3bb   : > { %5194 = vrot.lane.b32.xlu0 %v5179_v17, %s8968_s14  ;;  %v4358_v52 = vsel %vm595_vm13, %v12834_v31, %v12606_v5  ;;  %5754 = vmatprep.subr.bf16.mxu1 %v8573_v46 }
 0x3bc   : > { %v5316_v58 = vsel %vm595_vm13, %v5312_v54, %v5313_v62  ;;  %v4359_v17 = vsel %vm12835_vm4, %v11481_v22, %v4358_v52  ;;  %v11763_v54 = vpop.permute.xlu1 %4974  ;;  %v5419_v22 = vld [vmem:[%s12493_s4] sm:$0xff]  ;;  %v5200_v52 = vrot.slane %v11528_v43, 4  ;;  %vm12850_vm4 = vcmask 490496  }
 0x3bd   : > { %v5317_v41 = vsel %vm4399_vm14, %v11344_v56, %v5316_v58  ;;  %v11757_v42 = vpop.permute.xlu0 %4669  ;;  %4372 = vst [vmem:[#allocation5 + $0x108] sm:$0x11] %v4359_v17  ;;  %v4980_v16 = vrot.slane %v11763_v54, 4 }
 0x3be   : > { %5325 = vst [vmem:[#allocation5 + $0x18] sm:$0xee] %v5317_v41  ;;  %v12610_v12 = vrot.slane %v11757_v42, 4  ;;  %5755 = vmatpush1.bf16.msra.mxu1 %v8571_v27  ;;  %v8574_v27 = vld [vmem:[#allocation5 + $0x48] ss:$200 sps:$4 sm:$0xff]  }
 0x3bf   : > { %5258 = vrot.lane.b32.xlu0 %v5243_v45, %s8969_s15  ;;  %v4984_v58 = vsel %vm595_vm13, %v12836_v3, %v4980_v16  ;;  %5756 = vmatprep.subr.bf16.mxu1 %v8576_v8 }
 0x3c0   : > { %v4690_v56 = vsel %vm595_vm13, %v4678_v25, %v12610_v12  ;;  %v4985_v25 = vsel %vm12837_vm6, %v11220_v34, %v4984_v58  ;;  %v11788_v41 = vpop.permute.xlu1 %5340  ;;  %v12838_v34 = vrot.slane %v11401_v50, 4  ;;  %vm12851_vm6 = vmmov %vm12850_vm4 }
 0x3c1   : > { %v4691_v46 = vsel %vm4682_vm15, %v11538_v51, %v4690_v56  ;;  %v11783_v31 = vpop.permute.xlu0 %5190  ;;  %4992 = vst [vmem:[#allocation5 + $0x80] sm:$0x77] %v4985_v25  ;;  %v12608_v17 = vrot.slane %v11788_v41, 4  ;;  %v8579_v56 = vld [vmem:[#allocation5 + $0x18c] ss:$-144 sps:$4 sm:$0xff]  }
 0x3c2   : > { %4704 = vst [vmem:[#allocation5 + $0x198] sm:$0x33] %v4691_v46  ;;  %v5201_v45 = vrot.slane %v11783_v31, 4  ;;  %5757 = vmatpush1.bf16.msra.mxu1 %v8574_v27  ;;  %v5264_v46 = vrot.slane %v11543_v1, 4 }
 0x3c3   : > { %5423 = vperm.xlu0 %8526, %v5419_v22   ;;  %v5350_v3 = vsel %vm595_vm13, %v12838_v34, %v12608_v17  ;;  %5758 = vmatprep.subr.bf16.mxu1 %v8579_v56  ;;  %v5365_v56 = vld [vmem:[#allocation5 + $0xe0] sm:$0xff] }
 0x3c4   : > { %v5210_v51 = vsel %vm595_vm13, %v5200_v52, %v5201_v45  ;;  %v5351_v22 = vsel %vm4432_vm0, %v11401_v50, %v5350_v3  ;;  %v5139_v25 = vpop.permute.xlu1 %5138 }
 0x3c5   : > { %v5211_v8 = vsel %vm12822_vm1, %v11528_v43, %v5210_v51  ;;  %v11802_v58 = vpop.permute.xlu0 %5254  ;;  %5358 = vst [vmem:[#allocation5 + $0xb0] sm:$0x77] %v5351_v22  ;;  %v5144_v5 = vrot.slane %v5139_v25, 4  ;;  %v8582_v43 = vld [vmem:[#allocation5 + $0x194] ss:$-344 sps:$4 sm:$0xff]   ;;  %v12839_v51 = vrot.slane %v11361_v38, 4 }
 0x3c6   : > { %5225 = vst [vmem:[#allocation5 + $0x10] sm:$0x33] %v5211_v8  ;;  %v12612_v52 = vrot.slane %v11802_v58, 4  ;;  %5759 = vmatpush1.bf16.msra.mxu1 %v8577_v26  ;;  %v5362_v26 = vld [vmem:[#allocation5] sm:$0xff]  ;;  %vm12856_vm1 = vcmask 523264  }
 0x3c7   : > { %v5148_v34 = vsel %vm595_vm13, %v12839_v51, %v5144_v5  ;;  %5760 = vmatprep.subr.bf16.mxu1 %v8582_v43  ;;  %v8580_v51 = vld [vmem:[#allocation5 + $0x190] ss:$-344 sps:$4 sm:$0xff]  }
 0x3c8   : > { %v5274_v27 = vsel %vm595_vm13, %v5264_v46, %v12612_v52  ;;  %v5149_v8 = vsel %vm4682_vm15, %v11361_v38, %v5148_v34  ;;  %v11820_v22 = vpop.permute.xlu1 %4746  ;;  %v12841_v38 = vrot.slane %v11494_v35, 4 }
 0x3c9   : > { %v5275_v50 = vsel %vm12840_vm9, %v11543_v1, %v5274_v27  ;;  %v11816_v3 = vpop.permute.xlu0 %4274  ;;  %5156 = vst [vmem:[#allocation5 + $0xf0] sm:$0xee] %v5149_v8  ;;  %v4752_v17 = vrot.slane %v11820_v22, 4  ;;  %v7970_v27 = vcombine.high %v5362_v26, %v5365_v56  ;;  %v5416_v8 = vld [vmem:[#allocation5 + $0x90] sm:$0x77] }
 0x3ca   : > { %5289 = vst [vmem:[#allocation5 + $0x18] sm:$0x11] %v5275_v50  ;;  %v12611_v46 = vrot.slane %v11816_v3, 4  ;;  %5761 = vmatpush1.bf16.msra.mxu1 %v8580_v51  ;;  %v8023_v52 = vcombine.low %v5416_v8, %v5416_v8 }
 0x3cb   : > { %v4756_v43 = vsel %vm595_vm13, %v12841_v38, %v4752_v17  ;;  %5762 = vmatprep.subr.bf16.mxu1 %v7970_v27  ;;  %v7969_v38 = vcombine.low %v5362_v26, %v5365_v56 }
 0x3cc   : > { %v4294_v1 = vsel %vm595_vm13, %v4283_v0, %v12611_v46  ;;  %v4757_v37 = vsel %vm12843_vm7, %v11494_v35, %v4756_v43  ;;  %v11840_v12 = vpop.permute.xlu1 %4818  ;;  %vm12858_vm7 = vmmov %vm12856_vm1 }
 0x3cd   : > { %v4295_v34 = vsel %vm12842_vm8, %v11599_v10, %v4294_v1  ;;  %v11836_v50 = vpop.permute.xlu0 %4778  ;;  %4764 = vst [vmem:[#allocation5 + $0x28] sm:$0xee] %v4757_v37  ;;  %v4832_v46 = vrot.slane %v11840_v12, 4  ;;  %v12844_v10 = vrot.slane %v11251_v47, 4  ;;  %v8024_v1 = vcombine.high %v5416_v8, %v5416_v8  ;;  %vm12857_vm8 = vmmov %vm12848_vm5 }
 0x3ce   : > { %4308 = vst [vmem:[#allocation5 + $0x158] sm:$0x33] %v4295_v34  ;;  %v4784_v0 = vrot.slane %v11836_v50, 4  ;;  %5763 = vmatpush1.bf16.msra.mxu1 %v7969_v38 }
 0x3cf   : > { %v4840_v35 = vsel %vm595_vm13, %v4831_v13, %v4832_v46  ;;  %8029 = vmatprep.subr.msk.bf16.mxu1 %vm5729_vm3, %v8024_v1 }
 0x3d0   : > { %v4788_v51 = vsel %vm595_vm13, %v12844_v10, %v4784_v0  ;;  %v4841_v26 = vsel %vm4399_vm14, %v11521_v6, %v4840_v35  ;;  %v5141_v27 = vpop.permute.xlu1 %5140  ;;  %v5731_v10 = vsel %vm5729_vm3, %v8023_v52, 0 }
 0x3d1   : > { %v4789_v37 = vsel %vm12845_vm10, %v11251_v47, %v4788_v51  ;;  %v4977_v56 = vpop.permute.xlu0 %4976  ;;  %v8587_v34 = vld [vmem:[#allocation5 + $0x14] ss:$8 sps:$4 sm:$0xff]   ;;  %4857 = vst [vmem:[#allocation5 + $0x118] sm:$0x88] %v4841_v26  ;;  %v5145_v8 = vrot.slane %v5141_v27, 4  ;;  %vm12860_vm10 = vmmov %vm12840_vm9 }
 0x3d2   : > { %4796 = vst [vmem:[#allocation5 + $0x118] sm:$0x77] %v4789_v37  ;;  %v4981_v43 = vrot.slane %v4977_v56, 4  ;;  %5777 = vmatpush2.bf16.msra.mxu1 %v5731_v10  ;;  %v8585_v52 = vld [vmem:[#allocation5 + $0x10] ss:$8 sps:$4 sm:$0xff]  }
 0x3d3   : > { %v5150_v47 = vsel %vm595_vm13, %v5144_v5, %v5145_v8  ;;  %5778 = vmatprep.subr.bf16.mxu1 %v8587_v34 }
 0x3d4   : > { %v4986_v13 = vsel %vm595_vm13, %v4980_v16, %v4981_v43  ;;  %v5151_v51 = vsel %vm4682_vm15, %v5139_v25, %v5150_v47  ;;  %v5017_v1 = vpop.permute.xlu1 %5016  ;;  %v12847_v16 = vrot.slane %v11383_v33, 4  ;;  %v12849_v43 = vrot.slane %v11406_v44, 4 }
 0x3d5   : > { %v4987_v6 = vsel %vm12846_vm12, %v11763_v54, %v4986_v13  ;;  %v11866_v38 = vpop.permute.xlu0 %5184  ;;  %5157 = vst [vmem:[#allocation5 + $0x178] sm:$0xee] %v5151_v51  ;;  %v11878_v54 = vld [vmem:[%s12492_s3] ss:$8 sps:$4 sm:$0xff]   ;;  %v5029_v56 = vrot.slane %v5017_v1, 4  ;;  %vm12863_vm12 = vmmov %vm12848_vm5 }
 0x3d6   : > { %4993 = vst [vmem:[#allocation5 + $0xd0] sm:$0x77] %v4987_v6  ;;  %v5198_v35 = vrot.slane %v11866_v38, 4  ;;  %5779 = vmatpush2.bf16.msra.mxu1 %v8585_v52 }
 0x3d8   : > { %v5206_v5 = vsel %vm595_vm13, %v12847_v16, %v5198_v35  ;;  %v5081_v26 = vpop.permute.xlu1 %5080  ;;  %v12852_v16 = vrot.slane %v11430_v29, 4 }
 0x3d9   : > { %v5207_v25 = vsel %vm12848_vm5, %v11383_v33, %v5206_v5  ;;  %v5015_v37 = vpop.permute.xlu0 %5014  ;;  %5781 = vmatmul.mubr.bf16.vlgmr.msra.gmra.mxu1 %v11878_v54  ;;  %v8923_v33 = vld [vmem:[%s12492_s3 + $0x4] ss:$8 sps:$4 sm:$0xff]   ;;  %v5093_v6 = vrot.slane %v5081_v26, 4 }
 0x3da   : > { %5223 = vst [vmem:[#allocation5 + $0x30] sm:$0x88] %v5207_v25  ;;  %v5028_v27 = vrot.slane %v5015_v37, 4  ;;  %8034 = vmatprep.mubr.msk.bf16.mxu1 %vm5725_vm2, %v8923_v33  ;;  %vm12853_vm2 = vmmov %vm12850_vm4 }
 0x3db   : > { %vm12866_vm5 = vmmov %vm12853_vm2 }
 0x3dc   : > { %v5036_v34 = vsel %vm595_vm13, %v12849_v43, %v5028_v27  ;;  %v5038_v8 = vsel %vm595_vm13, %v5028_v27, %v5029_v56  ;;  %v11894_v51 = vpop.permute.xlu1 %5022 }
 0x3dd   : > { %v5037_v10 = vsel %vm12850_vm4, %v11406_v44, %v5036_v34  ;;  %v5039_v13 = vsel %vm12851_vm6, %v5015_v37, %v5038_v8  ;;  %v5079_v47 = vpop.permute.xlu0 %5078  ;;  %v5032_v52 = vrot.slane %v11894_v51, 4  ;;  %vm12867_vm4 = vmmov %vm12853_vm2 }
 0x3de   : > { %5053 = vst [vmem:[#allocation5 + $0x80] sm:$0x88] %v5037_v10  ;;  %5054 = vst [vmem:[#allocation5 + $0xd0] sm:$0x88] %v5039_v13  ;;  %v5092_v1 = vrot.slane %v5079_v47, 4  ;;  %v12854_v10 = vrot.slane %v11451_v61, 4 }
 0x3df   : > { %v5042_v25 = vsel %vm595_vm13, %v5031_v49, %v5032_v52  ;;  %vm12868_vm6 = vmmov %vm12857_vm8 }
 0x3e0   : > { %v5100_v44 = vsel %vm595_vm13, %v12852_v16, %v5092_v1  ;;  %v5102_v5 = vsel %vm595_vm13, %v5092_v1, %v5093_v6  ;;  %v5043_v27 = vsel %vm12853_vm2, %v11625_v60, %v5042_v25  ;;  %v11911_v43 = vpop.permute.xlu1 %4826  ;;  %v12855_v16 = vrot.slane %v11466_v28, 4  ;;  %vm12871_vm2 = vmmov %vm12840_vm9 }
 0x3e1   : > { %v5101_v37 = vsel %vm4629_vm11, %v11430_v29, %v5100_v44  ;;  %v5103_v56 = vsel %vm4629_vm11, %v5079_v47, %v5102_v5  ;;  %v4883_v26 = vpop.permute.xlu0 %4882  ;;  %5056 = vst [vmem:[#allocation5 + $0x1a8] sm:$0x33] %v5043_v27  ;;  %v4836_v8 = vrot.slane %v11911_v43, 4 }
 0x3e2   : > { %5117 = vst [vmem:[#allocation5 + $0x1a8] sm:$0xcc] %v5101_v37  ;;  %5118 = vst [vmem:[#allocation5 + $0xb8] sm:$0xcc] %v5103_v56  ;;  %v4896_v34 = vrot.slane %v4883_v26, 4 }
 0x3e3   : > { %v4846_v29 = vsel %vm595_vm13, %v4835_v30, %v4836_v8 }
 0x3e4   : > { %v4904_v49 = vsel %vm595_vm13, %v12854_v10, %v4896_v34  ;;  %v4847_v47 = vsel %vm4399_vm14, %v11648_v20, %v4846_v29  ;;  %v11926_v33 = vpop.permute.xlu1 %4890 }
 0x3e5   : > { %v4905_v60 = vsel %vm4432_vm0, %v11451_v61, %v4904_v49  ;;  %v4943_v13 = vpop.permute.xlu0 %4942  ;;  %4860 = vst [vmem:[#allocation5 + $0x160] sm:$0x33] %v4847_v47  ;;  %v4900_v1 = vrot.slane %v11926_v33, 4 }
 0x3e6   : > { %4921 = vst [vmem:[#allocation5 + $0x160] sm:$0xcc] %v4905_v60  ;;  %v4948_v6 = vrot.slane %v4943_v13, 4 }
 0x3e7   : > { %v4910_v61 = vsel %vm595_vm13, %v4899_v39, %v4900_v1 }
 0x3e8   : > { %v4952_v44 = vsel %vm595_vm13, %v12855_v16, %v4948_v6  ;;  %v4911_v5 = vsel %vm4432_vm0, %v11674_v15, %v4910_v61  ;;  %v11943_v25 = vpop.permute.xlu1 %5248 }
 0x3e9   : > { %v4953_v20 = vsel %vm12856_vm1, %v11466_v28, %v4952_v44  ;;  %v11939_v30 = vpop.permute.xlu0 %5086  ;;  %4924 = vst [vmem:[#allocation5 + $0x20] sm:$0x11] %v4911_v5  ;;  %v5262_v56 = vrot.slane %v11943_v25, 4 }
 0x3ea   : > { %4960 = vst [vmem:[#allocation5 + $0x20] sm:$0xee] %v4953_v20  ;;  %v5096_v37 = vrot.slane %v11939_v30, 4 }
 0x3eb   : > { %v5270_v28 = vsel %vm595_vm13, %v5261_v9, %v5262_v56 }
 0x3ec   : > { %v5106_v39 = vsel %vm595_vm13, %v5095_v2, %v5096_v37  ;;  %v5271_v10 = vsel %vm12840_vm9, %v11715_v21, %v5270_v28  ;;  %v11961_v49 = vpop.permute.xlu1 %5308 }
 0x3ed   : > { %v5107_v15 = vsel %vm4629_vm11, %v11606_v57, %v5106_v39  ;;  %v4749_v27 = vpop.permute.xlu0 %4748  ;;  %5287 = vst [vmem:[#allocation5 + $0x1b8] sm:$0xcc] %v5271_v10  ;;  %v5314_v2 = vrot.slane %v11961_v49, 4  ;;  %v5408_v39 = vld [vmem:[#allocation5 + $0x30] sm:$0xff] }
 0x3ee   : > { %5120 = vst [vmem:[#allocation5 + $0xf0] sm:$0x11] %v5107_v15  ;;  %v4753_v29 = vrot.slane %v4749_v27, 4 }
 0x3ef   : > { %v5318_v57 = vsel %vm595_vm13, %v5313_v62, %v5314_v2 }
 0x3f0   : > { %v4758_v60 = vsel %vm595_vm13, %v4752_v17, %v4753_v29  ;;  %v5319_v47 = vsel %vm4399_vm14, %v11736_v19, %v5318_v57  ;;  %v4885_v16 = vpop.permute.xlu1 %4884 }
 0x3f1   : > { %v4759_v21 = vsel %vm12857_vm8, %v11820_v22, %v4758_v60  ;;  %v4821_v9 = vpop.permute.xlu0 %4820  ;;  %5326 = vst [vmem:[#allocation5 + $0xc8] sm:$0xee] %v5319_v47  ;;  %v4897_v61 = vrot.slane %v4885_v16, 4  ;;  %v5396_v57 = vld [vmem:[#allocation5 + $0x20] sm:$0xff]  ;;  %vm12880_vm8 = vmmov %vm12858_vm7 }
 0x3f2   : > { %4765 = vst [vmem:[#allocation5 + $0x78] sm:$0xee] %v4759_v21  ;;  %v4833_v44 = vrot.slane %v4821_v9, 4 }
 0x3f3   : > { %v4906_v20 = vsel %vm595_vm13, %v4896_v34, %v4897_v61  ;;  %v8593_v34 = vld [vmem:[#allocation5 + $0x84] ss:$296 sps:$4 sm:$0xff]   ;;  %v12859_v61 = vrot.slane %v11308_v14, 4 }
 0x3f4   : > { %v4842_v17 = vsel %vm595_vm13, %v4832_v46, %v4833_v44  ;;  %v4907_v28 = vsel %vm4432_vm0, %v4883_v26, %v4906_v20  ;;  %v4945_v19 = vpop.permute.xlu1 %4944  ;;  %v8591_v44 = vld [vmem:[#allocation5 + $0x80] ss:$296 sps:$4 sm:$0xff]  }
 0x3f5   : > { %v4843_v62 = vsel %vm4399_vm14, %v11840_v12, %v4842_v17  ;;  %v4664_v5 = vpop.permute.xlu0 %4663  ;;  %v5405_v22 = vld [vmem:[#allocation5 + $0xf0] sm:$0xff]  ;;  %4922 = vst [vmem:[#allocation5 + $0x148] sm:$0xcc] %v4907_v28  ;;  %v4949_v29 = vrot.slane %v4945_v19, 4 }
 0x3f6   : > { %4858 = vst [vmem:[#allocation5 + $0x98] sm:$0x88] %v4843_v62  ;;  %v4676_v15 = vrot.slane %v4664_v5, 4  ;;  %v8013_v27 = vcombine.low %v5405_v22, %v5408_v39  ;;  %v8014_v10 = vcombine.high %v5405_v22, %v5408_v39 }
 0x3f7   : > { %v4954_v12 = vsel %vm595_vm13, %v4948_v6, %v4949_v29 }
 0x3f8   : > { %v4686_v46 = vsel %vm595_vm13, %v4675_v55, %v4676_v15  ;;  %5791 = vmatprep.subr.bf16.mxu0 %v8014_v10  ;;  %v4955_v21 = vsel %vm12858_vm7, %v4943_v13, %v4954_v12  ;;  %v4781_v9 = vpop.permute.xlu1 %4780  ;;  %v5393_v55 = vld [vmem:[#allocation5 + $0x160] sm:$0xff]  ;;  %v12861_v15 = vrot.slane %v11342_v48, 4  ;;  %vm12881_vm7 = vmmov %vm12871_vm2 }
 0x3f9   : > { %v4687_v60 = vsel %vm4682_vm15, %v11500_v40, %v4686_v46  ;;  %5792 = vmatpush1.bf16.msra.mxu0 %v8013_v27  ;;  %v4426_v26 = vpop.permute.xlu0 %4425  ;;  %4961 = vst [vmem:[#allocation5 + $0x1c0] sm:$0xee] %v4955_v21  ;;  %v4785_v16 = vrot.slane %v4781_v9, 4  ;;  %v8002_v17 = vcombine.high %v5393_v55, %v5396_v57  ;;  %v8001_v28 = vcombine.low %v5393_v55, %v5396_v57  ;;  %v8602_v55 = vld [vmem:[#allocation5 + $0x44] ss:$240 sps:$4 sm:$0xff]  }
 0x3fa   : > { %4702 = vst [vmem:[#allocation5 + $0xa8] sm:$0x88] %v4687_v60  ;;  %v4430_v47 = vrot.slane %v4426_v26, 4  ;;  %5793 = vmatprep.subr.bf16.mxu0 %v8593_v34  ;;  %v8599_v60 = vld [vmem:[#allocation5 + $0x64] ss:$312 sps:$4 sm:$0xff]   ;;  %v12862_v26 = vrot.slane %v11621_v63, 4 }
 0x3fb   : > { %v4790_v40 = vsel %vm595_vm13, %v4784_v0, %v4785_v16  ;;  %v8596_v0 = vld [vmem:[#allocation5 + $0x2c] ss:$240 sps:$4 sm:$0xff]  }
 0x3fc   : > { %v4436_v6 = vsel %vm595_vm13, %v12859_v61, %v4430_v47  ;;  %v4791_v62 = vsel %vm12860_vm10, %v11836_v50, %v4790_v40  ;;  %v4623_v5 = vpop.permute.xlu1 %4622  ;;  %v12865_v61 = vrot.slane %v11644_v53, 4 }
 0x3fd   : > { %v4437_v13 = vsel %vm4432_vm0, %v11308_v14, %v4436_v6  ;;  %5794 = vmatpush1.bf16.msra.mxu0 %v8591_v44  ;;  %v5089_v20 = vpop.permute.xlu0 %5088  ;;  %4797 = vst [vmem:[#allocation5 + $0x98] sm:$0x77] %v4791_v62  ;;  %v4627_v39 = vrot.slane %v4623_v5, 4  ;;  %v8605_v62 = vld [vmem:[#allocation5 + $0x10c] ss:$168 sps:$4 sm:$0xff]  }
 0x3fe   : > { %4443 = vst [vmem:[#allocation5 + $0x100] sm:$0x77] %v4437_v13  ;;  %v5097_v22 = vrot.slane %v5089_v20, 4  ;;  %5795 = vmatprep.subr.bf16.mxu0 %v8002_v17  ;;  %v8600_v20 = vld [vmem:[#allocation5 + $0x40] ss:$240 sps:$4 sm:$0xff]  }
 0x3ff   : > { %v4633_v14 = vsel %vm595_vm13, %v12861_v15, %v4627_v39 }
 0x400   : > { %v5108_v19 = vsel %vm595_vm13, %v5096_v37, %v5097_v22  ;;  %v4634_v10 = vsel %vm4629_vm11, %v11342_v48, %v4633_v14  ;;  %v4531_v29 = vpop.permute.xlu1 %4530  ;;  %v8594_v37 = vld [vmem:[#allocation5 + $0x28] ss:$240 sps:$4 sm:$0xff]  }
 0x401   : > { %v5109_v27 = vsel %vm4629_vm11, %v11939_v30, %v5108_v19  ;;  %5796 = vmatpush1.bf16.msra.mxu0 %v8001_v28  ;;  %v5187_v50 = vpop.permute.xlu0 %5186  ;;  %4640 = vst [vmem:[#allocation5 + $0xa8] sm:$0x77] %v4634_v10  ;;  %v4543_v34 = vrot.slane %v4531_v29, 4  ;;  %vm12864_vm11 = vcmask 506880   ;;  %v8603_v14 = vld [vmem:[#allocation5 + $0x108] ss:$168 sps:$4 sm:$0xff]  }
 0x402   : > { %5121 = vst [vmem:[#allocation5 + $0x178] sm:$0x11] %v5109_v27  ;;  %v5199_v46 = vrot.slane %v5187_v50, 4  ;;  %5797 = vmatprep.subr.bf16.mxu0 %v8596_v0  ;;  %v8611_v27 = vld [vmem:[#allocation5 + $0xc4] ss:$152 sps:$4 sm:$0xff]   ;;  %vm12883_vm10 = vmmov %vm12864_vm11 }
 0x403   : > { %v4552_v30 = vsel %vm595_vm13, %v12862_v26, %v4543_v34  ;;  %v5417_v50 = vld [vmem:[#allocation5 + $0xb0] sm:$0x77] }
 0x404   : > { %v5208_v12 = vsel %vm595_vm13, %v5198_v35, %v5199_v46  ;;  %v4553_v21 = vsel %vm12864_vm11, %v11621_v63, %v4552_v30  ;;  %v4591_v9 = vpop.permute.xlu1 %4590  ;;  %v8597_v35 = vld [vmem:[#allocation5 + $0x60] ss:$312 sps:$4 sm:$0xff]  }
 0x405   : > { %v5209_v57 = vsel %vm12863_vm12, %v11866_v38, %v5208_v12  ;;  %5798 = vmatpush1.bf16.msra.mxu0 %v8594_v37  ;;  %v5025_v48 = vpop.permute.xlu0 %5024  ;;  %4568 = vst [vmem:[#allocation5 + $0xe8] sm:$0xcc] %v4553_v21  ;;  %v4595_v16 = vrot.slane %v4591_v9, 4  ;;  %v8025_v21 = vcombine.low %v5417_v50, %v5417_v50  ;;  %v12872_v9 = vrot.slane %v11691_v7, 4  ;;  %vm12885_vm12 = vmmov %vm12871_vm2 }
 0x406   : > { %5224 = vst [vmem:[#allocation5 + $0x50] sm:$0x88] %v5209_v57  ;;  %v5033_v47 = vrot.slane %v5025_v48, 4  ;;  %5799 = vmatprep.subr.bf16.mxu0 %v8599_v60  ;;  %v8609_v57 = vld [vmem:[#allocation5 + $0xc0] ss:$152 sps:$4 sm:$0xff]  }
 0x407   : > { %v4600_v38 = vsel %vm595_vm13, %v12865_v61, %v4595_v16 }
 0x408   : > { %v5044_v44 = vsel %vm595_vm13, %v5032_v52, %v5033_v47  ;;  %v4601_v17 = vsel %vm12867_vm4, %v11644_v53, %v4600_v38  ;;  %v4393_v40 = vpop.permute.xlu1 %4392  ;;  %v5737_v38 = vsel %vm5729_vm3, %v8025_v21, 0  ;;  %vm12891_vm4 = vmmov %vm12880_vm8 }
 0x409   : > { %v5045_v6 = vsel %vm12866_vm5, %v11894_v51, %v5044_v44  ;;  %5800 = vmatpush1.bf16.msra.mxu0 %v8597_v35  ;;  %v12028_v63 = vpop.permute.xlu0 %5192  ;;  %4607 = vst [vmem:[#allocation5 + $0x140] sm:$0xee] %v4601_v17  ;;  %v4397_v52 = vrot.slane %v4393_v40, 4  ;;  %vm12889_vm5 = vmmov %vm12871_vm2 }
 0x40a   : > { %5057 = vst [vmem:[#allocation5 + $0xb8] sm:$0x33] %v5045_v6  ;;  %v5202_v13 = vrot.slane %v12028_v63, 4  ;;  %5801 = vmatprep.subr.bf16.mxu0 %v8602_v55 }
 0x40b   : > { %v4403_v5 = vsel %vm595_vm13, %v4396_v4, %v4397_v52  ;;  %v12869_v4 = vrot.slane %v11802_v58, 4 }
 0x40c   : > { %v5212_v51 = vsel %vm595_vm13, %v5201_v45, %v5202_v13  ;;  %v4404_v19 = vsel %vm4399_vm14, %v11668_v23, %v4403_v5  ;;  %v4672_v0 = vpop.permute.xlu1 %4671  ;;  %v12870_v23 = vrot.slane %v11757_v42, 4  ;;  %v12876_v5 = vrot.slane %v11558_v59, 4 }
 0x40d   : > { %v5213_v53 = vsel %vm12868_vm6, %v11783_v31, %v5212_v51  ;;  %5802 = vmatpush1.bf16.msra.mxu0 %v8600_v20  ;;  %v12043_v22 = vpop.permute.xlu0 %5256  ;;  %v8606_v39 = vld [vmem:[#allocation5 + $0x178] ss:$-296 sps:$4 sm:$0xff]   ;;  %v8608_v28 = vld [vmem:[#allocation5 + $0x17c] ss:$-296 sps:$4 sm:$0xff]   ;;  %4410 = vst [vmem:[#allocation5 + $0x8] sm:$0xee] %v4404_v19 }
 0x40e   : > { %5226 = vst [vmem:[#allocation5 + $0x1b8] sm:$0x33] %v5213_v53  ;;  %v5266_v45 = vrot.slane %v12043_v22, 4  ;;  %5803 = vmatprep.subr.bf16.mxu0 %v8605_v62  ;;  %v4680_v15 = vrot.slane %v4672_v0, 4  ;;  %5834 = vmatprep.subr.bf16.mxu1 %v8608_v28 }
 0x40f   : > { %5835 = vmatpush1.bf16.msra.mxu1 %v8606_v39  ;;  %v12877_v39 = vrot.slane %v11788_v41, 4 }
 0x410   : > { %v5276_v31 = vsel %vm595_vm13, %v12869_v4, %v5266_v45  ;;  %v4692_v10 = vsel %vm595_vm13, %v12870_v23, %v4680_v15  ;;  %v4467_v60 = vpop.permute.xlu1 %4466  ;;  %v12879_v4 = vrot.slane %v11695_v18, 4 }
 0x411   : > { %v5277_v29 = vsel %vm12871_vm2, %v11802_v58, %v5276_v31  ;;  %5804 = vmatpush1.bf16.msra.mxu0 %v8603_v14  ;;  %v4829_v46 = vpop.permute.xlu0 %4828  ;;  %v8612_v34 = vld [vmem:[#allocation5 + $0xd0] ss:$-24 sps:$4 sm:$0xff]   ;;  %v8614_v37 = vld [vmem:[#allocation5 + $0xd4] ss:$-24 sps:$4 sm:$0xff]   ;;  %v4693_v12 = vsel %vm4682_vm15, %v11757_v42, %v4692_v10  ;;  %v4479_v30 = vrot.slane %v4467_v60, 4  ;;  %v8026_v58 = vcombine.high %v5417_v50, %v5417_v50  ;;  %vm12873_vm15 = vmmov %vm12856_vm1 }
 0x412   : > { %5290 = vst [vmem:[#allocation5 + $0xc8] sm:$0x11] %v5277_v29  ;;  %v4837_v26 = vrot.slane %v4829_v46, 4  ;;  %5805 = vmatprep.subr.bf16.mxu0 %v8611_v27  ;;  %4705 = vst [vmem:[#allocation5 + $0x88] sm:$0x33] %v4693_v12  ;;  %5836 = vmatprep.subr.bf16.mxu1 %v8614_v37  ;;  %v5391_v27 = vld [vmem:[#allocation5 + $0x98] sm:$0xff] }
 0x413   : > { %5837 = vmatpush1.bf16.msra.mxu1 %v8612_v34  ;;  %v4488_v47 = vsel %vm595_vm13, %v12872_v9, %v4479_v30  ;;  %vm12875_vm1 = vmmov %vm12868_vm6  ;;  %v5388_v37 = vld [vmem:[#allocation5 + $0x78] sm:$0xff]  ;;  %v5382_v9 = vld [vmem:[#allocation5 + $0xa8] sm:$0xff] }
 0x414   : > { %v4848_v48 = vsel %vm595_vm13, %v4836_v8, %v4837_v26  ;;  %v4489_v35 = vsel %vm12873_vm15, %v11691_v7, %v4488_v47  ;;  %v4277_v44 = vpop.permute.xlu1 %4276  ;;  %vm12878_vm9 = vmmov %vm12875_vm1  ;;  %v7998_v60 = vcombine.high %v5388_v37, %v5391_v27  ;;  %v12882_v26 = vrot.slane %v11720_v36, 4 }
 0x415   : > { %v4849_v42 = vsel %vm4399_vm14, %v11911_v43, %v4848_v48  ;;  %5806 = vmatpush1.bf16.msra.mxu0 %v8609_v57  ;;  %v4893_v16 = vpop.permute.xlu0 %4892  ;;  %4504 = vst [vmem:[#allocation5 + $0x100] sm:$0x88] %v4489_v35  ;;  %v4285_v8 = vrot.slane %v4277_v44, 4  ;;  %v12874_v43 = vrot.slane %v11816_v3, 4  ;;  %v7997_v21 = vcombine.low %v5388_v37, %v5391_v27  ;;  %vm12888_vm11 = vmmov %vm12875_vm1  ;;  %v8648_v37 = vld [vmem:[#allocation7 + $0x84] ss:$16 sps:$4 sm:$0xff]  }
 0x416   : > { %4861 = vst [vmem:[#allocation5 + $0x148] sm:$0x33] %v4849_v42  ;;  %v4901_v55 = vrot.slane %v4893_v16, 4  ;;  %8031 = vmatprep.subr.msk.bf16.mxu0 %vm5729_vm3, %v8026_v58  ;;  %v12884_v42 = vrot.slane %v11742_v32, 4  ;;  %vm12892_vm6 = vmmov %vm12875_vm1 }
 0x417   : > { %v4296_v6 = vsel %vm595_vm13, %v12874_v43, %v4285_v8  ;;  %vm12894_vm15 = vmmov %vm12883_vm10 }
 0x418   : > { %v4912_v61 = vsel %vm595_vm13, %v4900_v1, %v4901_v55  ;;  %v4297_v52 = vsel %vm12875_vm1, %v11816_v3, %v4296_v6  ;;  %v5343_v20 = vpop.permute.xlu1 %5342 }
 0x419   : > { %v4913_v7 = vsel %vm4432_vm0, %v11926_v33, %v4912_v61  ;;  %5820 = vmatpush2.bf16.msra.mxu0 %v5737_v38  ;;  %v4269_v17 = vpop.permute.xlu0 %4268  ;;  %v8619_v40 = vld [vmem:[#allocation5 + $0x1bc] ss:$-240 sps:$4 sm:$0xff]   ;;  %4309 = vst [vmem:[#allocation5 + $0x120] sm:$0x33] %v4297_v52  ;;  %v5347_v1 = vrot.slane %v5343_v20, 4 }
 0x41a   : > { %4925 = vst [vmem:[#allocation5 + $0x1c0] sm:$0x11] %v4913_v7  ;;  %v4281_v51 = vrot.slane %v4269_v17, 4  ;;  %v8617_v62 = vld [vmem:[#allocation5 + $0x1b8] ss:$-240 sps:$4 sm:$0xff]   ;;  %5821 = vmatprep.subr.bf16.mxu0 %v8619_v40 }
 0x41b   : > { %v5352_v33 = vsel %vm595_vm13, %v12877_v39, %v5347_v1 }
 0x41c   : > { %v4290_v53 = vsel %vm595_vm13, %v12876_v5, %v4281_v51  ;;  %v5353_v19 = vsel %vm4432_vm0, %v11788_v41, %v5352_v33  ;;  %v5251_v0 = vpop.permute.xlu1 %5250 }
 0x41d   : > { %v4291_v28 = vsel %vm12878_vm9, %v11558_v59, %v4290_v53  ;;  %5822 = vmatpush2.bf16.msra.mxu0 %v8617_v62  ;;  %v4475_v3 = vpop.permute.xlu0 %4474  ;;  %5359 = vst [vmem:[#allocation5 + $0x180] sm:$0x77] %v5353_v19  ;;  %v5263_v14 = vrot.slane %v5251_v0, 4 }
 0x41e   : > { %4306 = vst [vmem:[#allocation5 + $0x58] sm:$0x88] %v4291_v28  ;;  %v4483_v15 = vrot.slane %v4475_v3, 4 }
 0x41f   : > { %v5272_v59 = vsel %vm595_vm13, %v5262_v56, %v5263_v14 }
 0x420   : > { %v4494_v31 = vsel %vm595_vm13, %v12879_v4, %v4483_v15  ;;  %5824 = vmatmul.mubr.bf16.vlgmr.msra.gmra.mxu0 %v11878_v54  ;;  %v5273_v29 = vsel %vm12881_vm7, %v11943_v25, %v5272_v59  ;;  %v5311_v46 = vpop.permute.xlu1 %5310 }
 0x421   : > { %v4495_v50 = vsel %vm12880_vm8, %v11695_v18, %v4494_v31  ;;  %v4539_v41 = vpop.permute.xlu0 %4538  ;;  %v8620_v23 = vld [vmem:[#allocation5 + $0x148] ss:$120 sps:$4 sm:$0xff]   ;;  %v8622_v10 = vld [vmem:[#allocation5 + $0x14c] ss:$120 sps:$4 sm:$0xff]   ;;  %5288 = vst [vmem:[#allocation5 + $0x70] sm:$0xcc] %v5273_v29 }
 0x422   : > { %4507 = vst [vmem:[#allocation5 + $0xe8] sm:$0x33] %v4495_v50  ;;  %v4547_v34 = vrot.slane %v4539_v41, 4  ;;  %v5315_v12 = vrot.slane %v5311_v46, 4  ;;  %5838 = vmatprep.subr.bf16.mxu1 %v8622_v10  ;;  %v5385_v18 = vld [vmem:[#allocation5 + $0x88] sm:$0xff] }
 0x423   : > { %5839 = vmatpush1.bf16.msra.mxu1 %v8620_v23  ;;  %v7992_v47 = vcombine.high %v5382_v9, %v5385_v18  ;;  %v7991_v44 = vcombine.low %v5382_v9, %v5385_v18  ;;  %v8637_v41 = vld [vmem:[#allocation7 + $0xe0] ss:$16 sps:$4 sm:$0xff]   ;;  %v8639_v23 = vld [vmem:[#allocation7 + $0xe4] ss:$16 sps:$4 sm:$0xff]  }
 0x424   : > { %v4558_v56 = vsel %vm595_vm13, %v12882_v26, %v4547_v34  ;;  %v5320_v30 = vsel %vm595_vm13, %v5314_v2, %v5315_v12  ;;  %5840 = vmatprep.subr.bf16.mxu1 %v7998_v60  ;;  %v5418_v51 = vld [vmem:[#allocation5 + $0x180] sm:$0x77]  ;;  %v8642_v10 = vld [vmem:[#allocation7 + $0xc4] ss:$16 sps:$4 sm:$0xff]   ;;  %7075 = vmatprep.subr.bf16.mxu0 %v8639_v23  ;;  %v8640_v29 = vld [vmem:[#allocation7 + $0xc0] ss:$16 sps:$4 sm:$0xff]  }
 0x425   : > { %v4559_v25 = vsel %vm12883_vm10, %v11720_v36, %v4558_v56  ;;  %v4341_v57 = vpop.permute.xlu0 %4340  ;;  %v5321_v48 = vsel %vm4399_vm14, %v11961_v49, %v5320_v30  ;;  %v12886_v49 = vrot.slane %v11583_v11, 4  ;;  %vm12887_vm14 = vmmov %vm12871_vm2  ;;  %v8027_v5 = vcombine.low %v5418_v51, %v5418_v51  ;;  %7076 = vmatpush1.bf16.msra.mxu0 %v8637_v41  ;;  %v8645_v46 = vld [vmem:[#allocation7 + $0xa4] ss:$16 sps:$4 sm:$0xff]   ;;  %v8643_v34 = vld [vmem:[#allocation7 + $0xa0] ss:$16 sps:$4 sm:$0xff]  }
 0x426   : > { %4571 = vst [vmem:[#allocation5 + $0x140] sm:$0x11] %v4559_v25  ;;  %v4349_v58 = vrot.slane %v4341_v57, 4  ;;  %5327 = vst [vmem:[#allocation5 + $0x1a0] sm:$0xee] %v5321_v48  ;;  %7077 = vmatprep.subr.bf16.mxu0 %v8642_v10 }
 0x427   : > { %5841 = vmatpush1.bf16.msra.mxu1 %v7997_v21  ;;  %v5743_v53 = vsel %vm5729_vm3, %v8027_v5, 0  ;;  %v8646_v12 = vld [vmem:[#allocation7 + $0x80] ss:$16 sps:$4 sm:$0xff]   ;;  %v8651_v60 = vld [vmem:[#allocation7 + $0x64] ss:$16 sps:$4 sm:$0xff]   ;;  %vm12893_vm2 = vmmov %vm12875_vm1 }
 0x428   : > { %v4360_v16 = vsel %vm595_vm13, %v12884_v42, %v4349_v58  ;;  %5842 = vmatprep.subr.bf16.mxu1 %v7992_v47  ;;  %v8649_v26 = vld [vmem:[#allocation7 + $0x60] ss:$16 sps:$4 sm:$0xff]   ;;  %v8654_v56 = vld [vmem:[#allocation7 + $0x44] ss:$16 sps:$4 sm:$0xff]   ;;  %vm12897_vm8 = vmmov %vm12893_vm2 }
 0x429   : > { %v4361_v2 = vsel %vm12885_vm12, %v11742_v32, %v4360_v16  ;;  %v4333_v36 = vpop.permute.xlu0 %4332  ;;  %7078 = vmatpush1.bf16.msra.mxu0 %v8640_v29  ;;  %v8652_v18 = vld [vmem:[#allocation7 + $0x40] ss:$16 sps:$4 sm:$0xff]   ;;  %v8657_v30 = vld [vmem:[#allocation7 + $0x24] ss:$16 sps:$4 sm:$0xff]   ;;  %vm12899_vm12 = vmmov %vm12883_vm10 }
 0x42a   : > { %4373 = vst [vmem:[#allocation5 + $0x8] sm:$0x11] %v4361_v2  ;;  %v4345_v35 = vrot.slane %v4333_v36, 4  ;;  %7079 = vmatprep.subr.bf16.mxu0 %v8645_v46  ;;  %v8655_v25 = vld [vmem:[#allocation7 + $0x20] ss:$16 sps:$4 sm:$0xff]  }
 0x42b   : > { %5843 = vmatpush1.bf16.msra.mxu1 %v7991_v44  ;;  %v8660_v57 = vld [vmem:[#allocation7 + $0x4] ss:$16 sps:$4 sm:$0xff]   ;;  %v8658_v48 = vld [vmem:[#allocation7] ss:$16 sps:$4 sm:$0xff]  }
 0x42c   : > { %v4354_v55 = vsel %vm595_vm13, %v12886_v49, %v4345_v35  ;;  %v8663_v58 = vld [vmem:[#allocation7 + $0x1e4] ss:$16 sps:$4 sm:$0xff]   ;;  %v8661_v21 = vld [vmem:[#allocation7 + $0x1e0] ss:$16 sps:$4 sm:$0xff]  }
 0x42d   : > { %v4355_v8 = vsel %vm12887_vm14, %v11583_v11, %v4354_v55  ;;  %v5195_v61 = vpop.permute.xlu0 %5194  ;;  %v8623_v38 = vld [vmem:[#allocation5 + $0xe8] ss:$88 sps:$4 sm:$0xff]   ;;  %v8625_v43 = vld [vmem:[#allocation5 + $0xec] ss:$88 sps:$4 sm:$0xff]   ;;  %v12139_v19 = vpop.permute.xlu1 %5428  ;;  %7080 = vmatpush1.bf16.msra.mxu0 %v8643_v34  ;;  %vm12900_vm14 = vmmov %vm12883_vm10 }
 0x42e   : > { %4370 = vst [vmem:[#allocation5 + $0x120] sm:$0xcc] %v4355_v8  ;;  %v5203_v6 = vrot.slane %v5195_v61, 4  ;;  %5844 = vmatprep.subr.bf16.mxu1 %v8625_v43  ;;  %7081 = vmatprep.subr.bf16.mxu0 %v8648_v37  ;;  %v8666_v9 = vld [vmem:[#allocation7 + $0x1c4] ss:$16 sps:$4 sm:$0xff]  }
 0x42f   : > { %5845 = vmatpush1.bf16.msra.mxu1 %v8623_v38  ;;  %v8664_v47 = vld [vmem:[#allocation7 + $0x1c0] ss:$16 sps:$4 sm:$0xff]   ;;  %v8669_v42 = vld [vmem:[#allocation7 + $0x1a4] ss:$16 sps:$4 sm:$0xff]  }
 0x430   : > { %v5214_v32 = vsel %vm595_vm13, %v5202_v13, %v5203_v6  ;;  %v8667_v16 = vld [vmem:[#allocation7 + $0x1a0] ss:$16 sps:$4 sm:$0xff]   ;;  %v8672_v55 = vld [vmem:[#allocation7 + $0x184] ss:$16 sps:$4 sm:$0xff]  }
 0x431   : > { %v5215_v7 = vsel %vm12888_vm11, %v12028_v63, %v5214_v32  ;;  %v5259_v17 = vpop.permute.xlu0 %5258  ;;  %v8626_v40 = vld [vmem:[#allocation5 + $0x8] ss:$248 sps:$4 sm:$0xff]   ;;  %v8628_v52 = vld [vmem:[#allocation5 + $0xc] ss:$248 sps:$4 sm:$0xff]   ;;  %v8028_v63 = vcombine.high %v5418_v51, %v5418_v51  ;;  %7082 = vmatpush1.bf16.msra.mxu0 %v8646_v12  ;;  %vm12901_vm11 = vmmov %vm12893_vm2 }
 0x432   : > { %5227 = vst [vmem:[#allocation5 + $0x70] sm:$0x33] %v5215_v7  ;;  %v5267_v20 = vrot.slane %v5259_v17, 4  ;;  %5846 = vmatprep.subr.bf16.mxu1 %v8628_v52  ;;  %7083 = vmatprep.subr.bf16.mxu0 %v8651_v60  ;;  %v8670_v49 = vld [vmem:[#allocation7 + $0x180] ss:$16 sps:$4 sm:$0xff]  }
 0x433   : > { %5847 = vmatpush1.bf16.msra.mxu1 %v8626_v40  ;;  %v8673_v8 = vld [vmem:[#allocation7 + $0x2e0] ss:$16 sps:$4 sm:$0xff]   ;;  %v8675_v61 = vld [vmem:[#allocation7 + $0x2e4] ss:$16 sps:$4 sm:$0xff]  }
 0x434   : > { %v5278_v11 = vsel %vm595_vm13, %v5266_v45, %v5267_v20  ;;  %v8676_v38 = vld [vmem:[#allocation7 + $0x160] ss:$16 sps:$4 sm:$0xff]   ;;  %v8678_v43 = vld [vmem:[#allocation7 + $0x164] ss:$16 sps:$4 sm:$0xff]  }
 0x435   : > { %v5279_v1 = vsel %vm12889_vm5, %v12043_v22, %v5278_v11  ;;  %v8629_v13 = vld [vmem:[#allocation5 + $0x58] ss:$200 sps:$4 sm:$0xff]   ;;  %v8631_v62 = vld [vmem:[#allocation5 + $0x5c] ss:$200 sps:$4 sm:$0xff]   ;;  %7084 = vmatpush1.bf16.msra.mxu0 %v8649_v26 }
 0x436   : > { %5291 = vst [vmem:[#allocation5 + $0x1a0] sm:$0x11] %v5279_v1  ;;  %5848 = vmatprep.subr.bf16.mxu1 %v8631_v62  ;;  %7085 = vmatprep.subr.bf16.mxu0 %v8654_v56  ;;  %v8679_v32 = vld [vmem:[#allocation7 + $0x2c0] ss:$16 sps:$4 sm:$0xff]   ;;  %v8681_v7 = vld [vmem:[#allocation7 + $0x2c4] ss:$16 sps:$4 sm:$0xff]  }
 0x437   : > { %5849 = vmatpush1.bf16.msra.mxu1 %v8629_v13  ;;  %v8682_v40 = vld [vmem:[#allocation7 + $0x140] ss:$16 sps:$4 sm:$0xff]   ;;  %v8684_v52 = vld [vmem:[#allocation7 + $0x144] ss:$16 sps:$4 sm:$0xff]  }
 0x438   : > { %8033 = vmatprep.subr.msk.bf16.mxu1 %vm5729_vm3, %v8028_v63  ;;  %v8685_v11 = vld [vmem:[#allocation7 + $0x2a0] ss:$16 sps:$4 sm:$0xff]   ;;  %v8687_v51 = vld [vmem:[#allocation7 + $0x2a4] ss:$16 sps:$4 sm:$0xff]   ;;  %vm12890_vm3 = vmmov %vm12875_vm1 }
 0x439   : > { %7086 = vmatpush1.bf16.msra.mxu0 %v8652_v18  ;;  %v8688_v1 = vld [vmem:[#allocation7 + $0x120] ss:$16 sps:$4 sm:$0xff]   ;;  %v8690_v13 = vld [vmem:[#allocation7 + $0x124] ss:$16 sps:$4 sm:$0xff]   ;;  %vm12895_vm1 = vmmov %vm12891_vm4 }
 0x43a   : > { %7087 = vmatprep.subr.bf16.mxu0 %v8657_v30  ;;  %v8691_v62 = vld [vmem:[#allocation7 + $0x280] ss:$16 sps:$4 sm:$0xff]   ;;  %v8693_v63 = vld [vmem:[#allocation7 + $0x284] ss:$16 sps:$4 sm:$0xff]   ;;  %vm12896_vm9 = vmmov %vm12895_vm1 }
 0x43b   : > { %5863 = vmatpush2.bf16.msra.mxu1 %v5743_v53  ;;  %v8694_v5 = vld [vmem:[#allocation7 + $0x100] ss:$16 sps:$4 sm:$0xff]   ;;  %v8696_v53 = vld [vmem:[#allocation7 + $0x104] ss:$16 sps:$4 sm:$0xff]   ;;  %vm12898_vm7 = vmmov %vm12895_vm1 }
 0x43c   : > { %v8715_v41 = vld [vmem:[#allocation7 + $0x200] ss:$16 sps:$4 sm:$0xff]   ;;  %v8723_v10 = vld [vmem:[#allocation7 + $0x3e4] ss:$16 sps:$4 sm:$0xff]   ;;  %vm12902_vm5 = vmmov %vm12895_vm1 }
 0x43d   : > { %v8634_v39 = vld [vmem:[#allocation5 + $0x70] ss:$304 sps:$4 sm:$0xff]   ;;  %v8636_v33 = vld [vmem:[#allocation5 + $0x74] ss:$304 sps:$4 sm:$0xff]   ;;  %7088 = vmatpush1.bf16.msra.mxu0 %v8655_v25  ;;  %v8721_v37 = vld [vmem:[#allocation7 + $0x3e0] ss:$16 sps:$4 sm:$0xff]  }
 0x43e   : > { %5864 = vmatprep.subr.bf16.mxu1 %v8636_v33  ;;  %v12136_v45 = vpop.permute.xlu0 %5423  ;;  %7089 = vmatprep.subr.bf16.mxu0 %v8660_v57  ;;  %v8702_v33 = vld [vmem:[#allocation7 + $0x4e4] ss:$16 sps:$4 sm:$0xff]   ;;  %v8727_v26 = vld [vmem:[#allocation7 + $0x3c0] ss:$16 sps:$4 sm:$0xff]  }
 0x43f   : > { %5865 = vmatpush2.bf16.msra.mxu1 %v8634_v39  ;;  %v8699_v39 = vld [vmem:[#allocation7 + $0x264] ss:$16 sps:$4 sm:$0xff]   ;;  %v8733_v57 = vld [vmem:[#allocation7 + $0x3a0] ss:$16 sps:$4 sm:$0xff]  }
 0x440   : > { %7118 = vmatprep.subr.bf16.mxu1 %v8675_v61  ;;  %v8729_v60 = vld [vmem:[#allocation7 + $0x3c4] ss:$16 sps:$4 sm:$0xff]  }
 0x441   : > { %7090 = vmatpush1.bf16.msra.mxu0 %v8658_v48  ;;  %v8735_v18 = vld [vmem:[#allocation7 + $0x3a4] ss:$16 sps:$4 sm:$0xff]  }
 0x442   : > { %5867 = vmatmul.mubr.bf16.vlgmr.msra.gmra.mxu1 %v11878_v54  ;;  %7091 = vmatprep.subr.bf16.mxu0 %v8663_v58  ;;  %v8741_v48 = vld [vmem:[#allocation7 + $0x384] ss:$16 sps:$4 sm:$0xff]  }
 0x443   : > { %7119 = vmatpush1.bf16.msra.mxu1 %v8673_v8  ;;  %v8759_v61 = vld [vmem:[#allocation7 + $0x324] ss:$16 sps:$4 sm:$0xff]  }
 0x444   : > { %7120 = vmatprep.subr.bf16.mxu1 %v8681_v7 }
 0x445   : > { %7092 = vmatpush2.bf16.msra.mxu0 %v8661_v21 }
 0x446   : > { %7093 = vmatprep.subr.bf16.mxu0 %v8666_v9  ;;  %v8739_v9 = vld [vmem:[#allocation7 + $0x380] ss:$16 sps:$4 sm:$0xff]  }
 0x447   : > { %7121 = vmatpush1.bf16.msra.mxu1 %v8679_v32 }
 0x448   : > { %7122 = vmatprep.subr.bf16.mxu1 %v8687_v51 }
 0x449   : > { %7094 = vmatpush2.bf16.msra.mxu0 %v8664_v47  ;;  %v8747_v47 = vld [vmem:[#allocation7 + $0x364] ss:$16 sps:$4 sm:$0xff]  }
 0x44a   : > { %7095 = vmatprep.subr.bf16.mxu0 %v8669_v42  ;;  %v8745_v42 = vld [vmem:[#allocation7 + $0x360] ss:$16 sps:$4 sm:$0xff]  }
 0x44b   : > { %7123 = vmatpush1.bf16.msra.mxu1 %v8685_v11 }
 0x44c   : > { %7124 = vmatprep.subr.bf16.mxu1 %v8693_v63 }
 0x44d   : > { %7096 = vmatpush2.bf16.msra.mxu0 %v8667_v16 }
 0x44e   : > { %7097 = vmatprep.subr.bf16.mxu0 %v8672_v55  ;;  %v8751_v55 = vld [vmem:[#allocation7 + $0x340] ss:$16 sps:$4 sm:$0xff]  }
 0x44f   : > { %7125 = vmatpush1.bf16.msra.mxu1 %v8691_v62 }
 0x450   : > { %7126 = vmatprep.subr.bf16.mxu1 %v8699_v39 }
 0x451   : > { %7098 = vmatpush2.bf16.msra.mxu0 %v8670_v49 }
 0x452   : > { %7099 = vmatprep.subr.bf16.mxu0 %v8678_v43  ;;  %v8771_v43 = vld [vmem:[#allocation7 + $0x2ec] ss:$16 sps:$4 sm:$0xff]  }
 0x455   : > { %7100 = vmatpush2.bf16.msra.mxu0 %v8676_v38 }
 0x456   : > { %7101 = vmatprep.subr.bf16.mxu0 %v8684_v52 }
 0x459   : > { %7102 = vmatpush2.bf16.msra.mxu0 %v8682_v40 }
 0x45a   : > { %7103 = vmatprep.subr.bf16.mxu0 %v8690_v13 }
 0x45d   : > { %7104 = vmatpush2.bf16.msra.mxu0 %v8688_v1 }
 0x45e   : > { %7105 = vmatprep.subr.bf16.mxu0 %v8696_v53 }
 0x461   : > { %7106 = vmatpush2.bf16.msra.mxu0 %v8694_v5 }
 0x462   : > { %7161 = vmatprep.subr.bf16.mxu0 %v8702_v33 }
 0x499   : > { %v5782_v22 = vpop.f32.mrf.mxu1 }
 0x49a   : > { %v5783_v28 = vadd.f32 %v5782_v22, %v12136_v45  ;;  %v8697_v22 = vld [vmem:[#allocation7 + $0x260] ss:$16 sps:$4 sm:$0xff]  }
 0x49b   : > { %v5784_v3 = vpop.f32.mrf.mxu1  ;;  %7127 = vmatpush1.bf16.msra.mxu1 %v8697_v22 }
 0x49c   : > { %v12141_v0 = vmax.f32 %v5783_v28, 0.0  ;;  %v5785_v4 = vadd.f32 %v5784_v3, %v12136_v45  ;;  %v8705_v28 = vld [vmem:[#allocation7 + $0x244] ss:$16 sps:$4 sm:$0xff]   ;;  %v8703_v3 = vld [vmem:[#allocation7 + $0x240] ss:$16 sps:$4 sm:$0xff]  }
 0x49d   : > { %v5786_v15 = vpop.f32.mrf.mxu1  ;;  %7128 = vmatprep.subr.bf16.mxu1 %v8705_v28 }
 0x49e   : > { %5935 = vrot.lane.b32.xlu0 %v12141_v0, %s8968_s14  ;;  %v5787_v14 = vadd.f32 %v5786_v15, %v12139_v19  ;;  %v12153_v54 = vmax.f32 %v5785_v4, 0.0  ;;  %v8711_v15 = vld [vmem:[#allocation7 + $0x224] ss:$16 sps:$4 sm:$0xff]  }
 0x49f   : > { %v5788_v27 = vpop.f32.mrf.mxu1  ;;  %7129 = vmatpush1.bf16.msra.mxu1 %v8703_v3  ;;  %v8717_v4 = vld [vmem:[#allocation7 + $0x204] ss:$16 sps:$4 sm:$0xff]  }
 0x4a0   : > { %v12147_v31 = vmax.f32 %v5787_v14, 0.0  ;;  %v5789_v59 = vadd.f32 %v5788_v27, %v12139_v19  ;;  %v8709_v14 = vld [vmem:[#allocation7 + $0x220] ss:$16 sps:$4 sm:$0xff]   ;;  %7130 = vmatprep.subr.bf16.mxu1 %v8711_v15 }
 0x4a2   : > { %5990 = vrot.lane.b32.xlu0 %v12141_v0, %s8972_s20  ;;  %5947 = vrot.lane.b32.xlu1 %v12147_v31, %s8968_s14  ;;  %v12162_v50 = vmax.f32 %v5789_v59, 0.0 }
 0x4a3   : > { %7131 = vmatpush1.bf16.msra.mxu1 %v8709_v14 }
 0x4a4   : > { %7132 = vmatprep.subr.bf16.mxu1 %v8717_v4 }
 0x4a6   : > { %5937 = vrot.lane.b32.xlu0 %v12153_v54, %s8968_s14  ;;  %6002 = vrot.lane.b32.xlu1 %v12147_v31, %s8972_s20 }
 0x4a7   : > { %7133 = vmatpush1.bf16.msra.mxu1 %v8715_v41 }
 0x4a8   : > { %7134 = vmatprep.subr.bf16.mxu1 %v8723_v10 }
 0x4aa   : > { %5992 = vrot.lane.b32.xlu0 %v12153_v54, %s8972_s20 }
 0x4ab   : > { %7135 = vmatpush2.bf16.msra.mxu1 %v8721_v37 }
 0x4ac   : > { %7136 = vmatprep.subr.bf16.mxu1 %v8729_v60 }
 0x4ae   : > { %6047 = vrot.lane.b32.xlu0 %v12153_v54, %s8973_s21 }
 0x4af   : > { %7137 = vmatpush2.bf16.msra.mxu1 %v8727_v26 }
 0x4b0   : > { %7138 = vmatprep.subr.bf16.mxu1 %v8735_v18 }
 0x4b2   : > { %5949 = vrot.lane.b32.xlu0 %v12162_v50, %s8968_s14 }
 0x4b3   : > { %7139 = vmatpush2.bf16.msra.mxu1 %v8733_v57 }
 0x4b4   : > { %7140 = vmatprep.subr.bf16.mxu1 %v8741_v48 }
 0x4b6   : > { %6004 = vrot.lane.b32.xlu0 %v12162_v50, %s8972_s20 }
 0x4b7   : > { %7141 = vmatpush2.bf16.msra.mxu1 %v8739_v9 }
 0x4b8   : > { %7142 = vmatprep.subr.bf16.mxu1 %v8747_v47 }
 0x4ba   : > { %6059 = vrot.lane.b32.xlu0 %v12162_v50, %s8973_s21 }
 0x4bb   : > { %7143 = vmatpush2.bf16.msra.mxu1 %v8745_v42 }
 0x4be   : > { %6045 = vrot.lane.b32.xlu0 %v12141_v0, %s8973_s21 }
 0x4e0   : > { %v5825_v2 = vpop.f32.mrf.mxu0 }
 0x4e1   : > { %v5826_v36 = vadd.f32 %v5825_v2, %v12136_v45  ;;  %v8753_v2 = vld [vmem:[#allocation7 + $0x344] ss:$16 sps:$4 sm:$0xff]  }
 0x4e2   : > { %v12177_v44 = vpop.f32.mrf.mxu0  ;;  %7144 = vmatprep.subr.bf16.mxu1 %v8753_v2  ;;  %v8700_v2 = vld [vmem:[#allocation7 + $0x4e0] ss:$16 sps:$4 sm:$0xff]  }
 0x4e3   : > { %v12175_v35 = vmax.f32 %v5826_v36, 0.0  ;;  %v5828_v36 = vadd.f32 %v12177_v44, %v12136_v45  ;;  %7145 = vmatpush2.bf16.msra.mxu1 %v8751_v55  ;;  %v8763_v44 = vld [vmem:[#allocation7 + $0x300] ss:$16 sps:$4 sm:$0xff]   ;;  %v8714_v55 = vld [vmem:[#allocation7 + $0x4a4] ss:$16 sps:$4 sm:$0xff]  }
 0x4e4   : > { %v5829_v6 = vpop.f32.mrf.mxu0  ;;  %7146 = vmatprep.subr.bf16.mxu1 %v8759_v61 }
 0x4e5   : > { %5939 = vrot.lane.b32.xlu1 %v12175_v35, %s8968_s14  ;;  %v5830_v17 = vadd.f32 %v5829_v6, %v12139_v19  ;;  %v12224_v8 = vmax.f32 %v5828_v36, 0.0 }
 0x4e6   : > { %v5831_v16 = vpop.f32.mrf.mxu0 }
 0x4e7   : > { %v12186_v20 = vmax.f32 %v5830_v17, 0.0  ;;  %v5832_v49 = vadd.f32 %v5831_v16, %v12139_v19 }
 0x4e9   : > { %5994 = vrot.lane.b32.xlu1 %v12175_v35, %s8972_s20  ;;  %v12227_v38 = vmax.f32 %v5832_v49, 0.0  ;;  %v8708_v49 = vld [vmem:[#allocation7 + $0x4c4] ss:$16 sps:$4 sm:$0xff]  }
 0x4ed   : > { %6049 = vrot.lane.b32.xlu1 %v12175_v35, %s8973_s21 }
 0x4f1   : > { %5951 = vrot.lane.b32.xlu1 %v12186_v20, %s8968_s14 }
 0x4f5   : > { %6006 = vrot.lane.b32.xlu1 %v12186_v20, %s8972_s20 }
 0x4f9   : > { %6061 = vrot.lane.b32.xlu1 %v12186_v20, %s8973_s21 }
 0x4fd   : > { %6057 = vrot.lane.b32.xlu1 %v12147_v31, %s8973_s21 }
 0x502   : > { %v5868_v27 = vpop.f32.mrf.mxu1 }
 0x503   : > { %v5869_v59 = vadd.f32 %v5868_v27, %v12136_v45 }
 0x504   : > { %v5870_v23 = vpop.f32.mrf.mxu1 }
 0x505   : > { %v12197_v29 = vmax.f32 %v5869_v59, 0.0  ;;  %v5871_v46 = vadd.f32 %v5870_v23, %v12136_v45  ;;  %v8757_v45 = vld [vmem:[#allocation7 + $0x320] ss:$16 sps:$4 sm:$0xff]  }
 0x506   : > { %v5872_v12 = vpop.f32.mrf.mxu1  ;;  %7147 = vmatpush2.bf16.msra.mxu1 %v8757_v45 }
 0x507   : > { %v5882_v34 = vmax.f32 %v5871_v46, 0.0  ;;  %5943 = vrot.lane.b32.xlu0 %v12197_v29, %s8968_s14  ;;  %v5873_v30 = vadd.f32 %v5872_v12, %v12139_v19 }
 0x508   : > { %v5874_v56 = vpop.f32.mrf.mxu1 }
 0x509   : > { %5945 = vrot.lane.b32.xlu1 %v5882_v34, %s8968_s14  ;;  %v5875_v25 = vadd.f32 %v5874_v56, %v12139_v19  ;;  %v12210_v58 = vmax.f32 %v5873_v30, 0.0  ;;  %v8765_v19 = vld [vmem:[#allocation7 + $0x304] ss:$16 sps:$4 sm:$0xff]  }
 0x50a   : > { %7148 = vmatprep.subr.bf16.mxu1 %v8765_v19  ;;  %v8712_v19 = vld [vmem:[#allocation7 + $0x4a0] ss:$16 sps:$4 sm:$0xff]  }
 0x50b   : > { %5998 = vrot.lane.b32.xlu0 %v12197_v29, %s8972_s20  ;;  %v5888_v21 = vmax.f32 %v5875_v25, 0.0  ;;  %7149 = vmatpush2.bf16.msra.mxu1 %v8763_v44  ;;  %v8720_v44 = vld [vmem:[#allocation7 + $0x484] ss:$16 sps:$4 sm:$0xff]  }
 0x50c   : > { %7247 = vmatprep.subr.bf16.mxu1 %v8771_v43 }
 0x50d   : > { %6000 = vrot.lane.b32.xlu1 %v5882_v34, %s8972_s20 }
 0x50f   : > { %6053 = vrot.lane.b32.xlu0 %v12197_v29, %s8973_s21 }
 0x510   : > { %v5936_v6 = vpop.permute.xlu0 %5935 }
 0x511   : > { %6055 = vrot.lane.b32.xlu1 %v5882_v34, %s8973_s21 }
 0x513   : > { %5955 = vrot.lane.b32.xlu0 %v12210_v58, %s8968_s14 }
 0x514   : > { %v5991_v32 = vpop.permute.xlu0 %5990  ;;  %v5948_v40 = vpop.permute.xlu1 %5947 }
 0x515   : > { %5957 = vrot.lane.b32.xlu1 %v5888_v21, %s8968_s14 }
 0x517   : > { %6010 = vrot.lane.b32.xlu0 %v12210_v58, %s8972_s20 }
 0x518   : > { %v5938_v7 = vpop.permute.xlu0 %5937  ;;  %v6003_v11 = vpop.permute.xlu1 %6002 }
 0x519   : > { %6012 = vrot.lane.b32.xlu1 %v5888_v21, %s8972_s20  ;;  %v5960_v15 = vsel %vm12893_vm2, %v5936_v6, %v5938_v7 }
 0x51b   : > { %6065 = vrot.lane.b32.xlu0 %v12210_v58, %s8973_s21 }
 0x51c   : > { %v5993_v17 = vpop.permute.xlu0 %5992 }
 0x51d   : > { %6067 = vrot.lane.b32.xlu1 %v5888_v21, %s8973_s21  ;;  %v6015_v23 = vsel %vm12896_vm9, %v5991_v32, %v5993_v17  ;;  %v8718_v32 = vld [vmem:[#allocation7 + $0x480] ss:$16 sps:$4 sm:$0xff]  }
 0x51f   : > { %5941 = vrot.lane.b32.xlu0 %v12224_v8, %s8968_s14 }
 0x520   : > { %v6048_v52 = vpop.permute.xlu0 %6047 }
 0x521   : > { %5953 = vrot.lane.b32.xlu1 %v12227_v38, %s8968_s14 }
 0x523   : > { %5996 = vrot.lane.b32.xlu0 %v12224_v8, %s8972_s20 }
 0x524   : > { %v5950_v51 = vpop.permute.xlu0 %5949 }
 0x525   : > { %6008 = vrot.lane.b32.xlu1 %v12227_v38, %s8972_s20  ;;  %v5965_v10 = vsel %vm12897_vm8, %v5948_v40, %v5950_v51  ;;  %s396_s20 = scalar_lea.vmem %s12500_s11, %s7917_s19 }
 0x527   : > { %6051 = vrot.lane.b32.xlu0 %v12224_v8, %s8973_s21 }
 0x528   : > { %v6005_v62 = vpop.permute.xlu0 %6004 }
 0x529   : > { %6063 = vrot.lane.b32.xlu1 %v12227_v38, %s8973_s21  ;;  %v6020_v12 = vsel %vm12898_vm7, %v6003_v11, %v6005_v62  ;;  %v8732_v11 = vld [vmem:[#allocation7 + $0x444] ss:$16 sps:$4 sm:$0xff]   ;;  %vm12911_vm7 = vmmov %vm12902_vm5 }
 0x52c   : > { %v6060_v5 = vpop.permute.xlu0 %6059 }
 0x530   : > { %v6046_v27 = vpop.permute.xlu0 %6045 }
 0x531   : > { %v6070_v60 = vsel %vm12883_vm10, %v6046_v27, %v6048_v52  ;;  %v8736_v27 = vld [vmem:[#allocation7 + $0x420] ss:$16 sps:$4 sm:$0xff]  }
 0x557   : > { %v12241_v1 = vpop.permute.xlu1 %5939 }
 0x558   : > { %v5961_v39 = vsel %vm12890_vm3, %v5938_v7, %v12241_v1  ;;  %v8726_v7 = vld [vmem:[#allocation7 + $0x464] ss:$16 sps:$4 sm:$0xff]   ;;  %vm12903_vm3 = vmmov %vm12893_vm2 }
 0x559   : > { %v5981_v28 = vadd.f32 %v5961_v39, %v12153_v54  ;;  %v5980_v54 = vadd.f32 %v5960_v15, %v12141_v0 }
 0x55b   : > { %v12243_v13 = vpop.permute.xlu1 %5994  ;;  %v6035_v56 = vadd.f32 %v6015_v23, %v5980_v54  ;;  %v8744_v23 = vld [vmem:[#allocation7 + $0x404] ss:$16 sps:$4 sm:$0xff]  }
 0x55c   : > { %v6016_v33 = vsel %vm12891_vm4, %v5993_v17, %v12243_v13  ;;  %vm12904_vm4 = vmmov %vm12883_vm10 }
 0x55d   : > { %v6036_v59 = vadd.f32 %v6016_v33, %v5981_v28  ;;  %v6090_v25 = vadd.f32 %v6070_v60, %v6035_v56  ;;  %v8738_v33 = vld [vmem:[#allocation7 + $0x424] ss:$16 sps:$4 sm:$0xff]   ;;  %vm12906_vm2 = vmmov %vm12904_vm4  ;;  %v8750_v56 = vld [vmem:[#allocation7 + $0xec] ss:$16 sps:$4 sm:$0xff]  }
 0x55e   : > { %vm12912_vm10 = vmmov %vm12902_vm5 }
 0x55f   : > { %v12245_v63 = vpop.permute.xlu1 %6049  ;;  %v6100_v42 = vmul.f32 0.25, %v6090_v25 }
 0x560   : > { %v6071_v14 = vsel %vm12894_vm15, %v6048_v52, %v12245_v63  ;;  %v8724_v52 = vld [vmem:[#allocation7 + $0x460] ss:$16 sps:$4 sm:$0xff]   ;;  %vm12907_vm15 = vmmov %vm12903_vm3 }
 0x561   : > { %v6091_v46 = vadd.f32 %v6071_v14, %v6036_v59 }
 0x563   : > { %v12247_v53 = vpop.permute.xlu1 %5951  ;;  %v6101_v57 = vmul.f32 0.25, %v6091_v46 }
 0x564   : > { %v5966_v22 = vsel %vm12892_vm6, %v5950_v51, %v12247_v53  ;;  %vm12905_vm6 = vmmov %vm12895_vm1 }
 0x565   : > { %v5986_v41 = vadd.f32 %v5966_v22, %v12162_v50  ;;  %v5985_v50 = vadd.f32 %v5965_v10, %v12147_v31  ;;  %v8706_v31 = vld [vmem:[#allocation7 + $0x4c0] ss:$16 sps:$4 sm:$0xff]  }
 0x567   : > { %v12256_v3 = vpop.permute.xlu1 %6006  ;;  %v6040_v30 = vadd.f32 %v6020_v12, %v5985_v50 }
 0x568   : > { %v6021_v4 = vsel %vm12895_vm1, %v6005_v62, %v12256_v3  ;;  %vm12908_vm1 = vmmov %vm12903_vm3 }
 0x569   : > { %v6041_v34 = vadd.f32 %v6021_v4, %v5986_v41  ;;  %vm12909_vm9 = vmmov %vm12908_vm1 }
 0x56a   : > { %vm12910_vm8 = vmmov %vm12908_vm1 }
 0x56b   : > { %v12267_v37 = vpop.permute.xlu1 %6061 }
 0x56c   : > { %v6076_v26 = vsel %vm12899_vm12, %v6060_v5, %v12267_v37  ;;  %vm12913_vm12 = vmmov %vm12902_vm5 }
 0x56d   : > { %v6096_v18 = vadd.f32 %v6076_v26, %v6041_v34  ;;  %v8742_v26 = vld [vmem:[#allocation7 + $0x400] ss:$16 sps:$4 sm:$0xff]  }
 0x56f   : > { %v6106_v48 = vmul.f32 0.25, %v6096_v18  ;;  %v6058_v0 = vpop.permute.xlu1 %6057 }
 0x570   : > { %v6075_v21 = vsel %vm12900_vm14, %v6058_v0, %v6060_v5  ;;  %v8730_v5 = vld [vmem:[#allocation7 + $0x440] ss:$16 sps:$4 sm:$0xff]   ;;  %v8748_v0 = vld [vmem:[#allocation7 + $0xe8] ss:$16 sps:$4 sm:$0xff]   ;;  %vm12914_vm14 = vmmov %vm12902_vm5 }
 0x571   : > { %v6095_v9 = vadd.f32 %v6075_v21, %v6040_v30  ;;  %v12275_v47 = vpack.c.bf16 %v6106_v48, %v6101_v57 }
 0x573   : > { %v6105_v16 = vmul.f32 0.25, %v6095_v9  ;;  %7107 = vmatprep.mubr.bf16.mxu0 %v12275_v47 }
 0x575   : > { %v12278_v36 = vpack.c.bf16 %v6105_v16, %v6100_v42  ;;  %v8756_v16 = vld [vmem:[#allocation7 + $0xcc] ss:$16 sps:$4 sm:$0xff]  }
 0x577   : > { %7108 = vmatmul.mubr.bf16.vlgmr.msra.gmra.mxu0 %v12278_v36 }
 0x578   : > { %7162 = vmatpush1.bf16.msra.mxu0 %v8700_v2  ;;  %7193 = vmatprep.mubr.bf16.mxu0 %v12704_v24 }
 0x579   : > { %7163 = vmatprep.subr.bf16.mxu0 %v8708_v49  ;;  %v5944_v61 = vpop.permute.xlu0 %5943 }
 0x57b   : > { %v5946_v45 = vpop.permute.xlu1 %5945 }
 0x57c   : > { %7164 = vmatpush1.bf16.msra.mxu0 %v8706_v31  ;;  %v5964_v39 = vsel %vm12901_vm11, %v5944_v61, %v5946_v45  ;;  %vm12915_vm11 = vmmov %vm12906_vm2 }
 0x57d   : > { %7165 = vmatprep.subr.bf16.mxu0 %v8714_v55  ;;  %v5999_v43 = vpop.permute.xlu0 %5998  ;;  %v5984_v14 = vadd.f32 %v5964_v39, %v12197_v29  ;;  %v8768_v39 = vld [vmem:[#allocation7 + $0x8c] ss:$16 sps:$4 sm:$0xff]  }
 0x57f   : > { %v6001_v6 = vpop.permute.xlu1 %6000 }
 0x580   : > { %7166 = vmatpush1.bf16.msra.mxu0 %v8712_v19  ;;  %v6019_v28 = vsel %vm12902_vm5, %v5999_v43, %v6001_v6  ;;  %vm12916_vm5 = vmmov %vm12906_vm2 }
 0x581   : > { %7167 = vmatprep.subr.bf16.mxu0 %v8720_v44  ;;  %v12282_v17 = vpop.permute.xlu0 %6053  ;;  %v6039_v10 = vadd.f32 %v6019_v28, %v5984_v14  ;;  %v8766_v28 = vld [vmem:[#allocation7 + $0x88] ss:$16 sps:$4 sm:$0xff]  }
 0x583   : > { %v6056_v40 = vpop.permute.xlu1 %6055 }
 0x584   : > { %7168 = vmatpush1.bf16.msra.mxu0 %v8718_v32  ;;  %v6074_v59 = vsel %vm12904_vm4, %v12282_v17, %v6056_v40  ;;  %vm12918_vm4 = vmmov %vm12906_vm2 }
 0x585   : > { %7169 = vmatprep.subr.bf16.mxu0 %v8726_v7  ;;  %v5956_v51 = vpop.permute.xlu0 %5955  ;;  %v6094_v34 = vadd.f32 %v6074_v59, %v6039_v10  ;;  %v8772_v59 = vld [vmem:[#allocation7 + $0x68] ss:$16 sps:$4 sm:$0xff]   ;;  %v8783_v10 = vld [vmem:[#allocation7 + $0x2ac] ss:$16 sps:$4 sm:$0xff]  }
 0x587   : > { %v5958_v62 = vpop.permute.xlu1 %5957  ;;  %v6104_v25 = vmul.f32 0.25, %v6094_v34  ;;  %v8786_v34 = vld [vmem:[#allocation7 + $0x2c] ss:$16 sps:$4 sm:$0xff]  }
 0x588   : > { %7170 = vmatpush1.bf16.msra.mxu0 %v8724_v52  ;;  %v5969_v15 = vsel %vm12903_vm3, %v5956_v51, %v5958_v62  ;;  %vm12917_vm3 = vmmov %vm12906_vm2 }
 0x589   : > { %7171 = vmatprep.subr.bf16.mxu0 %v8732_v11  ;;  %v6011_v22 = vpop.permute.xlu0 %6010  ;;  %v5989_v54 = vadd.f32 %v5969_v15, %v12210_v58 }
 0x58b   : > { %v6013_v4 = vpop.permute.xlu1 %6012 }
 0x58c   : > { %7172 = vmatpush1.bf16.msra.mxu0 %v8730_v5  ;;  %v6024_v41 = vsel %vm12905_vm6, %v6011_v22, %v6013_v4  ;;  %v8769_v4 = vld [vmem:[#allocation7 + $0x2e8] ss:$16 sps:$4 sm:$0xff]   ;;  %vm12919_vm6 = vcmask 1040384  }
 0x58d   : > { %7173 = vmatprep.subr.bf16.mxu0 %v8738_v33  ;;  %v6066_v46 = vpop.permute.xlu0 %6065  ;;  %v6044_v12 = vadd.f32 %v6024_v41, %v5989_v54  ;;  %v8775_v41 = vld [vmem:[#allocation7 + $0x2c8] ss:$16 sps:$4 sm:$0xff]  }
 0x58e   : > { %v8778_v54 = vld [vmem:[#allocation7 + $0x48] ss:$16 sps:$4 sm:$0xff]  }
 0x58f   : > { %v6068_v60 = vpop.permute.xlu1 %6067 }
 0x590   : > { %7174 = vmatpush1.bf16.msra.mxu0 %v8736_v27  ;;  %v6079_v29 = vsel %vm12906_vm2, %v6066_v46, %v6068_v60  ;;  %v8777_v27 = vld [vmem:[#allocation7 + $0x2cc] ss:$16 sps:$4 sm:$0xff]   ;;  %v8784_v60 = vld [vmem:[#allocation7 + $0x28] ss:$16 sps:$4 sm:$0xff]   ;;  %vm12920_vm2 = vmmov %vm12919_vm6 }
 0x591   : > { %7175 = vmatprep.subr.bf16.mxu0 %v8744_v23  ;;  %v6099_v50 = vadd.f32 %v6079_v29, %v6044_v12  ;;  %v5942_v18 = vpop.permute.xlu0 %5941  ;;  %v8780_v23 = vld [vmem:[#allocation7 + $0x4c] ss:$16 sps:$4 sm:$0xff]  }
 0x592   : > { %v5962_v30 = vsel %vm12907_vm15, %v12241_v1, %v5942_v18  ;;  %v5963_v58 = vsel %vm12908_vm1, %v5942_v18, %v5944_v61  ;;  %v8789_v12 = vld [vmem:[#allocation7 + $0x28c] ss:$16 sps:$4 sm:$0xff]   ;;  %v8793_v18 = vld [vmem:[#allocation7 + $0x268] ss:$16 sps:$4 sm:$0xff]  }
 0x593   : > { %v6109_v57 = vmul.f32 0.25, %v6099_v50  ;;  %v5954_v48 = vpop.permute.xlu1 %5953  ;;  %v5982_v9 = vadd.f32 %v5962_v30, %v12175_v35  ;;  %v5983_v55 = vadd.f32 %v5963_v58, %v12224_v8  ;;  %v8762_v8 = vld [vmem:[#allocation7 + $0xac] ss:$16 sps:$4 sm:$0xff]   ;;  %v8790_v50 = vld [vmem:[#allocation7 + $0x8] ss:$16 sps:$4 sm:$0xff]  }
 0x594   : > { %7176 = vmatpush1.bf16.msra.mxu0 %v8742_v26  ;;  %v5967_v2 = vsel %vm12909_vm9, %v12247_v53, %v5954_v48  ;;  %v5968_v49 = vsel %vm12910_vm8, %v5954_v48, %v5956_v51  ;;  %v8754_v53 = vld [vmem:[#allocation7 + $0xc8] ss:$16 sps:$4 sm:$0xff]   ;;  %v8792_v29 = vld [vmem:[#allocation7 + $0xc] ss:$16 sps:$4 sm:$0xff]  }
 0x595   : > { %7204 = vmatprep.subr.bf16.mxu0 %v8750_v56  ;;  %v12296_v21 = vpack.c.bf16 %v6109_v57, %v6104_v25  ;;  %v5997_v42 = vpop.permute.xlu0 %5996  ;;  %v5987_v44 = vadd.f32 %v5967_v2, %v12186_v20  ;;  %v8760_v51 = vld [vmem:[#allocation7 + $0xa8] ss:$16 sps:$4 sm:$0xff]   ;;  %v8795_v56 = vld [vmem:[#allocation7 + $0x26c] ss:$16 sps:$4 sm:$0xff]  }
 0x596   : > { %v6017_v1 = vsel %vm12911_vm7, %v12243_v13, %v5997_v42  ;;  %v6018_v31 = vsel %vm12912_vm10, %v5997_v42, %v5999_v43  ;;  %v5988_v13 = vadd.f32 %v5968_v49, %v12227_v38  ;;  %v8787_v26 = vld [vmem:[#allocation7 + $0x288] ss:$16 sps:$4 sm:$0xff]   ;;  %v8798_v30 = vld [vmem:[#allocation7 + $0x1ec] ss:$16 sps:$4 sm:$0xff]  }
 0x597   : > { %v6037_v61 = vadd.f32 %v6017_v1, %v5982_v9  ;;  %v6009_v45 = vpop.permute.xlu1 %6008  ;;  %7194 = vmatmul.mubr.bf16.vlgmr.msra.gmra.mxu0 %v12296_v21  ;;  %v6038_v43 = vadd.f32 %v6018_v31, %v5983_v55  ;;  %v8801_v25 = vld [vmem:[#allocation7 + $0x24c] ss:$16 sps:$4 sm:$0xff]   ;;  %v8796_v57 = vld [vmem:[#allocation7 + $0x1e8] ss:$16 sps:$4 sm:$0xff]  }
 0x598   : > { %v6022_v35 = vsel %vm12913_vm12, %v12256_v3, %v6009_v45  ;;  %v6023_v19 = vsel %vm12914_vm14, %v6009_v45, %v6011_v22  ;;  %7205 = vmatpush1.bf16.msra.mxu0 %v8748_v0  ;;  %7236 = vmatprep.mubr.bf16.mxu0 %v12275_v47  ;;  %v8799_v48 = vld [vmem:[#allocation7 + $0x248] ss:$16 sps:$4 sm:$0xff]   ;;  %v8804_v58 = vld [vmem:[#allocation7 + $0x1cc] ss:$16 sps:$4 sm:$0xff]  }
 0x599   : > { %v6052_v6 = vpop.permute.xlu0 %6051  ;;  %7206 = vmatprep.subr.bf16.mxu0 %v8756_v16  ;;  %v6042_v7 = vadd.f32 %v6022_v35, %v5987_v44  ;;  %v6043_v40 = vadd.f32 %v6023_v19, %v5988_v13  ;;  %v8807_v0 = vld [vmem:[#allocation7 + $0x22c] ss:$16 sps:$4 sm:$0xff]   ;;  %v8802_v9 = vld [vmem:[#allocation7 + $0x1c8] ss:$16 sps:$4 sm:$0xff]  }
 0x59a   : > { %v6072_v32 = vsel %vm12915_vm11, %v12245_v63, %v6052_v6  ;;  %v6073_v3 = vsel %vm12916_vm5, %v6052_v6, %v12282_v17  ;;  %v8805_v42 = vld [vmem:[#allocation7 + $0x228] ss:$16 sps:$4 sm:$0xff]   ;;  %v8810_v16 = vld [vmem:[#allocation7 + $0x1ac] ss:$16 sps:$4 sm:$0xff]  }
 0x59b   : > { %v6092_v52 = vadd.f32 %v6072_v32, %v6037_v61  ;;  %v6093_v11 = vadd.f32 %v6073_v3, %v6038_v43  ;;  %v6064_v47 = vpop.permute.xlu1 %6063  ;;  %v8813_v2 = vld [vmem:[#allocation7 + $0x20c] ss:$16 sps:$4 sm:$0xff]   ;;  %v8808_v49 = vld [vmem:[#allocation7 + $0x1a8] ss:$16 sps:$4 sm:$0xff]  }
 0x59c   : > { %v6077_v20 = vsel %vm12917_vm3, %v12267_v37, %v6064_v47  ;;  %v6078_v38 = vsel %vm12918_vm4, %v6064_v47, %v6066_v46  ;;  %7207 = vmatpush1.bf16.msra.mxu0 %v8754_v53  ;;  %v8774_v37 = vld [vmem:[#allocation7 + $0x6c] ss:$16 sps:$4 sm:$0xff]   ;;  %v8781_v46 = vld [vmem:[#allocation7 + $0x2a8] ss:$16 sps:$4 sm:$0xff]  }
 0x59d   : > { %v6097_v62 = vadd.f32 %v6077_v20, %v6042_v7  ;;  %v6098_v5 = vadd.f32 %v6078_v38, %v6043_v40  ;;  %7208 = vmatprep.subr.bf16.mxu0 %v8762_v8  ;;  %v6102_v63 = vmul.f32 0.25, %v6092_v52  ;;  %v6103_v33 = vmul.f32 0.25, %v6093_v11  ;;  %v8811_v1 = vld [vmem:[#allocation7 + $0x208] ss:$16 sps:$4 sm:$0xff]   ;;  %v8816_v31 = vld [vmem:[#allocation7 + $0x18c] ss:$16 sps:$4 sm:$0xff]  }
 0x59e   : > { %v8819_v55 = vld [vmem:[#allocation7 + $0x3ec] ss:$16 sps:$4 sm:$0xff]   ;;  %v8814_v61 = vld [vmem:[#allocation7 + $0x188] ss:$16 sps:$4 sm:$0xff]  }
 0x59f   : > { %v6107_v22 = vmul.f32 0.25, %v6097_v62  ;;  %v6108_v17 = vmul.f32 0.25, %v6098_v5  ;;  %v8817_v45 = vld [vmem:[#allocation7 + $0x3e8] ss:$16 sps:$4 sm:$0xff]   ;;  %v8822_v35 = vld [vmem:[#allocation7 + $0x16c] ss:$16 sps:$4 sm:$0xff]  }
 0x5a0   : > { %7209 = vmatpush1.bf16.msra.mxu0 %v8760_v51  ;;  %v8825_v19 = vld [vmem:[#allocation7 + $0x3cc] ss:$16 sps:$4 sm:$0xff]   ;;  %v8820_v53 = vld [vmem:[#allocation7 + $0x168] ss:$16 sps:$4 sm:$0xff]  }
 0x5a1   : > { %v12320_v15 = vpack.c.bf16 %v6107_v22, %v6102_v63  ;;  %7210 = vmatprep.subr.bf16.mxu0 %v8768_v39  ;;  %v6113_v14 = vpack.c.bf16 %v6108_v17, %v6103_v33  ;;  %v8823_v44 = vld [vmem:[#allocation7 + $0x3c8] ss:$16 sps:$4 sm:$0xff]   ;;  %v8828_v13 = vld [vmem:[#allocation7 + $0x14c] ss:$16 sps:$4 sm:$0xff]  }
 0x5a2   : > { %v8831_v43 = vld [vmem:[#allocation7 + $0x3ac] ss:$16 sps:$4 sm:$0xff]   ;;  %v8826_v6 = vld [vmem:[#allocation7 + $0x148] ss:$16 sps:$4 sm:$0xff]  }
 0x5a3   : > { %7150 = vmatprep.mubr.bf16.mxu1 %v6113_v14  ;;  %v8829_v8 = vld [vmem:[#allocation7 + $0x3a8] ss:$16 sps:$4 sm:$0xff]   ;;  %v8834_v32 = vld [vmem:[#allocation7 + $0x12c] ss:$16 sps:$4 sm:$0xff]  }
 0x5a4   : > { %7211 = vmatpush1.bf16.msra.mxu0 %v8766_v28  ;;  %7151 = vmatmul.mubr.bf16.vlgmr.msra.gmra.mxu1 %v12320_v15  ;;  %v8837_v3 = vld [vmem:[#allocation7 + $0x38c] ss:$16 sps:$4 sm:$0xff]   ;;  %v8832_v7 = vld [vmem:[#allocation7 + $0x128] ss:$16 sps:$4 sm:$0xff]  }
 0x5a5   : > { %7248 = vmatpush1.bf16.msra.mxu1 %v8769_v4  ;;  %7279 = vmatprep.mubr.bf16.mxu1 %v6113_v14  ;;  %v8835_v40 = vld [vmem:[#allocation7 + $0x388] ss:$16 sps:$4 sm:$0xff]   ;;  %v8840_v52 = vld [vmem:[#allocation7 + $0x10c] ss:$16 sps:$4 sm:$0xff]  }
 0x5a6   : > { %7212 = vmatprep.subr.bf16.mxu0 %v8774_v37  ;;  %7249 = vmatprep.subr.bf16.mxu1 %v8777_v27  ;;  %v8843_v11 = vld [vmem:[#allocation7 + $0x36c] ss:$16 sps:$4 sm:$0xff]   ;;  %v8838_v47 = vld [vmem:[#allocation7 + $0x108] ss:$16 sps:$4 sm:$0xff]  }
 0x5a7   : > { %v8841_v20 = vld [vmem:[#allocation7 + $0x368] ss:$16 sps:$4 sm:$0xff]   ;;  %v8846_v38 = vld [vmem:[#allocation7 + $0x4ec] ss:$16 sps:$4 sm:$0xff]  }
 0x5a8   : > { %7213 = vmatpush1.bf16.msra.mxu0 %v8772_v59  ;;  %v8849_v51 = vld [vmem:[#allocation7 + $0x34c] ss:$16 sps:$4 sm:$0xff]   ;;  %v8844_v62 = vld [vmem:[#allocation7 + $0x4e8] ss:$16 sps:$4 sm:$0xff]  }
 0x5a9   : > { %7250 = vmatpush1.bf16.msra.mxu1 %v8775_v41  ;;  %7214 = vmatprep.subr.bf16.mxu0 %v8780_v23  ;;  %v8847_v5 = vld [vmem:[#allocation7 + $0x348] ss:$16 sps:$4 sm:$0xff]   ;;  %v8852_v39 = vld [vmem:[#allocation7 + $0x4cc] ss:$16 sps:$4 sm:$0xff]  }
 0x5aa   : > { %7251 = vmatprep.subr.bf16.mxu1 %v8783_v10  ;;  %v8855_v63 = vld [vmem:[#allocation7 + $0x32c] ss:$16 sps:$4 sm:$0xff]   ;;  %v8850_v33 = vld [vmem:[#allocation7 + $0x4c8] ss:$16 sps:$4 sm:$0xff]  }
 0x5ab   : > { %v8853_v22 = vld [vmem:[#allocation7 + $0x328] ss:$16 sps:$4 sm:$0xff]   ;;  %v8858_v17 = vld [vmem:[#allocation7 + $0x4ac] ss:$16 sps:$4 sm:$0xff]  }
 0x5ac   : > { %7215 = vmatpush1.bf16.msra.mxu0 %v8778_v54  ;;  %v8861_v28 = vld [vmem:[#allocation7 + $0x30c] ss:$16 sps:$4 sm:$0xff]   ;;  %v8856_v14 = vld [vmem:[#allocation7 + $0x4a8] ss:$16 sps:$4 sm:$0xff]  }
 0x5ad   : > { %7252 = vmatpush1.bf16.msra.mxu1 %v8781_v46  ;;  %7216 = vmatprep.subr.bf16.mxu0 %v8786_v34  ;;  %v8859_v4 = vld [vmem:[#allocation7 + $0x308] ss:$16 sps:$4 sm:$0xff]   ;;  %v8864_v37 = vld [vmem:[#allocation7 + $0x48c] ss:$16 sps:$4 sm:$0xff]  }
 0x5ae   : > { %7253 = vmatprep.subr.bf16.mxu1 %v8789_v12  ;;  %v8862_v27 = vld [vmem:[#allocation7 + $0x488] ss:$16 sps:$4 sm:$0xff]   ;;  %v8878_v59 = vld [vmem:[%s12496_s7 + $0x38] sm:$0xff]  }
 0x5af   : > { %v8865_v41 = vld [vmem:[#allocation7 + $0x468] ss:$16 sps:$4 sm:$0xff]   ;;  %v8870_v23 = vld [vmem:[#allocation7 + $0x44c] ss:$16 sps:$4 sm:$0xff]  }
 0x5b0   : > { %7217 = vmatpush1.bf16.msra.mxu0 %v8784_v60  ;;  %v8868_v10 = vld [vmem:[#allocation7 + $0x448] ss:$16 sps:$4 sm:$0xff]   ;;  %v8873_v54 = vld [vmem:[#allocation7 + $0x42c] ss:$16 sps:$4 sm:$0xff]  }
 0x5b1   : > { %7254 = vmatpush1.bf16.msra.mxu1 %v8787_v26  ;;  %7218 = vmatprep.subr.bf16.mxu0 %v8792_v29  ;;  %v8879_v46 = vld [vmem:[%s12496_s7 + $0x70] sm:$0xff]   ;;  %v8881_v26 = vld [vmem:[%s12496_s7 + $0x68] sm:$0xff]  }
 0x5b2   : > { %7255 = vmatprep.subr.bf16.mxu1 %v8795_v56  ;;  %v8880_v34 = vld [vmem:[%s12496_s7 + $0x30] sm:$0xff]   ;;  %v8882_v29 = vld [vmem:[%s12496_s7 + $0x28] sm:$0xff]   ;;  %v8883_v56 = vld [vmem:[%s12496_s7 + $0x60] sm:$0xff]  }
 0x5b3   : > { %v8871_v12 = vld [vmem:[#allocation7 + $0x428] ss:$16 sps:$4 sm:$0xff]  }
 0x5b4   : > { %7219 = vmatpush1.bf16.msra.mxu0 %v8790_v50  ;;  %v8874_v60 = vld [vmem:[#allocation7 + $0x408] ss:$16 sps:$4 sm:$0xff]  }
 0x5b5   : > { %7256 = vmatpush1.bf16.msra.mxu1 %v8793_v18  ;;  %7220 = vmatprep.subr.bf16.mxu0 %v8798_v30  ;;  %v8884_v50 = vld [vmem:[%s12496_s7 + $0x20] sm:$0xff]   ;;  %v8885_v18 = vld [vmem:[%s12496_s7 + $0x58] sm:$0xff]  }
 0x5b6   : > { %7257 = vmatprep.subr.bf16.mxu1 %v8801_v25  ;;  %v8886_v30 = vld [vmem:[%s12496_s7 + $0x18] sm:$0xff]   ;;  %v8888_v25 = vld [vmem:[%s12496_s7 + $0x10] sm:$0xff]  }
 0x5b8   : > { %7221 = vmatpush2.bf16.msra.mxu0 %v8796_v57  ;;  %v8889_v57 = vld [vmem:[%s12496_s7 + $0x48] sm:$0xff]  }
 0x5b9   : > { %7258 = vmatpush1.bf16.msra.mxu1 %v8799_v48  ;;  %7222 = vmatprep.subr.bf16.mxu0 %v8804_v58  ;;  %v8890_v48 = vld [vmem:[%s12496_s7 + $0x8] sm:$0xff]   ;;  %v8891_v58 = vld [vmem:[%s12496_s7 + $0x40] sm:$0xff]  }
 0x5ba   : > { %7259 = vmatprep.subr.bf16.mxu1 %v8807_v0  ;;  %v8892_v0 = vld [vmem:[%s12496_s7] sm:$0xff]  }
 0x5bc   : > { %7223 = vmatpush2.bf16.msra.mxu0 %v8802_v9  ;;  %v8893_v9 = vld [vmem:[%s12496_s7 + $0xf8] sm:$0xff]  }
 0x5bd   : > { %7260 = vmatpush1.bf16.msra.mxu1 %v8805_v42  ;;  %7224 = vmatprep.subr.bf16.mxu0 %v8810_v16  ;;  %v8894_v42 = vld [vmem:[%s12496_s7 + $0xb8] sm:$0xff]   ;;  %v8895_v16 = vld [vmem:[%s12496_s7 + $0xf0] sm:$0xff]  }
 0x5be   : > { %7261 = vmatprep.subr.bf16.mxu1 %v8813_v2  ;;  %v8896_v2 = vld [vmem:[%s12496_s7 + $0xb0] sm:$0xff]  }
 0x5c0   : > { %7225 = vmatpush2.bf16.msra.mxu0 %v8808_v49  ;;  %v8897_v49 = vld [vmem:[%s12496_s7 + $0xe8] sm:$0xff]  }
 0x5c1   : > { %7262 = vmatpush1.bf16.msra.mxu1 %v8811_v1  ;;  %7226 = vmatprep.subr.bf16.mxu0 %v8816_v31  ;;  %v8898_v1 = vld [vmem:[%s12496_s7 + $0xa8] sm:$0xff]   ;;  %v8899_v31 = vld [vmem:[%s12496_s7 + $0xe0] sm:$0xff]  }
 0x5c2   : > { %7263 = vmatprep.subr.bf16.mxu1 %v8819_v55  ;;  %v8900_v55 = vld [vmem:[%s12496_s7 + $0xa0] sm:$0xff]  }
 0x5c4   : > { %7227 = vmatpush2.bf16.msra.mxu0 %v8814_v61  ;;  %v8901_v61 = vld [vmem:[%s12496_s7 + $0xd8] sm:$0xff]  }
 0x5c5   : > { %7264 = vmatpush2.bf16.msra.mxu1 %v8817_v45  ;;  %7228 = vmatprep.subr.bf16.mxu0 %v8822_v35  ;;  %v8902_v45 = vld [vmem:[%s12496_s7 + $0x98] sm:$0xff]   ;;  %v8903_v35 = vld [vmem:[%s12496_s7 + $0xd0] sm:$0xff]  }
 0x5c6   : > { %7265 = vmatprep.subr.bf16.mxu1 %v8825_v19 }
 0x5c8   : > { %7229 = vmatpush2.bf16.msra.mxu0 %v8820_v53  ;;  %v8904_v53 = vld [vmem:[%s12496_s7 + $0x90] sm:$0xff]  }
 0x5c9   : > { %7266 = vmatpush2.bf16.msra.mxu1 %v8823_v44  ;;  %7230 = vmatprep.subr.bf16.mxu0 %v8828_v13  ;;  %v8905_v44 = vld [vmem:[%s12496_s7 + $0xc8] sm:$0xff]  }
 0x5ca   : > { %7267 = vmatprep.subr.bf16.mxu1 %v8831_v43  ;;  %v8906_v43 = vld [vmem:[%s12496_s7 + $0x88] sm:$0xff]  }
 0x5cc   : > { %7231 = vmatpush2.bf16.msra.mxu0 %v8826_v6  ;;  %v8907_v6 = vld [vmem:[%s12496_s7 + $0xc0] sm:$0xff]  }
 0x5cd   : > { %7268 = vmatpush2.bf16.msra.mxu1 %v8829_v8  ;;  %7232 = vmatprep.subr.bf16.mxu0 %v8834_v32  ;;  %v8908_v32 = vld [vmem:[%s12496_s7 + $0x80] sm:$0xff]  }
 0x5ce   : > { %7269 = vmatprep.subr.bf16.mxu1 %v8837_v3 }
 0x5d0   : > { %7233 = vmatpush2.bf16.msra.mxu0 %v8832_v7 }
 0x5d1   : > { %7270 = vmatpush2.bf16.msra.mxu1 %v8835_v40  ;;  %7234 = vmatprep.subr.bf16.mxu0 %v8840_v52 }
 0x5d2   : > { %7271 = vmatprep.subr.bf16.mxu1 %v8843_v11 }
 0x5d4   : > { %7235 = vmatpush2.bf16.msra.mxu0 %v8838_v47 }
 0x5d5   : > { %7272 = vmatpush2.bf16.msra.mxu1 %v8841_v20  ;;  %7290 = vmatprep.subr.bf16.mxu0 %v8846_v38 }
 0x5d6   : > { %7273 = vmatprep.subr.bf16.mxu1 %v8849_v51 }
 0x5d7   : > { %7237 = vmatmul.mubr.bf16.vlgmr.msra.gmra.mxu0 %v12278_v36  ;;  %v8877_v36 = vld [vmem:[%s12496_s7 + $0x78] sm:$0xff]  }
 0x5d8   : > { %7291 = vmatpush1.bf16.msra.mxu0 %v8844_v62  ;;  %7322 = vmatprep.mubr.bf16.mxu0 %v12704_v24  ;;  %v8867_v24 = vld [vmem:[#allocation7 + $0x46c] ss:$16 sps:$4 sm:$0xff]  }
 0x5d9   : > { %7274 = vmatpush2.bf16.msra.mxu1 %v8847_v5  ;;  %7292 = vmatprep.subr.bf16.mxu0 %v8852_v39  ;;  %v7333_v39 = vld [vmem:[%s12495_s6] sm:$0xff] }
 0x5da   : > { %7275 = vmatprep.subr.bf16.mxu1 %v8855_v63  ;;  %v7337_v63 = vld [vmem:[%s12495_s6 + $0x20] sm:$0xff] }
 0x5dc   : > { %7293 = vmatpush1.bf16.msra.mxu0 %v8850_v33 }
 0x5dd   : > { %7276 = vmatpush2.bf16.msra.mxu1 %v8853_v22  ;;  %7294 = vmatprep.subr.bf16.mxu0 %v8858_v17 }
 0x5de   : > { %7277 = vmatprep.subr.bf16.mxu1 %v8861_v28 }
 0x5e0   : > { %7295 = vmatpush1.bf16.msra.mxu0 %v8856_v14 }
 0x5e1   : > { %7278 = vmatpush2.bf16.msra.mxu1 %v8859_v4  ;;  %7296 = vmatprep.subr.bf16.mxu0 %v8864_v37  ;;  %v7334_v4 = vld [vmem:[%s12495_s6 + $0x8] sm:$0xff] }
 0x5e2   : > { %8243 = vmatprep.subr.bf16.mxu1 %v8877_v36  ;;  %v7338_v37 = vld [vmem:[%s12495_s6 + $0x28] sm:$0xff] }
 0x5e4   : > { %7280 = vmatmul.mubr.bf16.vlgmr.msra.gmra.mxu1 %v12320_v15  ;;  %7297 = vmatpush1.bf16.msra.mxu0 %v8862_v27  ;;  %v8876_v15 = vld [vmem:[#allocation7 + $0x40c] ss:$16 sps:$4 sm:$0xff]  }
 0x5e5   : > { %7298 = vmatprep.subr.bf16.mxu0 %v8867_v24  ;;  %8244 = vmatpush3.bf16.msra.mxu1 %v8878_v59 }
 0x5e6   : > { %8245 = vmatprep.subr.bf16.mxu1 %v8879_v46 }
 0x5e8   : > { %7299 = vmatpush1.bf16.msra.mxu0 %v8865_v41 }
 0x5e9   : > { %7300 = vmatprep.subr.bf16.mxu0 %v8870_v23  ;;  %8246 = vmatpush3.bf16.msra.mxu1 %v8880_v34 }
 0x5ea   : > { %8247 = vmatprep.subr.bf16.mxu1 %v8881_v26 }
 0x5ec   : > { %7301 = vmatpush1.bf16.msra.mxu0 %v8868_v10 }
 0x5ed   : > { %7302 = vmatprep.subr.bf16.mxu0 %v8873_v54  ;;  %8248 = vmatpush3.bf16.msra.mxu1 %v8882_v29 }
 0x5ee   : > { %8249 = vmatprep.subr.bf16.mxu1 %v8883_v56 }
 0x5f0   : > { %7303 = vmatpush1.bf16.msra.mxu0 %v8871_v12 }
 0x5f1   : > { %7304 = vmatprep.subr.bf16.mxu0 %v8876_v15  ;;  %8250 = vmatpush3.bf16.msra.mxu1 %v8884_v50 }
 0x5f2   : > { %8251 = vmatprep.subr.bf16.mxu1 %v8885_v18 }
 0x5f4   : > { %7305 = vmatpush1.bf16.msra.mxu0 %v8874_v60 }
 0x5f5   : > { %8252 = vmatpush3.bf16.msra.mxu1 %v8886_v30  ;;  %8265 = vmatprep.subr.bf16.mxu0 %v8893_v9 }
 0x5f7   : > { %7323 = vmatmul.mubr.bf16.vlgmr.msra.gmra.mxu0 %v12296_v21  ;;  %v8887_v21 = vld [vmem:[%s12496_s7 + $0x50] sm:$0xff]  }
 0x5f8   : > { %8253 = vmatprep.subr.bf16.mxu1 %v8887_v21  ;;  %8266 = vmatpush3.bf16.msra.mxu0 %v8894_v42 }
 0x5f9   : > { %8254 = vmatpush3.bf16.msra.mxu1 %v8888_v25  ;;  %8267 = vmatprep.subr.bf16.mxu0 %v8895_v16 }
 0x5fa   : > { %8255 = vmatprep.subr.bf16.mxu1 %v8889_v57 }
 0x5fc   : > { %8268 = vmatpush3.bf16.msra.mxu0 %v8896_v2 }
 0x5fd   : > { %8256 = vmatpush3.bf16.msra.mxu1 %v8890_v48  ;;  %8269 = vmatprep.subr.bf16.mxu0 %v8897_v49 }
 0x5fe   : > { %8257 = vmatprep.subr.bf16.mxu1 %v8891_v58 }
 0x600   : > { %8270 = vmatpush3.bf16.msra.mxu0 %v8898_v1 }
 0x601   : > { %8258 = vmatpush3.bf16.msra.mxu1 %v8892_v0  ;;  %8271 = vmatprep.subr.bf16.mxu0 %v8899_v31 }
 0x604   : > { %8272 = vmatpush3.bf16.msra.mxu0 %v8900_v55 }
 0x605   : > { %8273 = vmatprep.subr.bf16.mxu0 %v8901_v61 }
 0x608   : > { %8274 = vmatpush3.bf16.msra.mxu0 %v8902_v45 }
 0x609   : > { %8275 = vmatprep.subr.bf16.mxu0 %v8903_v35  ;;  %v7335_v35 = vld [vmem:[%s12495_s6 + $0x10] sm:$0xff] }
 0x60c   : > { %8276 = vmatpush3.bf16.msra.mxu0 %v8904_v53  ;;  %v7339_v53 = vld [vmem:[%s12495_s6 + $0x30] sm:$0xff] }
 0x60d   : > { %8277 = vmatprep.subr.bf16.mxu0 %v8905_v44 }
 0x610   : > { %8278 = vmatpush3.bf16.msra.mxu0 %v8906_v43 }
 0x611   : > { %8279 = vmatprep.subr.bf16.mxu0 %v8907_v6  ;;  %v7336_v6 = vld [vmem:[%s12495_s6 + $0x18] sm:$0xff] }
 0x614   : > { %8280 = vmatpush3.bf16.msra.mxu0 %v8908_v32  ;;  %v7340_v32 = vld [vmem:[%s12495_s6 + $0x38] sm:$0xff] }
 0x637   : > { %v7109_v19 = vpop.f32.mrf.mxu0 }
 0x639   : > { %v7111_v13 = vpop.f32.mrf.mxu0 }
 0x63b   : > { %v7113_v8 = vpop.f32.mrf.mxu0 }
 0x63d   : > { %v7115_v3 = vpop.f32.mrf.mxu0 }
 0x657   : > { %v7195_v7 = vpop.f32.mrf.mxu0 }
 0x659   : > { %v7197_v40 = vpop.f32.mrf.mxu0 }
 0x65b   : > { %v7199_v38 = vpop.f32.mrf.mxu0 }
 0x65d   : > { %v7201_v14 = vpop.f32.mrf.mxu0 }
 0x664   : > { %v7152_v52 = vpop.f32.mrf.mxu1 }
 0x665   : > { %v7153_v11 = vadd.f32 %v7152_v52, %v7109_v19 }
 0x666   : > { %v7154_v47 = vpop.f32.mrf.mxu1 }
 0x667   : > { %v7155_v20 = vadd.f32 %v7154_v47, %v7111_v13  ;;  %v7196_v62 = vadd.f32 %v7195_v7, %v7153_v11 }
 0x668   : > { %v7156_v51 = vpop.f32.mrf.mxu1 }
 0x669   : > { %v7157_v5 = vadd.f32 %v7156_v51, %v7113_v8  ;;  %v7198_v22 = vadd.f32 %v7197_v40, %v7155_v20  ;;  %v7341_v36 = vmul.f32 %v7333_v39, %v7196_v62 }
 0x66a   : > { %v7158_v33 = vpop.f32.mrf.mxu1 }
 0x66b   : > { %v7200_v17 = vadd.f32 %v7199_v38, %v7157_v5  ;;  %v7159_v28 = vadd.f32 %v7158_v33, %v7115_v3  ;;  %v7342_v59 = vmul.f32 %v7334_v4, %v7198_v22  ;;  %v8909_v22 = vld [vmem:[%s12498_s9 + $0x38] ss:$0 sps:$4 sm:$0xff]  }
 0x66c   : > { %v7786_v4 = vsel %vm595_vm13, %v8909_v22, 0  ;;  %vm8992_vm13 = vmmov 0  }
 0x66d   : > { %v7345_v27 = vmul.f32 %v7337_v63, %v7200_v17  ;;  %v7202_v24 = vadd.f32 %v7201_v14, %v7159_v28  ;;  %v8991_v17 = vmov 0.0  }
 0x66e   : > { %8296 = vmatprep.subr.bf16.mxu1 %v8991_v17 }
 0x66f   : > { %v7349_v41 = vadd.f32 %v7345_v27, %v7341_v36  ;;  %v7346_v23 = vmul.f32 %v7338_v37, %v7202_v24  ;;  %v8910_v37 = vld [vmem:[%s12498_s9 + $0x30] sm:$0xff]  }
 0x671   : > { %v7350_v10 = vrot.slane %v7349_v41, 4  ;;  %v7356_v54 = vadd.f32 %v7346_v23, %v7342_v59  ;;  %v8911_v59 = vld [vmem:[%s12498_s9 + $0x28] sm:$0xff]  }
 0x673   : > { %v7351_v46 = vadd.f32 %v7350_v10, %v7349_v41  ;;  %v7357_v34 = vrot.slane %v7356_v54, 4  ;;  %v8912_v10 = vld [vmem:[%s12498_s9 + $0x20] sm:$0xff]  }
 0x675   : > { %v7352_v12 = vrot.slane %v7351_v46, 2  ;;  %v7358_v15 = vadd.f32 %v7357_v34, %v7356_v54  ;;  %v8913_v54 = vld [vmem:[%s12498_s9 + $0x18] sm:$0xff]   ;;  %v8915_v34 = vld [vmem:[%s12498_s9 + $0x8] sm:$0xff]  }
 0x677   : > { %v7359_v60 = vrot.slane %v7358_v15, 2  ;;  %v7353_v26 = vadd.f32 %v7352_v12, %v7351_v46  ;;  %v8914_v46 = vld [vmem:[%s12498_s9 + $0x10] sm:$0xff]   ;;  %v8916_v12 = vld [vmem:[%s12498_s9] sm:$0xff]  }
 0x679   : > { %v7360_v29 = vadd.f32 %v7359_v60, %v7358_v15  ;;  %v7354_v56 = vrot.slane %v7353_v26, 1 }
 0x67b   : > { %v7361_v50 = vrot.slane %v7360_v29, 1  ;;  %v7355_v18 = vadd.f32 %v7354_v56, %v7353_v26 }
 0x67d   : > { %v7362_v30 = vadd.f32 %v7361_v50, %v7360_v29  ;;  %v7377_v25 = vpack.c.bf16 %v7355_v18, %v7355_v18  ;;  %v7445_v50 = vld [vmem:[%s12497_s8] sm:$0x1] }
 0x67f   : > { %v7378_v21 = vpack.c.bf16 %v7362_v30, %v7362_v30 }
 0x681   : > { %7670 = vmatprep.mubr.bf16.mxu1 %v7378_v21 }
 0x682   : > { %7671 = vmatmul.mubr.bf16.vlgmr.msra.gmra.mxu1 %v7377_v25 }
 0x683   : > { %8297 = vmatpush3.bf16.msra.mxu1 %v7786_v4  ;;  %8312 = vmatprep.mubr.msk.bf16.mxu1 %vm8992_vm13, %v8991_v17 }
 0x684   : > { %8298 = vmatprep.subr.bf16.mxu1 %v8991_v17 }
 0x687   : > { %8299 = vmatpush3.bf16.msra.mxu1 %v8910_v37 }
 0x688   : > { %8300 = vmatprep.subr.bf16.mxu1 %v8991_v17 }
 0x68b   : > { %8301 = vmatpush3.bf16.msra.mxu1 %v8911_v59 }
 0x68c   : > { %8302 = vmatprep.subr.bf16.mxu1 %v8991_v17 }
 0x68f   : > { %8303 = vmatpush3.bf16.msra.mxu1 %v8912_v10 }
 0x690   : > { %8304 = vmatprep.subr.bf16.mxu1 %v8991_v17 }
 0x693   : > { %8305 = vmatpush3.bf16.msra.mxu1 %v8913_v54 }
 0x694   : > { %8306 = vmatprep.subr.bf16.mxu1 %v8991_v17 }
 0x697   : > { %v7238_v57 = vpop.f32.mrf.mxu0  ;;  %8307 = vmatpush3.bf16.msra.mxu1 %v8914_v46 }
 0x698   : > { %8308 = vmatprep.subr.bf16.mxu1 %v8991_v17 }
 0x699   : > { %v7240_v48 = vpop.f32.mrf.mxu0 }
 0x69b   : > { %v7242_v0 = vpop.f32.mrf.mxu0  ;;  %8309 = vmatpush3.bf16.msra.mxu1 %v8915_v34 }
 0x69c   : > { %8310 = vmatprep.subr.bf16.mxu1 %v8991_v17 }
 0x69d   : > { %v7244_v42 = vpop.f32.mrf.mxu0 }
 0x69f   : > { %8311 = vmatpush3.bf16.msra.mxu1 %v8916_v12 }
 0x6a4   : > { %v7281_v58 = vpop.f32.mrf.mxu1 }
 0x6a5   : > { %v7282_v49 = vadd.f32 %v7281_v58, %v7238_v57 }
 0x6a6   : > { %v7283_v9 = vpop.f32.mrf.mxu1 }
 0x6a7   : > { %v7284_v55 = vadd.f32 %v7283_v9, %v7240_v48 }
 0x6a8   : > { %v7285_v16 = vpop.f32.mrf.mxu1 }
 0x6a9   : > { %v7286_v61 = vadd.f32 %v7285_v16, %v7242_v0 }
 0x6aa   : > { %v7287_v1 = vpop.f32.mrf.mxu1 }
 0x6ab   : > { %v7288_v44 = vadd.f32 %v7287_v1, %v7244_v42  ;;  %v7735_v42 = vld [vmem:[%s12499_s10] sm:$0x1] }
 0x6b7   : > { %v7324_v2 = vpop.f32.mrf.mxu0 }
 0x6b8   : > { %v7325_v45 = vadd.f32 %v7324_v2, %v7282_v49 }
 0x6b9   : > { %v7326_v31 = vpop.f32.mrf.mxu0 }
 0x6ba   : > { %v7327_v13 = vadd.f32 %v7326_v31, %v7284_v55  ;;  %v7343_v3 = vmul.f32 %v7335_v35, %v7325_v45 }
 0x6bb   : > { %v7328_v19 = vpop.f32.mrf.mxu0 }
 0x6bc   : > { %v7329_v43 = vadd.f32 %v7328_v19, %v7286_v61  ;;  %v7344_v52 = vmul.f32 %v7336_v6, %v7327_v13  ;;  %v12921_v13 = vld [vmem:[#allocation10_spill] sm:$0xff] }
 0x6bd   : > { %v7330_v8 = vpop.f32.mrf.mxu0 }
 0x6be   : > { %v7347_v7 = vmul.f32 %v7339_v53, %v7329_v43  ;;  %v7331_v40 = vadd.f32 %v7330_v8, %v7288_v44  ;;  %v7842_v43 = vsub.s32 0, %v12921_v13 }
 0x6c0   : > { %v7363_v11 = vadd.f32 %v7347_v7, %v7343_v3  ;;  %v7348_v47 = vmul.f32 %v7340_v32, %v7331_v40 }
 0x6c2   : > { %v7364_v20 = vrot.slane %v7363_v11, 4  ;;  %v7370_v38 = vadd.f32 %v7348_v47, %v7344_v52 }
 0x6c4   : > { %v7365_v51 = vadd.f32 %v7364_v20, %v7363_v11  ;;  %v7371_v62 = vrot.slane %v7370_v38, 4 }
 0x6c6   : > { %v7366_v5 = vrot.slane %v7365_v51, 2  ;;  %v7372_v39 = vadd.f32 %v7371_v62, %v7370_v38 }
 0x6c8   : > { %v7367_v63 = vadd.f32 %v7366_v5, %v7365_v51  ;;  %v7373_v33 = vrot.slane %v7372_v39, 2 }
 0x6ca   : > { %v7374_v28 = vadd.f32 %v7373_v33, %v7372_v39  ;;  %v7368_v14 = vrot.slane %v7367_v63, 1 }
 0x6cc   : > { %v7375_v36 = vrot.slane %v7374_v28, 1  ;;  %v7369_v27 = vadd.f32 %v7368_v14, %v7367_v63 }
 0x6ce   : > { %v7376_v24 = vadd.f32 %v7375_v36, %v7374_v28  ;;  %v7379_v23 = vpack.c.bf16 %v7369_v27, %v7369_v27 }
 0x6d0   : > { %v7380_v41 = vpack.c.bf16 %v7376_v24, %v7376_v24 }
 0x6d2   : > { %7710 = vmatprep.mubr.bf16.mxu0 %v7380_v41 }
 0x6d3   : > { %7711 = vmatmul.mubr.bf16.vlgmr.msra.gmra.mxu0 %v7379_v23 }
 0x742   : > { %v8259_v15 = vpop.f32.mrf.mxu1 }
 0x744   : > { %v8260_v60 = vpop.f32.mrf.mxu1 }
 0x745   : > { %v8261_v26 = vadd.f32 %v8260_v60, %v8259_v15 }
 0x746   : > { %v8262_v29 = vpop.f32.mrf.mxu1 }
 0x747   : > { %v7673_v21 = vadd.f32 %v8261_v26, %v7445_v50 }
 0x748   : > { %v8263_v56 = vpop.f32.mrf.mxu1 }
 0x793   : > { %v8281_v18 = vpop.f32.mrf.mxu0 }
 0x795   : > { %v8282_v30 = vpop.f32.mrf.mxu0 }
 0x796   : > { %v8283_v25 = vadd.f32 %v8282_v30, %v8281_v18 }
 0x797   : > { %v8284_v57 = vpop.f32.mrf.mxu0 }
 0x798   : > { %v7713_v48 = vadd.f32 %v8283_v25, %v7673_v21 }
 0x799   : > { %v8285_v58 = vpop.f32.mrf.mxu0 }
 0x79a   : > { %v7718_v0 = vmax.f32 %v7713_v48, 0.0 }
 0x79c   : > { %v7719_v9 = vpack.c.bf16 %v7718_v0, %v7718_v0 }
 0x79e   : > { %8313 = vmatmul.mubr.msk.bf16.vlgmr.msra.gmra.mxu1 %vm4432_vm0, %v7719_v9 }
 0x85e   : > { %v7822_v16 = vpop.f32.mrf.mxu1 }
 0x85f   : > { %v7823_v2 = vadd.f32 %v7822_v16, %v7735_v42 }
 0x860   : > { %v8314_v49 = vpop.f32.mrf.mxu1 }
 0x861   : > { %v7829_v1 = vsel %vm12919_vm6, %v7823_v2, -inf }
 0x862   : > { %7830 = vmax.xlane.f32.xlu0 %v7829_v1  ;;  %v7825_v31 = vpop.f32.mrf.mxu1 }
 0x864   : > { %v8315_v55 = vpop.f32.mrf.mxu1 }
 0x8eb   : > { %v7831_v61 = vpop.xlane.xlu0 %7830 }
 0x8ec   : > { %v7832_v45 = vsub.f32 %v7823_v2, %v7831_v61 }
 0x8ee   : > { %v7833_v35 = vmul.f32 1.442695, %v7832_v45 }
 0x8f0   : > { %8917 = vpow2.f32 %v7833_v35 }
 0x8fd   : > { %v8918_v19 = vpop.eup %8917 }
 0x8fe   : > { %v7835_v53 = vsel %vm12920_vm2, %v8918_v19, 0.0 }
 0x8ff   : > { %7836 = vadd.xlane.f32.xlu1 %v7835_v53 }
 0x988   : > { %v7837_v44 = vpop.xlane.xlu1 %7836 }
 0x989   : > { %8919 = vrcp.f32 %v7837_v44 }
 0x996   : > { %v8920_v6 = vpop.eup %8919 }
 0x997   : > { %v7839_v8 = vmul.f32 %v8920_v6, %v8918_v19 }
 0x999   : > { %v7843_v32 = vrot.slane %v7839_v8, %v7842_v43 }
 0x99b   : > { %7844 = vst [vmem:[%s396_s20] sm:$0xff] %v7843_v32 }
 0x99c PF: > { %s22_s17 = sadd.s32 1, %s8960_s17  }
 0x99d   : > { %p19_p1 = scmp.ge.s32.totalorder %s22_s17, 4  }
 0x99f   :  { %21 = sbr.rel (!%p19_p1) target bundleno = 1 (0x1), region = 99 }
 0x9a4   :  { %7864 = vsyncpa [#allocation8], 1 }
 0x9a5   :  { %7866 = vsyncpa [#allocation8 + $0x1], 1 }

</bundles_post_ra>
